<compile_context>
chip_gen: v5e
topology: v5e:2x2
jax: 0.10.0
libtpu: 0.0.40
codegen_flags: <defaults>
</compile_context>

<pallas_src>
import functools

import jax
import jax.numpy as jnp
from jax.experimental import pallas as pl
from jax.experimental.pallas import tpu as pltpu


# ---------------------------------------------------------------------------
# Pallas kernels: tiled (X @ W) + bias [+ residual] [+ ReLU], f32 accumulation
# ---------------------------------------------------------------------------
def _mm_bias_kernel(x_ref, w_ref, b_ref, o_ref, acc_ref, *, relu):
    @pl.when(pl.program_id(2) == 0)
    def _():
        acc_ref[...] = jnp.zeros_like(acc_ref)

    acc_ref[...] += jnp.dot(x_ref[...], w_ref[...],
                            preferred_element_type=jnp.float32)

    @pl.when(pl.program_id(2) == pl.num_programs(2) - 1)
    def _():
        y = acc_ref[...] + b_ref[...]
        if relu:
            y = jnp.maximum(y, 0.0)
        o_ref[...] = y.astype(o_ref.dtype)


def _mm_bias_res_kernel(x_ref, w_ref, b_ref, r_ref, o_ref, acc_ref, *, relu):
    @pl.when(pl.program_id(2) == 0)
    def _():
        acc_ref[...] = jnp.zeros_like(acc_ref)

    acc_ref[...] += jnp.dot(x_ref[...], w_ref[...],
                            preferred_element_type=jnp.float32)

    @pl.when(pl.program_id(2) == pl.num_programs(2) - 1)
    def _():
        y = acc_ref[...] + b_ref[...] + r_ref[...].astype(jnp.float32)
        if relu:
            y = jnp.maximum(y, 0.0)
        o_ref[...] = y.astype(o_ref.dtype)


def _round_up(x, m):
    return ((x + m - 1) // m) * m


def _pick_k_tile(kp):
    # kp is a multiple of 128; pick the largest candidate tile that divides it
    # so no K padding beyond the 128-alignment is wasted on the MXU.
    for c in (512, 384, 256, 128):
        if kp % c == 0:
            return c
    return 128


def fused_matmul(x, w, bias, residual=None, relu=True):
    """Y = act((x @ w) + bias [+ residual]) via one tiled, pipelined Pallas call.

    x:(M,K) f32, w:(K,N) f32 (BN already folded in), bias:(N,) f32,
    residual: optional (M,N) f32. Returns (M,N) f32.
    """
    M, K = x.shape
    Kw, N = w.shape
    assert K == Kw

    # --- tiling: last dims lane/sublane aligned (bf16 operands -> 16 sublanes)
    Mp = _round_up(M, 16)
    tm = min(256, Mp)
    Mp = _round_up(Mp, tm)
    Np = _round_up(N, 128)
    tn = min(256, Np)
    Np = _round_up(Np, tn)
    Kp = _round_up(K, 128)
    tk = _pick_k_tile(Kp)

    # Zero padding is exact for the matmul; padded rows/cols are sliced off.
    xp = jnp.pad(x, ((0, Mp - M), (0, Kp - K))).astype(jnp.bfloat16)
    wp = jnp.pad(w, ((0, Kp - K), (0, Np - N))).astype(jnp.bfloat16)
    bp = jnp.pad(bias.reshape(1, N), ((0, 0), (0, Np - N))).astype(jnp.float32)

    grid = (Mp // tm, Np // tn, Kp // tk)

    x_spec = pl.BlockSpec((tm, tk), lambda i, j, k: (i, k))
    w_spec = pl.BlockSpec((tk, tn), lambda i, j, k: (k, j))  # ignores i: resident over M
    b_spec = pl.BlockSpec((1, tn), lambda i, j, k: (0, j))
    o_spec = pl.BlockSpec((tm, tn), lambda i, j, k: (i, j))

    if residual is None:
        kernel = functools.partial(_mm_bias_kernel, relu=relu)
        in_specs = [x_spec, w_spec, b_spec]
        args = (xp, wp, bp)
    else:
        rp = jnp.pad(residual, ((0, Mp - M), (0, Np - N))).astype(jnp.bfloat16)
        r_spec = pl.BlockSpec((tm, tn), lambda i, j, k: (i, j))  # tiled like output
        kernel = functools.partial(_mm_bias_res_kernel, relu=relu)
        in_specs = [x_spec, w_spec, b_spec, r_spec]
        args = (xp, wp, bp, rp)

    out = pl.pallas_call(
        kernel,
        out_shape=jax.ShapeDtypeStruct((Mp, Np), jnp.float32),
        grid_spec=pltpu.PrefetchScalarGridSpec(
            num_scalar_prefetch=0,
            grid=grid,
            in_specs=in_specs,
            out_specs=o_spec,
            scratch_shapes=[pltpu.VMEM((tm, tn), jnp.float32)],
        ),
        compiler_params=pltpu.CompilerParams(
            dimension_semantics=("parallel", "parallel", "arbitrary"),
            vmem_limit_bytes=48 * 1024 * 1024,  # fits v7x's 64 MiB with headroom
        ),
    )(*args)
    return out[:M, :N]


# ---------------------------------------------------------------------------
# Glue: im2col patch extraction (plain JAX, static strides), parameter builder
# ---------------------------------------------------------------------------
def im2col(x, kh, kw, stride, pad):
    """x: (N, H, W, C) -> (N*Ho*Wo, kh*kw*C), plus output dims. stride is a
    Python int (static), so slicing is legal under jit."""
    xp = jnp.pad(x, ((0, 0), (pad, pad), (pad, pad), (0, 0)))
    n, hp, wp, c = xp.shape
    ho = (hp - kh) // stride + 1
    wo = (wp - kw) // stride + 1
    cols = []
    for dy in range(kh):
        for dx in range(kw):
            cols.append(xp[:, dy:dy + stride * (ho - 1) + 1:stride,
                              dx:dx + stride * (wo - 1) + 1:stride, :])
    patches = jnp.concatenate(cols, axis=-1)  # (N, Ho, Wo, kh*kw*C)
    return patches.reshape(n * ho * wo, kh * kw * c), (n, ho, wo)


def conv_params(key, kh, kw, cin, cout):
    # kaiming_normal_(mode='fan_in', nonlinearity='relu'): std = sqrt(2/fan_in)
    std = (2.0 / (cin * kh * kw)) ** 0.5
    w = jax.random.normal(key, (kh, kw, cin, cout), jnp.float32) * std
    return w.reshape(kh * kw * cin, cout)  # feature order matches im2col


def fold_bn_into_weight(w, cout, eps=1e-5):
    """Inference-mode BN with fresh stats (mean=0, var=1, gamma=1, beta=0)
    folded into weight columns; returns (w_folded, bias)."""
    gamma = jnp.ones((cout,), jnp.float32)
    beta = jnp.zeros((cout,), jnp.float32)
    mean = jnp.zeros((cout,), jnp.float32)
    var = jnp.ones((cout,), jnp.float32)
    scale = gamma / jnp.sqrt(var + eps)
    bias = beta - mean * scale
    return w * scale[None, :], bias


def make_resnet_params(key, num_blocks=(1, 1, 1, 1), num_classes=10,
                       first_kernel_size=3):
    """Returns (params_pytree_of_arrays, static_cfg). static_cfg is a hashable
    tuple of (stride, has_shortcut) per BasicBlock."""
    keys = iter(jax.random.split(key, 128))
    params = {}
    w0 = conv_params(next(keys), first_kernel_size, first_kernel_size, 3, 64)
    params['conv1_w'], params['conv1_b'] = fold_bn_into_weight(w0, 64)
    in_planes = 64
    blocks, cfg = [], []
    plan = [(64, num_blocks[0], 1), (128, num_blocks[1], 2),
            (256, num_blocks[2], 2), (512, num_blocks[3], 2)]
    for planes, nb, stride in plan:
        for s in [stride] + [1] * (nb - 1):
            blk = {}
            w1 = conv_params(next(keys), 3, 3, in_planes, planes)
            blk['w1'], blk['b1'] = fold_bn_into_weight(w1, planes)
            w2 = conv_params(next(keys), 3, 3, planes, planes)
            blk['w2'], blk['b2'] = fold_bn_into_weight(w2, planes)
            has_sc = (s != 1 or in_planes != planes)
            if has_sc:
                wsc = conv_params(next(keys), 1, 1, in_planes, planes)
                blk['w_sc'], blk['b_sc'] = fold_bn_into_weight(wsc, planes)
            blocks.append(blk)
            cfg.append((s, has_sc))
            in_planes = planes
    params['blocks'] = blocks
    # nn.Linear(512, num_classes): weight ~ N(0, 0.01), bias = 0
    params['lin_w'] = jax.random.normal(next(keys), (512, num_classes),
                                        jnp.float32) * 0.01
    params['lin_b'] = jnp.zeros((num_classes,), jnp.float32)
    return params, tuple(cfg)


# ---------------------------------------------------------------------------
# Forward pass
# ---------------------------------------------------------------------------
def basic_block(x, blk, stride, has_shortcut):
    """BasicBlock: relu(bn2(conv2(relu(bn1(conv1(x))))) + shortcut(x))."""
    n, h, w, cin = x.shape
    # conv1 + bn1 + relu (fused)
    cols, (nb, ho, wo) = im2col(x, 3, 3, stride, 1)
    out1 = fused_matmul(cols, blk['w1'], blk['b1'], relu=True)
    cout = blk['w1'].shape[1]
    out1 = out1.reshape(nb, ho, wo, cout)
    # shortcut
    if has_shortcut:
        cols_sc, _ = im2col(x, 1, 1, stride, 0)
        sc = fused_matmul(cols_sc, blk['w_sc'], blk['b_sc'], relu=False)
    else:
        sc = x.reshape(n * h * w, cin)
    # conv2 + bn2 + residual add + relu (single fused kernel)
    cols2, _ = im2col(out1, 3, 3, 1, 1)
    out2 = fused_matmul(cols2, blk['w2'], blk['b2'], residual=sc, relu=True)
    return out2.reshape(nb, ho, wo, cout)


def resnet_forward(x_nchw, params, cfg):
    x = jnp.transpose(x_nchw, (0, 2, 3, 1)).astype(jnp.float32)  # NCHW -> NHWC
    # conv1_initial + bn1_initial + relu
    cols, (n, h, w) = im2col(x, 3, 3, 1, 1)
    out = fused_matmul(cols, params['conv1_w'], params['conv1_b'], relu=True)
    out = out.reshape(n, h, w, -1)
    # layer1..layer4
    for blk, (stride, has_sc) in zip(params['blocks'], cfg):
        out = basic_block(out, blk, stride, has_sc)
    # avg_pool2d over the full remaining spatial extent -> flatten
    out = jnp.mean(out, axis=(1, 2))  # (N, 512)
    # final linear (same fused kernel; N padded to 128 inside for lane-density)
    logits = fused_matmul(out, params['lin_w'], params['lin_b'], relu=False)
    return logits


# static_argnums=2: block strides / shortcut flags stay Python-level ints
resnet_forward_jit = jax.jit(resnet_forward, static_argnums=2)


if __name__ == "__main__":
    key = jax.random.PRNGKey(0)
    kp, kx = jax.random.split(key)
    params, cfg = make_resnet_params(kp, num_blocks=(1, 1, 1, 1), num_classes=10)
    x = jax.random.normal(kx, (2, 3, 16, 16), jnp.float32)  # NCHW like PyTorch
    out = resnet_forward_jit(x, params, cfg)
    jax.block_until_ready(out)
    assert out.shape == (2, 10), out.shape
    assert bool(jnp.all(jnp.isfinite(out)))
    print("KERNEL_OK")
</pallas_src>

<mosaic_0001>
module attributes {stable_mosaic.version = 11 : i64} {
  func.func @_mm_bias_kernel(%arg0: i32, %arg1: i32, %arg2: i32, %arg3: memref<256x128xbf16, #tpu.memory_space<vmem>>, %arg4: memref<128x128xbf16, #tpu.memory_space<vmem>>, %arg5: memref<1x128xf32, #tpu.memory_space<vmem>>, %arg6: memref<256x128xf32, #tpu.memory_space<vmem>>, %arg7: memref<256x128xf32, #tpu.memory_space<vmem>>) attributes {dimension_semantics = [#tpu.dimension_semantics<parallel>, #tpu.dimension_semantics<parallel>, #tpu.dimension_semantics<arbitrary>], iteration_bounds = array<i64: 2, 1, 1>, scalar_prefetch = 0 : i64, scratch_operands = 1 : i64, tpu.core_type = #tpu.core_type<tc>, window_params = [{transform_indices = @transform_0, window_bounds = array<i64: 256, 128>}, {transform_indices = @transform_1, window_bounds = array<i64: 128, 128>}, {transform_indices = @transform_2, window_bounds = array<i64: 1, 128>}, {transform_indices = @transform_3, window_bounds = array<i64: 256, 128>}]} {
    %c0_i32 = arith.constant 0 : i32
    %0 = arith.cmpi eq, %arg2, %c0_i32 : i32
    %1 = arith.extui %0 : i1 to i32
    %c0_i32_0 = arith.constant 0 : i32
    %2 = arith.cmpi ne, %1, %c0_i32_0 : i32
    scf.if %2 {
      %cst_10 = arith.constant 0.000000e+00 : f32
      %12 = vector.broadcast %cst_10 : f32 to vector<256x128xf32>
      %c0_11 = arith.constant 0 : index
      %c0_12 = arith.constant 0 : index
      %13 = vector.load %arg7[%c0_11, %c0_12] : memref<256x128xf32, #tpu.memory_space<vmem>>, vector<256x128xf32>
      tpu.vector_store %arg7[%c0_11, %c0_12], %12 {strides = array<i32>} : memref<256x128xf32, #tpu.memory_space<vmem>>, vector<256x128xf32>,
    } else {
    }
    %c0 = arith.constant 0 : index
    %c0_1 = arith.constant 0 : index
    %3 = vector.load %arg7[%c0, %c0_1] : memref<256x128xf32, #tpu.memory_space<vmem>>, vector<256x128xf32>
    %c0_2 = arith.constant 0 : index
    %c0_3 = arith.constant 0 : index
    %4 = vector.load %arg3[%c0_2, %c0_3] : memref<256x128xbf16, #tpu.memory_space<vmem>>, vector<256x128xbf16>
    %c0_4 = arith.constant 0 : index
    %c0_5 = arith.constant 0 : index
    %5 = vector.load %arg4[%c0_4, %c0_5] : memref<128x128xbf16, #tpu.memory_space<vmem>>, vector<128x128xbf16>
    %cst = arith.constant dense<0.000000e+00> : vector<256x128xf32>
    %6 = tpu.matmul %4, %5, %cst {dimension_numbers = #tpu.dot_dimension_numbers<[1], [0], [0], [1], [0, 0, 1, 1], [], []>} : vector<256x128xbf16>, vector<128x128xbf16>, vector<256x128xf32> -> vector<256x128xf32>
    %7 = arith.addf %3, %6 : vector<256x128xf32>
    %c0_6 = arith.constant 0 : index
    %c0_7 = arith.constant 0 : index
    %8 = vector.load %arg7[%c0_6, %c0_7] : memref<256x128xf32, #tpu.memory_space<vmem>>, vector<256x128xf32>
    tpu.vector_store %arg7[%c0_6, %c0_7], %7 {strides = array<i32>} : memref<256x128xf32, #tpu.memory_space<vmem>>, vector<256x128xf32>,
    %c0_i32_8 = arith.constant 0 : i32
    %9 = arith.cmpi eq, %arg2, %c0_i32_8 : i32
    %10 = arith.extui %9 : i1 to i32
    %c0_i32_9 = arith.constant 0 : i32
    %11 = arith.cmpi ne, %10, %c0_i32_9 : i32
    scf.if %11 {
      %c0_10 = arith.constant 0 : index
      %c0_11 = arith.constant 0 : index
      %12 = vector.load %arg7[%c0_10, %c0_11] : memref<256x128xf32, #tpu.memory_space<vmem>>, vector<256x128xf32>
      %c0_12 = arith.constant 0 : index
      %c0_13 = arith.constant 0 : index
      %13 = vector.load %arg5[%c0_12, %c0_13] : memref<1x128xf32, #tpu.memory_space<vmem>>, vector<1x128xf32>
      %14 = vector.broadcast %13 : vector<1x128xf32> to vector<256x128xf32>
      %15 = arith.addf %12, %14 : vector<256x128xf32>
      %cst_14 = arith.constant 0.000000e+00 : f32
      %16 = vector.broadcast %cst_14 : f32 to vector<256x128xf32>
      %17 = arith.maximumf %15, %16 : vector<256x128xf32>
      %c0_15 = arith.constant 0 : index
      %c0_16 = arith.constant 0 : index
      %18 = vector.load %arg6[%c0_15, %c0_16] : memref<256x128xf32, #tpu.memory_space<vmem>>, vector<256x128xf32>
      tpu.vector_store %arg6[%c0_15, %c0_16], %17 {strides = array<i32>} : memref<256x128xf32, #tpu.memory_space<vmem>>, vector<256x128xf32>,
    } else {
    }
    return
  }
  func.func @transform_0(%arg0: i32, %arg1: i32, %arg2: i32) -> (i32, i32) {
    %c0_i32 = arith.constant 0 : i32
    return %arg0, %arg2 : i32, i32
  }
  func.func @transform_1(%arg0: i32, %arg1: i32, %arg2: i32) -> (i32, i32) {
    %c0_i32 = arith.constant 0 : i32
    return %arg2, %arg1 : i32, i32
  }
  func.func @transform_2(%arg0: i32, %arg1: i32, %arg2: i32) -> (i32, i32) {
    %c0_i32 = arith.constant 0 : i32
    %c0_i32_0 = arith.constant 0 : i32
    return %c0_i32, %arg1 : i32, i32
  }
  func.func @transform_3(%arg0: i32, %arg1: i32, %arg2: i32) -> (i32, i32) {
    %c0_i32 = arith.constant 0 : i32
    return %arg0, %arg1 : i32, i32
  }
}

module attributes {stable_mosaic.version = 11 : i64} {
  func.func @_mm_bias_kernel(%arg0: i32, %arg1: i32, %arg2: i32, %arg3: memref<256x128xbf16, #tpu.memory_space<vmem>>, %arg4: memref<128x128xbf16, #tpu.memory_space<vmem>>, %arg5: memref<1x128xf32, #tpu.memory_space<vmem>>, %arg6: memref<256x128xf32, #tpu.memory_space<vmem>>, %arg7: memref<256x128xf32, #tpu.memory_space<vmem>>) attributes {dimension_semantics = [#tpu.dimension_semantics<parallel>, #tpu.dimension_semantics<parallel>, #tpu.dimension_semantics<arbitrary>], iteration_bounds = array<i64: 2, 1, 5>, scalar_prefetch = 0 : i64, scratch_operands = 1 : i64, tpu.core_type = #tpu.core_type<tc>, window_params = [{transform_indices = @transform_0, window_bounds = array<i64: 256, 128>}, {transform_indices = @transform_1, window_bounds = array<i64: 128, 128>}, {transform_indices = @transform_2, window_bounds = array<i64: 1, 128>}, {transform_indices = @transform_3, window_bounds = array<i64: 256, 128>}]} {
    %c0_i32 = arith.constant 0 : i32
    %0 = arith.cmpi eq, %arg2, %c0_i32 : i32
    %1 = arith.extui %0 : i1 to i32
    %c0_i32_0 = arith.constant 0 : i32
    %2 = arith.cmpi ne, %1, %c0_i32_0 : i32
    scf.if %2 {
      %cst_9 = arith.constant 0.000000e+00 : f32
      %12 = vector.broadcast %cst_9 : f32 to vector<256x128xf32>
      %c0_10 = arith.constant 0 : index
      %c0_11 = arith.constant 0 : index
      %13 = vector.load %arg7[%c0_10, %c0_11] : memref<256x128xf32, #tpu.memory_space<vmem>>, vector<256x128xf32>
      tpu.vector_store %arg7[%c0_10, %c0_11], %12 {strides = array<i32>} : memref<256x128xf32, #tpu.memory_space<vmem>>, vector<256x128xf32>,
    } else {
    }
    %c0 = arith.constant 0 : index
    %c0_1 = arith.constant 0 : index
    %3 = vector.load %arg7[%c0, %c0_1] : memref<256x128xf32, #tpu.memory_space<vmem>>, vector<256x128xf32>
    %c0_2 = arith.constant 0 : index
    %c0_3 = arith.constant 0 : index
    %4 = vector.load %arg3[%c0_2, %c0_3] : memref<256x128xbf16, #tpu.memory_space<vmem>>, vector<256x128xbf16>
    %c0_4 = arith.constant 0 : index
    %c0_5 = arith.constant 0 : index
    %5 = vector.load %arg4[%c0_4, %c0_5] : memref<128x128xbf16, #tpu.memory_space<vmem>>, vector<128x128xbf16>
    %cst = arith.constant dense<0.000000e+00> : vector<256x128xf32>
    %6 = tpu.matmul %4, %5, %cst {dimension_numbers = #tpu.dot_dimension_numbers<[1], [0], [0], [1], [0, 0, 1, 1], [], []>} : vector<256x128xbf16>, vector<128x128xbf16>, vector<256x128xf32> -> vector<256x128xf32>
    %7 = arith.addf %3, %6 : vector<256x128xf32>
    %c0_6 = arith.constant 0 : index
    %c0_7 = arith.constant 0 : index
    %8 = vector.load %arg7[%c0_6, %c0_7] : memref<256x128xf32, #tpu.memory_space<vmem>>, vector<256x128xf32>
    tpu.vector_store %arg7[%c0_6, %c0_7], %7 {strides = array<i32>} : memref<256x128xf32, #tpu.memory_space<vmem>>, vector<256x128xf32>,
    %c4_i32 = arith.constant 4 : i32
    %9 = arith.cmpi eq, %arg2, %c4_i32 : i32
    %10 = arith.extui %9 : i1 to i32
    %c0_i32_8 = arith.constant 0 : i32
    %11 = arith.cmpi ne, %10, %c0_i32_8 : i32
    scf.if %11 {
      %c0_9 = arith.constant 0 : index
      %c0_10 = arith.constant 0 : index
      %12 = vector.load %arg7[%c0_9, %c0_10] : memref<256x128xf32, #tpu.memory_space<vmem>>, vector<256x128xf32>
      %c0_11 = arith.constant 0 : index
      %c0_12 = arith.constant 0 : index
      %13 = vector.load %arg5[%c0_11, %c0_12] : memref<1x128xf32, #tpu.memory_space<vmem>>, vector<1x128xf32>
      %14 = vector.broadcast %13 : vector<1x128xf32> to vector<256x128xf32>
      %15 = arith.addf %12, %14 : vector<256x128xf32>
      %cst_13 = arith.constant 0.000000e+00 : f32
      %16 = vector.broadcast %cst_13 : f32 to vector<256x128xf32>
      %17 = arith.maximumf %15, %16 : vector<256x128xf32>
      %c0_14 = arith.constant 0 : index
      %c0_15 = arith.constant 0 : index
      %18 = vector.load %arg6[%c0_14, %c0_15] : memref<256x128xf32, #tpu.memory_space<vmem>>, vector<256x128xf32>
      tpu.vector_store %arg6[%c0_14, %c0_15], %17 {strides = array<i32>} : memref<256x128xf32, #tpu.memory_space<vmem>>, vector<256x128xf32>,
    } else {
    }
    return
  }
  func.func @transform_0(%arg0: i32, %arg1: i32, %arg2: i32) -> (i32, i32) {
    %c0_i32 = arith.constant 0 : i32
    return %arg0, %arg2 : i32, i32
  }
  func.func @transform_1(%arg0: i32, %arg1: i32, %arg2: i32) -> (i32, i32) {
    %c0_i32 = arith.constant 0 : i32
    return %arg2, %arg1 : i32, i32
  }
  func.func @transform_2(%arg0: i32, %arg1: i32, %arg2: i32) -> (i32, i32) {
    %c0_i32 = arith.constant 0 : i32
    %c0_i32_0 = arith.constant 0 : i32
    return %c0_i32, %arg1 : i32, i32
  }
  func.func @transform_3(%arg0: i32, %arg1: i32, %arg2: i32) -> (i32, i32) {
    %c0_i32 = arith.constant 0 : i32
    return %arg0, %arg1 : i32, i32
  }
}

module attributes {stable_mosaic.version = 11 : i64} {
  func.func @_mm_bias_res_kernel(%arg0: i32, %arg1: i32, %arg2: i32, %arg3: memref<256x128xbf16, #tpu.memory_space<vmem>>, %arg4: memref<128x128xbf16, #tpu.memory_space<vmem>>, %arg5: memref<1x128xf32, #tpu.memory_space<vmem>>, %arg6: memref<256x128xbf16, #tpu.memory_space<vmem>>, %arg7: memref<256x128xf32, #tpu.memory_space<vmem>>, %arg8: memref<256x128xf32, #tpu.memory_space<vmem>>) attributes {dimension_semantics = [#tpu.dimension_semantics<parallel>, #tpu.dimension_semantics<parallel>, #tpu.dimension_semantics<arbitrary>], iteration_bounds = array<i64: 2, 1, 5>, scalar_prefetch = 0 : i64, scratch_operands = 1 : i64, tpu.core_type = #tpu.core_type<tc>, window_params = [{transform_indices = @transform_0, window_bounds = array<i64: 256, 128>}, {transform_indices = @transform_1, window_bounds = array<i64: 128, 128>}, {transform_indices = @transform_2, window_bounds = array<i64: 1, 128>}, {transform_indices = @transform_3, window_bounds = array<i64: 256, 128>}, {transform_indices = @transform_4, window_bounds = array<i64: 256, 128>}]} {
    %c0_i32 = arith.constant 0 : i32
    %0 = arith.cmpi eq, %arg2, %c0_i32 : i32
    %1 = arith.extui %0 : i1 to i32
    %c0_i32_0 = arith.constant 0 : i32
    %2 = arith.cmpi ne, %1, %c0_i32_0 : i32
    scf.if %2 {
      %cst_9 = arith.constant 0.000000e+00 : f32
      %12 = vector.broadcast %cst_9 : f32 to vector<256x128xf32>
      %c0_10 = arith.constant 0 : index
      %c0_11 = arith.constant 0 : index
      %13 = vector.load %arg8[%c0_10, %c0_11] : memref<256x128xf32, #tpu.memory_space<vmem>>, vector<256x128xf32>
      tpu.vector_store %arg8[%c0_10, %c0_11], %12 {strides = array<i32>} : memref<256x128xf32, #tpu.memory_space<vmem>>, vector<256x128xf32>,
    } else {
    }
    %c0 = arith.constant 0 : index
    %c0_1 = arith.constant 0 : index
    %3 = vector.load %arg8[%c0, %c0_1] : memref<256x128xf32, #tpu.memory_space<vmem>>, vector<256x128xf32>
    %c0_2 = arith.constant 0 : index
    %c0_3 = arith.constant 0 : index
    %4 = vector.load %arg3[%c0_2, %c0_3] : memref<256x128xbf16, #tpu.memory_space<vmem>>, vector<256x128xbf16>
    %c0_4 = arith.constant 0 : index
    %c0_5 = arith.constant 0 : index
    %5 = vector.load %arg4[%c0_4, %c0_5] : memref<128x128xbf16, #tpu.memory_space<vmem>>, vector<128x128xbf16>
    %cst = arith.constant dense<0.000000e+00> : vector<256x128xf32>
    %6 = tpu.matmul %4, %5, %cst {dimension_numbers = #tpu.dot_dimension_numbers<[1], [0], [0], [1], [0, 0, 1, 1], [], []>} : vector<256x128xbf16>, vector<128x128xbf16>, vector<256x128xf32> -> vector<256x128xf32>
    %7 = arith.addf %3, %6 : vector<256x128xf32>
    %c0_6 = arith.constant 0 : index
    %c0_7 = arith.constant 0 : index
    %8 = vector.load %arg8[%c0_6, %c0_7] : memref<256x128xf32, #tpu.memory_space<vmem>>, vector<256x128xf32>
    tpu.vector_store %arg8[%c0_6, %c0_7], %7 {strides = array<i32>} : memref<256x128xf32, #tpu.memory_space<vmem>>, vector<256x128xf32>,
    %c4_i32 = arith.constant 4 : i32
    %9 = arith.cmpi eq, %arg2, %c4_i32 : i32
    %10 = arith.extui %9 : i1 to i32
    %c0_i32_8 = arith.constant 0 : i32
    %11 = arith.cmpi ne, %10, %c0_i32_8 : i32
    scf.if %11 {
      %c0_9 = arith.constant 0 : index
      %c0_10 = arith.constant 0 : index
      %12 = vector.load %arg8[%c0_9, %c0_10] : memref<256x128xf32, #tpu.memory_space<vmem>>, vector<256x128xf32>
      %c0_11 = arith.constant 0 : index
      %c0_12 = arith.constant 0 : index
      %13 = vector.load %arg5[%c0_11, %c0_12] : memref<1x128xf32, #tpu.memory_space<vmem>>, vector<1x128xf32>
      %14 = vector.broadcast %13 : vector<1x128xf32> to vector<256x128xf32>
      %15 = arith.addf %12, %14 : vector<256x128xf32>
      %c0_13 = arith.constant 0 : index
      %c0_14 = arith.constant 0 : index
      %16 = vector.load %arg6[%c0_13, %c0_14] : memref<256x128xbf16, #tpu.memory_space<vmem>>, vector<256x128xbf16>
      %17 = arith.extf %16 : vector<256x128xbf16> to vector<256x128xf32>
      %18 = arith.addf %15, %17 : vector<256x128xf32>
      %cst_15 = arith.constant 0.000000e+00 : f32
      %19 = vector.broadcast %cst_15 : f32 to vector<256x128xf32>
      %20 = arith.maximumf %18, %19 : vector<256x128xf32>
      %c0_16 = arith.constant 0 : index
      %c0_17 = arith.constant 0 : index
      %21 = vector.load %arg7[%c0_16, %c0_17] : memref<256x128xf32, #tpu.memory_space<vmem>>, vector<256x128xf32>
      tpu.vector_store %arg7[%c0_16, %c0_17], %20 {strides = array<i32>} : memref<256x128xf32, #tpu.memory_space<vmem>>, vector<256x128xf32>,
    } else {
    }
    return
  }
  func.func @transform_0(%arg0: i32, %arg1: i32, %arg2: i32) -> (i32, i32) {
    %c0_i32 = arith.constant 0 : i32
    return %arg0, %arg2 : i32, i32
  }
  func.func @transform_1(%arg0: i32, %arg1: i32, %arg2: i32) -> (i32, i32) {
    %c0_i32 = arith.constant 0 : i32
    return %arg2, %arg1 : i32, i32
  }
  func.func @transform_2(%arg0: i32, %arg1: i32, %arg2: i32) -> (i32, i32) {
    %c0_i32 = arith.constant 0 : i32
    %c0_i32_0 = arith.constant 0 : i32
    return %c0_i32, %arg1 : i32, i32
  }
  func.func @transform_3(%arg0: i32, %arg1: i32, %arg2: i32) -> (i32, i32) {
    %c0_i32 = arith.constant 0 : i32
    return %arg0, %arg1 : i32, i32
  }
  func.func @transform_4(%arg0: i32, %arg1: i32, %arg2: i32) -> (i32, i32) {
    %c0_i32 = arith.constant 0 : i32
    return %arg0, %arg1 : i32, i32
  }
}

module attributes {stable_mosaic.version = 11 : i64} {
  func.func @_mm_bias_kernel(%arg0: i32, %arg1: i32, %arg2: i32, %arg3: memref<128x128xbf16, #tpu.memory_space<vmem>>, %arg4: memref<128x128xbf16, #tpu.memory_space<vmem>>, %arg5: memref<1x128xf32, #tpu.memory_space<vmem>>, %arg6: memref<128x128xf32, #tpu.memory_space<vmem>>, %arg7: memref<128x128xf32, #tpu.memory_space<vmem>>) attributes {dimension_semantics = [#tpu.dimension_semantics<parallel>, #tpu.dimension_semantics<parallel>, #tpu.dimension_semantics<arbitrary>], iteration_bounds = array<i64: 1, 1, 5>, scalar_prefetch = 0 : i64, scratch_operands = 1 : i64, tpu.core_type = #tpu.core_type<tc>, window_params = [{transform_indices = @transform_0, window_bounds = array<i64: 128, 128>}, {transform_indices = @transform_1, window_bounds = array<i64: 128, 128>}, {transform_indices = @transform_2, window_bounds = array<i64: 1, 128>}, {transform_indices = @transform_3, window_bounds = array<i64: 128, 128>}]} {
    %c0_i32 = arith.constant 0 : i32
    %0 = arith.cmpi eq, %arg2, %c0_i32 : i32
    %1 = arith.extui %0 : i1 to i32
    %c0_i32_0 = arith.constant 0 : i32
    %2 = arith.cmpi ne, %1, %c0_i32_0 : i32
    scf.if %2 {
      %cst_9 = arith.constant 0.000000e+00 : f32
      %12 = vector.broadcast %cst_9 : f32 to vector<128x128xf32>
      %c0_10 = arith.constant 0 : index
      %c0_11 = arith.constant 0 : index
      %13 = vector.load %arg7[%c0_10, %c0_11] : memref<128x128xf32, #tpu.memory_space<vmem>>, vector<128x128xf32>
      tpu.vector_store %arg7[%c0_10, %c0_11], %12 {strides = array<i32>} : memref<128x128xf32, #tpu.memory_space<vmem>>, vector<128x128xf32>,
    } else {
    }
    %c0 = arith.constant 0 : index
    %c0_1 = arith.constant 0 : index
    %3 = vector.load %arg7[%c0, %c0_1] : memref<128x128xf32, #tpu.memory_space<vmem>>, vector<128x128xf32>
    %c0_2 = arith.constant 0 : index
    %c0_3 = arith.constant 0 : index
    %4 = vector.load %arg3[%c0_2, %c0_3] : memref<128x128xbf16, #tpu.memory_space<vmem>>, vector<128x128xbf16>
    %c0_4 = arith.constant 0 : index
    %c0_5 = arith.constant 0 : index
    %5 = vector.load %arg4[%c0_4, %c0_5] : memref<128x128xbf16, #tpu.memory_space<vmem>>, vector<128x128xbf16>
    %cst = arith.constant dense<0.000000e+00> : vector<128x128xf32>
    %6 = tpu.matmul %4, %5, %cst {dimension_numbers = #tpu.dot_dimension_numbers<[1], [0], [0], [1], [0, 0, 1, 1], [], []>} : vector<128x128xbf16>, vector<128x128xbf16>, vector<128x128xf32> -> vector<128x128xf32>
    %7 = arith.addf %3, %6 : vector<128x128xf32>
    %c0_6 = arith.constant 0 : index
    %c0_7 = arith.constant 0 : index
    %8 = vector.load %arg7[%c0_6, %c0_7] : memref<128x128xf32, #tpu.memory_space<vmem>>, vector<128x128xf32>
    tpu.vector_store %arg7[%c0_6, %c0_7], %7 {strides = array<i32>} : memref<128x128xf32, #tpu.memory_space<vmem>>, vector<128x128xf32>,
    %c4_i32 = arith.constant 4 : i32
    %9 = arith.cmpi eq, %arg2, %c4_i32 : i32
    %10 = arith.extui %9 : i1 to i32
    %c0_i32_8 = arith.constant 0 : i32
    %11 = arith.cmpi ne, %10, %c0_i32_8 : i32
    scf.if %11 {
      %c0_9 = arith.constant 0 : index
      %c0_10 = arith.constant 0 : index
      %12 = vector.load %arg7[%c0_9, %c0_10] : memref<128x128xf32, #tpu.memory_space<vmem>>, vector<128x128xf32>
      %c0_11 = arith.constant 0 : index
      %c0_12 = arith.constant 0 : index
      %13 = vector.load %arg5[%c0_11, %c0_12] : memref<1x128xf32, #tpu.memory_space<vmem>>, vector<1x128xf32>
      %14 = vector.broadcast %13 : vector<1x128xf32> to vector<128x128xf32>
      %15 = arith.addf %12, %14 : vector<128x128xf32>
      %cst_13 = arith.constant 0.000000e+00 : f32
      %16 = vector.broadcast %cst_13 : f32 to vector<128x128xf32>
      %17 = arith.maximumf %15, %16 : vector<128x128xf32>
      %c0_14 = arith.constant 0 : index
      %c0_15 = arith.constant 0 : index
      %18 = vector.load %arg6[%c0_14, %c0_15] : memref<128x128xf32, #tpu.memory_space<vmem>>, vector<128x128xf32>
      tpu.vector_store %arg6[%c0_14, %c0_15], %17 {strides = array<i32>} : memref<128x128xf32, #tpu.memory_space<vmem>>, vector<128x128xf32>,
    } else {
    }
    return
  }
  func.func @transform_0(%arg0: i32, %arg1: i32, %arg2: i32) -> (i32, i32) {
    %c0_i32 = arith.constant 0 : i32
    return %arg0, %arg2 : i32, i32
  }
  func.func @transform_1(%arg0: i32, %arg1: i32, %arg2: i32) -> (i32, i32) {
    %c0_i32 = arith.constant 0 : i32
    return %arg2, %arg1 : i32, i32
  }
  func.func @transform_2(%arg0: i32, %arg1: i32, %arg2: i32) -> (i32, i32) {
    %c0_i32 = arith.constant 0 : i32
    %c0_i32_0 = arith.constant 0 : i32
    return %c0_i32, %arg1 : i32, i32
  }
  func.func @transform_3(%arg0: i32, %arg1: i32, %arg2: i32) -> (i32, i32) {
    %c0_i32 = arith.constant 0 : i32
    return %arg0, %arg1 : i32, i32
  }
}

module attributes {stable_mosaic.version = 11 : i64} {
  func.func @_mm_bias_kernel(%arg0: i32, %arg1: i32, %arg2: i32, %arg3: memref<128x128xbf16, #tpu.memory_space<vmem>>, %arg4: memref<128x128xbf16, #tpu.memory_space<vmem>>, %arg5: memref<1x128xf32, #tpu.memory_space<vmem>>, %arg6: memref<128x128xf32, #tpu.memory_space<vmem>>, %arg7: memref<128x128xf32, #tpu.memory_space<vmem>>) attributes {dimension_semantics = [#tpu.dimension_semantics<parallel>, #tpu.dimension_semantics<parallel>, #tpu.dimension_semantics<arbitrary>], iteration_bounds = array<i64: 1, 1, 1>, scalar_prefetch = 0 : i64, scratch_operands = 1 : i64, tpu.core_type = #tpu.core_type<tc>, window_params = [{transform_indices = @transform_0, window_bounds = array<i64: 128, 128>}, {transform_indices = @transform_1, window_bounds = array<i64: 128, 128>}, {transform_indices = @transform_2, window_bounds = array<i64: 1, 128>}, {transform_indices = @transform_3, window_bounds = array<i64: 128, 128>}]} {
    %c0_i32 = arith.constant 0 : i32
    %0 = arith.cmpi eq, %arg2, %c0_i32 : i32
    %1 = arith.extui %0 : i1 to i32
    %c0_i32_0 = arith.constant 0 : i32
    %2 = arith.cmpi ne, %1, %c0_i32_0 : i32
    scf.if %2 {
      %cst_10 = arith.constant 0.000000e+00 : f32
      %12 = vector.broadcast %cst_10 : f32 to vector<128x128xf32>
      %c0_11 = arith.constant 0 : index
      %c0_12 = arith.constant 0 : index
      %13 = vector.load %arg7[%c0_11, %c0_12] : memref<128x128xf32, #tpu.memory_space<vmem>>, vector<128x128xf32>
      tpu.vector_store %arg7[%c0_11, %c0_12], %12 {strides = array<i32>} : memref<128x128xf32, #tpu.memory_space<vmem>>, vector<128x128xf32>,
    } else {
    }
    %c0 = arith.constant 0 : index
    %c0_1 = arith.constant 0 : index
    %3 = vector.load %arg7[%c0, %c0_1] : memref<128x128xf32, #tpu.memory_space<vmem>>, vector<128x128xf32>
    %c0_2 = arith.constant 0 : index
    %c0_3 = arith.constant 0 : index
    %4 = vector.load %arg3[%c0_2, %c0_3] : memref<128x128xbf16, #tpu.memory_space<vmem>>, vector<128x128xbf16>
    %c0_4 = arith.constant 0 : index
    %c0_5 = arith.constant 0 : index
    %5 = vector.load %arg4[%c0_4, %c0_5] : memref<128x128xbf16, #tpu.memory_space<vmem>>, vector<128x128xbf16>
    %cst = arith.constant dense<0.000000e+00> : vector<128x128xf32>
    %6 = tpu.matmul %4, %5, %cst {dimension_numbers = #tpu.dot_dimension_numbers<[1], [0], [0], [1], [0, 0, 1, 1], [], []>} : vector<128x128xbf16>, vector<128x128xbf16>, vector<128x128xf32> -> vector<128x128xf32>
    %7 = arith.addf %3, %6 : vector<128x128xf32>
    %c0_6 = arith.constant 0 : index
    %c0_7 = arith.constant 0 : index
    %8 = vector.load %arg7[%c0_6, %c0_7] : memref<128x128xf32, #tpu.memory_space<vmem>>, vector<128x128xf32>
    tpu.vector_store %arg7[%c0_6, %c0_7], %7 {strides = array<i32>} : memref<128x128xf32, #tpu.memory_space<vmem>>, vector<128x128xf32>,
    %c0_i32_8 = arith.constant 0 : i32
    %9 = arith.cmpi eq, %arg2, %c0_i32_8 : i32
    %10 = arith.extui %9 : i1 to i32
    %c0_i32_9 = arith.constant 0 : i32
    %11 = arith.cmpi ne, %10, %c0_i32_9 : i32
    scf.if %11 {
      %c0_10 = arith.constant 0 : index
      %c0_11 = arith.constant 0 : index
      %12 = vector.load %arg7[%c0_10, %c0_11] : memref<128x128xf32, #tpu.memory_space<vmem>>, vector<128x128xf32>
      %c0_12 = arith.constant 0 : index
      %c0_13 = arith.constant 0 : index
      %13 = vector.load %arg5[%c0_12, %c0_13] : memref<1x128xf32, #tpu.memory_space<vmem>>, vector<1x128xf32>
      %14 = vector.broadcast %13 : vector<1x128xf32> to vector<128x128xf32>
      %15 = arith.addf %12, %14 : vector<128x128xf32>
      %c0_14 = arith.constant 0 : index
      %c0_15 = arith.constant 0 : index
      %16 = vector.load %arg6[%c0_14, %c0_15] : memref<128x128xf32, #tpu.memory_space<vmem>>, vector<128x128xf32>
      tpu.vector_store %arg6[%c0_14, %c0_15], %15 {strides = array<i32>} : memref<128x128xf32, #tpu.memory_space<vmem>>, vector<128x128xf32>,
    } else {
    }
    return
  }
  func.func @transform_0(%arg0: i32, %arg1: i32, %arg2: i32) -> (i32, i32) {
    %c0_i32 = arith.constant 0 : i32
    return %arg0, %arg2 : i32, i32
  }
  func.func @transform_1(%arg0: i32, %arg1: i32, %arg2: i32) -> (i32, i32) {
    %c0_i32 = arith.constant 0 : i32
    return %arg2, %arg1 : i32, i32
  }
  func.func @transform_2(%arg0: i32, %arg1: i32, %arg2: i32) -> (i32, i32) {
    %c0_i32 = arith.constant 0 : i32
    %c0_i32_0 = arith.constant 0 : i32
    return %c0_i32, %arg1 : i32, i32
  }
  func.func @transform_3(%arg0: i32, %arg1: i32, %arg2: i32) -> (i32, i32) {
    %c0_i32 = arith.constant 0 : i32
    return %arg0, %arg1 : i32, i32
  }
}

module attributes {stable_mosaic.version = 11 : i64} {
  func.func @_mm_bias_res_kernel(%arg0: i32, %arg1: i32, %arg2: i32, %arg3: memref<128x384xbf16, #tpu.memory_space<vmem>>, %arg4: memref<384x128xbf16, #tpu.memory_space<vmem>>, %arg5: memref<1x128xf32, #tpu.memory_space<vmem>>, %arg6: memref<128x128xbf16, #tpu.memory_space<vmem>>, %arg7: memref<128x128xf32, #tpu.memory_space<vmem>>, %arg8: memref<128x128xf32, #tpu.memory_space<vmem>>) attributes {dimension_semantics = [#tpu.dimension_semantics<parallel>, #tpu.dimension_semantics<parallel>, #tpu.dimension_semantics<arbitrary>], iteration_bounds = array<i64: 1, 1, 3>, scalar_prefetch = 0 : i64, scratch_operands = 1 : i64, tpu.core_type = #tpu.core_type<tc>, window_params = [{transform_indices = @transform_0, window_bounds = array<i64: 128, 384>}, {transform_indices = @transform_1, window_bounds = array<i64: 384, 128>}, {transform_indices = @transform_2, window_bounds = array<i64: 1, 128>}, {transform_indices = @transform_3, window_bounds = array<i64: 128, 128>}, {transform_indices = @transform_4, window_bounds = array<i64: 128, 128>}]} {
    %c0_i32 = arith.constant 0 : i32
    %0 = arith.cmpi eq, %arg2, %c0_i32 : i32
    %1 = arith.extui %0 : i1 to i32
    %c0_i32_0 = arith.constant 0 : i32
    %2 = arith.cmpi ne, %1, %c0_i32_0 : i32
    scf.if %2 {
      %cst_9 = arith.constant 0.000000e+00 : f32
      %12 = vector.broadcast %cst_9 : f32 to vector<128x128xf32>
      %c0_10 = arith.constant 0 : index
      %c0_11 = arith.constant 0 : index
      %13 = vector.load %arg8[%c0_10, %c0_11] : memref<128x128xf32, #tpu.memory_space<vmem>>, vector<128x128xf32>
      tpu.vector_store %arg8[%c0_10, %c0_11], %12 {strides = array<i32>} : memref<128x128xf32, #tpu.memory_space<vmem>>, vector<128x128xf32>,
    } else {
    }
    %c0 = arith.constant 0 : index
    %c0_1 = arith.constant 0 : index
    %3 = vector.load %arg8[%c0, %c0_1] : memref<128x128xf32, #tpu.memory_space<vmem>>, vector<128x128xf32>
    %c0_2 = arith.constant 0 : index
    %c0_3 = arith.constant 0 : index
    %4 = vector.load %arg3[%c0_2, %c0_3] : memref<128x384xbf16, #tpu.memory_space<vmem>>, vector<128x384xbf16>
    %c0_4 = arith.constant 0 : index
    %c0_5 = arith.constant 0 : index
    %5 = vector.load %arg4[%c0_4, %c0_5] : memref<384x128xbf16, #tpu.memory_space<vmem>>, vector<384x128xbf16>
    %cst = arith.constant dense<0.000000e+00> : vector<128x128xf32>
    %6 = tpu.matmul %4, %5, %cst {dimension_numbers = #tpu.dot_dimension_numbers<[1], [0], [0], [1], [0, 0, 1, 1], [], []>} : vector<128x384xbf16>, vector<384x128xbf16>, vector<128x128xf32> -> vector<128x128xf32>
    %7 = arith.addf %3, %6 : vector<128x128xf32>
    %c0_6 = arith.constant 0 : index
    %c0_7 = arith.constant 0 : index
    %8 = vector.load %arg8[%c0_6, %c0_7] : memref<128x128xf32, #tpu.memory_space<vmem>>, vector<128x128xf32>
    tpu.vector_store %arg8[%c0_6, %c0_7], %7 {strides = array<i32>} : memref<128x128xf32, #tpu.memory_space<vmem>>, vector<128x128xf32>,
    %c2_i32 = arith.constant 2 : i32
    %9 = arith.cmpi eq, %arg2, %c2_i32 : i32
    %10 = arith.extui %9 : i1 to i32
    %c0_i32_8 = arith.constant 0 : i32
    %11 = arith.cmpi ne, %10, %c0_i32_8 : i32
    scf.if %11 {
      %c0_9 = arith.constant 0 : index
      %c0_10 = arith.constant 0 : index
      %12 = vector.load %arg8[%c0_9, %c0_10] : memref<128x128xf32, #tpu.memory_space<vmem>>, vector<128x128xf32>
      %c0_11 = arith.constant 0 : index
      %c0_12 = arith.constant 0 : index
      %13 = vector.load %arg5[%c0_11, %c0_12] : memref<1x128xf32, #tpu.memory_space<vmem>>, vector<1x128xf32>
      %14 = vector.broadcast %13 : vector<1x128xf32> to vector<128x128xf32>
      %15 = arith.addf %12, %14 : vector<128x128xf32>
      %c0_13 = arith.constant 0 : index
      %c0_14 = arith.constant 0 : index
      %16 = vector.load %arg6[%c0_13, %c0_14] : memref<128x128xbf16, #tpu.memory_space<vmem>>, vector<128x128xbf16>
      %17 = arith.extf %16 : vector<128x128xbf16> to vector<128x128xf32>
      %18 = arith.addf %15, %17 : vector<128x128xf32>
      %cst_15 = arith.constant 0.000000e+00 : f32
      %19 = vector.broadcast %cst_15 : f32 to vector<128x128xf32>
      %20 = arith.maximumf %18, %19 : vector<128x128xf32>
      %c0_16 = arith.constant 0 : index
      %c0_17 = arith.constant 0 : index
      %21 = vector.load %arg7[%c0_16, %c0_17] : memref<128x128xf32, #tpu.memory_space<vmem>>, vector<128x128xf32>
      tpu.vector_store %arg7[%c0_16, %c0_17], %20 {strides = array<i32>} : memref<128x128xf32, #tpu.memory_space<vmem>>, vector<128x128xf32>,
    } else {
    }
    return
  }
  func.func @transform_0(%arg0: i32, %arg1: i32, %arg2: i32) -> (i32, i32) {
    %c0_i32 = arith.constant 0 : i32
    return %arg0, %arg2 : i32, i32
  }
  func.func @transform_1(%arg0: i32, %arg1: i32, %arg2: i32) -> (i32, i32) {
    %c0_i32 = arith.constant 0 : i32
    return %arg2, %arg1 : i32, i32
  }
  func.func @transform_2(%arg0: i32, %arg1: i32, %arg2: i32) -> (i32, i32) {
    %c0_i32 = arith.constant 0 : i32
    %c0_i32_0 = arith.constant 0 : i32
    return %c0_i32, %arg1 : i32, i32
  }
  func.func @transform_3(%arg0: i32, %arg1: i32, %arg2: i32) -> (i32, i32) {
    %c0_i32 = arith.constant 0 : i32
    return %arg0, %arg1 : i32, i32
  }
  func.func @transform_4(%arg0: i32, %arg1: i32, %arg2: i32) -> (i32, i32) {
    %c0_i32 = arith.constant 0 : i32
    return %arg0, %arg1 : i32, i32
  }
}

module attributes {stable_mosaic.version = 11 : i64} {
  func.func @_mm_bias_kernel(%arg0: i32, %arg1: i32, %arg2: i32, %arg3: memref<32x384xbf16, #tpu.memory_space<vmem>>, %arg4: memref<384x256xbf16, #tpu.memory_space<vmem>>, %arg5: memref<1x256xf32, #tpu.memory_space<vmem>>, %arg6: memref<32x256xf32, #tpu.memory_space<vmem>>, %arg7: memref<32x256xf32, #tpu.memory_space<vmem>>) attributes {dimension_semantics = [#tpu.dimension_semantics<parallel>, #tpu.dimension_semantics<parallel>, #tpu.dimension_semantics<arbitrary>], iteration_bounds = array<i64: 1, 1, 3>, scalar_prefetch = 0 : i64, scratch_operands = 1 : i64, tpu.core_type = #tpu.core_type<tc>, window_params = [{transform_indices = @transform_0, window_bounds = array<i64: 32, 384>}, {transform_indices = @transform_1, window_bounds = array<i64: 384, 256>}, {transform_indices = @transform_2, window_bounds = array<i64: 1, 256>}, {transform_indices = @transform_3, window_bounds = array<i64: 32, 256>}]} {
    %c0_i32 = arith.constant 0 : i32
    %0 = arith.cmpi eq, %arg2, %c0_i32 : i32
    %1 = arith.extui %0 : i1 to i32
    %c0_i32_0 = arith.constant 0 : i32
    %2 = arith.cmpi ne, %1, %c0_i32_0 : i32
    scf.if %2 {
      %cst_9 = arith.constant 0.000000e+00 : f32
      %12 = vector.broadcast %cst_9 : f32 to vector<32x256xf32>
      %c0_10 = arith.constant 0 : index
      %c0_11 = arith.constant 0 : index
      %13 = vector.load %arg7[%c0_10, %c0_11] : memref<32x256xf32, #tpu.memory_space<vmem>>, vector<32x256xf32>
      tpu.vector_store %arg7[%c0_10, %c0_11], %12 {strides = array<i32>} : memref<32x256xf32, #tpu.memory_space<vmem>>, vector<32x256xf32>,
    } else {
    }
    %c0 = arith.constant 0 : index
    %c0_1 = arith.constant 0 : index
    %3 = vector.load %arg7[%c0, %c0_1] : memref<32x256xf32, #tpu.memory_space<vmem>>, vector<32x256xf32>
    %c0_2 = arith.constant 0 : index
    %c0_3 = arith.constant 0 : index
    %4 = vector.load %arg3[%c0_2, %c0_3] : memref<32x384xbf16, #tpu.memory_space<vmem>>, vector<32x384xbf16>
    %c0_4 = arith.constant 0 : index
    %c0_5 = arith.constant 0 : index
    %5 = vector.load %arg4[%c0_4, %c0_5] : memref<384x256xbf16, #tpu.memory_space<vmem>>, vector<384x256xbf16>
    %cst = arith.constant dense<0.000000e+00> : vector<32x256xf32>
    %6 = tpu.matmul %4, %5, %cst {dimension_numbers = #tpu.dot_dimension_numbers<[1], [0], [0], [1], [0, 0, 1, 1], [], []>} : vector<32x384xbf16>, vector<384x256xbf16>, vector<32x256xf32> -> vector<32x256xf32>
    %7 = arith.addf %3, %6 : vector<32x256xf32>
    %c0_6 = arith.constant 0 : index
    %c0_7 = arith.constant 0 : index
    %8 = vector.load %arg7[%c0_6, %c0_7] : memref<32x256xf32, #tpu.memory_space<vmem>>, vector<32x256xf32>
    tpu.vector_store %arg7[%c0_6, %c0_7], %7 {strides = array<i32>} : memref<32x256xf32, #tpu.memory_space<vmem>>, vector<32x256xf32>,
    %c2_i32 = arith.constant 2 : i32
    %9 = arith.cmpi eq, %arg2, %c2_i32 : i32
    %10 = arith.extui %9 : i1 to i32
    %c0_i32_8 = arith.constant 0 : i32
    %11 = arith.cmpi ne, %10, %c0_i32_8 : i32
    scf.if %11 {
      %c0_9 = arith.constant 0 : index
      %c0_10 = arith.constant 0 : index
      %12 = vector.load %arg7[%c0_9, %c0_10] : memref<32x256xf32, #tpu.memory_space<vmem>>, vector<32x256xf32>
      %c0_11 = arith.constant 0 : index
      %c0_12 = arith.constant 0 : index
      %13 = vector.load %arg5[%c0_11, %c0_12] : memref<1x256xf32, #tpu.memory_space<vmem>>, vector<1x256xf32>
      %14 = vector.broadcast %13 : vector<1x256xf32> to vector<32x256xf32>
      %15 = arith.addf %12, %14 : vector<32x256xf32>
      %cst_13 = arith.constant 0.000000e+00 : f32
      %16 = vector.broadcast %cst_13 : f32 to vector<32x256xf32>
      %17 = arith.maximumf %15, %16 : vector<32x256xf32>
      %c0_14 = arith.constant 0 : index
      %c0_15 = arith.constant 0 : index
      %18 = vector.load %arg6[%c0_14, %c0_15] : memref<32x256xf32, #tpu.memory_space<vmem>>, vector<32x256xf32>
      tpu.vector_store %arg6[%c0_14, %c0_15], %17 {strides = array<i32>} : memref<32x256xf32, #tpu.memory_space<vmem>>, vector<32x256xf32>,
    } else {
    }
    return
  }
  func.func @transform_0(%arg0: i32, %arg1: i32, %arg2: i32) -> (i32, i32) {
    %c0_i32 = arith.constant 0 : i32
    return %arg0, %arg2 : i32, i32
  }
  func.func @transform_1(%arg0: i32, %arg1: i32, %arg2: i32) -> (i32, i32) {
    %c0_i32 = arith.constant 0 : i32
    return %arg2, %arg1 : i32, i32
  }
  func.func @transform_2(%arg0: i32, %arg1: i32, %arg2: i32) -> (i32, i32) {
    %c0_i32 = arith.constant 0 : i32
    %c0_i32_0 = arith.constant 0 : i32
    return %c0_i32, %arg1 : i32, i32
  }
  func.func @transform_3(%arg0: i32, %arg1: i32, %arg2: i32) -> (i32, i32) {
    %c0_i32 = arith.constant 0 : i32
    return %arg0, %arg1 : i32, i32
  }
}

module attributes {stable_mosaic.version = 11 : i64} {
  func.func @_mm_bias_kernel(%arg0: i32, %arg1: i32, %arg2: i32, %arg3: memref<32x128xbf16, #tpu.memory_space<vmem>>, %arg4: memref<128x256xbf16, #tpu.memory_space<vmem>>, %arg5: memref<1x256xf32, #tpu.memory_space<vmem>>, %arg6: memref<32x256xf32, #tpu.memory_space<vmem>>, %arg7: memref<32x256xf32, #tpu.memory_space<vmem>>) attributes {dimension_semantics = [#tpu.dimension_semantics<parallel>, #tpu.dimension_semantics<parallel>, #tpu.dimension_semantics<arbitrary>], iteration_bounds = array<i64: 1, 1, 1>, scalar_prefetch = 0 : i64, scratch_operands = 1 : i64, tpu.core_type = #tpu.core_type<tc>, window_params = [{transform_indices = @transform_0, window_bounds = array<i64: 32, 128>}, {transform_indices = @transform_1, window_bounds = array<i64: 128, 256>}, {transform_indices = @transform_2, window_bounds = array<i64: 1, 256>}, {transform_indices = @transform_3, window_bounds = array<i64: 32, 256>}]} {
    %c0_i32 = arith.constant 0 : i32
    %0 = arith.cmpi eq, %arg2, %c0_i32 : i32
    %1 = arith.extui %0 : i1 to i32
    %c0_i32_0 = arith.constant 0 : i32
    %2 = arith.cmpi ne, %1, %c0_i32_0 : i32
    scf.if %2 {
      %cst_10 = arith.constant 0.000000e+00 : f32
      %12 = vector.broadcast %cst_10 : f32 to vector<32x256xf32>
      %c0_11 = arith.constant 0 : index
      %c0_12 = arith.constant 0 : index
      %13 = vector.load %arg7[%c0_11, %c0_12] : memref<32x256xf32, #tpu.memory_space<vmem>>, vector<32x256xf32>
      tpu.vector_store %arg7[%c0_11, %c0_12], %12 {strides = array<i32>} : memref<32x256xf32, #tpu.memory_space<vmem>>, vector<32x256xf32>,
    } else {
    }
    %c0 = arith.constant 0 : index
    %c0_1 = arith.constant 0 : index
    %3 = vector.load %arg7[%c0, %c0_1] : memref<32x256xf32, #tpu.memory_space<vmem>>, vector<32x256xf32>
    %c0_2 = arith.constant 0 : index
    %c0_3 = arith.constant 0 : index
    %4 = vector.load %arg3[%c0_2, %c0_3] : memref<32x128xbf16, #tpu.memory_space<vmem>>, vector<32x128xbf16>
    %c0_4 = arith.constant 0 : index
    %c0_5 = arith.constant 0 : index
    %5 = vector.load %arg4[%c0_4, %c0_5] : memref<128x256xbf16, #tpu.memory_space<vmem>>, vector<128x256xbf16>
    %cst = arith.constant dense<0.000000e+00> : vector<32x256xf32>
    %6 = tpu.matmul %4, %5, %cst {dimension_numbers = #tpu.dot_dimension_numbers<[1], [0], [0], [1], [0, 0, 1, 1], [], []>} : vector<32x128xbf16>, vector<128x256xbf16>, vector<32x256xf32> -> vector<32x256xf32>
    %7 = arith.addf %3, %6 : vector<32x256xf32>
    %c0_6 = arith.constant 0 : index
    %c0_7 = arith.constant 0 : index
    %8 = vector.load %arg7[%c0_6, %c0_7] : memref<32x256xf32, #tpu.memory_space<vmem>>, vector<32x256xf32>
    tpu.vector_store %arg7[%c0_6, %c0_7], %7 {strides = array<i32>} : memref<32x256xf32, #tpu.memory_space<vmem>>, vector<32x256xf32>,
    %c0_i32_8 = arith.constant 0 : i32
    %9 = arith.cmpi eq, %arg2, %c0_i32_8 : i32
    %10 = arith.extui %9 : i1 to i32
    %c0_i32_9 = arith.constant 0 : i32
    %11 = arith.cmpi ne, %10, %c0_i32_9 : i32
    scf.if %11 {
      %c0_10 = arith.constant 0 : index
      %c0_11 = arith.constant 0 : index
      %12 = vector.load %arg7[%c0_10, %c0_11] : memref<32x256xf32, #tpu.memory_space<vmem>>, vector<32x256xf32>
      %c0_12 = arith.constant 0 : index
      %c0_13 = arith.constant 0 : index
      %13 = vector.load %arg5[%c0_12, %c0_13] : memref<1x256xf32, #tpu.memory_space<vmem>>, vector<1x256xf32>
      %14 = vector.broadcast %13 : vector<1x256xf32> to vector<32x256xf32>
      %15 = arith.addf %12, %14 : vector<32x256xf32>
      %c0_14 = arith.constant 0 : index
      %c0_15 = arith.constant 0 : index
      %16 = vector.load %arg6[%c0_14, %c0_15] : memref<32x256xf32, #tpu.memory_space<vmem>>, vector<32x256xf32>
      tpu.vector_store %arg6[%c0_14, %c0_15], %15 {strides = array<i32>} : memref<32x256xf32, #tpu.memory_space<vmem>>, vector<32x256xf32>,
    } else {
    }
    return
  }
  func.func @transform_0(%arg0: i32, %arg1: i32, %arg2: i32) -> (i32, i32) {
    %c0_i32 = arith.constant 0 : i32
    return %arg0, %arg2 : i32, i32
  }
  func.func @transform_1(%arg0: i32, %arg1: i32, %arg2: i32) -> (i32, i32) {
    %c0_i32 = arith.constant 0 : i32
    return %arg2, %arg1 : i32, i32
  }
  func.func @transform_2(%arg0: i32, %arg1: i32, %arg2: i32) -> (i32, i32) {
    %c0_i32 = arith.constant 0 : i32
    %c0_i32_0 = arith.constant 0 : i32
    return %c0_i32, %arg1 : i32, i32
  }
  func.func @transform_3(%arg0: i32, %arg1: i32, %arg2: i32) -> (i32, i32) {
    %c0_i32 = arith.constant 0 : i32
    return %arg0, %arg1 : i32, i32
  }
}

module attributes {stable_mosaic.version = 11 : i64} {
  func.func @_mm_bias_res_kernel(%arg0: i32, %arg1: i32, %arg2: i32, %arg3: memref<32x384xbf16, #tpu.memory_space<vmem>>, %arg4: memref<384x256xbf16, #tpu.memory_space<vmem>>, %arg5: memref<1x256xf32, #tpu.memory_space<vmem>>, %arg6: memref<32x256xbf16, #tpu.memory_space<vmem>>, %arg7: memref<32x256xf32, #tpu.memory_space<vmem>>, %arg8: memref<32x256xf32, #tpu.memory_space<vmem>>) attributes {dimension_semantics = [#tpu.dimension_semantics<parallel>, #tpu.dimension_semantics<parallel>, #tpu.dimension_semantics<arbitrary>], iteration_bounds = array<i64: 1, 1, 6>, scalar_prefetch = 0 : i64, scratch_operands = 1 : i64, tpu.core_type = #tpu.core_type<tc>, window_params = [{transform_indices = @transform_0, window_bounds = array<i64: 32, 384>}, {transform_indices = @transform_1, window_bounds = array<i64: 384, 256>}, {transform_indices = @transform_2, window_bounds = array<i64: 1, 256>}, {transform_indices = @transform_3, window_bounds = array<i64: 32, 256>}, {transform_indices = @transform_4, window_bounds = array<i64: 32, 256>}]} {
    %c0_i32 = arith.constant 0 : i32
    %0 = arith.cmpi eq, %arg2, %c0_i32 : i32
    %1 = arith.extui %0 : i1 to i32
    %c0_i32_0 = arith.constant 0 : i32
    %2 = arith.cmpi ne, %1, %c0_i32_0 : i32
    scf.if %2 {
      %cst_9 = arith.constant 0.000000e+00 : f32
      %12 = vector.broadcast %cst_9 : f32 to vector<32x256xf32>
      %c0_10 = arith.constant 0 : index
      %c0_11 = arith.constant 0 : index
      %13 = vector.load %arg8[%c0_10, %c0_11] : memref<32x256xf32, #tpu.memory_space<vmem>>, vector<32x256xf32>
      tpu.vector_store %arg8[%c0_10, %c0_11], %12 {strides = array<i32>} : memref<32x256xf32, #tpu.memory_space<vmem>>, vector<32x256xf32>,
    } else {
    }
    %c0 = arith.constant 0 : index
    %c0_1 = arith.constant 0 : index
    %3 = vector.load %arg8[%c0, %c0_1] : memref<32x256xf32, #tpu.memory_space<vmem>>, vector<32x256xf32>
    %c0_2 = arith.constant 0 : index
    %c0_3 = arith.constant 0 : index
    %4 = vector.load %arg3[%c0_2, %c0_3] : memref<32x384xbf16, #tpu.memory_space<vmem>>, vector<32x384xbf16>
    %c0_4 = arith.constant 0 : index
    %c0_5 = arith.constant 0 : index
    %5 = vector.load %arg4[%c0_4, %c0_5] : memref<384x256xbf16, #tpu.memory_space<vmem>>, vector<384x256xbf16>
    %cst = arith.constant dense<0.000000e+00> : vector<32x256xf32>
    %6 = tpu.matmul %4, %5, %cst {dimension_numbers = #tpu.dot_dimension_numbers<[1], [0], [0], [1], [0, 0, 1, 1], [], []>} : vector<32x384xbf16>, vector<384x256xbf16>, vector<32x256xf32> -> vector<32x256xf32>
    %7 = arith.addf %3, %6 : vector<32x256xf32>
    %c0_6 = arith.constant 0 : index
    %c0_7 = arith.constant 0 : index
    %8 = vector.load %arg8[%c0_6, %c0_7] : memref<32x256xf32, #tpu.memory_space<vmem>>, vector<32x256xf32>
    tpu.vector_store %arg8[%c0_6, %c0_7], %7 {strides = array<i32>} : memref<32x256xf32, #tpu.memory_space<vmem>>, vector<32x256xf32>,
    %c5_i32 = arith.constant 5 : i32
    %9 = arith.cmpi eq, %arg2, %c5_i32 : i32
    %10 = arith.extui %9 : i1 to i32
    %c0_i32_8 = arith.constant 0 : i32
    %11 = arith.cmpi ne, %10, %c0_i32_8 : i32
    scf.if %11 {
      %c0_9 = arith.constant 0 : index
      %c0_10 = arith.constant 0 : index
      %12 = vector.load %arg8[%c0_9, %c0_10] : memref<32x256xf32, #tpu.memory_space<vmem>>, vector<32x256xf32>
      %c0_11 = arith.constant 0 : index
      %c0_12 = arith.constant 0 : index
      %13 = vector.load %arg5[%c0_11, %c0_12] : memref<1x256xf32, #tpu.memory_space<vmem>>, vector<1x256xf32>
      %14 = vector.broadcast %13 : vector<1x256xf32> to vector<32x256xf32>
      %15 = arith.addf %12, %14 : vector<32x256xf32>
      %c0_13 = arith.constant 0 : index
      %c0_14 = arith.constant 0 : index
      %16 = vector.load %arg6[%c0_13, %c0_14] : memref<32x256xbf16, #tpu.memory_space<vmem>>, vector<32x256xbf16>
      %17 = arith.extf %16 : vector<32x256xbf16> to vector<32x256xf32>
      %18 = arith.addf %15, %17 : vector<32x256xf32>
      %cst_15 = arith.constant 0.000000e+00 : f32
      %19 = vector.broadcast %cst_15 : f32 to vector<32x256xf32>
      %20 = arith.maximumf %18, %19 : vector<32x256xf32>
      %c0_16 = arith.constant 0 : index
      %c0_17 = arith.constant 0 : index
      %21 = vector.load %arg7[%c0_16, %c0_17] : memref<32x256xf32, #tpu.memory_space<vmem>>, vector<32x256xf32>
      tpu.vector_store %arg7[%c0_16, %c0_17], %20 {strides = array<i32>} : memref<32x256xf32, #tpu.memory_space<vmem>>, vector<32x256xf32>,
    } else {
    }
    return
  }
  func.func @transform_0(%arg0: i32, %arg1: i32, %arg2: i32) -> (i32, i32) {
    %c0_i32 = arith.constant 0 : i32
    return %arg0, %arg2 : i32, i32
  }
  func.func @transform_1(%arg0: i32, %arg1: i32, %arg2: i32) -> (i32, i32) {
    %c0_i32 = arith.constant 0 : i32
    return %arg2, %arg1 : i32, i32
  }
  func.func @transform_2(%arg0: i32, %arg1: i32, %arg2: i32) -> (i32, i32) {
    %c0_i32 = arith.constant 0 : i32
    %c0_i32_0 = arith.constant 0 : i32
    return %c0_i32, %arg1 : i32, i32
  }
  func.func @transform_3(%arg0: i32, %arg1: i32, %arg2: i32) -> (i32, i32) {
    %c0_i32 = arith.constant 0 : i32
    return %arg0, %arg1 : i32, i32
  }
  func.func @transform_4(%arg0: i32, %arg1: i32, %arg2: i32) -> (i32, i32) {
    %c0_i32 = arith.constant 0 : i32
    return %arg0, %arg1 : i32, i32
  }
}

module attributes {stable_mosaic.version = 11 : i64} {
  func.func @_mm_bias_kernel(%arg0: i32, %arg1: i32, %arg2: i32, %arg3: memref<16x384xbf16, #tpu.memory_space<vmem>>, %arg4: memref<384x256xbf16, #tpu.memory_space<vmem>>, %arg5: memref<1x256xf32, #tpu.memory_space<vmem>>, %arg6: memref<16x256xf32, #tpu.memory_space<vmem>>, %arg7: memref<16x256xf32, #tpu.memory_space<vmem>>) attributes {dimension_semantics = [#tpu.dimension_semantics<parallel>, #tpu.dimension_semantics<parallel>, #tpu.dimension_semantics<arbitrary>], iteration_bounds = array<i64: 1, 2, 6>, scalar_prefetch = 0 : i64, scratch_operands = 1 : i64, tpu.core_type = #tpu.core_type<tc>, window_params = [{transform_indices = @transform_0, window_bounds = array<i64: 16, 384>}, {transform_indices = @transform_1, window_bounds = array<i64: 384, 256>}, {transform_indices = @transform_2, window_bounds = array<i64: 1, 256>}, {transform_indices = @transform_3, window_bounds = array<i64: 16, 256>}]} {
    %c0_i32 = arith.constant 0 : i32
    %0 = arith.cmpi eq, %arg2, %c0_i32 : i32
    %1 = arith.extui %0 : i1 to i32
    %c0_i32_0 = arith.constant 0 : i32
    %2 = arith.cmpi ne, %1, %c0_i32_0 : i32
    scf.if %2 {
      %cst_9 = arith.constant 0.000000e+00 : f32
      %12 = vector.broadcast %cst_9 : f32 to vector<16x256xf32>
      %c0_10 = arith.constant 0 : index
      %c0_11 = arith.constant 0 : index
      %13 = vector.load %arg7[%c0_10, %c0_11] : memref<16x256xf32, #tpu.memory_space<vmem>>, vector<16x256xf32>
      tpu.vector_store %arg7[%c0_10, %c0_11], %12 {strides = array<i32>} : memref<16x256xf32, #tpu.memory_space<vmem>>, vector<16x256xf32>,
    } else {
    }
    %c0 = arith.constant 0 : index
    %c0_1 = arith.constant 0 : index
    %3 = vector.load %arg7[%c0, %c0_1] : memref<16x256xf32, #tpu.memory_space<vmem>>, vector<16x256xf32>
    %c0_2 = arith.constant 0 : index
    %c0_3 = arith.constant 0 : index
    %4 = vector.load %arg3[%c0_2, %c0_3] : memref<16x384xbf16, #tpu.memory_space<vmem>>, vector<16x384xbf16>
    %c0_4 = arith.constant 0 : index
    %c0_5 = arith.constant 0 : index
    %5 = vector.load %arg4[%c0_4, %c0_5] : memref<384x256xbf16, #tpu.memory_space<vmem>>, vector<384x256xbf16>
    %cst = arith.constant dense<0.000000e+00> : vector<16x256xf32>
    %6 = tpu.matmul %4, %5, %cst {dimension_numbers = #tpu.dot_dimension_numbers<[1], [0], [0], [1], [0, 0, 1, 1], [], []>} : vector<16x384xbf16>, vector<384x256xbf16>, vector<16x256xf32> -> vector<16x256xf32>
    %7 = arith.addf %3, %6 : vector<16x256xf32>
    %c0_6 = arith.constant 0 : index
    %c0_7 = arith.constant 0 : index
    %8 = vector.load %arg7[%c0_6, %c0_7] : memref<16x256xf32, #tpu.memory_space<vmem>>, vector<16x256xf32>
    tpu.vector_store %arg7[%c0_6, %c0_7], %7 {strides = array<i32>} : memref<16x256xf32, #tpu.memory_space<vmem>>, vector<16x256xf32>,
    %c5_i32 = arith.constant 5 : i32
    %9 = arith.cmpi eq, %arg2, %c5_i32 : i32
    %10 = arith.extui %9 : i1 to i32
    %c0_i32_8 = arith.constant 0 : i32
    %11 = arith.cmpi ne, %10, %c0_i32_8 : i32
    scf.if %11 {
      %c0_9 = arith.constant 0 : index
      %c0_10 = arith.constant 0 : index
      %12 = vector.load %arg7[%c0_9, %c0_10] : memref<16x256xf32, #tpu.memory_space<vmem>>, vector<16x256xf32>
      %c0_11 = arith.constant 0 : index
      %c0_12 = arith.constant 0 : index
      %13 = vector.load %arg5[%c0_11, %c0_12] : memref<1x256xf32, #tpu.memory_space<vmem>>, vector<1x256xf32>
      %14 = vector.broadcast %13 : vector<1x256xf32> to vector<16x256xf32>
      %15 = arith.addf %12, %14 : vector<16x256xf32>
      %cst_13 = arith.constant 0.000000e+00 : f32
      %16 = vector.broadcast %cst_13 : f32 to vector<16x256xf32>
      %17 = arith.maximumf %15, %16 : vector<16x256xf32>
      %c0_14 = arith.constant 0 : index
      %c0_15 = arith.constant 0 : index
      %18 = vector.load %arg6[%c0_14, %c0_15] : memref<16x256xf32, #tpu.memory_space<vmem>>, vector<16x256xf32>
      tpu.vector_store %arg6[%c0_14, %c0_15], %17 {strides = array<i32>} : memref<16x256xf32, #tpu.memory_space<vmem>>, vector<16x256xf32>,
    } else {
    }
    return
  }
  func.func @transform_0(%arg0: i32, %arg1: i32, %arg2: i32) -> (i32, i32) {
    %c0_i32 = arith.constant 0 : i32
    return %arg0, %arg2 : i32, i32
  }
  func.func @transform_1(%arg0: i32, %arg1: i32, %arg2: i32) -> (i32, i32) {
    %c0_i32 = arith.constant 0 : i32
    return %arg2, %arg1 : i32, i32
  }
  func.func @transform_2(%arg0: i32, %arg1: i32, %arg2: i32) -> (i32, i32) {
    %c0_i32 = arith.constant 0 : i32
    %c0_i32_0 = arith.constant 0 : i32
    return %c0_i32, %arg1 : i32, i32
  }
  func.func @transform_3(%arg0: i32, %arg1: i32, %arg2: i32) -> (i32, i32) {
    %c0_i32 = arith.constant 0 : i32
    return %arg0, %arg1 : i32, i32
  }
}

module attributes {stable_mosaic.version = 11 : i64} {
  func.func @_mm_bias_kernel(%arg0: i32, %arg1: i32, %arg2: i32, %arg3: memref<16x256xbf16, #tpu.memory_space<vmem>>, %arg4: memref<256x256xbf16, #tpu.memory_space<vmem>>, %arg5: memref<1x256xf32, #tpu.memory_space<vmem>>, %arg6: memref<16x256xf32, #tpu.memory_space<vmem>>, %arg7: memref<16x256xf32, #tpu.memory_space<vmem>>) attributes {dimension_semantics = [#tpu.dimension_semantics<parallel>, #tpu.dimension_semantics<parallel>, #tpu.dimension_semantics<arbitrary>], iteration_bounds = array<i64: 1, 2, 1>, scalar_prefetch = 0 : i64, scratch_operands = 1 : i64, tpu.core_type = #tpu.core_type<tc>, window_params = [{transform_indices = @transform_0, window_bounds = array<i64: 16, 256>}, {transform_indices = @transform_1, window_bounds = array<i64: 256, 256>}, {transform_indices = @transform_2, window_bounds = array<i64: 1, 256>}, {transform_indices = @transform_3, window_bounds = array<i64: 16, 256>}]} {
    %c0_i32 = arith.constant 0 : i32
    %0 = arith.cmpi eq, %arg2, %c0_i32 : i32
    %1 = arith.extui %0 : i1 to i32
    %c0_i32_0 = arith.constant 0 : i32
    %2 = arith.cmpi ne, %1, %c0_i32_0 : i32
    scf.if %2 {
      %cst_10 = arith.constant 0.000000e+00 : f32
      %12 = vector.broadcast %cst_10 : f32 to vector<16x256xf32>
      %c0_11 = arith.constant 0 : index
      %c0_12 = arith.constant 0 : index
      %13 = vector.load %arg7[%c0_11, %c0_12] : memref<16x256xf32, #tpu.memory_space<vmem>>, vector<16x256xf32>
      tpu.vector_store %arg7[%c0_11, %c0_12], %12 {strides = array<i32>} : memref<16x256xf32, #tpu.memory_space<vmem>>, vector<16x256xf32>,
    } else {
    }
    %c0 = arith.constant 0 : index
    %c0_1 = arith.constant 0 : index
    %3 = vector.load %arg7[%c0, %c0_1] : memref<16x256xf32, #tpu.memory_space<vmem>>, vector<16x256xf32>
    %c0_2 = arith.constant 0 : index
    %c0_3 = arith.constant 0 : index
    %4 = vector.load %arg3[%c0_2, %c0_3] : memref<16x256xbf16, #tpu.memory_space<vmem>>, vector<16x256xbf16>
    %c0_4 = arith.constant 0 : index
    %c0_5 = arith.constant 0 : index
    %5 = vector.load %arg4[%c0_4, %c0_5] : memref<256x256xbf16, #tpu.memory_space<vmem>>, vector<256x256xbf16>
    %cst = arith.constant dense<0.000000e+00> : vector<16x256xf32>
    %6 = tpu.matmul %4, %5, %cst {dimension_numbers = #tpu.dot_dimension_numbers<[1], [0], [0], [1], [0, 0, 1, 1], [], []>} : vector<16x256xbf16>, vector<256x256xbf16>, vector<16x256xf32> -> vector<16x256xf32>
    %7 = arith.addf %3, %6 : vector<16x256xf32>
    %c0_6 = arith.constant 0 : index
    %c0_7 = arith.constant 0 : index
    %8 = vector.load %arg7[%c0_6, %c0_7] : memref<16x256xf32, #tpu.memory_space<vmem>>, vector<16x256xf32>
    tpu.vector_store %arg7[%c0_6, %c0_7], %7 {strides = array<i32>} : memref<16x256xf32, #tpu.memory_space<vmem>>, vector<16x256xf32>,
    %c0_i32_8 = arith.constant 0 : i32
    %9 = arith.cmpi eq, %arg2, %c0_i32_8 : i32
    %10 = arith.extui %9 : i1 to i32
    %c0_i32_9 = arith.constant 0 : i32
    %11 = arith.cmpi ne, %10, %c0_i32_9 : i32
    scf.if %11 {
      %c0_10 = arith.constant 0 : index
      %c0_11 = arith.constant 0 : index
      %12 = vector.load %arg7[%c0_10, %c0_11] : memref<16x256xf32, #tpu.memory_space<vmem>>, vector<16x256xf32>
      %c0_12 = arith.constant 0 : index
      %c0_13 = arith.constant 0 : index
      %13 = vector.load %arg5[%c0_12, %c0_13] : memref<1x256xf32, #tpu.memory_space<vmem>>, vector<1x256xf32>
      %14 = vector.broadcast %13 : vector<1x256xf32> to vector<16x256xf32>
      %15 = arith.addf %12, %14 : vector<16x256xf32>
      %c0_14 = arith.constant 0 : index
      %c0_15 = arith.constant 0 : index
      %16 = vector.load %arg6[%c0_14, %c0_15] : memref<16x256xf32, #tpu.memory_space<vmem>>, vector<16x256xf32>
      tpu.vector_store %arg6[%c0_14, %c0_15], %15 {strides = array<i32>} : memref<16x256xf32, #tpu.memory_space<vmem>>, vector<16x256xf32>,
    } else {
    }
    return
  }
  func.func @transform_0(%arg0: i32, %arg1: i32, %arg2: i32) -> (i32, i32) {
    %c0_i32 = arith.constant 0 : i32
    return %arg0, %arg2 : i32, i32
  }
  func.func @transform_1(%arg0: i32, %arg1: i32, %arg2: i32) -> (i32, i32) {
    %c0_i32 = arith.constant 0 : i32
    return %arg2, %arg1 : i32, i32
  }
  func.func @transform_2(%arg0: i32, %arg1: i32, %arg2: i32) -> (i32, i32) {
    %c0_i32 = arith.constant 0 : i32
    %c0_i32_0 = arith.constant 0 : i32
    return %c0_i32, %arg1 : i32, i32
  }
  func.func @transform_3(%arg0: i32, %arg1: i32, %arg2: i32) -> (i32, i32) {
    %c0_i32 = arith.constant 0 : i32
    return %arg0, %arg1 : i32, i32
  }
}

module attributes {stable_mosaic.version = 11 : i64} {
  func.func @_mm_bias_res_kernel(%arg0: i32, %arg1: i32, %arg2: i32, %arg3: memref<16x512xbf16, #tpu.memory_space<vmem>>, %arg4: memref<512x256xbf16, #tpu.memory_space<vmem>>, %arg5: memref<1x256xf32, #tpu.memory_space<vmem>>, %arg6: memref<16x256xbf16, #tpu.memory_space<vmem>>, %arg7: memref<16x256xf32, #tpu.memory_space<vmem>>, %arg8: memref<16x256xf32, #tpu.memory_space<vmem>>) attributes {dimension_semantics = [#tpu.dimension_semantics<parallel>, #tpu.dimension_semantics<parallel>, #tpu.dimension_semantics<arbitrary>], iteration_bounds = array<i64: 1, 2, 9>, scalar_prefetch = 0 : i64, scratch_operands = 1 : i64, tpu.core_type = #tpu.core_type<tc>, window_params = [{transform_indices = @transform_0, window_bounds = array<i64: 16, 512>}, {transform_indices = @transform_1, window_bounds = array<i64: 512, 256>}, {transform_indices = @transform_2, window_bounds = array<i64: 1, 256>}, {transform_indices = @transform_3, window_bounds = array<i64: 16, 256>}, {transform_indices = @transform_4, window_bounds = array<i64: 16, 256>}]} {
    %c0_i32 = arith.constant 0 : i32
    %0 = arith.cmpi eq, %arg2, %c0_i32 : i32
    %1 = arith.extui %0 : i1 to i32
    %c0_i32_0 = arith.constant 0 : i32
    %2 = arith.cmpi ne, %1, %c0_i32_0 : i32
    scf.if %2 {
      %cst_9 = arith.constant 0.000000e+00 : f32
      %12 = vector.broadcast %cst_9 : f32 to vector<16x256xf32>
      %c0_10 = arith.constant 0 : index
      %c0_11 = arith.constant 0 : index
      %13 = vector.load %arg8[%c0_10, %c0_11] : memref<16x256xf32, #tpu.memory_space<vmem>>, vector<16x256xf32>
      tpu.vector_store %arg8[%c0_10, %c0_11], %12 {strides = array<i32>} : memref<16x256xf32, #tpu.memory_space<vmem>>, vector<16x256xf32>,
    } else {
    }
    %c0 = arith.constant 0 : index
    %c0_1 = arith.constant 0 : index
    %3 = vector.load %arg8[%c0, %c0_1] : memref<16x256xf32, #tpu.memory_space<vmem>>, vector<16x256xf32>
    %c0_2 = arith.constant 0 : index
    %c0_3 = arith.constant 0 : index
    %4 = vector.load %arg3[%c0_2, %c0_3] : memref<16x512xbf16, #tpu.memory_space<vmem>>, vector<16x512xbf16>
    %c0_4 = arith.constant 0 : index
    %c0_5 = arith.constant 0 : index
    %5 = vector.load %arg4[%c0_4, %c0_5] : memref<512x256xbf16, #tpu.memory_space<vmem>>, vector<512x256xbf16>
    %cst = arith.constant dense<0.000000e+00> : vector<16x256xf32>
    %6 = tpu.matmul %4, %5, %cst {dimension_numbers = #tpu.dot_dimension_numbers<[1], [0], [0], [1], [0, 0, 1, 1], [], []>} : vector<16x512xbf16>, vector<512x256xbf16>, vector<16x256xf32> -> vector<16x256xf32>
    %7 = arith.addf %3, %6 : vector<16x256xf32>
    %c0_6 = arith.constant 0 : index
    %c0_7 = arith.constant 0 : index
    %8 = vector.load %arg8[%c0_6, %c0_7] : memref<16x256xf32, #tpu.memory_space<vmem>>, vector<16x256xf32>
    tpu.vector_store %arg8[%c0_6, %c0_7], %7 {strides = array<i32>} : memref<16x256xf32, #tpu.memory_space<vmem>>, vector<16x256xf32>,
    %c8_i32 = arith.constant 8 : i32
    %9 = arith.cmpi eq, %arg2, %c8_i32 : i32
    %10 = arith.extui %9 : i1 to i32
    %c0_i32_8 = arith.constant 0 : i32
    %11 = arith.cmpi ne, %10, %c0_i32_8 : i32
    scf.if %11 {
      %c0_9 = arith.constant 0 : index
      %c0_10 = arith.constant 0 : index
      %12 = vector.load %arg8[%c0_9, %c0_10] : memref<16x256xf32, #tpu.memory_space<vmem>>, vector<16x256xf32>
      %c0_11 = arith.constant 0 : index
      %c0_12 = arith.constant 0 : index
      %13 = vector.load %arg5[%c0_11, %c0_12] : memref<1x256xf32, #tpu.memory_space<vmem>>, vector<1x256xf32>
      %14 = vector.broadcast %13 : vector<1x256xf32> to vector<16x256xf32>
      %15 = arith.addf %12, %14 : vector<16x256xf32>
      %c0_13 = arith.constant 0 : index
      %c0_14 = arith.constant 0 : index
      %16 = vector.load %arg6[%c0_13, %c0_14] : memref<16x256xbf16, #tpu.memory_space<vmem>>, vector<16x256xbf16>
      %17 = arith.extf %16 : vector<16x256xbf16> to vector<16x256xf32>
      %18 = arith.addf %15, %17 : vector<16x256xf32>
      %cst_15 = arith.constant 0.000000e+00 : f32
      %19 = vector.broadcast %cst_15 : f32 to vector<16x256xf32>
      %20 = arith.maximumf %18, %19 : vector<16x256xf32>
      %c0_16 = arith.constant 0 : index
      %c0_17 = arith.constant 0 : index
      %21 = vector.load %arg7[%c0_16, %c0_17] : memref<16x256xf32, #tpu.memory_space<vmem>>, vector<16x256xf32>
      tpu.vector_store %arg7[%c0_16, %c0_17], %20 {strides = array<i32>} : memref<16x256xf32, #tpu.memory_space<vmem>>, vector<16x256xf32>,
    } else {
    }
    return
  }
  func.func @transform_0(%arg0: i32, %arg1: i32, %arg2: i32) -> (i32, i32) {
    %c0_i32 = arith.constant 0 : i32
    return %arg0, %arg2 : i32, i32
  }
  func.func @transform_1(%arg0: i32, %arg1: i32, %arg2: i32) -> (i32, i32) {
    %c0_i32 = arith.constant 0 : i32
    return %arg2, %arg1 : i32, i32
  }
  func.func @transform_2(%arg0: i32, %arg1: i32, %arg2: i32) -> (i32, i32) {
    %c0_i32 = arith.constant 0 : i32
    %c0_i32_0 = arith.constant 0 : i32
    return %c0_i32, %arg1 : i32, i32
  }
  func.func @transform_3(%arg0: i32, %arg1: i32, %arg2: i32) -> (i32, i32) {
    %c0_i32 = arith.constant 0 : i32
    return %arg0, %arg1 : i32, i32
  }
  func.func @transform_4(%arg0: i32, %arg1: i32, %arg2: i32) -> (i32, i32) {
    %c0_i32 = arith.constant 0 : i32
    return %arg0, %arg1 : i32, i32
  }
}

module attributes {stable_mosaic.version = 11 : i64} {
  func.func @_mm_bias_kernel(%arg0: i32, %arg1: i32, %arg2: i32, %arg3: memref<16x512xbf16, #tpu.memory_space<vmem>>, %arg4: memref<512x128xbf16, #tpu.memory_space<vmem>>, %arg5: memref<1x128xf32, #tpu.memory_space<vmem>>, %arg6: memref<16x128xf32, #tpu.memory_space<vmem>>, %arg7: memref<16x128xf32, #tpu.memory_space<vmem>>) attributes {dimension_semantics = [#tpu.dimension_semantics<parallel>, #tpu.dimension_semantics<parallel>, #tpu.dimension_semantics<arbitrary>], iteration_bounds = array<i64: 1, 1, 1>, scalar_prefetch = 0 : i64, scratch_operands = 1 : i64, tpu.core_type = #tpu.core_type<tc>, window_params = [{transform_indices = @transform_0, window_bounds = array<i64: 16, 512>}, {transform_indices = @transform_1, window_bounds = array<i64: 512, 128>}, {transform_indices = @transform_2, window_bounds = array<i64: 1, 128>}, {transform_indices = @transform_3, window_bounds = array<i64: 16, 128>}]} {
    %c0_i32 = arith.constant 0 : i32
    %0 = arith.cmpi eq, %arg2, %c0_i32 : i32
    %1 = arith.extui %0 : i1 to i32
    %c0_i32_0 = arith.constant 0 : i32
    %2 = arith.cmpi ne, %1, %c0_i32_0 : i32
    scf.if %2 {
      %cst_10 = arith.constant 0.000000e+00 : f32
      %12 = vector.broadcast %cst_10 : f32 to vector<16x128xf32>
      %c0_11 = arith.constant 0 : index
      %c0_12 = arith.constant 0 : index
      %13 = vector.load %arg7[%c0_11, %c0_12] : memref<16x128xf32, #tpu.memory_space<vmem>>, vector<16x128xf32>
      tpu.vector_store %arg7[%c0_11, %c0_12], %12 {strides = array<i32>} : memref<16x128xf32, #tpu.memory_space<vmem>>, vector<16x128xf32>,
    } else {
    }
    %c0 = arith.constant 0 : index
    %c0_1 = arith.constant 0 : index
    %3 = vector.load %arg7[%c0, %c0_1] : memref<16x128xf32, #tpu.memory_space<vmem>>, vector<16x128xf32>
    %c0_2 = arith.constant 0 : index
    %c0_3 = arith.constant 0 : index
    %4 = vector.load %arg3[%c0_2, %c0_3] : memref<16x512xbf16, #tpu.memory_space<vmem>>, vector<16x512xbf16>
    %c0_4 = arith.constant 0 : index
    %c0_5 = arith.constant 0 : index
    %5 = vector.load %arg4[%c0_4, %c0_5] : memref<512x128xbf16, #tpu.memory_space<vmem>>, vector<512x128xbf16>
    %cst = arith.constant dense<0.000000e+00> : vector<16x128xf32>
    %6 = tpu.matmul %4, %5, %cst {dimension_numbers = #tpu.dot_dimension_numbers<[1], [0], [0], [1], [0, 0, 1, 1], [], []>} : vector<16x512xbf16>, vector<512x128xbf16>, vector<16x128xf32> -> vector<16x128xf32>
    %7 = arith.addf %3, %6 : vector<16x128xf32>
    %c0_6 = arith.constant 0 : index
    %c0_7 = arith.constant 0 : index
    %8 = vector.load %arg7[%c0_6, %c0_7] : memref<16x128xf32, #tpu.memory_space<vmem>>, vector<16x128xf32>
    tpu.vector_store %arg7[%c0_6, %c0_7], %7 {strides = array<i32>} : memref<16x128xf32, #tpu.memory_space<vmem>>, vector<16x128xf32>,
    %c0_i32_8 = arith.constant 0 : i32
    %9 = arith.cmpi eq, %arg2, %c0_i32_8 : i32
    %10 = arith.extui %9 : i1 to i32
    %c0_i32_9 = arith.constant 0 : i32
    %11 = arith.cmpi ne, %10, %c0_i32_9 : i32
    scf.if %11 {
      %c0_10 = arith.constant 0 : index
      %c0_11 = arith.constant 0 : index
      %12 = vector.load %arg7[%c0_10, %c0_11] : memref<16x128xf32, #tpu.memory_space<vmem>>, vector<16x128xf32>
      %c0_12 = arith.constant 0 : index
      %c0_13 = arith.constant 0 : index
      %13 = vector.load %arg5[%c0_12, %c0_13] : memref<1x128xf32, #tpu.memory_space<vmem>>, vector<1x128xf32>
      %14 = vector.broadcast %13 : vector<1x128xf32> to vector<16x128xf32>
      %15 = arith.addf %12, %14 : vector<16x128xf32>
      %c0_14 = arith.constant 0 : index
      %c0_15 = arith.constant 0 : index
      %16 = vector.load %arg6[%c0_14, %c0_15] : memref<16x128xf32, #tpu.memory_space<vmem>>, vector<16x128xf32>
      tpu.vector_store %arg6[%c0_14, %c0_15], %15 {strides = array<i32>} : memref<16x128xf32, #tpu.memory_space<vmem>>, vector<16x128xf32>,
    } else {
    }
    return
  }
  func.func @transform_0(%arg0: i32, %arg1: i32, %arg2: i32) -> (i32, i32) {
    %c0_i32 = arith.constant 0 : i32
    return %arg0, %arg2 : i32, i32
  }
  func.func @transform_1(%arg0: i32, %arg1: i32, %arg2: i32) -> (i32, i32) {
    %c0_i32 = arith.constant 0 : i32
    return %arg2, %arg1 : i32, i32
  }
  func.func @transform_2(%arg0: i32, %arg1: i32, %arg2: i32) -> (i32, i32) {
    %c0_i32 = arith.constant 0 : i32
    %c0_i32_0 = arith.constant 0 : i32
    return %c0_i32, %arg1 : i32, i32
  }
  func.func @transform_3(%arg0: i32, %arg1: i32, %arg2: i32) -> (i32, i32) {
    %c0_i32 = arith.constant 0 : i32
    return %arg0, %arg1 : i32, i32
  }
}

</mosaic_0001>

<bundles_post_ra>
// kernel: resnet_forward.13
= control target key start
LH: loop header
LB: loop body
LE: loop exit
PB: predicated region body
PF: predicated region fallthrough
CT: control target
= control target key end

     0   :  { %s1144_s12 = smov 0   ;;  %s1146_s13 = smov 0   ;;  %s1297_s0 = inlined_call_operand.vmem [shape: bf16[512,128], index: 0, kind: input, shape index: {}]   ;;  %s1298_s1 = inlined_call_operand.vmem [shape: bf16[128,128], index: 1, kind: input, shape index: {}]   ;;  %s1299_s2 = inlined_call_operand.vmem [shape: f32[1,128], index: 2, kind: input, shape index: {}]   ;;  %s1300_s3 = inlined_call_operand.vmem [shape: f32[512,128], index: 3, kind: output, shape index: {}]  }
   0x1   :  { %s1148_s14 = smov 0  }
   0x2 LB: > { %s32_s15 = sadd.s32 1, %s1118_s13  ;;  %p924_p0 = scmp.ge.s32.totalorder %s1122_s14, 1  ;;  %s1122_s14 = sphi %s1148_s14, %s13_s14   ;;  %s1118_s13 = sphi %s1146_s13, %s1302_s13   ;;  %s1114_s12 = sphi %s1144_s12, %s1301_s12  }
   0x3   : > { %p34_p1 = scmp.ge.s32.totalorder %s32_s15, 2  ;;  %p188_p2 = scmp.lt.s32.totalorder %s1122_s14, 3 }
   0x5   : > { %s1304_s15 = smov (%p34_p1, %s32_s15), 0  ;;  %p189_p3 = pnand %p924_p0, %p188_p2 }
   0x6   : > { %s925_s24 = sshll.u32 (!%p189_p3), %s1114_s12, 5 }
   0x7   : > { %192 = sbr.rel (%p189_p3) target bundleno = 239 (0xef), region = 32  ;;  %p230_p4 = scmp.lt.s32.totalorder (!%p189_p3), %s925_s24, 63 }
   0xc   : > { %v1050_v0 = vld [vmem:[%s1298_s1 + $0x38] sm:$0xff]  ;;  %v1049_v1 = vld [vmem:[%s1298_s1 + $0x30] sm:$0xff]  ;;  %v1048_v2 = vld [vmem:[%s1298_s1 + $0x28] sm:$0xff]  ;;  %s1306_s24 = smov (!%p230_p4, %s925_s24), 63 }
   0xd   : > { %519 = vmatpush.bf16.msra.mxu0 %v1050_v0  ;;  %1051 = vmatpush.bf16.msra.mxu1 %v1050_v0  ;;  %v1047_v3 = vld [vmem:[%s1298_s1 + $0x20] sm:$0xff]  ;;  %v1046_v4 = vld [vmem:[%s1298_s1 + $0x18] sm:$0xff]  ;;  %v1045_v5 = vld [vmem:[%s1298_s1 + $0x10] sm:$0xff]  ;;  %s926_s4 = sshll.u32 %s1306_s24, 2  ;;  %s928_s12 = sshll.u32 %s1306_s24, 3 }
   0xe   : > { %1052 = vmatpush.bf16.msra.mxu2 %v1050_v0  ;;  %1053 = vmatpush.bf16.msra.mxu3 %v1050_v0  ;;  %v1044_v6 = vld [vmem:[%s1298_s1 + $0x8] sm:$0xff]  ;;  %v1043_v7 = vld [vmem:[%s1298_s1] sm:$0xff]  ;;  %s1195_s9 = scalar_lea.vmem %s1297_s0, %s926_s4  ;;  %s1224_s18 = scalar_lea.vmem %s1300_s3, %s928_s12 }
   0xf   : > { %v1027_v8 = vld [vmem:[%s1195_s9] sm:$0xff]  ;;  %v1028_v12 = vld [vmem:[%s1195_s9 + $0x8] sm:$0xff]  ;;  %v1029_v16 = vld [vmem:[%s1195_s9 + $0x10] sm:$0xff] }
  0x10   : > { %v1031_v9 = vld [vmem:[%s1195_s9 + $0x20] sm:$0xff]  ;;  %v1032_v13 = vld [vmem:[%s1195_s9 + $0x28] sm:$0xff]  ;;  %v1033_v17 = vld [vmem:[%s1195_s9 + $0x30] sm:$0xff] }
  0x11   : > { %520 = vmatpush.bf16.msra.mxu0 %v1049_v1  ;;  %1054 = vmatpush.bf16.msra.mxu1 %v1049_v1  ;;  %v1035_v10 = vld [vmem:[%s1195_s9 + $0x40] sm:$0xff]  ;;  %v1036_v14 = vld [vmem:[%s1195_s9 + $0x48] sm:$0xff]  ;;  %v1037_v18 = vld [vmem:[%s1195_s9 + $0x50] sm:$0xff] }
  0x12   : > { %1055 = vmatpush.bf16.msra.mxu2 %v1049_v1  ;;  %1056 = vmatpush.bf16.msra.mxu3 %v1049_v1  ;;  %v1039_v11 = vld [vmem:[%s1195_s9 + $0x60] sm:$0xff]  ;;  %v1040_v15 = vld [vmem:[%s1195_s9 + $0x68] sm:$0xff]  ;;  %v1041_v19 = vld [vmem:[%s1195_s9 + $0x70] sm:$0xff] }
  0x13   : > { %v1030_v20 = vld [vmem:[%s1195_s9 + $0x18] sm:$0xff]  ;;  %v1216_v24 = vld [vmem:[%s1299_s2] ss:$0 sm:$0xff] }
  0x14   : > { %v1034_v21 = vld [vmem:[%s1195_s9 + $0x38] sm:$0xff] }
  0x15   : > { %521 = vmatpush.bf16.msra.mxu0 %v1048_v2  ;;  %1057 = vmatpush.bf16.msra.mxu1 %v1048_v2  ;;  %v1038_v22 = vld [vmem:[%s1195_s9 + $0x58] sm:$0xff] }
  0x16   : > { %1058 = vmatpush.bf16.msra.mxu2 %v1048_v2  ;;  %1059 = vmatpush.bf16.msra.mxu3 %v1048_v2  ;;  %v1042_v23 = vld [vmem:[%s1195_s9 + $0x78] sm:$0xff] }
  0x19   : > { %522 = vmatpush.bf16.msra.mxu0 %v1047_v3  ;;  %1060 = vmatpush.bf16.msra.mxu1 %v1047_v3 }
  0x1a   : > { %1061 = vmatpush.bf16.msra.mxu2 %v1047_v3  ;;  %1062 = vmatpush.bf16.msra.mxu3 %v1047_v3 }
  0x1d   : > { %523 = vmatpush.bf16.msra.mxu0 %v1046_v4  ;;  %1063 = vmatpush.bf16.msra.mxu1 %v1046_v4 }
  0x1e   : > { %1064 = vmatpush.bf16.msra.mxu2 %v1046_v4  ;;  %1065 = vmatpush.bf16.msra.mxu3 %v1046_v4 }
  0x21   : > { %524 = vmatpush.bf16.msra.mxu0 %v1045_v5  ;;  %1066 = vmatpush.bf16.msra.mxu1 %v1045_v5 }
  0x22   : > { %1067 = vmatpush.bf16.msra.mxu2 %v1045_v5  ;;  %1068 = vmatpush.bf16.msra.mxu3 %v1045_v5 }
  0x25   : > { %525 = vmatpush.bf16.msra.mxu0 %v1044_v6  ;;  %1069 = vmatpush.bf16.msra.mxu1 %v1044_v6 }
  0x26   : > { %1070 = vmatpush.bf16.msra.mxu2 %v1044_v6  ;;  %1071 = vmatpush.bf16.msra.mxu3 %v1044_v6 }
  0x29   : > { %526 = vmatpush.bf16.msra.mxu0 %v1043_v7  ;;  %1072 = vmatpush.bf16.msra.mxu1 %v1043_v7 }
  0x2a   : > { %1073 = vmatpush.bf16.msra.mxu2 %v1043_v7  ;;  %1074 = vmatpush.bf16.msra.mxu3 %v1043_v7 }
  0x2c   : > { %527 = vmatmul.bf16.vlgmr.msra.gmra.mxu0 %v1027_v8  ;;  %547 = vmatmul.bf16.vlgmr.msra.gmra.mxu1 %v1031_v9 }
  0x2d   : > { %567 = vmatmul.bf16.vlgmr.msra.gmra.mxu2 %v1035_v10  ;;  %587 = vmatmul.bf16.vlgmr.msra.gmra.mxu3 %v1039_v11 }
  0x3c   : > { %532 = vmatmul.bf16.gmra.mxu0 %v1028_v12  ;;  %552 = vmatmul.bf16.gmra.mxu1 %v1032_v13 }
  0x3d   : > { %572 = vmatmul.bf16.gmra.mxu2 %v1036_v14  ;;  %592 = vmatmul.bf16.gmra.mxu3 %v1040_v15 }
  0x4c   : > { %537 = vmatmul.bf16.gmra.mxu0 %v1029_v16  ;;  %557 = vmatmul.bf16.gmra.mxu1 %v1033_v17 }
  0x4d   : > { %577 = vmatmul.bf16.gmra.mxu2 %v1037_v18  ;;  %597 = vmatmul.bf16.gmra.mxu3 %v1041_v19 }
  0x5c   : > { %542 = vmatmul.bf16.gmra.mxu0 %v1030_v20  ;;  %562 = vmatmul.bf16.gmra.mxu1 %v1034_v21 }
  0x5d   : > { %582 = vmatmul.bf16.gmra.mxu2 %v1038_v22  ;;  %602 = vmatmul.bf16.gmra.mxu3 %v1042_v23 }
  0xa9   : > { %v528_v25 = vpop.f32.mrf.mxu0  ;;  %v548_v26 = vpop.f32.mrf.mxu1 }
  0xaa   : > { %v711_v27 = vadd.f32 %v1216_v24, %v528_v25  ;;  %v719_v28 = vadd.f32 %v1216_v24, %v548_v26 }
  0xac   : > { %v743_v29 = vmax.f32 %v711_v27, 0.0  ;;  %v751_v30 = vmax.f32 %v719_v28, 0.0 }
  0xae   : > { %775 = vst [vmem:[%s1224_s18] sm:$0xff] %v743_v29 }
  0xaf   : > { %783 = vst [vmem:[%s1224_s18 + $0x40] sm:$0xff] %v751_v30 }
  0xb0   : > { %v568_v31 = vpop.f32.mrf.mxu2  ;;  %v588_v32 = vpop.f32.mrf.mxu3 }
  0xb1   : > { %v727_v33 = vadd.f32 %v1216_v24, %v568_v31  ;;  %v735_v34 = vadd.f32 %v1216_v24, %v588_v32  ;;  %v530_v35 = vpop.f32.mrf.mxu0  ;;  %v550_v36 = vpop.f32.mrf.mxu1 }
  0xb2   : > { %v712_v37 = vadd.f32 %v1216_v24, %v530_v35  ;;  %v720_v38 = vadd.f32 %v1216_v24, %v550_v36 }
  0xb3   : > { %v759_v39 = vmax.f32 %v727_v33, 0.0  ;;  %v767_v40 = vmax.f32 %v735_v34, 0.0 }
  0xb4   : > { %v744_v41 = vmax.f32 %v712_v37, 0.0  ;;  %v752_v42 = vmax.f32 %v720_v38, 0.0 }
  0xb5   : > { %791 = vst [vmem:[%s1224_s18 + $0x80] sm:$0xff] %v759_v39 }
  0xb6   : > { %799 = vst [vmem:[%s1224_s18 + $0xc0] sm:$0xff] %v767_v40 }
  0xb7   : > { %776 = vst [vmem:[%s1224_s18 + $0x8] sm:$0xff] %v744_v41 }
  0xb8   : > { %784 = vst [vmem:[%s1224_s18 + $0x48] sm:$0xff] %v752_v42  ;;  %v570_v43 = vpop.f32.mrf.mxu2  ;;  %v590_v44 = vpop.f32.mrf.mxu3 }
  0xb9   : > { %v728_v45 = vadd.f32 %v1216_v24, %v570_v43  ;;  %v736_v46 = vadd.f32 %v1216_v24, %v590_v44  ;;  %v533_v47 = vpop.f32.mrf.mxu0  ;;  %v553_v48 = vpop.f32.mrf.mxu1 }
  0xba   : > { %v713_v49 = vadd.f32 %v1216_v24, %v533_v47  ;;  %v721_v50 = vadd.f32 %v1216_v24, %v553_v48 }
  0xbb   : > { %v760_v51 = vmax.f32 %v728_v45, 0.0  ;;  %v768_v52 = vmax.f32 %v736_v46, 0.0 }
  0xbc   : > { %v745_v53 = vmax.f32 %v713_v49, 0.0  ;;  %v753_v54 = vmax.f32 %v721_v50, 0.0 }
  0xbd   : > { %792 = vst [vmem:[%s1224_s18 + $0x88] sm:$0xff] %v760_v51 }
  0xbe   : > { %800 = vst [vmem:[%s1224_s18 + $0xc8] sm:$0xff] %v768_v52 }
  0xbf   : > { %777 = vst [vmem:[%s1224_s18 + $0x10] sm:$0xff] %v745_v53 }
  0xc0   : > { %785 = vst [vmem:[%s1224_s18 + $0x50] sm:$0xff] %v753_v54  ;;  %v573_v55 = vpop.f32.mrf.mxu2  ;;  %v593_v56 = vpop.f32.mrf.mxu3 }
  0xc1   : > { %v729_v57 = vadd.f32 %v1216_v24, %v573_v55  ;;  %v737_v58 = vadd.f32 %v1216_v24, %v593_v56  ;;  %v535_v59 = vpop.f32.mrf.mxu0  ;;  %v555_v60 = vpop.f32.mrf.mxu1 }
  0xc2   : > { %v714_v61 = vadd.f32 %v1216_v24, %v535_v59  ;;  %v722_v62 = vadd.f32 %v1216_v24, %v555_v60 }
  0xc3   : > { %v761_v63 = vmax.f32 %v729_v57, 0.0  ;;  %v769_v0 = vmax.f32 %v737_v58, 0.0 }
  0xc4   : > { %v746_v1 = vmax.f32 %v714_v61, 0.0  ;;  %v754_v2 = vmax.f32 %v722_v62, 0.0 }
  0xc5   : > { %793 = vst [vmem:[%s1224_s18 + $0x90] sm:$0xff] %v761_v63 }
  0xc6   : > { %801 = vst [vmem:[%s1224_s18 + $0xd0] sm:$0xff] %v769_v0 }
  0xc7   : > { %778 = vst [vmem:[%s1224_s18 + $0x18] sm:$0xff] %v746_v1 }
  0xc8   : > { %786 = vst [vmem:[%s1224_s18 + $0x58] sm:$0xff] %v754_v2  ;;  %v575_v3 = vpop.f32.mrf.mxu2  ;;  %v595_v4 = vpop.f32.mrf.mxu3 }
  0xc9   : > { %v730_v5 = vadd.f32 %v1216_v24, %v575_v3  ;;  %v738_v6 = vadd.f32 %v1216_v24, %v595_v4  ;;  %v538_v7 = vpop.f32.mrf.mxu0  ;;  %v558_v8 = vpop.f32.mrf.mxu1 }
  0xca   : > { %v715_v9 = vadd.f32 %v1216_v24, %v538_v7  ;;  %v723_v10 = vadd.f32 %v1216_v24, %v558_v8 }
  0xcb   : > { %v762_v11 = vmax.f32 %v730_v5, 0.0  ;;  %v770_v12 = vmax.f32 %v738_v6, 0.0 }
  0xcc   : > { %v747_v13 = vmax.f32 %v715_v9, 0.0  ;;  %v755_v14 = vmax.f32 %v723_v10, 0.0 }
  0xcd   : > { %794 = vst [vmem:[%s1224_s18 + $0x98] sm:$0xff] %v762_v11 }
  0xce   : > { %802 = vst [vmem:[%s1224_s18 + $0xd8] sm:$0xff] %v770_v12 }
  0xcf   : > { %779 = vst [vmem:[%s1224_s18 + $0x20] sm:$0xff] %v747_v13 }
  0xd0   : > { %787 = vst [vmem:[%s1224_s18 + $0x60] sm:$0xff] %v755_v14  ;;  %v578_v15 = vpop.f32.mrf.mxu2  ;;  %v598_v16 = vpop.f32.mrf.mxu3 }
  0xd1   : > { %v731_v17 = vadd.f32 %v1216_v24, %v578_v15  ;;  %v739_v18 = vadd.f32 %v1216_v24, %v598_v16  ;;  %v540_v19 = vpop.f32.mrf.mxu0  ;;  %v560_v20 = vpop.f32.mrf.mxu1 }
  0xd2   : > { %v716_v21 = vadd.f32 %v1216_v24, %v540_v19  ;;  %v724_v22 = vadd.f32 %v1216_v24, %v560_v20 }
  0xd3   : > { %v763_v23 = vmax.f32 %v731_v17, 0.0  ;;  %v771_v25 = vmax.f32 %v739_v18, 0.0 }
  0xd4   : > { %v748_v26 = vmax.f32 %v716_v21, 0.0  ;;  %v756_v27 = vmax.f32 %v724_v22, 0.0 }
  0xd5   : > { %795 = vst [vmem:[%s1224_s18 + $0xa0] sm:$0xff] %v763_v23 }
  0xd6   : > { %803 = vst [vmem:[%s1224_s18 + $0xe0] sm:$0xff] %v771_v25 }
  0xd7   : > { %780 = vst [vmem:[%s1224_s18 + $0x28] sm:$0xff] %v748_v26 }
  0xd8   : > { %788 = vst [vmem:[%s1224_s18 + $0x68] sm:$0xff] %v756_v27  ;;  %v580_v28 = vpop.f32.mrf.mxu2  ;;  %v600_v29 = vpop.f32.mrf.mxu3 }
  0xd9   : > { %v732_v30 = vadd.f32 %v1216_v24, %v580_v28  ;;  %v740_v31 = vadd.f32 %v1216_v24, %v600_v29  ;;  %v543_v32 = vpop.f32.mrf.mxu0  ;;  %v563_v33 = vpop.f32.mrf.mxu1 }
  0xda   : > { %v717_v34 = vadd.f32 %v1216_v24, %v543_v32  ;;  %v725_v35 = vadd.f32 %v1216_v24, %v563_v33 }
  0xdb   : > { %v764_v36 = vmax.f32 %v732_v30, 0.0  ;;  %v772_v37 = vmax.f32 %v740_v31, 0.0 }
  0xdc   : > { %v749_v38 = vmax.f32 %v717_v34, 0.0  ;;  %v757_v39 = vmax.f32 %v725_v35, 0.0 }
  0xdd   : > { %796 = vst [vmem:[%s1224_s18 + $0xa8] sm:$0xff] %v764_v36 }
  0xde   : > { %804 = vst [vmem:[%s1224_s18 + $0xe8] sm:$0xff] %v772_v37 }
  0xdf   : > { %781 = vst [vmem:[%s1224_s18 + $0x30] sm:$0xff] %v749_v38 }
  0xe0   : > { %789 = vst [vmem:[%s1224_s18 + $0x70] sm:$0xff] %v757_v39  ;;  %v583_v40 = vpop.f32.mrf.mxu2  ;;  %v603_v41 = vpop.f32.mrf.mxu3 }
  0xe1   : > { %v733_v42 = vadd.f32 %v1216_v24, %v583_v40  ;;  %v741_v43 = vadd.f32 %v1216_v24, %v603_v41  ;;  %v545_v44 = vpop.f32.mrf.mxu0  ;;  %v565_v45 = vpop.f32.mrf.mxu1 }
  0xe2   : > { %v718_v46 = vadd.f32 %v1216_v24, %v545_v44  ;;  %v726_v47 = vadd.f32 %v1216_v24, %v565_v45 }
  0xe3   : > { %v765_v48 = vmax.f32 %v733_v42, 0.0  ;;  %v773_v49 = vmax.f32 %v741_v43, 0.0 }
  0xe4   : > { %v750_v50 = vmax.f32 %v718_v46, 0.0  ;;  %v758_v51 = vmax.f32 %v726_v47, 0.0 }
  0xe5   : > { %797 = vst [vmem:[%s1224_s18 + $0xb0] sm:$0xff] %v765_v48 }
  0xe6   : > { %805 = vst [vmem:[%s1224_s18 + $0xf0] sm:$0xff] %v773_v49 }
  0xe7   : > { %782 = vst [vmem:[%s1224_s18 + $0x38] sm:$0xff] %v750_v50 }
  0xe8   : > { %790 = vst [vmem:[%s1224_s18 + $0x78] sm:$0xff] %v758_v51  ;;  %v585_v52 = vpop.f32.mrf.mxu2  ;;  %v605_v53 = vpop.f32.mrf.mxu3 }
  0xe9   : > { %v734_v54 = vadd.f32 %v1216_v24, %v585_v52  ;;  %v742_v55 = vadd.f32 %v1216_v24, %v605_v53 }
  0xeb   : > { %v766_v56 = vmax.f32 %v734_v54, 0.0  ;;  %v774_v57 = vmax.f32 %v742_v55, 0.0 }
  0xed   : > { %798 = vst [vmem:[%s1224_s18 + $0xb8] sm:$0xff] %v766_v56 }
  0xee   : > { %806 = vst [vmem:[%s1224_s18 + $0xf8] sm:$0xff] %v774_v57 }
  0xef PF: > { %s13_s14 = sadd.s32 1, %s1122_s14   ;;  %s1301_s12 = smov %s1118_s13 }
  0xf0   : > { %p10_p5 = scmp.ge.s32.totalorder %s13_s14, 4   ;;  %s1302_s13 = smov %s1304_s15 }
  0xf2   :  { %12 = sbr.rel (!%p10_p5) target bundleno = 2 (0x2), region = 76 }

// kernel: resnet_forward.14
= control target key start
LH: loop header
LB: loop body
LE: loop exit
PB: predicated region body
PF: predicated region fallthrough
CT: control target
= control target key end

     0   :  { %s1383_s12 = smov 0   ;;  %s1385_s13 = smov 0   ;;  %s1644_s0 = inlined_call_operand.vmem [shape: bf16[512,640], index: 0, kind: input, shape index: {}]   ;;  %s1645_s1 = inlined_call_operand.vmem [shape: bf16[640,128], index: 1, kind: input, shape index: {}]   ;;  %s1646_s2 = inlined_call_operand.vmem [shape: f32[1,128], index: 2, kind: input, shape index: {}]   ;;  %s1647_s3 = inlined_call_operand.vmem [shape: f32[512,128], index: 3, kind: output, shape index: {}]  }
   0x1   :  { %s1387_s14 = smov 0   ;;  %s1389_s15 = smov 0  }
   0x2   :  { %s1391_s16 = smov 0   ;;  %s1393_s17 = smov 0  }
   0x3   :  { %s1395_s18 = smov 0  }
   0x4 LB: > { %s25_s19 = sadd.s32 1, %s1352_s16  ;;  %s32_s20 = sadd.s32 1, %s1356_s17  ;;  %s1360_s18 = sphi %s1395_s18, %s13_s18   ;;  %s1356_s17 = sphi %s1393_s17, %s1653_s17   ;;  %s1352_s16 = sphi %s1391_s16, %s1652_s16   ;;  %s1348_s15 = sphi %s1389_s15, %s1651_s15   ;;  %s1344_s14 = sphi %s1387_s14, %s1650_s14   ;;  %s1340_s13 = sphi %s1385_s13, %s1649_s13   ;;  %s1336_s12 = sphi %s1383_s12, %s1648_s12  }
   0x5   : > { %p26_p0 = scmp.ge.s32.totalorder %s25_s19, 5  ;;  %p48_p1 = scmp.ne.s32.totalorder %s1340_s13, %s1336_s12 }
   0x6   : > { %p49_p2 = scmp.eq.s32.totalorder %s1360_s18, 0  ;;  %s41_s24 = sadd.s32 1, %s1340_s13 }
   0x7   : > { %s1655_s19 = smov (%p26_p0, %s25_s19), 0  ;;  %s1657_s20 = smov (!%p26_p0, %s32_s20), %s1356_s17 }
   0x8   : > { %p50_p3 = por %p49_p2, %p48_p1  ;;  %p34_p4 = scmp.ge.s32.totalorder %s1657_s20, 2 }
   0x9   : > { %s37_s21 = ssub.s32 %s1352_s16, %s1655_s19  ;;  %p1088_p6 = scmp.ge.s32.totalorder %s1360_s18, 10 }
   0xa   : > { %s1659_s20 = smov (%p34_p4, %s1657_s20), 0 }
   0xb   : > { %s36_s22 = ssub.s32 %s1356_s17, %s1659_s20  ;;  %162 = sbr.rel (%p1088_p6) target bundleno = 55 (0x37), region = 20 }
   0xc   : > { %s38_s23 = sor.u32 %s37_s21, %s36_s22 }
   0xd   : > { %p39_p5 = scmp.eq.s32.totalorder %s38_s23, 0 }
   0xf   : > { %s1434_s25 = scalar_select %p39_p5, %s1340_s13, %s41_s24  }
  0x10   : > { %165 = sbr.rel (!%p50_p3) target bundleno = 55 (0x37), region = 24  ;;  %s167_s26 = sand.u32 (%p50_p3), 1, %s1340_s13  }
  0x11   : > { %s1247_s27 = smul.u32 (%p50_p3), 160, %s1356_s17  ;;  %s1089_s28 = sshll.u32 (%p50_p3), %s167_s26, 7 }
  0x12   : > { %s1448_s7 = scalar_lea.vmem (%p50_p3), [#allocation3], %s1089_s28 }
  0x13   : > { %s172_s29 = sadd.s32 (%p50_p3), %s1352_s16, %s1247_s27 }
  0x14   : > { %s1092_s30 = sshll.u32 (%p50_p3), %s172_s29, 2 }
  0x15   : > { %s1443_s6 = scalar_lea.vmem %s1644_s0, %s1092_s30 }
  0x16   : > { %v191_v0 = vld [vmem:[%s1443_s6] sm:$0xf]  ;;  %v193_v1 = vld [vmem:[%s1443_s6 + $0x14] sm:$0xf]  ;;  %v195_v2 = vld [vmem:[%s1443_s6 + $0x28] sm:$0xf] }
  0x17   : > { %192 = vst [vmem:[%s1448_s7] sm:$0xf] %v191_v0  ;;  %v197_v3 = vld [vmem:[%s1443_s6 + $0x3c] sm:$0xf]  ;;  %v199_v4 = vld [vmem:[%s1443_s6 + $0x50] sm:$0xf] }
  0x18   : > { %194 = vst [vmem:[%s1448_s7 + $0x4] sm:$0xf] %v193_v1  ;;  %v201_v5 = vld [vmem:[%s1443_s6 + $0x64] sm:$0xf]  ;;  %v203_v6 = vld [vmem:[%s1443_s6 + $0x78] sm:$0xf] }
  0x19   : > { %196 = vst [vmem:[%s1448_s7 + $0x8] sm:$0xf] %v195_v2  ;;  %v205_v7 = vld [vmem:[%s1443_s6 + $0x8c] sm:$0xf]  ;;  %v207_v8 = vld [vmem:[%s1443_s6 + $0xa0] sm:$0xf] }
  0x1a   : > { %198 = vst [vmem:[%s1448_s7 + $0xc] sm:$0xf] %v197_v3  ;;  %v209_v9 = vld [vmem:[%s1443_s6 + $0xb4] sm:$0xf]  ;;  %v211_v10 = vld [vmem:[%s1443_s6 + $0xc8] sm:$0xf] }
  0x1b   : > { %200 = vst [vmem:[%s1448_s7 + $0x10] sm:$0xf] %v199_v4  ;;  %v213_v11 = vld [vmem:[%s1443_s6 + $0xdc] sm:$0xf]  ;;  %v215_v12 = vld [vmem:[%s1443_s6 + $0xf0] sm:$0xf] }
  0x1c   : > { %202 = vst [vmem:[%s1448_s7 + $0x14] sm:$0xf] %v201_v5  ;;  %v217_v13 = vld [vmem:[%s1443_s6 + $0x104] sm:$0xf]  ;;  %v219_v14 = vld [vmem:[%s1443_s6 + $0x118] sm:$0xf] }
  0x1d   : > { %204 = vst [vmem:[%s1448_s7 + $0x18] sm:$0xf] %v203_v6  ;;  %v221_v15 = vld [vmem:[%s1443_s6 + $0x12c] sm:$0xf]  ;;  %v223_v16 = vld [vmem:[%s1443_s6 + $0x140] sm:$0xf] }
  0x1e   : > { %206 = vst [vmem:[%s1448_s7 + $0x1c] sm:$0xf] %v205_v7  ;;  %v225_v17 = vld [vmem:[%s1443_s6 + $0x154] sm:$0xf]  ;;  %v227_v18 = vld [vmem:[%s1443_s6 + $0x168] sm:$0xf] }
  0x1f   : > { %208 = vst [vmem:[%s1448_s7 + $0x20] sm:$0xf] %v207_v8  ;;  %v229_v19 = vld [vmem:[%s1443_s6 + $0x17c] sm:$0xf]  ;;  %v231_v20 = vld [vmem:[%s1443_s6 + $0x190] sm:$0xf] }
  0x20   : > { %210 = vst [vmem:[%s1448_s7 + $0x24] sm:$0xf] %v209_v9  ;;  %v233_v21 = vld [vmem:[%s1443_s6 + $0x1a4] sm:$0xf]  ;;  %v235_v22 = vld [vmem:[%s1443_s6 + $0x1b8] sm:$0xf] }
  0x21   : > { %212 = vst [vmem:[%s1448_s7 + $0x28] sm:$0xf] %v211_v10  ;;  %v237_v23 = vld [vmem:[%s1443_s6 + $0x1cc] sm:$0xf]  ;;  %v239_v24 = vld [vmem:[%s1443_s6 + $0x1e0] sm:$0xf] }
  0x22   : > { %214 = vst [vmem:[%s1448_s7 + $0x2c] sm:$0xf] %v213_v11  ;;  %v241_v25 = vld [vmem:[%s1443_s6 + $0x1f4] sm:$0xf]  ;;  %v243_v26 = vld [vmem:[%s1443_s6 + $0x208] sm:$0xf] }
  0x23   : > { %216 = vst [vmem:[%s1448_s7 + $0x30] sm:$0xf] %v215_v12  ;;  %v245_v27 = vld [vmem:[%s1443_s6 + $0x21c] sm:$0xf]  ;;  %v247_v28 = vld [vmem:[%s1443_s6 + $0x230] sm:$0xf] }
  0x24   : > { %218 = vst [vmem:[%s1448_s7 + $0x34] sm:$0xf] %v217_v13  ;;  %v249_v29 = vld [vmem:[%s1443_s6 + $0x244] sm:$0xf]  ;;  %v251_v30 = vld [vmem:[%s1443_s6 + $0x258] sm:$0xf] }
  0x25   : > { %220 = vst [vmem:[%s1448_s7 + $0x38] sm:$0xf] %v219_v14  ;;  %v253_v31 = vld [vmem:[%s1443_s6 + $0x26c] sm:$0xf] }
  0x26   : > { %222 = vst [vmem:[%s1448_s7 + $0x3c] sm:$0xf] %v221_v15 }
  0x27   : > { %224 = vst [vmem:[%s1448_s7 + $0x40] sm:$0xf] %v223_v16 }
  0x28   : > { %226 = vst [vmem:[%s1448_s7 + $0x44] sm:$0xf] %v225_v17 }
  0x29   : > { %228 = vst [vmem:[%s1448_s7 + $0x48] sm:$0xf] %v227_v18 }
  0x2a   : > { %230 = vst [vmem:[%s1448_s7 + $0x4c] sm:$0xf] %v229_v19 }
  0x2b   : > { %232 = vst [vmem:[%s1448_s7 + $0x50] sm:$0xf] %v231_v20 }
  0x2c   : > { %234 = vst [vmem:[%s1448_s7 + $0x54] sm:$0xf] %v233_v21 }
  0x2d   : > { %236 = vst [vmem:[%s1448_s7 + $0x58] sm:$0xf] %v235_v22 }
  0x2e   : > { %238 = vst [vmem:[%s1448_s7 + $0x5c] sm:$0xf] %v237_v23 }
  0x2f   : > { %240 = vst [vmem:[%s1448_s7 + $0x60] sm:$0xf] %v239_v24 }
  0x30   : > { %242 = vst [vmem:[%s1448_s7 + $0x64] sm:$0xf] %v241_v25 }
  0x31   : > { %244 = vst [vmem:[%s1448_s7 + $0x68] sm:$0xf] %v243_v26 }
  0x32   : > { %246 = vst [vmem:[%s1448_s7 + $0x6c] sm:$0xf] %v245_v27 }
  0x33   : > { %248 = vst [vmem:[%s1448_s7 + $0x70] sm:$0xf] %v247_v28 }
  0x34   : > { %250 = vst [vmem:[%s1448_s7 + $0x74] sm:$0xf] %v249_v29 }
  0x35   : > { %252 = vst [vmem:[%s1448_s7 + $0x78] sm:$0xf] %v251_v30 }
  0x36   : > { %254 = vst [vmem:[%s1448_s7 + $0x7c] sm:$0xf] %v253_v31 }
  0x37 PF: > { %p1093_p7 = scmp.ge.s32.totalorder %s1360_s18, 1  ;;  %p353_p8 = scmp.lt.s32.totalorder %s1360_s18, 11 }
  0x39   : > { %p354_p9 = pnand %p1093_p7, %p353_p8 }
  0x3a   : > { %s360_s8 = sand.u32 (!%p354_p9), 1, %s1336_s12   ;;  %s1095_s9 = sshll.u32 (!%p354_p9), %s1344_s14, 4 }
  0x3b   : > { %357 = sbr.rel (%p354_p9) target bundleno = 367 (0x16f), region = 69  ;;  %s1094_s10 = sshll.u32 (!%p354_p9), %s360_s8, 7 }
  0x3c   : > { %p399_p10 = scmp.lt.s32.totalorder (!%p354_p9), %s1095_s9, 79  ;;  %s1097_s11 = sshll.u32 (!%p354_p9), %s1348_s15, 5 }
  0x3d   : > { %p411_p11 = scmp.lt.s32.totalorder (!%p354_p9), %s1097_s11, 63  ;;  %s1526_s12 = scalar_lea.vmem (!%p354_p9), [#allocation3], %s1094_s10 }
  0x3e   : > { %p1099_p12 = scmp.ne.s32.totalorder (!%p354_p9), %s1344_s14, 0 }
  0x40   : > { %s1661_s9 = smov (!%p399_p10, %s1095_s9), 79  ;;  %s1663_s11 = smov (!%p411_p11, %s1097_s11), 63 }
  0x41   : > { %s1096_s21 = sshll.u32 %s1661_s9, 2  ;;  %s1098_s26 = sshll.u32 %s1663_s11, 3 }
  0x42   : > { %s1519_s24 = scalar_lea.vmem %s1645_s1, %s1096_s21  ;;  %s1524_s29 = scalar_lea.vmem %s1647_s3, %s1098_s26 }
  0x43   : > { %422 = sbr.rel (%p1099_p12) target bundleno = 105 (0x69), region = 77 }
  0x48   : > { %v1362_v32 = vmov 0.0  }
  0x49   : > { %423 = vst [vmem:[#allocation2 + $0xb0] sm:$0xff] %v1362_v32 }
  0x4a   : > { %424 = vst [vmem:[#allocation2] sm:$0xff] %v1362_v32 }
  0x4b   : > { %425 = vst [vmem:[#allocation2 + $0xd8] sm:$0xff] %v1362_v32 }
  0x4c   : > { %426 = vst [vmem:[#allocation2 + $0x18] sm:$0xff] %v1362_v32 }
  0x4d   : > { %427 = vst [vmem:[#allocation2 + $0x50] sm:$0xff] %v1362_v32 }
  0x4e   : > { %428 = vst [vmem:[#allocation2 + $0x68] sm:$0xff] %v1362_v32 }
  0x4f   : > { %429 = vst [vmem:[#allocation2 + $0x30] sm:$0xff] %v1362_v32 }
  0x50   : > { %430 = vst [vmem:[#allocation2 + $0x48] sm:$0xff] %v1362_v32 }
  0x51   : > { %431 = vst [vmem:[#allocation2 + $0x80] sm:$0xff] %v1362_v32 }
  0x52   : > { %432 = vst [vmem:[#allocation2 + $0x88] sm:$0xff] %v1362_v32 }
  0x53   : > { %433 = vst [vmem:[#allocation2 + $0xe8] sm:$0xff] %v1362_v32 }
  0x54   : > { %434 = vst [vmem:[#allocation2 + $0xb8] sm:$0xff] %v1362_v32 }
  0x55   : > { %435 = vst [vmem:[#allocation2 + $0x60] sm:$0xff] %v1362_v32 }
  0x56   : > { %436 = vst [vmem:[#allocation2 + $0xf0] sm:$0xff] %v1362_v32 }
  0x57   : > { %437 = vst [vmem:[#allocation2 + $0x8] sm:$0xff] %v1362_v32 }
  0x58   : > { %438 = vst [vmem:[#allocation2 + $0x78] sm:$0xff] %v1362_v32 }
  0x59   : > { %439 = vst [vmem:[#allocation2 + $0x38] sm:$0xff] %v1362_v32 }
  0x5a   : > { %440 = vst [vmem:[#allocation2 + $0x58] sm:$0xff] %v1362_v32 }
  0x5b   : > { %441 = vst [vmem:[#allocation2 + $0x40] sm:$0xff] %v1362_v32 }
  0x5c   : > { %442 = vst [vmem:[#allocation2 + $0xc8] sm:$0xff] %v1362_v32 }
  0x5d   : > { %443 = vst [vmem:[#allocation2 + $0xe0] sm:$0xff] %v1362_v32 }
  0x5e   : > { %444 = vst [vmem:[#allocation2 + $0x90] sm:$0xff] %v1362_v32 }
  0x5f   : > { %445 = vst [vmem:[#allocation2 + $0x70] sm:$0xff] %v1362_v32 }
  0x60   : > { %446 = vst [vmem:[#allocation2 + $0xc0] sm:$0xff] %v1362_v32 }
  0x61   : > { %447 = vst [vmem:[#allocation2 + $0xa8] sm:$0xff] %v1362_v32 }
  0x62   : > { %448 = vst [vmem:[#allocation2 + $0xd0] sm:$0xff] %v1362_v32 }
  0x63   : > { %449 = vst [vmem:[#allocation2 + $0x10] sm:$0xff] %v1362_v32 }
  0x64   : > { %450 = vst [vmem:[#allocation2 + $0x28] sm:$0xff] %v1362_v32 }
  0x65   : > { %451 = vst [vmem:[#allocation2 + $0xa0] sm:$0xff] %v1362_v32 }
  0x66   : > { %452 = vst [vmem:[#allocation2 + $0xf8] sm:$0xff] %v1362_v32 }
  0x67   : > { %453 = vst [vmem:[#allocation2 + $0x20] sm:$0xff] %v1362_v32 }
  0x68   : > { %454 = vst [vmem:[#allocation2 + $0x98] sm:$0xff] %v1362_v32 }
  0x69 PF: > { %v1222_v33 = vld [vmem:[%s1519_s24 + $0x38] sm:$0xff]  ;;  %v1221_v34 = vld [vmem:[%s1519_s24 + $0x30] sm:$0xff]  ;;  %v1220_v35 = vld [vmem:[%s1519_s24 + $0x28] sm:$0xff]  ;;  %p1196_p13 = scmp.ne.s32.totalorder %s1344_s14, 4 }
  0x6a   : > { %679 = vmatpush.bf16.msra.mxu0 %v1222_v33  ;;  %1223 = vmatpush.bf16.msra.mxu1 %v1222_v33  ;;  %v1219_v36 = vld [vmem:[%s1519_s24 + $0x20] sm:$0xff]  ;;  %v1218_v37 = vld [vmem:[%s1519_s24 + $0x18] sm:$0xff]  ;;  %v1217_v38 = vld [vmem:[%s1519_s24 + $0x10] sm:$0xff] }
  0x6b   : > { %1224 = vmatpush.bf16.msra.mxu2 %v1222_v33  ;;  %1225 = vmatpush.bf16.msra.mxu3 %v1222_v33  ;;  %v1216_v39 = vld [vmem:[%s1519_s24 + $0x8] sm:$0xff]  ;;  %v1215_v40 = vld [vmem:[%s1519_s24] sm:$0xff]  ;;  %v1201_v49 = vld [vmem:[%s1526_s12 + $0x10] sm:$0xff] }
  0x6c   : > { %v1199_v41 = vld [vmem:[%s1526_s12] sm:$0xff]  ;;  %v1200_v45 = vld [vmem:[%s1526_s12 + $0x8] sm:$0xff]  ;;  %v1205_v50 = vld [vmem:[%s1526_s12 + $0x30] sm:$0xff] }
  0x6d   : > { %v1203_v42 = vld [vmem:[%s1526_s12 + $0x20] sm:$0xff]  ;;  %v1204_v46 = vld [vmem:[%s1526_s12 + $0x28] sm:$0xff]  ;;  %v1209_v51 = vld [vmem:[%s1526_s12 + $0x50] sm:$0xff] }
  0x6e   : > { %680 = vmatpush.bf16.msra.mxu0 %v1221_v34  ;;  %1226 = vmatpush.bf16.msra.mxu1 %v1221_v34  ;;  %v1207_v43 = vld [vmem:[%s1526_s12 + $0x40] sm:$0xff]  ;;  %v1208_v47 = vld [vmem:[%s1526_s12 + $0x48] sm:$0xff]  ;;  %v1213_v52 = vld [vmem:[%s1526_s12 + $0x70] sm:$0xff] }
  0x6f   : > { %1227 = vmatpush.bf16.msra.mxu2 %v1221_v34  ;;  %1228 = vmatpush.bf16.msra.mxu3 %v1221_v34  ;;  %v1211_v44 = vld [vmem:[%s1526_s12 + $0x60] sm:$0xff]  ;;  %v1212_v48 = vld [vmem:[%s1526_s12 + $0x68] sm:$0xff]  ;;  %v1202_v53 = vld [vmem:[%s1526_s12 + $0x18] sm:$0xff] }
  0x70   : > { %v1206_v54 = vld [vmem:[%s1526_s12 + $0x38] sm:$0xff]  ;;  %v455_v57 = vld [vmem:[#allocation2 + $0xb0] sm:$0xff]  ;;  %v463_v58 = vld [vmem:[#allocation2 + $0x80] sm:$0xff] }
  0x71   : > { %v1210_v55 = vld [vmem:[%s1526_s12 + $0x58] sm:$0xff]  ;;  %v479_v0 = vld [vmem:[#allocation2 + $0xa8] sm:$0xff]  ;;  %v456_v1 = vld [vmem:[#allocation2] sm:$0xff] }
  0x72   : > { %681 = vmatpush.bf16.msra.mxu0 %v1220_v35  ;;  %1229 = vmatpush.bf16.msra.mxu1 %v1220_v35  ;;  %v1214_v56 = vld [vmem:[%s1526_s12 + $0x78] sm:$0xff]  ;;  %v464_v2 = vld [vmem:[#allocation2 + $0x88] sm:$0xff]  ;;  %v480_v12 = vld [vmem:[#allocation2 + $0xd0] sm:$0xff] }
  0x73   : > { %1230 = vmatpush.bf16.msra.mxu2 %v1220_v35  ;;  %1231 = vmatpush.bf16.msra.mxu3 %v1220_v35  ;;  %v471_v63 = vld [vmem:[#allocation2 + $0x38] sm:$0xff]  ;;  %v465_v14 = vld [vmem:[#allocation2 + $0xe8] sm:$0xff]  ;;  %v473_v23 = vld [vmem:[#allocation2 + $0x40] sm:$0xff] }
  0x74   : > { %v472_v11 = vld [vmem:[#allocation2 + $0x58] sm:$0xff]  ;;  %v481_v24 = vld [vmem:[#allocation2 + $0x10] sm:$0xff]  ;;  %v474_v35 = vld [vmem:[#allocation2 + $0xc8] sm:$0xff] }
  0x75   : > { %v457_v13 = vld [vmem:[#allocation2 + $0xd8] sm:$0xff] }
  0x76   : > { %682 = vmatpush.bf16.msra.mxu0 %v1219_v36  ;;  %1232 = vmatpush.bf16.msra.mxu1 %v1219_v36  ;;  %v458_v25 = vld [vmem:[#allocation2 + $0x18] sm:$0xff] }
  0x77   : > { %1233 = vmatpush.bf16.msra.mxu2 %v1219_v36  ;;  %1234 = vmatpush.bf16.msra.mxu3 %v1219_v36  ;;  %v466_v26 = vld [vmem:[#allocation2 + $0xb8] sm:$0xff]  ;;  %v482_v36 = vld [vmem:[#allocation2 + $0x28] sm:$0xff] }
  0x7a   : > { %683 = vmatpush.bf16.msra.mxu0 %v1218_v37  ;;  %1235 = vmatpush.bf16.msra.mxu1 %v1218_v37 }
  0x7b   : > { %1236 = vmatpush.bf16.msra.mxu2 %v1218_v37  ;;  %1237 = vmatpush.bf16.msra.mxu3 %v1218_v37  ;;  %v459_v37 = vld [vmem:[#allocation2 + $0x50] sm:$0xff] }
  0x7e   : > { %684 = vmatpush.bf16.msra.mxu0 %v1217_v38  ;;  %1238 = vmatpush.bf16.msra.mxu1 %v1217_v38 }
  0x7f   : > { %1239 = vmatpush.bf16.msra.mxu2 %v1217_v38  ;;  %1240 = vmatpush.bf16.msra.mxu3 %v1217_v38  ;;  %v467_v38 = vld [vmem:[#allocation2 + $0x60] sm:$0xff] }
  0x82   : > { %685 = vmatpush.bf16.msra.mxu0 %v1216_v39  ;;  %1241 = vmatpush.bf16.msra.mxu1 %v1216_v39 }
  0x83   : > { %1242 = vmatpush.bf16.msra.mxu2 %v1216_v39  ;;  %1243 = vmatpush.bf16.msra.mxu3 %v1216_v39 }
  0x86   : > { %686 = vmatpush.bf16.msra.mxu0 %v1215_v40  ;;  %1244 = vmatpush.bf16.msra.mxu1 %v1215_v40 }
  0x87   : > { %1245 = vmatpush.bf16.msra.mxu2 %v1215_v40  ;;  %1246 = vmatpush.bf16.msra.mxu3 %v1215_v40 }
  0x89   : > { %687 = vmatmul.bf16.vlgmr.msra.gmra.mxu0 %v1199_v41  ;;  %707 = vmatmul.bf16.vlgmr.msra.gmra.mxu1 %v1203_v42 }
  0x8a   : > { %727 = vmatmul.bf16.vlgmr.msra.gmra.mxu2 %v1207_v43  ;;  %747 = vmatmul.bf16.vlgmr.msra.gmra.mxu3 %v1211_v44 }
  0x99   : > { %692 = vmatmul.bf16.gmra.mxu0 %v1200_v45  ;;  %712 = vmatmul.bf16.gmra.mxu1 %v1204_v46 }
  0x9a   : > { %732 = vmatmul.bf16.gmra.mxu2 %v1208_v47  ;;  %752 = vmatmul.bf16.gmra.mxu3 %v1212_v48  ;;  %v475_v47 = vld [vmem:[#allocation2 + $0xe0] sm:$0xff] }
  0x9b   : > { %v483_v48 = vld [vmem:[#allocation2 + $0xa0] sm:$0xff] }
  0xa9   : > { %697 = vmatmul.bf16.gmra.mxu0 %v1201_v49  ;;  %717 = vmatmul.bf16.gmra.mxu1 %v1205_v50  ;;  %v460_v49 = vld [vmem:[#allocation2 + $0x68] sm:$0xff]  ;;  %v468_v50 = vld [vmem:[#allocation2 + $0xf0] sm:$0xff] }
  0xaa   : > { %737 = vmatmul.bf16.gmra.mxu2 %v1209_v51  ;;  %757 = vmatmul.bf16.gmra.mxu3 %v1213_v52 }
  0xb9   : > { %702 = vmatmul.bf16.gmra.mxu0 %v1202_v53  ;;  %722 = vmatmul.bf16.gmra.mxu1 %v1206_v54 }
  0xba   : > { %742 = vmatmul.bf16.gmra.mxu2 %v1210_v55  ;;  %762 = vmatmul.bf16.gmra.mxu3 %v1214_v56 }
 0x106   : > { %v688_v59 = vpop.f32.mrf.mxu0  ;;  %v708_v60 = vpop.f32.mrf.mxu1 }
 0x107   : > { %v768_v61 = vadd.f32 %v688_v59, %v455_v57  ;;  %v776_v62 = vadd.f32 %v708_v60, %v463_v58  ;;  %v476_v59 = vld [vmem:[#allocation2 + $0x90] sm:$0xff]  ;;  %v484_v60 = vld [vmem:[#allocation2 + $0xf8] sm:$0xff] }
 0x109   : > { %800 = vst [vmem:[#allocation2 + $0xb0] sm:$0xff] %v768_v61  ;;  %v461_v61 = vld [vmem:[#allocation2 + $0x30] sm:$0xff] }
 0x10a   : > { %808 = vst [vmem:[#allocation2 + $0x80] sm:$0xff] %v776_v62  ;;  %v469_v62 = vld [vmem:[#allocation2 + $0x8] sm:$0xff] }
 0x10d   : > { %v728_v3 = vpop.f32.mrf.mxu2  ;;  %v748_v4 = vpop.f32.mrf.mxu3 }
 0x10e   : > { %v784_v5 = vadd.f32 %v728_v3, %v471_v63  ;;  %v792_v6 = vadd.f32 %v748_v4, %v479_v0  ;;  %v690_v7 = vpop.f32.mrf.mxu0  ;;  %v710_v8 = vpop.f32.mrf.mxu1 }
 0x10f   : > { %v769_v9 = vadd.f32 %v690_v7, %v456_v1  ;;  %v777_v10 = vadd.f32 %v710_v8, %v464_v2  ;;  %v477_v7 = vld [vmem:[#allocation2 + $0x70] sm:$0xff]  ;;  %v485_v8 = vld [vmem:[#allocation2 + $0x20] sm:$0xff] }
 0x110   : > { %816 = vst [vmem:[#allocation2 + $0x38] sm:$0xff] %v784_v5 }
 0x111   : > { %824 = vst [vmem:[#allocation2 + $0xa8] sm:$0xff] %v792_v6 }
 0x112   : > { %801 = vst [vmem:[#allocation2] sm:$0xff] %v769_v9  ;;  %v462_v9 = vld [vmem:[#allocation2 + $0x48] sm:$0xff] }
 0x113   : > { %809 = vst [vmem:[#allocation2 + $0x88] sm:$0xff] %v777_v10  ;;  %v470_v10 = vld [vmem:[#allocation2 + $0x78] sm:$0xff] }
 0x115   : > { %v730_v15 = vpop.f32.mrf.mxu2  ;;  %v750_v16 = vpop.f32.mrf.mxu3 }
 0x116   : > { %v785_v17 = vadd.f32 %v730_v15, %v472_v11  ;;  %v793_v18 = vadd.f32 %v750_v16, %v480_v12  ;;  %v693_v19 = vpop.f32.mrf.mxu0  ;;  %v713_v20 = vpop.f32.mrf.mxu1 }
 0x117   : > { %v770_v21 = vadd.f32 %v693_v19, %v457_v13  ;;  %v778_v22 = vadd.f32 %v713_v20, %v465_v14  ;;  %v478_v19 = vld [vmem:[#allocation2 + $0xc0] sm:$0xff]  ;;  %v486_v20 = vld [vmem:[#allocation2 + $0x98] sm:$0xff] }
 0x118   : > { %817 = vst [vmem:[#allocation2 + $0x58] sm:$0xff] %v785_v17 }
 0x119   : > { %825 = vst [vmem:[#allocation2 + $0xd0] sm:$0xff] %v793_v18 }
 0x11a   : > { %802 = vst [vmem:[#allocation2 + $0xd8] sm:$0xff] %v770_v21 }
 0x11b   : > { %810 = vst [vmem:[#allocation2 + $0xe8] sm:$0xff] %v778_v22 }
 0x11d   : > { %v733_v27 = vpop.f32.mrf.mxu2  ;;  %v753_v28 = vpop.f32.mrf.mxu3 }
 0x11e   : > { %v786_v29 = vadd.f32 %v733_v27, %v473_v23  ;;  %v794_v30 = vadd.f32 %v753_v28, %v481_v24  ;;  %v695_v31 = vpop.f32.mrf.mxu0  ;;  %v715_v32 = vpop.f32.mrf.mxu1 }
 0x11f   : > { %v771_v33 = vadd.f32 %v695_v31, %v458_v25  ;;  %v779_v34 = vadd.f32 %v715_v32, %v466_v26 }
 0x120   : > { %818 = vst [vmem:[#allocation2 + $0x40] sm:$0xff] %v786_v29 }
 0x121   : > { %826 = vst [vmem:[#allocation2 + $0x10] sm:$0xff] %v794_v30 }
 0x122   : > { %803 = vst [vmem:[#allocation2 + $0x18] sm:$0xff] %v771_v33 }
 0x123   : > { %811 = vst [vmem:[#allocation2 + $0xb8] sm:$0xff] %v779_v34 }
 0x125   : > { %v735_v39 = vpop.f32.mrf.mxu2  ;;  %v755_v40 = vpop.f32.mrf.mxu3 }
 0x126   : > { %v787_v41 = vadd.f32 %v735_v39, %v474_v35  ;;  %v795_v42 = vadd.f32 %v755_v40, %v482_v36  ;;  %v698_v43 = vpop.f32.mrf.mxu0  ;;  %v718_v44 = vpop.f32.mrf.mxu1 }
 0x127   : > { %v772_v45 = vadd.f32 %v698_v43, %v459_v37  ;;  %v780_v46 = vadd.f32 %v718_v44, %v467_v38 }
 0x128   : > { %819 = vst [vmem:[#allocation2 + $0xc8] sm:$0xff] %v787_v41 }
 0x129   : > { %827 = vst [vmem:[#allocation2 + $0x28] sm:$0xff] %v795_v42 }
 0x12a   : > { %804 = vst [vmem:[#allocation2 + $0x50] sm:$0xff] %v772_v45 }
 0x12b   : > { %812 = vst [vmem:[#allocation2 + $0x60] sm:$0xff] %v780_v46 }
 0x12d   : > { %v738_v51 = vpop.f32.mrf.mxu2  ;;  %v758_v52 = vpop.f32.mrf.mxu3 }
 0x12e   : > { %v788_v53 = vadd.f32 %v738_v51, %v475_v47  ;;  %v796_v54 = vadd.f32 %v758_v52, %v483_v48  ;;  %v700_v55 = vpop.f32.mrf.mxu0  ;;  %v720_v56 = vpop.f32.mrf.mxu1 }
 0x12f   : > { %v773_v57 = vadd.f32 %v700_v55, %v460_v49  ;;  %v781_v58 = vadd.f32 %v720_v56, %v468_v50 }
 0x130   : > { %820 = vst [vmem:[#allocation2 + $0xe0] sm:$0xff] %v788_v53 }
 0x131   : > { %828 = vst [vmem:[#allocation2 + $0xa0] sm:$0xff] %v796_v54 }
 0x132   : > { %805 = vst [vmem:[#allocation2 + $0x68] sm:$0xff] %v773_v57 }
 0x133   : > { %813 = vst [vmem:[#allocation2 + $0xf0] sm:$0xff] %v781_v58 }
 0x135   : > { %v740_v63 = vpop.f32.mrf.mxu2  ;;  %v760_v0 = vpop.f32.mrf.mxu3 }
 0x136   : > { %v789_v1 = vadd.f32 %v740_v63, %v476_v59  ;;  %v797_v2 = vadd.f32 %v760_v0, %v484_v60  ;;  %v703_v3 = vpop.f32.mrf.mxu0  ;;  %v723_v4 = vpop.f32.mrf.mxu1 }
 0x137   : > { %v774_v5 = vadd.f32 %v703_v3, %v461_v61  ;;  %v782_v6 = vadd.f32 %v723_v4, %v469_v62 }
 0x138   : > { %821 = vst [vmem:[#allocation2 + $0x90] sm:$0xff] %v789_v1 }
 0x139   : > { %829 = vst [vmem:[#allocation2 + $0xf8] sm:$0xff] %v797_v2 }
 0x13a   : > { %806 = vst [vmem:[#allocation2 + $0x30] sm:$0xff] %v774_v5 }
 0x13b   : > { %814 = vst [vmem:[#allocation2 + $0x8] sm:$0xff] %v782_v6 }
 0x13d   : > { %v743_v11 = vpop.f32.mrf.mxu2  ;;  %v763_v12 = vpop.f32.mrf.mxu3 }
 0x13e   : > { %v790_v13 = vadd.f32 %v743_v11, %v477_v7  ;;  %v798_v14 = vadd.f32 %v763_v12, %v485_v8  ;;  %v705_v15 = vpop.f32.mrf.mxu0  ;;  %v725_v16 = vpop.f32.mrf.mxu1 }
 0x13f   : > { %v775_v17 = vadd.f32 %v705_v15, %v462_v9  ;;  %v783_v18 = vadd.f32 %v725_v16, %v470_v10 }
 0x140   : > { %822 = vst [vmem:[#allocation2 + $0x70] sm:$0xff] %v790_v13 }
 0x141   : > { %830 = vst [vmem:[#allocation2 + $0x20] sm:$0xff] %v798_v14 }
 0x142   : > { %807 = vst [vmem:[#allocation2 + $0x48] sm:$0xff] %v775_v17 }
 0x143   : > { %815 = vst [vmem:[#allocation2 + $0x78] sm:$0xff] %v783_v18 }
 0x145   : > { %v745_v21 = vpop.f32.mrf.mxu2  ;;  %v765_v22 = vpop.f32.mrf.mxu3  ;;  %835 = sbr.rel (%p1196_p13) target bundleno = 367 (0x16f), region = 81 }
 0x146   : > { %v791_v23 = vadd.f32 %v745_v21, %v478_v19  ;;  %v799_v24 = vadd.f32 %v765_v22, %v486_v20 }
 0x148   : > { %823 = vst [vmem:[#allocation2 + $0xc0] sm:$0xff] %v791_v23 }
 0x149   : > { %831 = vst [vmem:[#allocation2 + $0x98] sm:$0xff] %v799_v24 }
 0x14a   : > { %v836_v25 = vld [vmem:[#allocation2 + $0xb0] sm:$0xff]  ;;  %v1557_v26 = vld [vmem:[%s1646_s2] ss:$0 sm:$0xff]  ;;  %v838_v28 = vld [vmem:[#allocation2 + $0xd8] sm:$0xff] }
 0x14b   : > { %v837_v27 = vld [vmem:[#allocation2] sm:$0xff]  ;;  %v839_v29 = vld [vmem:[#allocation2 + $0x18] sm:$0xff]  ;;  %v872_v30 = vadd.f32 %v1557_v26, %v836_v25  ;;  %v874_v32 = vadd.f32 %v1557_v26, %v838_v28  ;;  %v840_v34 = vld [vmem:[#allocation2 + $0x50] sm:$0xff] }
 0x14c   : > { %v873_v31 = vadd.f32 %v1557_v26, %v837_v27  ;;  %v875_v33 = vadd.f32 %v1557_v26, %v839_v29  ;;  %v841_v35 = vld [vmem:[#allocation2 + $0x68] sm:$0xff]  ;;  %v842_v36 = vld [vmem:[#allocation2 + $0x30] sm:$0xff]  ;;  %v876_v37 = vadd.f32 %v1557_v26, %v840_v34  ;;  %v844_v40 = vld [vmem:[#allocation2 + $0x80] sm:$0xff] }
 0x14d   : > { %v877_v38 = vadd.f32 %v1557_v26, %v841_v35  ;;  %v843_v39 = vld [vmem:[#allocation2 + $0x48] sm:$0xff]  ;;  %v904_v41 = vmax.f32 %v872_v30, 0.0  ;;  %v906_v43 = vmax.f32 %v874_v32, 0.0  ;;  %v878_v44 = vadd.f32 %v1557_v26, %v842_v36  ;;  %v847_v51 = vld [vmem:[#allocation2 + $0xb8] sm:$0xff]  ;;  %v848_v54 = vld [vmem:[#allocation2 + $0x60] sm:$0xff] }
 0x14e   : > { %v905_v42 = vmax.f32 %v873_v31, 0.0  ;;  %v845_v45 = vld [vmem:[#allocation2 + $0x88] sm:$0xff]  ;;  %v907_v46 = vmax.f32 %v875_v33, 0.0  ;;  %v879_v47 = vadd.f32 %v1557_v26, %v843_v39  ;;  %v908_v49 = vmax.f32 %v876_v37, 0.0  ;;  %v849_v57 = vld [vmem:[#allocation2 + $0xf0] sm:$0xff]  ;;  %v851_v63 = vld [vmem:[#allocation2 + $0x78] sm:$0xff] }
 0x14f   : > { %v846_v48 = vld [vmem:[#allocation2 + $0xe8] sm:$0xff]  ;;  %936 = vst [vmem:[%s1524_s29] sm:$0xff] %v904_v41  ;;  %v880_v50 = vadd.f32 %v1557_v26, %v844_v40  ;;  %v909_v52 = vmax.f32 %v877_v38, 0.0  ;;  %v881_v53 = vadd.f32 %v1557_v26, %v845_v45  ;;  %v910_v55 = vmax.f32 %v878_v44, 0.0  ;;  %v852_v2 = vld [vmem:[#allocation2 + $0x38] sm:$0xff]  ;;  %v854_v8 = vld [vmem:[#allocation2 + $0x40] sm:$0xff] }
 0x150   : > { %937 = vst [vmem:[%s1524_s29 + $0x8] sm:$0xff] %v905_v42  ;;  %v882_v56 = vadd.f32 %v1557_v26, %v846_v48  ;;  %v911_v58 = vmax.f32 %v879_v47, 0.0  ;;  %v883_v59 = vadd.f32 %v1557_v26, %v847_v51  ;;  %v850_v60 = vld [vmem:[#allocation2 + $0x8] sm:$0xff]  ;;  %v884_v62 = vadd.f32 %v1557_v26, %v848_v54  ;;  %v853_v5 = vld [vmem:[#allocation2 + $0x58] sm:$0xff]  ;;  %v856_v14 = vld [vmem:[#allocation2 + $0xe0] sm:$0xff] }
 0x151   : > { %938 = vst [vmem:[%s1524_s29 + $0x10] sm:$0xff] %v906_v43  ;;  %v912_v61 = vmax.f32 %v880_v50, 0.0  ;;  %v913_v0 = vmax.f32 %v881_v53, 0.0  ;;  %v885_v1 = vadd.f32 %v1557_v26, %v849_v57  ;;  %v886_v4 = vadd.f32 %v1557_v26, %v850_v60  ;;  %v855_v11 = vld [vmem:[#allocation2 + $0xc8] sm:$0xff]  ;;  %v857_v17 = vld [vmem:[#allocation2 + $0x90] sm:$0xff]  ;;  %v859_v23 = vld [vmem:[#allocation2 + $0xc0] sm:$0xff] }
 0x152   : > { %939 = vst [vmem:[%s1524_s29 + $0x18] sm:$0xff] %v907_v46  ;;  %v914_v3 = vmax.f32 %v882_v56, 0.0  ;;  %v915_v6 = vmax.f32 %v883_v59, 0.0  ;;  %v887_v7 = vadd.f32 %v1557_v26, %v851_v63  ;;  %v916_v9 = vmax.f32 %v884_v62, 0.0  ;;  %v858_v20 = vld [vmem:[#allocation2 + $0x70] sm:$0xff]  ;;  %v860_v27 = vld [vmem:[#allocation2 + $0xa8] sm:$0xff] }
 0x153   : > { %940 = vst [vmem:[%s1524_s29 + $0x20] sm:$0xff] %v908_v49  ;;  %v888_v10 = vadd.f32 %v1557_v26, %v852_v2  ;;  %v917_v12 = vmax.f32 %v885_v1, 0.0  ;;  %v889_v13 = vadd.f32 %v1557_v26, %v853_v5  ;;  %v918_v15 = vmax.f32 %v886_v4, 0.0  ;;  %v861_v30 = vld [vmem:[#allocation2 + $0xd0] sm:$0xff]  ;;  %v863_v36 = vld [vmem:[#allocation2 + $0x28] sm:$0xff]  ;;  %v864_v39 = vld [vmem:[#allocation2 + $0xa0] sm:$0xff] }
 0x154   : > { %941 = vst [vmem:[%s1524_s29 + $0x28] sm:$0xff] %v909_v52  ;;  %v890_v16 = vadd.f32 %v1557_v26, %v854_v8  ;;  %v919_v18 = vmax.f32 %v887_v7, 0.0  ;;  %v891_v19 = vadd.f32 %v1557_v26, %v855_v11  ;;  %v892_v22 = vadd.f32 %v1557_v26, %v856_v14  ;;  %v862_v33 = vld [vmem:[#allocation2 + $0x10] sm:$0xff]  ;;  %v865_v42 = vld [vmem:[#allocation2 + $0xf8] sm:$0xff]  ;;  %v866_v45 = vld [vmem:[#allocation2 + $0x20] sm:$0xff] }
 0x155   : > { %942 = vst [vmem:[%s1524_s29 + $0x30] sm:$0xff] %v910_v55  ;;  %v920_v21 = vmax.f32 %v888_v10, 0.0  ;;  %v921_v24 = vmax.f32 %v889_v13, 0.0  ;;  %v893_v25 = vadd.f32 %v1557_v26, %v857_v17  ;;  %v894_v29 = vadd.f32 %v1557_v26, %v858_v20  ;;  %v867_v48 = vld [vmem:[#allocation2 + $0x98] sm:$0xff] }
 0x156   : > { %943 = vst [vmem:[%s1524_s29 + $0x38] sm:$0xff] %v911_v58  ;;  %v922_v28 = vmax.f32 %v890_v16, 0.0  ;;  %v923_v31 = vmax.f32 %v891_v19, 0.0  ;;  %v895_v32 = vadd.f32 %v1557_v26, %v859_v23  ;;  %v924_v34 = vmax.f32 %v892_v22, 0.0 }
 0x157   : > { %944 = vst [vmem:[%s1524_s29 + $0x40] sm:$0xff] %v912_v61  ;;  %v896_v35 = vadd.f32 %v1557_v26, %v860_v27  ;;  %v925_v37 = vmax.f32 %v893_v25, 0.0  ;;  %v897_v38 = vadd.f32 %v1557_v26, %v861_v30  ;;  %v926_v40 = vmax.f32 %v894_v29, 0.0 }
 0x158   : > { %945 = vst [vmem:[%s1524_s29 + $0x48] sm:$0xff] %v913_v0  ;;  %v898_v41 = vadd.f32 %v1557_v26, %v862_v33  ;;  %v927_v43 = vmax.f32 %v895_v32, 0.0  ;;  %v899_v44 = vadd.f32 %v1557_v26, %v863_v36  ;;  %v900_v47 = vadd.f32 %v1557_v26, %v864_v39 }
 0x159   : > { %946 = vst [vmem:[%s1524_s29 + $0x50] sm:$0xff] %v914_v3  ;;  %v928_v46 = vmax.f32 %v896_v35, 0.0  ;;  %v929_v49 = vmax.f32 %v897_v38, 0.0  ;;  %v901_v50 = vadd.f32 %v1557_v26, %v865_v42  ;;  %v902_v52 = vadd.f32 %v1557_v26, %v866_v45 }
 0x15a   : > { %947 = vst [vmem:[%s1524_s29 + $0x58] sm:$0xff] %v915_v6  ;;  %v930_v51 = vmax.f32 %v898_v41, 0.0  ;;  %v931_v53 = vmax.f32 %v899_v44, 0.0  ;;  %v903_v54 = vadd.f32 %v1557_v26, %v867_v48  ;;  %v932_v55 = vmax.f32 %v900_v47, 0.0 }
 0x15b   : > { %948 = vst [vmem:[%s1524_s29 + $0x60] sm:$0xff] %v916_v9  ;;  %v933_v56 = vmax.f32 %v901_v50, 0.0  ;;  %v934_v57 = vmax.f32 %v902_v52, 0.0 }
 0x15c   : > { %949 = vst [vmem:[%s1524_s29 + $0x68] sm:$0xff] %v917_v12  ;;  %v935_v58 = vmax.f32 %v903_v54, 0.0 }
 0x15d   : > { %950 = vst [vmem:[%s1524_s29 + $0x70] sm:$0xff] %v918_v15 }
 0x15e   : > { %951 = vst [vmem:[%s1524_s29 + $0x78] sm:$0xff] %v919_v18 }
 0x15f   : > { %952 = vst [vmem:[%s1524_s29 + $0x80] sm:$0xff] %v920_v21 }
 0x160   : > { %953 = vst [vmem:[%s1524_s29 + $0x88] sm:$0xff] %v921_v24 }
 0x161   : > { %954 = vst [vmem:[%s1524_s29 + $0x90] sm:$0xff] %v922_v28 }
 0x162   : > { %955 = vst [vmem:[%s1524_s29 + $0x98] sm:$0xff] %v923_v31 }
 0x163   : > { %956 = vst [vmem:[%s1524_s29 + $0xa0] sm:$0xff] %v924_v34 }
 0x164   : > { %957 = vst [vmem:[%s1524_s29 + $0xa8] sm:$0xff] %v925_v37 }
 0x165   : > { %958 = vst [vmem:[%s1524_s29 + $0xb0] sm:$0xff] %v926_v40 }
 0x166   : > { %959 = vst [vmem:[%s1524_s29 + $0xb8] sm:$0xff] %v927_v43 }
 0x167   : > { %960 = vst [vmem:[%s1524_s29 + $0xc0] sm:$0xff] %v928_v46 }
 0x168   : > { %961 = vst [vmem:[%s1524_s29 + $0xc8] sm:$0xff] %v929_v49 }
 0x169   : > { %962 = vst [vmem:[%s1524_s29 + $0xd0] sm:$0xff] %v930_v51 }
 0x16a   : > { %963 = vst [vmem:[%s1524_s29 + $0xd8] sm:$0xff] %v931_v53 }
 0x16b   : > { %964 = vst [vmem:[%s1524_s29 + $0xe0] sm:$0xff] %v932_v55 }
 0x16c   : > { %965 = vst [vmem:[%s1524_s29 + $0xe8] sm:$0xff] %v933_v56 }
 0x16d   : > { %966 = vst [vmem:[%s1524_s29 + $0xf0] sm:$0xff] %v934_v57 }
 0x16e   : > { %967 = vst [vmem:[%s1524_s29 + $0xf8] sm:$0xff] %v935_v58 }
 0x16f PF: > { %s13_s18 = sadd.s32 1, %s1360_s18   ;;  %s1648_s12 = smov %s1340_s13 }
 0x170   : > { %p10_p0 = scmp.ge.s32.totalorder %s13_s18, 12   ;;  %s1649_s13 = smov %s1434_s25 }
 0x171   : > { %s1650_s14 = smov %s1352_s16  ;;  %s1651_s15 = smov %s1356_s17 }
 0x172   : > { %s1652_s16 = smov %s1655_s19  ;;  %s1653_s17 = smov %s1659_s20 }
 0x173   :  { %12 = sbr.rel (!%p10_p0) target bundleno = 4 (0x4), region = 122 }

// kernel: resnet_forward.15
= control target key start
LH: loop header
LB: loop body
LE: loop exit
PB: predicated region body
PF: predicated region fallthrough
CT: control target
= control target key end

     0   :  { %s1640_s15 = smov 0   ;;  %s1642_s16 = smov 0   ;;  %s1922_s0 = inlined_call_operand.vmem [shape: bf16[512,640], index: 0, kind: input, shape index: {}]   ;;  %s1923_s1 = inlined_call_operand.vmem [shape: bf16[640,128], index: 1, kind: input, shape index: {}]   ;;  %s1924_s2 = inlined_call_operand.vmem [shape: f32[1,128], index: 2, kind: input, shape index: {}]   ;;  %s1925_s3 = inlined_call_operand.vmem [shape: bf16[512,128], index: 3, kind: input, shape index: {}]   ;;  %s1926_s4 = inlined_call_operand.vmem [shape: f32[512,128], index: 4, kind: output, shape index: {}]  }
   0x1   :  { %s1644_s17 = smov 0   ;;  %s1646_s18 = smov 0  }
   0x2   :  { %s1648_s19 = smov 0   ;;  %s1650_s20 = smov 0  }
   0x3   :  { %s1652_s21 = smov 0  }
   0x4 LB: > { %s26_s22 = sadd.s32 1, %s1604_s19  ;;  %s33_s23 = sadd.s32 1, %s1608_s20  ;;  %s1612_s21 = sphi %s1652_s21, %s14_s21   ;;  %s1608_s20 = sphi %s1650_s20, %s1932_s20   ;;  %s1604_s19 = sphi %s1648_s19, %s1931_s19   ;;  %s1600_s18 = sphi %s1646_s18, %s1930_s18   ;;  %s1596_s17 = sphi %s1644_s17, %s1929_s17   ;;  %s1592_s16 = sphi %s1642_s16, %s1928_s16   ;;  %s1588_s15 = sphi %s1640_s15, %s1927_s15  }
   0x5   : > { %p27_p0 = scmp.ge.s32.totalorder %s26_s22, 5  ;;  %p49_p1 = scmp.ne.s32.totalorder %s1592_s16, %s1588_s15 }
   0x6   : > { %p50_p2 = scmp.eq.s32.totalorder %s1612_s21, 0  ;;  %s42_s27 = sadd.s32 1, %s1592_s16 }
   0x7   : > { %s1934_s22 = smov (%p27_p0, %s26_s22), 0  ;;  %s1936_s23 = smov (!%p27_p0, %s33_s23), %s1608_s20 }
   0x8   : > { %p51_p3 = por %p50_p2, %p49_p1  ;;  %p35_p4 = scmp.ge.s32.totalorder %s1936_s23, 2 }
   0x9   : > { %s38_s24 = ssub.s32 %s1604_s19, %s1934_s22  ;;  %p1259_p6 = scmp.ge.s32.totalorder %s1612_s21, 10 }
   0xa   : > { %s1938_s23 = smov (%p35_p4, %s1936_s23), 0 }
   0xb   : > { %s37_s25 = ssub.s32 %s1608_s20, %s1938_s23  ;;  %191 = sbr.rel (%p1259_p6) target bundleno = 55 (0x37), region = 20 }
   0xc   : > { %s39_s26 = sor.u32 %s38_s24, %s37_s25 }
   0xd   : > { %p40_p5 = scmp.eq.s32.totalorder %s39_s26, 0 }
   0xf   : > { %s1691_s28 = scalar_select %p40_p5, %s1592_s16, %s42_s27  }
  0x10   : > { %194 = sbr.rel (!%p51_p3) target bundleno = 55 (0x37), region = 24  ;;  %s196_s29 = sand.u32 (%p51_p3), 1, %s1592_s16  }
  0x11   : > { %s1499_s30 = smul.u32 (%p51_p3), 160, %s1608_s20  ;;  %s1260_s5 = sshll.u32 (%p51_p3), %s196_s29, 7 }
  0x12   : > { %s1705_s11 = scalar_lea.vmem (%p51_p3), [#allocation3], %s1260_s5 }
  0x13   : > { %s201_s6 = sadd.s32 (%p51_p3), %s1604_s19, %s1499_s30 }
  0x14   : > { %s1263_s7 = sshll.u32 (%p51_p3), %s201_s6, 2 }
  0x15   : > { %s1700_s10 = scalar_lea.vmem %s1922_s0, %s1263_s7 }
  0x16   : > { %v220_v0 = vld [vmem:[%s1700_s10] sm:$0xf]  ;;  %v222_v1 = vld [vmem:[%s1700_s10 + $0x14] sm:$0xf]  ;;  %v224_v2 = vld [vmem:[%s1700_s10 + $0x28] sm:$0xf] }
  0x17   : > { %221 = vst [vmem:[%s1705_s11] sm:$0xf] %v220_v0  ;;  %v226_v3 = vld [vmem:[%s1700_s10 + $0x3c] sm:$0xf]  ;;  %v228_v4 = vld [vmem:[%s1700_s10 + $0x50] sm:$0xf] }
  0x18   : > { %223 = vst [vmem:[%s1705_s11 + $0x4] sm:$0xf] %v222_v1  ;;  %v230_v5 = vld [vmem:[%s1700_s10 + $0x64] sm:$0xf]  ;;  %v232_v6 = vld [vmem:[%s1700_s10 + $0x78] sm:$0xf] }
  0x19   : > { %225 = vst [vmem:[%s1705_s11 + $0x8] sm:$0xf] %v224_v2  ;;  %v234_v7 = vld [vmem:[%s1700_s10 + $0x8c] sm:$0xf]  ;;  %v236_v8 = vld [vmem:[%s1700_s10 + $0xa0] sm:$0xf] }
  0x1a   : > { %227 = vst [vmem:[%s1705_s11 + $0xc] sm:$0xf] %v226_v3  ;;  %v238_v9 = vld [vmem:[%s1700_s10 + $0xb4] sm:$0xf]  ;;  %v240_v10 = vld [vmem:[%s1700_s10 + $0xc8] sm:$0xf] }
  0x1b   : > { %229 = vst [vmem:[%s1705_s11 + $0x10] sm:$0xf] %v228_v4  ;;  %v242_v11 = vld [vmem:[%s1700_s10 + $0xdc] sm:$0xf]  ;;  %v244_v12 = vld [vmem:[%s1700_s10 + $0xf0] sm:$0xf] }
  0x1c   : > { %231 = vst [vmem:[%s1705_s11 + $0x14] sm:$0xf] %v230_v5  ;;  %v246_v13 = vld [vmem:[%s1700_s10 + $0x104] sm:$0xf]  ;;  %v248_v14 = vld [vmem:[%s1700_s10 + $0x118] sm:$0xf] }
  0x1d   : > { %233 = vst [vmem:[%s1705_s11 + $0x18] sm:$0xf] %v232_v6  ;;  %v250_v15 = vld [vmem:[%s1700_s10 + $0x12c] sm:$0xf]  ;;  %v252_v16 = vld [vmem:[%s1700_s10 + $0x140] sm:$0xf] }
  0x1e   : > { %235 = vst [vmem:[%s1705_s11 + $0x1c] sm:$0xf] %v234_v7  ;;  %v254_v17 = vld [vmem:[%s1700_s10 + $0x154] sm:$0xf]  ;;  %v256_v18 = vld [vmem:[%s1700_s10 + $0x168] sm:$0xf] }
  0x1f   : > { %237 = vst [vmem:[%s1705_s11 + $0x20] sm:$0xf] %v236_v8  ;;  %v258_v19 = vld [vmem:[%s1700_s10 + $0x17c] sm:$0xf]  ;;  %v260_v20 = vld [vmem:[%s1700_s10 + $0x190] sm:$0xf] }
  0x20   : > { %239 = vst [vmem:[%s1705_s11 + $0x24] sm:$0xf] %v238_v9  ;;  %v262_v21 = vld [vmem:[%s1700_s10 + $0x1a4] sm:$0xf]  ;;  %v264_v22 = vld [vmem:[%s1700_s10 + $0x1b8] sm:$0xf] }
  0x21   : > { %241 = vst [vmem:[%s1705_s11 + $0x28] sm:$0xf] %v240_v10  ;;  %v266_v23 = vld [vmem:[%s1700_s10 + $0x1cc] sm:$0xf]  ;;  %v268_v24 = vld [vmem:[%s1700_s10 + $0x1e0] sm:$0xf] }
  0x22   : > { %243 = vst [vmem:[%s1705_s11 + $0x2c] sm:$0xf] %v242_v11  ;;  %v270_v25 = vld [vmem:[%s1700_s10 + $0x1f4] sm:$0xf]  ;;  %v272_v26 = vld [vmem:[%s1700_s10 + $0x208] sm:$0xf] }
  0x23   : > { %245 = vst [vmem:[%s1705_s11 + $0x30] sm:$0xf] %v244_v12  ;;  %v274_v27 = vld [vmem:[%s1700_s10 + $0x21c] sm:$0xf]  ;;  %v276_v28 = vld [vmem:[%s1700_s10 + $0x230] sm:$0xf] }
  0x24   : > { %247 = vst [vmem:[%s1705_s11 + $0x34] sm:$0xf] %v246_v13  ;;  %v278_v29 = vld [vmem:[%s1700_s10 + $0x244] sm:$0xf]  ;;  %v280_v30 = vld [vmem:[%s1700_s10 + $0x258] sm:$0xf] }
  0x25   : > { %249 = vst [vmem:[%s1705_s11 + $0x38] sm:$0xf] %v248_v14  ;;  %v282_v31 = vld [vmem:[%s1700_s10 + $0x26c] sm:$0xf] }
  0x26   : > { %251 = vst [vmem:[%s1705_s11 + $0x3c] sm:$0xf] %v250_v15 }
  0x27   : > { %253 = vst [vmem:[%s1705_s11 + $0x40] sm:$0xf] %v252_v16 }
  0x28   : > { %255 = vst [vmem:[%s1705_s11 + $0x44] sm:$0xf] %v254_v17 }
  0x29   : > { %257 = vst [vmem:[%s1705_s11 + $0x48] sm:$0xf] %v256_v18 }
  0x2a   : > { %259 = vst [vmem:[%s1705_s11 + $0x4c] sm:$0xf] %v258_v19 }
  0x2b   : > { %261 = vst [vmem:[%s1705_s11 + $0x50] sm:$0xf] %v260_v20 }
  0x2c   : > { %263 = vst [vmem:[%s1705_s11 + $0x54] sm:$0xf] %v262_v21 }
  0x2d   : > { %265 = vst [vmem:[%s1705_s11 + $0x58] sm:$0xf] %v264_v22 }
  0x2e   : > { %267 = vst [vmem:[%s1705_s11 + $0x5c] sm:$0xf] %v266_v23 }
  0x2f   : > { %269 = vst [vmem:[%s1705_s11 + $0x60] sm:$0xf] %v268_v24 }
  0x30   : > { %271 = vst [vmem:[%s1705_s11 + $0x64] sm:$0xf] %v270_v25 }
  0x31   : > { %273 = vst [vmem:[%s1705_s11 + $0x68] sm:$0xf] %v272_v26 }
  0x32   : > { %275 = vst [vmem:[%s1705_s11 + $0x6c] sm:$0xf] %v274_v27 }
  0x33   : > { %277 = vst [vmem:[%s1705_s11 + $0x70] sm:$0xf] %v276_v28 }
  0x34   : > { %279 = vst [vmem:[%s1705_s11 + $0x74] sm:$0xf] %v278_v29 }
  0x35   : > { %281 = vst [vmem:[%s1705_s11 + $0x78] sm:$0xf] %v280_v30 }
  0x36   : > { %283 = vst [vmem:[%s1705_s11 + $0x7c] sm:$0xf] %v282_v31 }
  0x37 PF: > { %p1264_p7 = scmp.ge.s32.totalorder %s1612_s21, 1  ;;  %p394_p8 = scmp.lt.s32.totalorder %s1612_s21, 11 }
  0x39   : > { %p395_p9 = pnand %p1264_p7, %p394_p8 }
  0x3a   : > { %s401_s12 = sand.u32 (!%p395_p9), 1, %s1588_s15   ;;  %s1266_s13 = sshll.u32 (!%p395_p9), %s1596_s17, 4 }
  0x3b   : > { %398 = sbr.rel (%p395_p9) target bundleno = 371 (0x173), region = 73  ;;  %s1265_s14 = sshll.u32 (!%p395_p9), %s401_s12, 7 }
  0x3c   : > { %p450_p10 = scmp.lt.s32.totalorder (!%p395_p9), %s1266_s13, 79  ;;  %s1268_s24 = sshll.u32 (!%p395_p9), %s1600_s18, 5 }
  0x3d   : > { %p462_p11 = scmp.lt.s32.totalorder (!%p395_p9), %s1268_s24, 63  ;;  %s1788_s10 = scalar_lea.vmem (!%p395_p9), [#allocation3], %s1265_s14 }
  0x3e   : > { %p1272_p12 = scmp.ne.s32.totalorder (!%p395_p9), %s1596_s17, 0 }
  0x40   : > { %s1940_s13 = smov (!%p450_p10, %s1266_s13), 79  ;;  %s1942_s24 = smov (!%p462_p11, %s1268_s24), 63 }
  0x41   : > { %s1267_s25 = sshll.u32 %s1940_s13, 2  ;;  %s1269_s30 = sshll.u32 %s1942_s24, 2 }
  0x42   : > { %s1776_s29 = scalar_lea.vmem %s1923_s1, %s1267_s25  ;;  %s1271_s5 = sshll.u32 %s1942_s24, 3 }
  0x43   : > { %s1781_s8 = scalar_lea.vmem %s1925_s3, %s1269_s30  ;;  %s1786_s18 = scalar_lea.vmem %s1926_s4, %s1271_s5 }
  0x44   : > { %482 = sbr.rel (%p1272_p12) target bundleno = 106 (0x6a), region = 81 }
  0x49   : > { %v1614_v32 = vmov 0.0  }
  0x4a   : > { %483 = vst [vmem:[#allocation2 + $0xb0] sm:$0xff] %v1614_v32 }
  0x4b   : > { %484 = vst [vmem:[#allocation2] sm:$0xff] %v1614_v32 }
  0x4c   : > { %485 = vst [vmem:[#allocation2 + $0xd8] sm:$0xff] %v1614_v32 }
  0x4d   : > { %486 = vst [vmem:[#allocation2 + $0x18] sm:$0xff] %v1614_v32 }
  0x4e   : > { %487 = vst [vmem:[#allocation2 + $0x50] sm:$0xff] %v1614_v32 }
  0x4f   : > { %488 = vst [vmem:[#allocation2 + $0x68] sm:$0xff] %v1614_v32 }
  0x50   : > { %489 = vst [vmem:[#allocation2 + $0x30] sm:$0xff] %v1614_v32 }
  0x51   : > { %490 = vst [vmem:[#allocation2 + $0x48] sm:$0xff] %v1614_v32 }
  0x52   : > { %491 = vst [vmem:[#allocation2 + $0x80] sm:$0xff] %v1614_v32 }
  0x53   : > { %492 = vst [vmem:[#allocation2 + $0x88] sm:$0xff] %v1614_v32 }
  0x54   : > { %493 = vst [vmem:[#allocation2 + $0xe8] sm:$0xff] %v1614_v32 }
  0x55   : > { %494 = vst [vmem:[#allocation2 + $0xb8] sm:$0xff] %v1614_v32 }
  0x56   : > { %495 = vst [vmem:[#allocation2 + $0x60] sm:$0xff] %v1614_v32 }
  0x57   : > { %496 = vst [vmem:[#allocation2 + $0xf0] sm:$0xff] %v1614_v32 }
  0x58   : > { %497 = vst [vmem:[#allocation2 + $0x8] sm:$0xff] %v1614_v32 }
  0x59   : > { %498 = vst [vmem:[#allocation2 + $0x78] sm:$0xff] %v1614_v32 }
  0x5a   : > { %499 = vst [vmem:[#allocation2 + $0x38] sm:$0xff] %v1614_v32 }
  0x5b   : > { %500 = vst [vmem:[#allocation2 + $0x58] sm:$0xff] %v1614_v32 }
  0x5c   : > { %501 = vst [vmem:[#allocation2 + $0x40] sm:$0xff] %v1614_v32 }
  0x5d   : > { %502 = vst [vmem:[#allocation2 + $0xc8] sm:$0xff] %v1614_v32 }
  0x5e   : > { %503 = vst [vmem:[#allocation2 + $0xe0] sm:$0xff] %v1614_v32 }
  0x5f   : > { %504 = vst [vmem:[#allocation2 + $0x90] sm:$0xff] %v1614_v32 }
  0x60   : > { %505 = vst [vmem:[#allocation2 + $0x70] sm:$0xff] %v1614_v32 }
  0x61   : > { %506 = vst [vmem:[#allocation2 + $0xc0] sm:$0xff] %v1614_v32 }
  0x62   : > { %507 = vst [vmem:[#allocation2 + $0xa8] sm:$0xff] %v1614_v32 }
  0x63   : > { %508 = vst [vmem:[#allocation2 + $0xd0] sm:$0xff] %v1614_v32 }
  0x64   : > { %509 = vst [vmem:[#allocation2 + $0x10] sm:$0xff] %v1614_v32 }
  0x65   : > { %510 = vst [vmem:[#allocation2 + $0x28] sm:$0xff] %v1614_v32 }
  0x66   : > { %511 = vst [vmem:[#allocation2 + $0xa0] sm:$0xff] %v1614_v32 }
  0x67   : > { %512 = vst [vmem:[#allocation2 + $0xf8] sm:$0xff] %v1614_v32 }
  0x68   : > { %513 = vst [vmem:[#allocation2 + $0x20] sm:$0xff] %v1614_v32 }
  0x69   : > { %514 = vst [vmem:[#allocation2 + $0x98] sm:$0xff] %v1614_v32 }
  0x6a PF: > { %v1395_v33 = vld [vmem:[%s1776_s29 + $0x38] sm:$0xff]  ;;  %v1394_v34 = vld [vmem:[%s1776_s29 + $0x30] sm:$0xff]  ;;  %v1393_v35 = vld [vmem:[%s1776_s29 + $0x28] sm:$0xff]  ;;  %p1369_p13 = scmp.ne.s32.totalorder %s1596_s17, 4 }
  0x6b   : > { %739 = vmatpush.bf16.msra.mxu0 %v1395_v33  ;;  %1475 = vmatpush.bf16.msra.mxu1 %v1395_v33  ;;  %v1392_v36 = vld [vmem:[%s1776_s29 + $0x20] sm:$0xff]  ;;  %v1391_v37 = vld [vmem:[%s1776_s29 + $0x18] sm:$0xff]  ;;  %v1390_v38 = vld [vmem:[%s1776_s29 + $0x10] sm:$0xff] }
  0x6c   : > { %1476 = vmatpush.bf16.msra.mxu2 %v1395_v33  ;;  %1477 = vmatpush.bf16.msra.mxu3 %v1395_v33  ;;  %v1389_v39 = vld [vmem:[%s1776_s29 + $0x8] sm:$0xff]  ;;  %v1388_v40 = vld [vmem:[%s1776_s29] sm:$0xff]  ;;  %v1374_v49 = vld [vmem:[%s1788_s10 + $0x10] sm:$0xff] }
  0x6d   : > { %v1372_v41 = vld [vmem:[%s1788_s10] sm:$0xff]  ;;  %v1373_v45 = vld [vmem:[%s1788_s10 + $0x8] sm:$0xff]  ;;  %v1378_v50 = vld [vmem:[%s1788_s10 + $0x30] sm:$0xff] }
  0x6e   : > { %v1376_v42 = vld [vmem:[%s1788_s10 + $0x20] sm:$0xff]  ;;  %v1377_v46 = vld [vmem:[%s1788_s10 + $0x28] sm:$0xff]  ;;  %v1382_v51 = vld [vmem:[%s1788_s10 + $0x50] sm:$0xff] }
  0x6f   : > { %740 = vmatpush.bf16.msra.mxu0 %v1394_v34  ;;  %1478 = vmatpush.bf16.msra.mxu1 %v1394_v34  ;;  %v1380_v43 = vld [vmem:[%s1788_s10 + $0x40] sm:$0xff]  ;;  %v1381_v47 = vld [vmem:[%s1788_s10 + $0x48] sm:$0xff]  ;;  %v1386_v52 = vld [vmem:[%s1788_s10 + $0x70] sm:$0xff] }
  0x70   : > { %1479 = vmatpush.bf16.msra.mxu2 %v1394_v34  ;;  %1480 = vmatpush.bf16.msra.mxu3 %v1394_v34  ;;  %v1384_v44 = vld [vmem:[%s1788_s10 + $0x60] sm:$0xff]  ;;  %v1385_v48 = vld [vmem:[%s1788_s10 + $0x68] sm:$0xff]  ;;  %v1375_v53 = vld [vmem:[%s1788_s10 + $0x18] sm:$0xff] }
  0x71   : > { %v1379_v54 = vld [vmem:[%s1788_s10 + $0x38] sm:$0xff]  ;;  %v515_v57 = vld [vmem:[#allocation2 + $0xb0] sm:$0xff]  ;;  %v523_v58 = vld [vmem:[#allocation2 + $0x80] sm:$0xff] }
  0x72   : > { %v1383_v55 = vld [vmem:[%s1788_s10 + $0x58] sm:$0xff]  ;;  %v539_v0 = vld [vmem:[#allocation2 + $0xa8] sm:$0xff]  ;;  %v516_v1 = vld [vmem:[#allocation2] sm:$0xff] }
  0x73   : > { %741 = vmatpush.bf16.msra.mxu0 %v1393_v35  ;;  %1481 = vmatpush.bf16.msra.mxu1 %v1393_v35  ;;  %v1387_v56 = vld [vmem:[%s1788_s10 + $0x78] sm:$0xff]  ;;  %v524_v2 = vld [vmem:[#allocation2 + $0x88] sm:$0xff]  ;;  %v540_v12 = vld [vmem:[#allocation2 + $0xd0] sm:$0xff] }
  0x74   : > { %1482 = vmatpush.bf16.msra.mxu2 %v1393_v35  ;;  %1483 = vmatpush.bf16.msra.mxu3 %v1393_v35  ;;  %v531_v63 = vld [vmem:[#allocation2 + $0x38] sm:$0xff]  ;;  %v525_v14 = vld [vmem:[#allocation2 + $0xe8] sm:$0xff]  ;;  %v533_v23 = vld [vmem:[#allocation2 + $0x40] sm:$0xff] }
  0x75   : > { %v532_v11 = vld [vmem:[#allocation2 + $0x58] sm:$0xff]  ;;  %v541_v24 = vld [vmem:[#allocation2 + $0x10] sm:$0xff]  ;;  %v534_v35 = vld [vmem:[#allocation2 + $0xc8] sm:$0xff] }
  0x76   : > { %v517_v13 = vld [vmem:[#allocation2 + $0xd8] sm:$0xff] }
  0x77   : > { %742 = vmatpush.bf16.msra.mxu0 %v1392_v36  ;;  %1484 = vmatpush.bf16.msra.mxu1 %v1392_v36  ;;  %v518_v25 = vld [vmem:[#allocation2 + $0x18] sm:$0xff] }
  0x78   : > { %1485 = vmatpush.bf16.msra.mxu2 %v1392_v36  ;;  %1486 = vmatpush.bf16.msra.mxu3 %v1392_v36  ;;  %v526_v26 = vld [vmem:[#allocation2 + $0xb8] sm:$0xff]  ;;  %v542_v36 = vld [vmem:[#allocation2 + $0x28] sm:$0xff] }
  0x7b   : > { %743 = vmatpush.bf16.msra.mxu0 %v1391_v37  ;;  %1487 = vmatpush.bf16.msra.mxu1 %v1391_v37 }
  0x7c   : > { %1488 = vmatpush.bf16.msra.mxu2 %v1391_v37  ;;  %1489 = vmatpush.bf16.msra.mxu3 %v1391_v37  ;;  %v519_v37 = vld [vmem:[#allocation2 + $0x50] sm:$0xff] }
  0x7f   : > { %744 = vmatpush.bf16.msra.mxu0 %v1390_v38  ;;  %1490 = vmatpush.bf16.msra.mxu1 %v1390_v38 }
  0x80   : > { %1491 = vmatpush.bf16.msra.mxu2 %v1390_v38  ;;  %1492 = vmatpush.bf16.msra.mxu3 %v1390_v38  ;;  %v527_v38 = vld [vmem:[#allocation2 + $0x60] sm:$0xff] }
  0x83   : > { %745 = vmatpush.bf16.msra.mxu0 %v1389_v39  ;;  %1493 = vmatpush.bf16.msra.mxu1 %v1389_v39 }
  0x84   : > { %1494 = vmatpush.bf16.msra.mxu2 %v1389_v39  ;;  %1495 = vmatpush.bf16.msra.mxu3 %v1389_v39 }
  0x87   : > { %746 = vmatpush.bf16.msra.mxu0 %v1388_v40  ;;  %1496 = vmatpush.bf16.msra.mxu1 %v1388_v40 }
  0x88   : > { %1497 = vmatpush.bf16.msra.mxu2 %v1388_v40  ;;  %1498 = vmatpush.bf16.msra.mxu3 %v1388_v40 }
  0x8a   : > { %747 = vmatmul.bf16.vlgmr.msra.gmra.mxu0 %v1372_v41  ;;  %767 = vmatmul.bf16.vlgmr.msra.gmra.mxu1 %v1376_v42 }
  0x8b   : > { %787 = vmatmul.bf16.vlgmr.msra.gmra.mxu2 %v1380_v43  ;;  %807 = vmatmul.bf16.vlgmr.msra.gmra.mxu3 %v1384_v44 }
  0x9a   : > { %752 = vmatmul.bf16.gmra.mxu0 %v1373_v45  ;;  %772 = vmatmul.bf16.gmra.mxu1 %v1377_v46 }
  0x9b   : > { %792 = vmatmul.bf16.gmra.mxu2 %v1381_v47  ;;  %812 = vmatmul.bf16.gmra.mxu3 %v1385_v48  ;;  %v535_v47 = vld [vmem:[#allocation2 + $0xe0] sm:$0xff] }
  0x9c   : > { %v543_v48 = vld [vmem:[#allocation2 + $0xa0] sm:$0xff] }
  0xaa   : > { %757 = vmatmul.bf16.gmra.mxu0 %v1374_v49  ;;  %777 = vmatmul.bf16.gmra.mxu1 %v1378_v50  ;;  %v520_v49 = vld [vmem:[#allocation2 + $0x68] sm:$0xff]  ;;  %v528_v50 = vld [vmem:[#allocation2 + $0xf0] sm:$0xff] }
  0xab   : > { %797 = vmatmul.bf16.gmra.mxu2 %v1382_v51  ;;  %817 = vmatmul.bf16.gmra.mxu3 %v1386_v52 }
  0xba   : > { %762 = vmatmul.bf16.gmra.mxu0 %v1375_v53  ;;  %782 = vmatmul.bf16.gmra.mxu1 %v1379_v54 }
  0xbb   : > { %802 = vmatmul.bf16.gmra.mxu2 %v1383_v55  ;;  %822 = vmatmul.bf16.gmra.mxu3 %v1387_v56 }
 0x107   : > { %v748_v59 = vpop.f32.mrf.mxu0  ;;  %v768_v60 = vpop.f32.mrf.mxu1 }
 0x108   : > { %v828_v61 = vadd.f32 %v748_v59, %v515_v57  ;;  %v836_v62 = vadd.f32 %v768_v60, %v523_v58  ;;  %v536_v59 = vld [vmem:[#allocation2 + $0x90] sm:$0xff]  ;;  %v544_v60 = vld [vmem:[#allocation2 + $0xf8] sm:$0xff] }
 0x10a   : > { %860 = vst [vmem:[#allocation2 + $0xb0] sm:$0xff] %v828_v61  ;;  %v521_v61 = vld [vmem:[#allocation2 + $0x30] sm:$0xff] }
 0x10b   : > { %868 = vst [vmem:[#allocation2 + $0x80] sm:$0xff] %v836_v62  ;;  %v529_v62 = vld [vmem:[#allocation2 + $0x8] sm:$0xff] }
 0x10e   : > { %v788_v3 = vpop.f32.mrf.mxu2  ;;  %v808_v4 = vpop.f32.mrf.mxu3 }
 0x10f   : > { %v844_v5 = vadd.f32 %v788_v3, %v531_v63  ;;  %v852_v6 = vadd.f32 %v808_v4, %v539_v0  ;;  %v750_v7 = vpop.f32.mrf.mxu0  ;;  %v770_v8 = vpop.f32.mrf.mxu1 }
 0x110   : > { %v829_v9 = vadd.f32 %v750_v7, %v516_v1  ;;  %v837_v10 = vadd.f32 %v770_v8, %v524_v2  ;;  %v537_v7 = vld [vmem:[#allocation2 + $0x70] sm:$0xff]  ;;  %v545_v8 = vld [vmem:[#allocation2 + $0x20] sm:$0xff] }
 0x111   : > { %876 = vst [vmem:[#allocation2 + $0x38] sm:$0xff] %v844_v5 }
 0x112   : > { %884 = vst [vmem:[#allocation2 + $0xa8] sm:$0xff] %v852_v6 }
 0x113   : > { %861 = vst [vmem:[#allocation2] sm:$0xff] %v829_v9  ;;  %v522_v9 = vld [vmem:[#allocation2 + $0x48] sm:$0xff] }
 0x114   : > { %869 = vst [vmem:[#allocation2 + $0x88] sm:$0xff] %v837_v10  ;;  %v530_v10 = vld [vmem:[#allocation2 + $0x78] sm:$0xff] }
 0x116   : > { %v790_v15 = vpop.f32.mrf.mxu2  ;;  %v810_v16 = vpop.f32.mrf.mxu3 }
 0x117   : > { %v845_v17 = vadd.f32 %v790_v15, %v532_v11  ;;  %v853_v18 = vadd.f32 %v810_v16, %v540_v12  ;;  %v753_v19 = vpop.f32.mrf.mxu0  ;;  %v773_v20 = vpop.f32.mrf.mxu1 }
 0x118   : > { %v830_v21 = vadd.f32 %v753_v19, %v517_v13  ;;  %v838_v22 = vadd.f32 %v773_v20, %v525_v14  ;;  %v538_v19 = vld [vmem:[#allocation2 + $0xc0] sm:$0xff]  ;;  %v546_v20 = vld [vmem:[#allocation2 + $0x98] sm:$0xff] }
 0x119   : > { %877 = vst [vmem:[#allocation2 + $0x58] sm:$0xff] %v845_v17 }
 0x11a   : > { %885 = vst [vmem:[#allocation2 + $0xd0] sm:$0xff] %v853_v18 }
 0x11b   : > { %862 = vst [vmem:[#allocation2 + $0xd8] sm:$0xff] %v830_v21 }
 0x11c   : > { %870 = vst [vmem:[#allocation2 + $0xe8] sm:$0xff] %v838_v22 }
 0x11e   : > { %v793_v27 = vpop.f32.mrf.mxu2  ;;  %v813_v28 = vpop.f32.mrf.mxu3 }
 0x11f   : > { %v846_v29 = vadd.f32 %v793_v27, %v533_v23  ;;  %v854_v30 = vadd.f32 %v813_v28, %v541_v24  ;;  %v755_v31 = vpop.f32.mrf.mxu0  ;;  %v775_v32 = vpop.f32.mrf.mxu1 }
 0x120   : > { %v831_v33 = vadd.f32 %v755_v31, %v518_v25  ;;  %v839_v34 = vadd.f32 %v775_v32, %v526_v26 }
 0x121   : > { %878 = vst [vmem:[#allocation2 + $0x40] sm:$0xff] %v846_v29 }
 0x122   : > { %886 = vst [vmem:[#allocation2 + $0x10] sm:$0xff] %v854_v30 }
 0x123   : > { %863 = vst [vmem:[#allocation2 + $0x18] sm:$0xff] %v831_v33 }
 0x124   : > { %871 = vst [vmem:[#allocation2 + $0xb8] sm:$0xff] %v839_v34 }
 0x126   : > { %v795_v39 = vpop.f32.mrf.mxu2  ;;  %v815_v40 = vpop.f32.mrf.mxu3 }
 0x127   : > { %v847_v41 = vadd.f32 %v795_v39, %v534_v35  ;;  %v855_v42 = vadd.f32 %v815_v40, %v542_v36  ;;  %v758_v43 = vpop.f32.mrf.mxu0  ;;  %v778_v44 = vpop.f32.mrf.mxu1 }
 0x128   : > { %v832_v45 = vadd.f32 %v758_v43, %v519_v37  ;;  %v840_v46 = vadd.f32 %v778_v44, %v527_v38 }
 0x129   : > { %879 = vst [vmem:[#allocation2 + $0xc8] sm:$0xff] %v847_v41 }
 0x12a   : > { %887 = vst [vmem:[#allocation2 + $0x28] sm:$0xff] %v855_v42 }
 0x12b   : > { %864 = vst [vmem:[#allocation2 + $0x50] sm:$0xff] %v832_v45 }
 0x12c   : > { %872 = vst [vmem:[#allocation2 + $0x60] sm:$0xff] %v840_v46 }
 0x12e   : > { %v798_v51 = vpop.f32.mrf.mxu2  ;;  %v818_v52 = vpop.f32.mrf.mxu3 }
 0x12f   : > { %v848_v53 = vadd.f32 %v798_v51, %v535_v47  ;;  %v856_v54 = vadd.f32 %v818_v52, %v543_v48  ;;  %v760_v55 = vpop.f32.mrf.mxu0  ;;  %v780_v56 = vpop.f32.mrf.mxu1 }
 0x130   : > { %v833_v57 = vadd.f32 %v760_v55, %v520_v49  ;;  %v841_v58 = vadd.f32 %v780_v56, %v528_v50 }
 0x131   : > { %880 = vst [vmem:[#allocation2 + $0xe0] sm:$0xff] %v848_v53 }
 0x132   : > { %888 = vst [vmem:[#allocation2 + $0xa0] sm:$0xff] %v856_v54 }
 0x133   : > { %865 = vst [vmem:[#allocation2 + $0x68] sm:$0xff] %v833_v57 }
 0x134   : > { %873 = vst [vmem:[#allocation2 + $0xf0] sm:$0xff] %v841_v58 }
 0x136   : > { %v800_v63 = vpop.f32.mrf.mxu2  ;;  %v820_v0 = vpop.f32.mrf.mxu3 }
 0x137   : > { %v849_v1 = vadd.f32 %v800_v63, %v536_v59  ;;  %v857_v2 = vadd.f32 %v820_v0, %v544_v60  ;;  %v763_v3 = vpop.f32.mrf.mxu0  ;;  %v783_v4 = vpop.f32.mrf.mxu1 }
 0x138   : > { %v834_v5 = vadd.f32 %v763_v3, %v521_v61  ;;  %v842_v6 = vadd.f32 %v783_v4, %v529_v62 }
 0x139   : > { %881 = vst [vmem:[#allocation2 + $0x90] sm:$0xff] %v849_v1 }
 0x13a   : > { %889 = vst [vmem:[#allocation2 + $0xf8] sm:$0xff] %v857_v2 }
 0x13b   : > { %866 = vst [vmem:[#allocation2 + $0x30] sm:$0xff] %v834_v5 }
 0x13c   : > { %874 = vst [vmem:[#allocation2 + $0x8] sm:$0xff] %v842_v6 }
 0x13e   : > { %v803_v11 = vpop.f32.mrf.mxu2  ;;  %v823_v12 = vpop.f32.mrf.mxu3 }
 0x13f   : > { %v850_v13 = vadd.f32 %v803_v11, %v537_v7  ;;  %v858_v14 = vadd.f32 %v823_v12, %v545_v8  ;;  %v765_v15 = vpop.f32.mrf.mxu0  ;;  %v785_v16 = vpop.f32.mrf.mxu1 }
 0x140   : > { %v835_v17 = vadd.f32 %v765_v15, %v522_v9  ;;  %v843_v18 = vadd.f32 %v785_v16, %v530_v10 }
 0x141   : > { %882 = vst [vmem:[#allocation2 + $0x70] sm:$0xff] %v850_v13 }
 0x142   : > { %890 = vst [vmem:[#allocation2 + $0x20] sm:$0xff] %v858_v14 }
 0x143   : > { %867 = vst [vmem:[#allocation2 + $0x48] sm:$0xff] %v835_v17 }
 0x144   : > { %875 = vst [vmem:[#allocation2 + $0x78] sm:$0xff] %v843_v18 }
 0x146   : > { %v805_v21 = vpop.f32.mrf.mxu2  ;;  %v825_v22 = vpop.f32.mrf.mxu3  ;;  %895 = sbr.rel (%p1369_p13) target bundleno = 371 (0x173), region = 85 }
 0x147   : > { %v851_v23 = vadd.f32 %v805_v21, %v538_v19  ;;  %v859_v24 = vadd.f32 %v825_v22, %v546_v20 }
 0x149   : > { %883 = vst [vmem:[#allocation2 + $0xc0] sm:$0xff] %v851_v23 }
 0x14a   : > { %891 = vst [vmem:[#allocation2 + $0x98] sm:$0xff] %v859_v24 }
 0x14b   : > { %v896_v25 = vld [vmem:[#allocation2 + $0xb0] sm:$0xff]  ;;  %v1819_v26 = vld [vmem:[%s1924_s2] ss:$0 sm:$0xff]  ;;  %v898_v29 = vld [vmem:[#allocation2 + $0xd8] sm:$0xff] }
 0x14c   : > { %v1397_v27 = vld [vmem:[%s1781_s8] sm:$0xff]   ;;  %v932_v30 = vadd.f32 %v1819_v26, %v896_v25  ;;  %v1460_v34 = vld [vmem:[%s1781_s8 + $0x8] sm:$0xff]   ;;  %v899_v35 = vld [vmem:[#allocation2 + $0x18] sm:$0xff]  ;;  %v934_v37 = vadd.f32 %v1819_v26, %v898_v29 }
 0x14d   : > { %v897_v28 = vld [vmem:[#allocation2] sm:$0xff]  ;;  %v1398_v31 = vunpack.c.l.bf16 %v1397_v27  ;;  %v1399_v33 = vunpack.c.h.bf16 %v1397_v27  ;;  %v900_v36 = vld [vmem:[#allocation2 + $0x50] sm:$0xff]  ;;  %v1402_v38 = vunpack.c.l.bf16 %v1460_v34  ;;  %v935_v39 = vadd.f32 %v1819_v26, %v899_v35  ;;  %v901_v42 = vld [vmem:[#allocation2 + $0x68] sm:$0xff] }
 0x14e   : > { %v933_v32 = vadd.f32 %v1819_v26, %v897_v28  ;;  %v1403_v40 = vunpack.c.h.bf16 %v1460_v34  ;;  %v1461_v41 = vld [vmem:[%s1781_s8 + $0x10] sm:$0xff]   ;;  %v936_v46 = vadd.f32 %v1819_v26, %v900_v36  ;;  %v1462_v48 = vld [vmem:[%s1781_s8 + $0x18] sm:$0xff]   ;;  %v937_v51 = vadd.f32 %v1819_v26, %v901_v42  ;;  %v903_v53 = vld [vmem:[#allocation2 + $0x48] sm:$0xff] }
 0x14f   : > { %v902_v43 = vld [vmem:[#allocation2 + $0x30] sm:$0xff]  ;;  %v1028_v44 = vadd.f32 %v1398_v31, %v932_v30  ;;  %v1406_v47 = vunpack.c.l.bf16 %v1461_v41  ;;  %v1030_v49 = vadd.f32 %v1402_v38, %v934_v37  ;;  %v1407_v52 = vunpack.c.h.bf16 %v1461_v41  ;;  %v904_v54 = vld [vmem:[#allocation2 + $0x80] sm:$0xff]  ;;  %v905_v60 = vld [vmem:[#allocation2 + $0x88] sm:$0xff] }
 0x150   : > { %v1029_v45 = vadd.f32 %v1399_v33, %v933_v32  ;;  %v1031_v50 = vadd.f32 %v1403_v40, %v935_v39  ;;  %v938_v58 = vadd.f32 %v1819_v26, %v902_v43  ;;  %v1463_v59 = vld [vmem:[%s1781_s8 + $0x20] sm:$0xff]   ;;  %v1410_v0 = vunpack.c.l.bf16 %v1462_v48  ;;  %v906_v1 = vld [vmem:[#allocation2 + $0xe8] sm:$0xff]  ;;  %v907_v7 = vld [vmem:[#allocation2 + $0xb8] sm:$0xff] }
 0x151   : > { %v1060_v55 = vmax.f32 %v1028_v44, 0.0  ;;  %v1032_v57 = vadd.f32 %v1406_v47, %v936_v46  ;;  %v1062_v61 = vmax.f32 %v1030_v49, 0.0  ;;  %v1033_v63 = vadd.f32 %v1407_v52, %v937_v51  ;;  %v1464_v2 = vld [vmem:[%s1781_s8 + $0x28] sm:$0xff]   ;;  %v908_v12 = vld [vmem:[#allocation2 + $0x60] sm:$0xff]  ;;  %v1465_v17 = vld [vmem:[%s1781_s8 + $0x30] sm:$0xff]  }
 0x152   : > { %v1061_v56 = vmax.f32 %v1029_v45, 0.0  ;;  %v1063_v62 = vmax.f32 %v1031_v50, 0.0  ;;  %v939_v4 = vadd.f32 %v1819_v26, %v903_v53  ;;  %v1411_v5 = vunpack.c.h.bf16 %v1462_v48  ;;  %v909_v18 = vld [vmem:[#allocation2 + $0xf0] sm:$0xff]  ;;  %v910_v23 = vld [vmem:[#allocation2 + $0x8] sm:$0xff]  ;;  %v1466_v29 = vld [vmem:[%s1781_s8 + $0x38] sm:$0xff]  }
 0x153   : > { %1092 = vst [vmem:[%s1786_s18] sm:$0xff] %v1060_v55  ;;  %v1064_v3 = vmax.f32 %v1032_v57, 0.0  ;;  %v940_v6 = vadd.f32 %v1819_v26, %v904_v54  ;;  %v1065_v8 = vmax.f32 %v1033_v63, 0.0  ;;  %v1034_v9 = vadd.f32 %v1410_v0, %v938_v58  ;;  %v911_v30 = vld [vmem:[#allocation2 + $0x78] sm:$0xff]  ;;  %v1467_v36 = vld [vmem:[%s1781_s8 + $0x40] sm:$0xff]   ;;  %v1468_v51 = vld [vmem:[%s1781_s8 + $0x48] sm:$0xff]  }
 0x154   : > { %1093 = vst [vmem:[%s1786_s18 + $0x8] sm:$0xff] %v1061_v56  ;;  %v1414_v10 = vunpack.c.l.bf16 %v1463_v59  ;;  %v941_v11 = vadd.f32 %v1819_v26, %v905_v60  ;;  %v1035_v13 = vadd.f32 %v1411_v5, %v939_v4  ;;  %v1415_v14 = vunpack.c.h.bf16 %v1463_v59  ;;  %v912_v35 = vld [vmem:[#allocation2 + $0x38] sm:$0xff]  ;;  %v914_v46 = vld [vmem:[#allocation2 + $0x40] sm:$0xff]  ;;  %v915_v52 = vld [vmem:[#allocation2 + $0xc8] sm:$0xff] }
 0x155   : > { %1094 = vst [vmem:[%s1786_s18 + $0x10] sm:$0xff] %v1062_v61  ;;  %v942_v15 = vadd.f32 %v1819_v26, %v906_v1  ;;  %v1418_v16 = vunpack.c.l.bf16 %v1464_v2  ;;  %v1066_v19 = vmax.f32 %v1034_v9, 0.0  ;;  %v943_v21 = vadd.f32 %v1819_v26, %v907_v7  ;;  %v913_v41 = vld [vmem:[#allocation2 + $0x58] sm:$0xff]  ;;  %v916_v57 = vld [vmem:[#allocation2 + $0xe0] sm:$0xff]  ;;  %v917_v63 = vld [vmem:[#allocation2 + $0x90] sm:$0xff] }
 0x156   : > { %1095 = vst [vmem:[%s1786_s18 + $0x18] sm:$0xff] %v1063_v62  ;;  %v1036_v20 = vadd.f32 %v1414_v10, %v940_v6  ;;  %v1419_v22 = vunpack.c.h.bf16 %v1464_v2  ;;  %v1067_v24 = vmax.f32 %v1035_v13, 0.0  ;;  %v1037_v25 = vadd.f32 %v1415_v14, %v941_v11  ;;  %v1469_v62 = vld [vmem:[%s1781_s8 + $0x50] sm:$0xff]   ;;  %v1470_v5 = vld [vmem:[%s1781_s8 + $0x58] sm:$0xff]   ;;  %v919_v10 = vld [vmem:[#allocation2 + $0xc0] sm:$0xff] }
 0x157   : > { %1096 = vst [vmem:[%s1786_s18 + $0x20] sm:$0xff] %v1064_v3  ;;  %v1038_v27 = vadd.f32 %v1418_v16, %v942_v15  ;;  %v944_v28 = vadd.f32 %v1819_v26, %v908_v12  ;;  %v1422_v33 = vunpack.c.l.bf16 %v1465_v17  ;;  %v945_v34 = vadd.f32 %v1819_v26, %v909_v18  ;;  %v918_v4 = vld [vmem:[#allocation2 + $0x70] sm:$0xff]  ;;  %v920_v15 = vld [vmem:[#allocation2 + $0xa8] sm:$0xff] }
 0x158   : > { %1097 = vst [vmem:[%s1786_s18 + $0x28] sm:$0xff] %v1065_v8  ;;  %v1068_v31 = vmax.f32 %v1036_v20, 0.0  ;;  %v1039_v32 = vadd.f32 %v1419_v22, %v943_v21  ;;  %v1069_v37 = vmax.f32 %v1037_v25, 0.0  ;;  %v1423_v39 = vunpack.c.h.bf16 %v1465_v17  ;;  %v1471_v20 = vld [vmem:[%s1781_s8 + $0x60] sm:$0xff]   ;;  %v921_v21 = vld [vmem:[#allocation2 + $0xd0] sm:$0xff] }
 0x159   : > { %1098 = vst [vmem:[%s1786_s18 + $0x30] sm:$0xff] %v1066_v19  ;;  %v1070_v38 = vmax.f32 %v1038_v27, 0.0  ;;  %v946_v40 = vadd.f32 %v1819_v26, %v910_v23  ;;  %v1040_v43 = vadd.f32 %v1422_v33, %v944_v28  ;;  %v1426_v44 = vunpack.c.l.bf16 %v1466_v29  ;;  %v922_v27 = vld [vmem:[#allocation2 + $0x10] sm:$0xff]  ;;  %v923_v33 = vld [vmem:[#allocation2 + $0x28] sm:$0xff] }
 0x15a   : > { %1099 = vst [vmem:[%s1786_s18 + $0x38] sm:$0xff] %v1067_v24  ;;  %v1071_v42 = vmax.f32 %v1039_v32, 0.0  ;;  %v947_v45 = vadd.f32 %v1819_v26, %v911_v30  ;;  %v1041_v47 = vadd.f32 %v1423_v39, %v945_v34  ;;  %v1427_v48 = vunpack.c.h.bf16 %v1466_v29  ;;  %v1472_v32 = vld [vmem:[%s1781_s8 + $0x68] sm:$0xff]   ;;  %v1473_v39 = vld [vmem:[%s1781_s8 + $0x70] sm:$0xff]  }
 0x15b   : > { %1100 = vst [vmem:[%s1786_s18 + $0x40] sm:$0xff] %v1068_v31  ;;  %v948_v49 = vadd.f32 %v1819_v26, %v912_v35  ;;  %v1430_v50 = vunpack.c.l.bf16 %v1467_v36  ;;  %v1072_v53 = vmax.f32 %v1040_v43, 0.0  ;;  %v1042_v54 = vadd.f32 %v1426_v44, %v946_v40  ;;  %v925_v44 = vld [vmem:[#allocation2 + $0xf8] sm:$0xff] }
 0x15c   : > { %1101 = vst [vmem:[%s1786_s18 + $0x48] sm:$0xff] %v1069_v37  ;;  %v949_v55 = vadd.f32 %v1819_v26, %v913_v41  ;;  %v1431_v56 = vunpack.c.h.bf16 %v1467_v36  ;;  %v1073_v58 = vmax.f32 %v1041_v47, 0.0  ;;  %v1043_v59 = vadd.f32 %v1427_v48, %v947_v45 }
 0x15d   : > { %1102 = vst [vmem:[%s1786_s18 + $0x50] sm:$0xff] %v1070_v38  ;;  %v1044_v60 = vadd.f32 %v1430_v50, %v948_v49  ;;  %v950_v61 = vadd.f32 %v1819_v26, %v914_v46  ;;  %v1074_v0 = vmax.f32 %v1042_v54, 0.0  ;;  %v1434_v2 = vunpack.c.l.bf16 %v1468_v51  ;;  %v924_v38 = vld [vmem:[#allocation2 + $0xa0] sm:$0xff]  ;;  %v1474_v54 = vld [vmem:[%s1781_s8 + $0x78] sm:$0xff]  }
 0x15e   : > { %1103 = vst [vmem:[%s1786_s18 + $0x58] sm:$0xff] %v1071_v42  ;;  %v1045_v1 = vadd.f32 %v1431_v56, %v949_v55  ;;  %v951_v3 = vadd.f32 %v1819_v26, %v915_v52  ;;  %v1075_v6 = vmax.f32 %v1043_v59, 0.0  ;;  %v1435_v8 = vunpack.c.h.bf16 %v1468_v51  ;;  %v926_v49 = vld [vmem:[#allocation2 + $0x20] sm:$0xff]  ;;  %v927_v55 = vld [vmem:[#allocation2 + $0x98] sm:$0xff] }
 0x15f   : > { %1104 = vst [vmem:[%s1786_s18 + $0x60] sm:$0xff] %v1072_v53  ;;  %v1076_v7 = vmax.f32 %v1044_v60, 0.0  ;;  %v952_v9 = vadd.f32 %v1819_v26, %v916_v57  ;;  %v1046_v12 = vadd.f32 %v1434_v2, %v950_v61  ;;  %v1438_v13 = vunpack.c.l.bf16 %v1469_v62 }
 0x160   : > { %1105 = vst [vmem:[%s1786_s18 + $0x68] sm:$0xff] %v1073_v58  ;;  %v1077_v11 = vmax.f32 %v1045_v1, 0.0  ;;  %v953_v14 = vadd.f32 %v1819_v26, %v917_v63  ;;  %v1047_v16 = vadd.f32 %v1435_v8, %v951_v3  ;;  %v1439_v17 = vunpack.c.h.bf16 %v1469_v62 }
 0x161   : > { %1106 = vst [vmem:[%s1786_s18 + $0x70] sm:$0xff] %v1074_v0  ;;  %v954_v18 = vadd.f32 %v1819_v26, %v918_v4  ;;  %v1442_v19 = vunpack.c.l.bf16 %v1470_v5  ;;  %v1078_v22 = vmax.f32 %v1046_v12, 0.0  ;;  %v1048_v23 = vadd.f32 %v1438_v13, %v952_v9 }
 0x162   : > { %1107 = vst [vmem:[%s1786_s18 + $0x78] sm:$0xff] %v1075_v6  ;;  %v955_v24 = vadd.f32 %v1819_v26, %v919_v10  ;;  %v1443_v25 = vunpack.c.h.bf16 %v1470_v5  ;;  %v1079_v28 = vmax.f32 %v1047_v16, 0.0  ;;  %v1049_v29 = vadd.f32 %v1439_v17, %v953_v14 }
 0x163   : > { %1108 = vst [vmem:[%s1786_s18 + $0x80] sm:$0xff] %v1076_v7  ;;  %v1050_v30 = vadd.f32 %v1442_v19, %v954_v18  ;;  %v956_v31 = vadd.f32 %v1819_v26, %v920_v15  ;;  %v1080_v34 = vmax.f32 %v1048_v23, 0.0  ;;  %v1446_v36 = vunpack.c.l.bf16 %v1471_v20 }
 0x164   : > { %1109 = vst [vmem:[%s1786_s18 + $0x88] sm:$0xff] %v1077_v11  ;;  %v1051_v35 = vadd.f32 %v1443_v25, %v955_v24  ;;  %v957_v37 = vadd.f32 %v1819_v26, %v921_v21  ;;  %v1081_v40 = vmax.f32 %v1049_v29, 0.0  ;;  %v1447_v42 = vunpack.c.h.bf16 %v1471_v20 }
 0x165   : > { %1110 = vst [vmem:[%s1786_s18 + $0x90] sm:$0xff] %v1078_v22  ;;  %v1082_v41 = vmax.f32 %v1050_v30, 0.0  ;;  %v958_v43 = vadd.f32 %v1819_v26, %v922_v27  ;;  %v1052_v46 = vadd.f32 %v1446_v36, %v956_v31  ;;  %v1450_v47 = vunpack.c.l.bf16 %v1472_v32 }
 0x166   : > { %1111 = vst [vmem:[%s1786_s18 + $0x98] sm:$0xff] %v1079_v28  ;;  %v1083_v45 = vmax.f32 %v1051_v35, 0.0  ;;  %v959_v48 = vadd.f32 %v1819_v26, %v923_v33  ;;  %v1053_v50 = vadd.f32 %v1447_v42, %v957_v37  ;;  %v1451_v51 = vunpack.c.h.bf16 %v1472_v32 }
 0x167   : > { %1112 = vst [vmem:[%s1786_s18 + $0xa0] sm:$0xff] %v1080_v34  ;;  %v960_v52 = vadd.f32 %v1819_v26, %v924_v38  ;;  %v1454_v53 = vunpack.c.l.bf16 %v1473_v39  ;;  %v1084_v56 = vmax.f32 %v1052_v46, 0.0  ;;  %v1054_v57 = vadd.f32 %v1450_v47, %v958_v43 }
 0x168   : > { %1113 = vst [vmem:[%s1786_s18 + $0xa8] sm:$0xff] %v1081_v40  ;;  %v961_v58 = vadd.f32 %v1819_v26, %v925_v44  ;;  %v1455_v59 = vunpack.c.h.bf16 %v1473_v39  ;;  %v1085_v60 = vmax.f32 %v1053_v50, 0.0  ;;  %v1055_v61 = vadd.f32 %v1451_v51, %v959_v48 }
 0x169   : > { %1114 = vst [vmem:[%s1786_s18 + $0xb0] sm:$0xff] %v1082_v41  ;;  %v1056_v62 = vadd.f32 %v1454_v53, %v960_v52  ;;  %v962_v63 = vadd.f32 %v1819_v26, %v926_v49  ;;  %v1086_v0 = vmax.f32 %v1054_v57, 0.0  ;;  %v1458_v2 = vunpack.c.l.bf16 %v1474_v54 }
 0x16a   : > { %1115 = vst [vmem:[%s1786_s18 + $0xb8] sm:$0xff] %v1083_v45  ;;  %v1057_v1 = vadd.f32 %v1455_v59, %v961_v58  ;;  %v963_v3 = vadd.f32 %v1819_v26, %v927_v55  ;;  %v1087_v4 = vmax.f32 %v1055_v61, 0.0  ;;  %v1459_v6 = vunpack.c.h.bf16 %v1474_v54 }
 0x16b   : > { %1116 = vst [vmem:[%s1786_s18 + $0xc0] sm:$0xff] %v1084_v56  ;;  %v1088_v5 = vmax.f32 %v1056_v62, 0.0  ;;  %v1058_v8 = vadd.f32 %v1458_v2, %v962_v63 }
 0x16c   : > { %1117 = vst [vmem:[%s1786_s18 + $0xc8] sm:$0xff] %v1085_v60  ;;  %v1089_v7 = vmax.f32 %v1057_v1, 0.0  ;;  %v1059_v9 = vadd.f32 %v1459_v6, %v963_v3 }
 0x16d   : > { %1118 = vst [vmem:[%s1786_s18 + $0xd0] sm:$0xff] %v1086_v0  ;;  %v1090_v10 = vmax.f32 %v1058_v8, 0.0 }
 0x16e   : > { %1119 = vst [vmem:[%s1786_s18 + $0xd8] sm:$0xff] %v1087_v4  ;;  %v1091_v11 = vmax.f32 %v1059_v9, 0.0 }
 0x16f   : > { %1120 = vst [vmem:[%s1786_s18 + $0xe0] sm:$0xff] %v1088_v5 }
 0x170   : > { %1121 = vst [vmem:[%s1786_s18 + $0xe8] sm:$0xff] %v1089_v7 }
 0x171   : > { %1122 = vst [vmem:[%s1786_s18 + $0xf0] sm:$0xff] %v1090_v10 }
 0x172   : > { %1123 = vst [vmem:[%s1786_s18 + $0xf8] sm:$0xff] %v1091_v11 }
 0x173 PF: > { %s14_s21 = sadd.s32 1, %s1612_s21   ;;  %s1927_s15 = smov %s1592_s16 }
 0x174   : > { %p11_p0 = scmp.ge.s32.totalorder %s14_s21, 12   ;;  %s1928_s16 = smov %s1691_s28 }
 0x175   : > { %s1929_s17 = smov %s1604_s19  ;;  %s1930_s18 = smov %s1608_s20 }
 0x176   : > { %s1931_s19 = smov %s1934_s22  ;;  %s1932_s20 = smov %s1938_s23 }
 0x177   :  { %13 = sbr.rel (!%p11_p0) target bundleno = 4 (0x4), region = 129 }

// kernel: resnet_forward.16
= control target key start
LH: loop header
LB: loop body
LE: loop exit
PB: predicated region body
PF: predicated region fallthrough
CT: control target
= control target key end

     0   :  { %s1005_s12 = smov 0   ;;  %s1007_s13 = smov 0   ;;  %s1161_s0 = inlined_call_operand.vmem [shape: bf16[128,640], index: 0, kind: input, shape index: {}]   ;;  %s1162_s1 = inlined_call_operand.vmem [shape: bf16[640,128], index: 1, kind: input, shape index: {}]   ;;  %s1163_s2 = inlined_call_operand.vmem [shape: f32[1,128], index: 2, kind: input, shape index: {}]   ;;  %s1164_s3 = inlined_call_operand.vmem [shape: f32[128,128], index: 3, kind: output, shape index: {}]  }
   0x1   :  { %s1009_s14 = smov 0   ;;  %s1011_s15 = smov 0  }
   0x2   :  { %s1013_s16 = smov 0  }
   0x3 LB: > { %s25_s17 = sadd.s32 1, %s978_s15  ;;  %p48_p1 = scmp.ne.s32.totalorder %s970_s13, %s966_s12  ;;  %s982_s16 = sphi %s1013_s16, %s13_s16   ;;  %s978_s15 = sphi %s1011_s15, %s1168_s15   ;;  %s974_s14 = sphi %s1009_s14, %s1167_s14   ;;  %s970_s13 = sphi %s1007_s13, %s1166_s13   ;;  %s966_s12 = sphi %s1005_s12, %s1165_s12  }
   0x4   : > { %p26_p0 = scmp.ge.s32.totalorder %s25_s17, 5  ;;  %p49_p2 = scmp.eq.s32.totalorder %s982_s16, 0 }
   0x5   : > { %s41_s19 = sadd.s32 1, %s970_s13  ;;  %p785_p5 = scmp.ge.s32.totalorder %s982_s16, 5 }
   0x6   : > { %s1170_s17 = smov (%p26_p0, %s25_s17), 0  ;;  %p50_p3 = por %p49_p2, %p48_p1 }
   0x7   : > { %s37_s18 = ssub.s32 %s978_s15, %s1170_s17  ;;  %162 = sbr.rel (%p785_p5) target bundleno = 32 (0x20), region = 20 }
   0x8   : > { %p39_p4 = scmp.eq.s32.totalorder %s37_s18, 0 }
   0xa   : > { %s1040_s20 = scalar_select %p39_p4, %s970_s13, %s41_s19  }
   0xc   : > { %165 = sbr.rel (!%p50_p3) target bundleno = 32 (0x20), region = 24  ;;  %s167_s21 = sand.u32 (%p50_p3), 1, %s970_s13  }
   0xd   : > { %s787_s22 = sshll.u32 (%p50_p3), %s978_s15, 2  ;;  %s786_s23 = sshll.u32 (%p50_p3), %s167_s21, 6 }
   0xe   : > { %s1048_s26 = scalar_lea.vmem (%p50_p3), %s1161_s0, %s787_s22  ;;  %s169_s27 = scalar_lea.vmem (%p50_p3), [#allocation3], %s786_s23 }
   0xf   : > { %v191_v0 = vld [vmem:[%s1048_s26] sm:$0xf] (%p50_p3)  ;;  %v193_v1 = vld [vmem:[%s1048_s26 + $0x14] sm:$0xf] (%p50_p3)  ;;  %v195_v2 = vld [vmem:[%s1048_s26 + $0x28] sm:$0xf] (%p50_p3) }
  0x10   : > { %192 = vst [vmem:[%s169_s27] sm:$0xf] (%p50_p3), %v191_v0  ;;  %v197_v3 = vld [vmem:[%s1048_s26 + $0x3c] sm:$0xf] (%p50_p3)  ;;  %v199_v4 = vld [vmem:[%s1048_s26 + $0x50] sm:$0xf] (%p50_p3) }
  0x11   : > { %194 = vst [vmem:[%s169_s27 + $0x4] sm:$0xf] %v193_v1  ;;  %v201_v5 = vld [vmem:[%s1048_s26 + $0x64] sm:$0xf]  ;;  %v203_v6 = vld [vmem:[%s1048_s26 + $0x78] sm:$0xf] }
  0x12   : > { %196 = vst [vmem:[%s169_s27 + $0x8] sm:$0xf] %v195_v2  ;;  %v205_v7 = vld [vmem:[%s1048_s26 + $0x8c] sm:$0xf]  ;;  %v207_v8 = vld [vmem:[%s1048_s26 + $0xa0] sm:$0xf] }
  0x13   : > { %198 = vst [vmem:[%s169_s27 + $0xc] sm:$0xf] %v197_v3  ;;  %v209_v9 = vld [vmem:[%s1048_s26 + $0xb4] sm:$0xf]  ;;  %v211_v10 = vld [vmem:[%s1048_s26 + $0xc8] sm:$0xf] }
  0x14   : > { %200 = vst [vmem:[%s169_s27 + $0x10] sm:$0xf] %v199_v4  ;;  %v213_v11 = vld [vmem:[%s1048_s26 + $0xdc] sm:$0xf]  ;;  %v215_v12 = vld [vmem:[%s1048_s26 + $0xf0] sm:$0xf] }
  0x15   : > { %202 = vst [vmem:[%s169_s27 + $0x14] sm:$0xf] %v201_v5  ;;  %v217_v13 = vld [vmem:[%s1048_s26 + $0x104] sm:$0xf]  ;;  %v219_v14 = vld [vmem:[%s1048_s26 + $0x118] sm:$0xf] }
  0x16   : > { %204 = vst [vmem:[%s169_s27 + $0x18] sm:$0xf] %v203_v6  ;;  %v221_v15 = vld [vmem:[%s1048_s26 + $0x12c] sm:$0xf] }
  0x17   : > { %206 = vst [vmem:[%s169_s27 + $0x1c] sm:$0xf] %v205_v7 }
  0x18   : > { %208 = vst [vmem:[%s169_s27 + $0x20] sm:$0xf] %v207_v8 }
  0x19   : > { %210 = vst [vmem:[%s169_s27 + $0x24] sm:$0xf] %v209_v9 }
  0x1a   : > { %212 = vst [vmem:[%s169_s27 + $0x28] sm:$0xf] %v211_v10 }
  0x1b   : > { %214 = vst [vmem:[%s169_s27 + $0x2c] sm:$0xf] %v213_v11 }
  0x1c   : > { %216 = vst [vmem:[%s169_s27 + $0x30] sm:$0xf] %v215_v12 }
  0x1d   : > { %218 = vst [vmem:[%s169_s27 + $0x34] sm:$0xf] %v217_v13 }
  0x1e   : > { %220 = vst [vmem:[%s169_s27 + $0x38] sm:$0xf] %v219_v14 }
  0x1f   : > { %222 = vst [vmem:[%s169_s27 + $0x3c] sm:$0xf] %v221_v15 }
  0x20 PF: > { %p788_p6 = scmp.ge.s32.totalorder %s982_s16, 1  ;;  %p289_p7 = scmp.lt.s32.totalorder %s982_s16, 6 }
  0x22   : > { %p290_p8 = pnand %p788_p6, %p289_p7 }
  0x23   : > { %s296_s28 = sand.u32 (!%p290_p8), 1, %s966_s12   ;;  %s790_s29 = sshll.u32 (!%p290_p8), %s974_s14, 4 }
  0x24   : > { %293 = sbr.rel (%p290_p8) target bundleno = 277 (0x115), region = 69  ;;  %s789_s30 = sshll.u32 (!%p290_p8), %s296_s28, 6 }
  0x25   : > { %p335_p9 = scmp.lt.s32.totalorder (!%p290_p8), %s790_s29, 79  ;;  %s1075_s8 = scalar_lea.vmem (!%p290_p8), [#allocation3], %s789_s30 }
  0x26   : > { %p792_p10 = scmp.ne.s32.totalorder (!%p290_p8), %s974_s14, 0 }
  0x29   : > { %s1172_s29 = smov (!%p335_p9, %s790_s29), 79  ;;  %358 = sbr.rel (%p792_p10) target bundleno = 63 (0x3f), region = 77 }
  0x2a   : > { %s791_s4 = sshll.u32 %s1172_s29, 2 }
  0x2b   : > { %s1073_s7 = scalar_lea.vmem %s1162_s1, %s791_s4 }
  0x2e   : > { %v984_v16 = vmov 0.0  }
  0x2f   : > { %359 = vst [vmem:[#allocation2 + $0x30] sm:$0xff] %v984_v16 }
  0x30   : > { %360 = vst [vmem:[#allocation2] sm:$0xff] %v984_v16 }
  0x31   : > { %361 = vst [vmem:[#allocation2 + $0x58] sm:$0xff] %v984_v16 }
  0x32   : > { %362 = vst [vmem:[#allocation2 + $0x18] sm:$0xff] %v984_v16 }
  0x33   : > { %363 = vst [vmem:[#allocation2 + $0x50] sm:$0xff] %v984_v16 }
  0x34   : > { %364 = vst [vmem:[#allocation2 + $0x68] sm:$0xff] %v984_v16 }
  0x35   : > { %365 = vst [vmem:[#allocation2 + $0x8] sm:$0xff] %v984_v16 }
  0x36   : > { %366 = vst [vmem:[#allocation2 + $0x48] sm:$0xff] %v984_v16 }
  0x37   : > { %367 = vst [vmem:[#allocation2 + $0x40] sm:$0xff] %v984_v16 }
  0x38   : > { %368 = vst [vmem:[#allocation2 + $0x20] sm:$0xff] %v984_v16 }
  0x39   : > { %369 = vst [vmem:[#allocation2 + $0x10] sm:$0xff] %v984_v16 }
  0x3a   : > { %370 = vst [vmem:[#allocation2 + $0x38] sm:$0xff] %v984_v16 }
  0x3b   : > { %371 = vst [vmem:[#allocation2 + $0x60] sm:$0xff] %v984_v16 }
  0x3c   : > { %372 = vst [vmem:[#allocation2 + $0x70] sm:$0xff] %v984_v16 }
  0x3d   : > { %373 = vst [vmem:[#allocation2 + $0x78] sm:$0xff] %v984_v16 }
  0x3e   : > { %374 = vst [vmem:[#allocation2 + $0x28] sm:$0xff] %v984_v16 }
  0x3f PF: > { %v877_v17 = vld [vmem:[%s1073_s7 + $0x38] sm:$0xff]  ;;  %v876_v18 = vld [vmem:[%s1073_s7 + $0x30] sm:$0xff]  ;;  %v875_v19 = vld [vmem:[%s1073_s7 + $0x28] sm:$0xff]  ;;  %p857_p11 = scmp.ne.s32.totalorder %s974_s14, 4 }
  0x40   : > { %519 = vmatpush.bf16.msra.mxu0 %v877_v17  ;;  %878 = vmatpush.bf16.msra.mxu1 %v877_v17  ;;  %v874_v20 = vld [vmem:[%s1073_s7 + $0x20] sm:$0xff]  ;;  %v873_v21 = vld [vmem:[%s1073_s7 + $0x18] sm:$0xff]  ;;  %v872_v22 = vld [vmem:[%s1073_s7 + $0x10] sm:$0xff] }
  0x41   : > { %879 = vmatpush.bf16.msra.mxu2 %v877_v17  ;;  %880 = vmatpush.bf16.msra.mxu3 %v877_v17  ;;  %v871_v23 = vld [vmem:[%s1073_s7 + $0x8] sm:$0xff]  ;;  %v870_v24 = vld [vmem:[%s1073_s7] sm:$0xff]  ;;  %v864_v26 = vld [vmem:[%s1075_s8 + $0x10] sm:$0xff] }
  0x42   : > { %v862_v25 = vld [vmem:[%s1075_s8] sm:$0xff]  ;;  %v868_v28 = vld [vmem:[%s1075_s8 + $0x30] sm:$0xff]  ;;  %v863_v29 = vld [vmem:[%s1075_s8 + $0x8] sm:$0xff] }
  0x43   : > { %v866_v27 = vld [vmem:[%s1075_s8 + $0x20] sm:$0xff]  ;;  %v865_v30 = vld [vmem:[%s1075_s8 + $0x18] sm:$0xff]  ;;  %v867_v31 = vld [vmem:[%s1075_s8 + $0x28] sm:$0xff] }
  0x44   : > { %520 = vmatpush.bf16.msra.mxu0 %v876_v18  ;;  %881 = vmatpush.bf16.msra.mxu1 %v876_v18  ;;  %v869_v32 = vld [vmem:[%s1075_s8 + $0x38] sm:$0xff]  ;;  %v375_v33 = vld [vmem:[#allocation2 + $0x30] sm:$0xff]  ;;  %v383_v39 = vld [vmem:[#allocation2 + $0x40] sm:$0xff] }
  0x45   : > { %882 = vmatpush.bf16.msra.mxu2 %v876_v18  ;;  %883 = vmatpush.bf16.msra.mxu3 %v876_v18  ;;  %v379_v34 = vld [vmem:[#allocation2 + $0x50] sm:$0xff]  ;;  %v387_v40 = vld [vmem:[#allocation2 + $0x60] sm:$0xff]  ;;  %v380_v42 = vld [vmem:[#allocation2 + $0x68] sm:$0xff] }
  0x46   : > { %v376_v41 = vld [vmem:[#allocation2] sm:$0xff]  ;;  %v388_v52 = vld [vmem:[#allocation2 + $0x70] sm:$0xff]  ;;  %v377_v53 = vld [vmem:[#allocation2 + $0x58] sm:$0xff] }
  0x47   : > { %v384_v51 = vld [vmem:[#allocation2 + $0x20] sm:$0xff]  ;;  %v381_v54 = vld [vmem:[#allocation2 + $0x8] sm:$0xff]  ;;  %v385_v63 = vld [vmem:[#allocation2 + $0x10] sm:$0xff] }
  0x48   : > { %521 = vmatpush.bf16.msra.mxu0 %v875_v19  ;;  %884 = vmatpush.bf16.msra.mxu1 %v875_v19  ;;  %v389_v0 = vld [vmem:[#allocation2 + $0x78] sm:$0xff]  ;;  %v382_v2 = vld [vmem:[#allocation2 + $0x48] sm:$0xff] }
  0x49   : > { %885 = vmatpush.bf16.msra.mxu2 %v875_v19  ;;  %886 = vmatpush.bf16.msra.mxu3 %v875_v19  ;;  %v378_v1 = vld [vmem:[#allocation2 + $0x18] sm:$0xff]  ;;  %v390_v12 = vld [vmem:[#allocation2 + $0x28] sm:$0xff] }
  0x4a   : > { %v386_v11 = vld [vmem:[#allocation2 + $0x38] sm:$0xff] }
  0x4c   : > { %522 = vmatpush.bf16.msra.mxu0 %v874_v20  ;;  %887 = vmatpush.bf16.msra.mxu1 %v874_v20 }
  0x4d   : > { %888 = vmatpush.bf16.msra.mxu2 %v874_v20  ;;  %889 = vmatpush.bf16.msra.mxu3 %v874_v20 }
  0x50   : > { %523 = vmatpush.bf16.msra.mxu0 %v873_v21  ;;  %890 = vmatpush.bf16.msra.mxu1 %v873_v21 }
  0x51   : > { %891 = vmatpush.bf16.msra.mxu2 %v873_v21  ;;  %892 = vmatpush.bf16.msra.mxu3 %v873_v21 }
  0x54   : > { %524 = vmatpush.bf16.msra.mxu0 %v872_v22  ;;  %893 = vmatpush.bf16.msra.mxu1 %v872_v22 }
  0x55   : > { %894 = vmatpush.bf16.msra.mxu2 %v872_v22  ;;  %895 = vmatpush.bf16.msra.mxu3 %v872_v22 }
  0x58   : > { %525 = vmatpush.bf16.msra.mxu0 %v871_v23  ;;  %896 = vmatpush.bf16.msra.mxu1 %v871_v23 }
  0x59   : > { %897 = vmatpush.bf16.msra.mxu2 %v871_v23  ;;  %898 = vmatpush.bf16.msra.mxu3 %v871_v23 }
  0x5c   : > { %526 = vmatpush.bf16.msra.mxu0 %v870_v24  ;;  %899 = vmatpush.bf16.msra.mxu1 %v870_v24 }
  0x5d   : > { %900 = vmatpush.bf16.msra.mxu2 %v870_v24  ;;  %901 = vmatpush.bf16.msra.mxu3 %v870_v24 }
  0x5f   : > { %527 = vmatmul.bf16.vlgmr.msra.gmra.mxu0 %v862_v25  ;;  %537 = vmatmul.bf16.vlgmr.msra.gmra.mxu1 %v864_v26 }
  0x60   : > { %547 = vmatmul.bf16.vlgmr.msra.gmra.mxu2 %v866_v27  ;;  %557 = vmatmul.bf16.vlgmr.msra.gmra.mxu3 %v868_v28 }
  0x6f   : > { %532 = vmatmul.bf16.gmra.mxu0 %v863_v29  ;;  %542 = vmatmul.bf16.gmra.mxu1 %v865_v30 }
  0x70   : > { %552 = vmatmul.bf16.gmra.mxu2 %v867_v31  ;;  %562 = vmatmul.bf16.gmra.mxu3 %v869_v32 }
  0xdc   : > { %v528_v35 = vpop.f32.mrf.mxu0  ;;  %v538_v36 = vpop.f32.mrf.mxu1 }
  0xdd   : > { %v568_v37 = vadd.f32 %v528_v35, %v375_v33  ;;  %v572_v38 = vadd.f32 %v538_v36, %v379_v34 }
  0xdf   : > { %584 = vst [vmem:[#allocation2 + $0x30] sm:$0xff] %v568_v37 }
  0xe0   : > { %588 = vst [vmem:[#allocation2 + $0x50] sm:$0xff] %v572_v38 }
  0xe3   : > { %v548_v43 = vpop.f32.mrf.mxu2  ;;  %v558_v44 = vpop.f32.mrf.mxu3 }
  0xe4   : > { %v576_v45 = vadd.f32 %v548_v43, %v383_v39  ;;  %v580_v46 = vadd.f32 %v558_v44, %v387_v40  ;;  %v530_v47 = vpop.f32.mrf.mxu0  ;;  %v540_v48 = vpop.f32.mrf.mxu1 }
  0xe5   : > { %v569_v49 = vadd.f32 %v530_v47, %v376_v41  ;;  %v573_v50 = vadd.f32 %v540_v48, %v380_v42 }
  0xe6   : > { %592 = vst [vmem:[#allocation2 + $0x40] sm:$0xff] %v576_v45 }
  0xe7   : > { %596 = vst [vmem:[#allocation2 + $0x60] sm:$0xff] %v580_v46 }
  0xe8   : > { %585 = vst [vmem:[#allocation2] sm:$0xff] %v569_v49 }
  0xe9   : > { %589 = vst [vmem:[#allocation2 + $0x68] sm:$0xff] %v573_v50 }
  0xeb   : > { %v550_v55 = vpop.f32.mrf.mxu2  ;;  %v560_v56 = vpop.f32.mrf.mxu3 }
  0xec   : > { %v577_v57 = vadd.f32 %v550_v55, %v384_v51  ;;  %v581_v58 = vadd.f32 %v560_v56, %v388_v52  ;;  %v533_v59 = vpop.f32.mrf.mxu0  ;;  %v543_v60 = vpop.f32.mrf.mxu1 }
  0xed   : > { %v570_v61 = vadd.f32 %v533_v59, %v377_v53  ;;  %v574_v62 = vadd.f32 %v543_v60, %v381_v54 }
  0xee   : > { %593 = vst [vmem:[#allocation2 + $0x20] sm:$0xff] %v577_v57 }
  0xef   : > { %597 = vst [vmem:[#allocation2 + $0x70] sm:$0xff] %v581_v58 }
  0xf0   : > { %586 = vst [vmem:[#allocation2 + $0x58] sm:$0xff] %v570_v61 }
  0xf1   : > { %590 = vst [vmem:[#allocation2 + $0x8] sm:$0xff] %v574_v62 }
  0xf3   : > { %v553_v3 = vpop.f32.mrf.mxu2  ;;  %v563_v4 = vpop.f32.mrf.mxu3 }
  0xf4   : > { %v578_v5 = vadd.f32 %v553_v3, %v385_v63  ;;  %v582_v6 = vadd.f32 %v563_v4, %v389_v0  ;;  %v535_v7 = vpop.f32.mrf.mxu0  ;;  %v545_v8 = vpop.f32.mrf.mxu1 }
  0xf5   : > { %v571_v9 = vadd.f32 %v535_v7, %v378_v1  ;;  %v575_v10 = vadd.f32 %v545_v8, %v382_v2 }
  0xf6   : > { %594 = vst [vmem:[#allocation2 + $0x10] sm:$0xff] %v578_v5 }
  0xf7   : > { %598 = vst [vmem:[#allocation2 + $0x78] sm:$0xff] %v582_v6 }
  0xf8   : > { %587 = vst [vmem:[#allocation2 + $0x18] sm:$0xff] %v571_v9 }
  0xf9   : > { %591 = vst [vmem:[#allocation2 + $0x48] sm:$0xff] %v575_v10 }
  0xfb   : > { %v555_v13 = vpop.f32.mrf.mxu2  ;;  %v565_v14 = vpop.f32.mrf.mxu3  ;;  %603 = sbr.rel (%p857_p11) target bundleno = 277 (0x115), region = 81 }
  0xfc   : > { %v579_v15 = vadd.f32 %v555_v13, %v386_v11  ;;  %v583_v16 = vadd.f32 %v565_v14, %v390_v12 }
  0xfe   : > { %595 = vst [vmem:[#allocation2 + $0x38] sm:$0xff] %v579_v15 }
  0xff   : > { %599 = vst [vmem:[#allocation2 + $0x28] sm:$0xff] %v583_v16 }
 0x100   : > { %v604_v17 = vld [vmem:[#allocation2 + $0x30] sm:$0xff]  ;;  %v943_v18 = vld [vmem:[%s1163_s2] ss:$0 sm:$0xff]  ;;  %v606_v20 = vld [vmem:[#allocation2 + $0x58] sm:$0xff] }
 0x101   : > { %v605_v19 = vld [vmem:[#allocation2] sm:$0xff]  ;;  %v607_v21 = vld [vmem:[#allocation2 + $0x18] sm:$0xff]  ;;  %v624_v22 = vadd.f32 %v943_v18, %v604_v17  ;;  %v626_v24 = vadd.f32 %v943_v18, %v606_v20  ;;  %v608_v26 = vld [vmem:[#allocation2 + $0x50] sm:$0xff] }
 0x102   : > { %v625_v23 = vadd.f32 %v943_v18, %v605_v19  ;;  %v627_v25 = vadd.f32 %v943_v18, %v607_v21  ;;  %v609_v27 = vld [vmem:[#allocation2 + $0x68] sm:$0xff]  ;;  %v628_v29 = vadd.f32 %v943_v18, %v608_v26  ;;  %v612_v32 = vld [vmem:[#allocation2 + $0x40] sm:$0xff]  ;;  %v614_v40 = vld [vmem:[#allocation2 + $0x10] sm:$0xff] }
 0x103   : > { %v610_v28 = vld [vmem:[#allocation2 + $0x8] sm:$0xff]  ;;  %v629_v30 = vadd.f32 %v943_v18, %v609_v27  ;;  %v640_v33 = vmax.f32 %v624_v22, 0.0  ;;  %v642_v35 = vmax.f32 %v626_v24, 0.0  ;;  %v613_v37 = vld [vmem:[#allocation2 + $0x20] sm:$0xff]  ;;  %v632_v42 = vadd.f32 %v943_v18, %v612_v32  ;;  %v617_v49 = vld [vmem:[#allocation2 + $0x70] sm:$0xff] }
 0x104   : > { %v611_v31 = vld [vmem:[#allocation2 + $0x48] sm:$0xff]  ;;  %v641_v34 = vmax.f32 %v625_v23, 0.0  ;;  %v630_v36 = vadd.f32 %v943_v18, %v610_v28  ;;  %v643_v38 = vmax.f32 %v627_v25, 0.0  ;;  %v644_v41 = vmax.f32 %v628_v29, 0.0  ;;  %v616_v46 = vld [vmem:[#allocation2 + $0x60] sm:$0xff]  ;;  %v618_v52 = vld [vmem:[#allocation2 + $0x78] sm:$0xff] }
 0x105   : > { %v631_v39 = vadd.f32 %v943_v18, %v611_v31  ;;  %656 = vst [vmem:[%s1164_s3] sm:$0xff] %v640_v33  ;;  %v615_v43 = vld [vmem:[#allocation2 + $0x38] sm:$0xff]  ;;  %v645_v44 = vmax.f32 %v629_v30, 0.0  ;;  %v633_v45 = vadd.f32 %v943_v18, %v613_v37  ;;  %v634_v48 = vadd.f32 %v943_v18, %v614_v40 }
 0x106   : > { %657 = vst [vmem:[%s1164_s3 + $0x8] sm:$0xff] %v641_v34  ;;  %v646_v47 = vmax.f32 %v630_v36, 0.0  ;;  %v635_v51 = vadd.f32 %v943_v18, %v615_v43  ;;  %v648_v53 = vmax.f32 %v632_v42, 0.0  ;;  %v636_v54 = vadd.f32 %v943_v18, %v616_v46  ;;  %v619_v55 = vld [vmem:[#allocation2 + $0x28] sm:$0xff] }
 0x107   : > { %658 = vst [vmem:[%s1164_s3 + $0x10] sm:$0xff] %v642_v35  ;;  %v647_v50 = vmax.f32 %v631_v39, 0.0  ;;  %v649_v56 = vmax.f32 %v633_v45, 0.0  ;;  %v637_v57 = vadd.f32 %v943_v18, %v617_v49  ;;  %v650_v58 = vmax.f32 %v634_v48, 0.0 }
 0x108   : > { %659 = vst [vmem:[%s1164_s3 + $0x18] sm:$0xff] %v643_v38  ;;  %v638_v59 = vadd.f32 %v943_v18, %v618_v52  ;;  %v651_v60 = vmax.f32 %v635_v51, 0.0  ;;  %v639_v61 = vadd.f32 %v943_v18, %v619_v55  ;;  %v652_v62 = vmax.f32 %v636_v54, 0.0 }
 0x109   : > { %660 = vst [vmem:[%s1164_s3 + $0x20] sm:$0xff] %v644_v41  ;;  %v653_v63 = vmax.f32 %v637_v57, 0.0 }
 0x10a   : > { %661 = vst [vmem:[%s1164_s3 + $0x28] sm:$0xff] %v645_v44  ;;  %v654_v0 = vmax.f32 %v638_v59, 0.0  ;;  %v655_v1 = vmax.f32 %v639_v61, 0.0 }
 0x10b   : > { %662 = vst [vmem:[%s1164_s3 + $0x30] sm:$0xff] %v646_v47 }
 0x10c   : > { %663 = vst [vmem:[%s1164_s3 + $0x38] sm:$0xff] %v647_v50 }
 0x10d   : > { %664 = vst [vmem:[%s1164_s3 + $0x40] sm:$0xff] %v648_v53 }
 0x10e   : > { %665 = vst [vmem:[%s1164_s3 + $0x48] sm:$0xff] %v649_v56 }
 0x10f   : > { %666 = vst [vmem:[%s1164_s3 + $0x50] sm:$0xff] %v650_v58 }
 0x110   : > { %667 = vst [vmem:[%s1164_s3 + $0x58] sm:$0xff] %v651_v60 }
 0x111   : > { %668 = vst [vmem:[%s1164_s3 + $0x60] sm:$0xff] %v652_v62 }
 0x112   : > { %669 = vst [vmem:[%s1164_s3 + $0x68] sm:$0xff] %v653_v63 }
 0x113   : > { %670 = vst [vmem:[%s1164_s3 + $0x70] sm:$0xff] %v654_v0 }
 0x114   : > { %671 = vst [vmem:[%s1164_s3 + $0x78] sm:$0xff] %v655_v1 }
 0x115 PF: > { %s13_s16 = sadd.s32 1, %s982_s16   ;;  %s1165_s12 = smov %s970_s13 }
 0x116   : > { %p10_p12 = scmp.ge.s32.totalorder %s13_s16, 7   ;;  %s1166_s13 = smov %s1040_s20 }
 0x117   : > { %s1167_s14 = smov %s978_s15  ;;  %s1168_s15 = smov %s1170_s17 }
 0x118   :  { %12 = sbr.rel (!%p10_p12) target bundleno = 3 (0x3), region = 122 }

// kernel: resnet_forward.17
= control target key start
LH: loop header
LB: loop body
LE: loop exit
PB: predicated region body
PF: predicated region fallthrough
CT: control target
= control target key end

     0   :  { %s542_s1 = inlined_call_operand.vmem [shape: bf16[128,128], index: 1, kind: input, shape index: {}]   ;;  %s543_s2 = inlined_call_operand.vmem [shape: f32[1,128], index: 2, kind: input, shape index: {}]   ;;  %s544_s0 = inlined_call_operand.vmem [shape: bf16[128,128], index: 0, kind: input, shape index: {}]   ;;  %s545_s3 = inlined_call_operand.vmem [shape: f32[128,128], index: 3, kind: output, shape index: {}]  }
   0x1   :  { %v397_v0 = vld [vmem:[%s542_s1 + $0x38] sm:$0xff]  ;;  %v396_v1 = vld [vmem:[%s542_s1 + $0x30] sm:$0xff]  ;;  %v395_v2 = vld [vmem:[%s542_s1 + $0x28] sm:$0xff] }
   0x2   :  { %178 = vmatpush.bf16.msra.mxu0 %v397_v0  ;;  %398 = vmatpush.bf16.msra.mxu1 %v397_v0  ;;  %v394_v3 = vld [vmem:[%s542_s1 + $0x20] sm:$0xff]  ;;  %v393_v4 = vld [vmem:[%s542_s1 + $0x18] sm:$0xff]  ;;  %v392_v5 = vld [vmem:[%s542_s1 + $0x10] sm:$0xff] }
   0x3   :  { %399 = vmatpush.bf16.msra.mxu2 %v397_v0  ;;  %400 = vmatpush.bf16.msra.mxu3 %v397_v0  ;;  %v391_v6 = vld [vmem:[%s542_s1 + $0x8] sm:$0xff]  ;;  %v390_v7 = vld [vmem:[%s542_s1] sm:$0xff]  ;;  %v384_v9 = vld [vmem:[%s544_s0 + $0x10] sm:$0xff] }
   0x4   :  { %v382_v8 = vld [vmem:[%s544_s0] sm:$0xff]  ;;  %v388_v11 = vld [vmem:[%s544_s0 + $0x30] sm:$0xff]  ;;  %v383_v12 = vld [vmem:[%s544_s0 + $0x8] sm:$0xff] }
   0x5   :  { %v386_v10 = vld [vmem:[%s544_s0 + $0x20] sm:$0xff]  ;;  %v385_v13 = vld [vmem:[%s544_s0 + $0x18] sm:$0xff]  ;;  %v387_v14 = vld [vmem:[%s544_s0 + $0x28] sm:$0xff] }
   0x6   :  { %179 = vmatpush.bf16.msra.mxu0 %v396_v1  ;;  %401 = vmatpush.bf16.msra.mxu1 %v396_v1  ;;  %v389_v15 = vld [vmem:[%s544_s0 + $0x38] sm:$0xff]  ;;  %v422_v16 = vld [vmem:[%s543_s2] ss:$0 sm:$0xff] }
   0x7   :  { %402 = vmatpush.bf16.msra.mxu2 %v396_v1  ;;  %403 = vmatpush.bf16.msra.mxu3 %v396_v1 }
   0xa   :  { %180 = vmatpush.bf16.msra.mxu0 %v395_v2  ;;  %404 = vmatpush.bf16.msra.mxu1 %v395_v2 }
   0xb   :  { %405 = vmatpush.bf16.msra.mxu2 %v395_v2  ;;  %406 = vmatpush.bf16.msra.mxu3 %v395_v2 }
   0xe   :  { %181 = vmatpush.bf16.msra.mxu0 %v394_v3  ;;  %407 = vmatpush.bf16.msra.mxu1 %v394_v3 }
   0xf   :  { %408 = vmatpush.bf16.msra.mxu2 %v394_v3  ;;  %409 = vmatpush.bf16.msra.mxu3 %v394_v3 }
  0x12   :  { %182 = vmatpush.bf16.msra.mxu0 %v393_v4  ;;  %410 = vmatpush.bf16.msra.mxu1 %v393_v4 }
  0x13   :  { %411 = vmatpush.bf16.msra.mxu2 %v393_v4  ;;  %412 = vmatpush.bf16.msra.mxu3 %v393_v4 }
  0x16   :  { %183 = vmatpush.bf16.msra.mxu0 %v392_v5  ;;  %413 = vmatpush.bf16.msra.mxu1 %v392_v5 }
  0x17   :  { %414 = vmatpush.bf16.msra.mxu2 %v392_v5  ;;  %415 = vmatpush.bf16.msra.mxu3 %v392_v5 }
  0x1a   :  { %184 = vmatpush.bf16.msra.mxu0 %v391_v6  ;;  %416 = vmatpush.bf16.msra.mxu1 %v391_v6 }
  0x1b   :  { %417 = vmatpush.bf16.msra.mxu2 %v391_v6  ;;  %418 = vmatpush.bf16.msra.mxu3 %v391_v6 }
  0x1e   :  { %185 = vmatpush.bf16.msra.mxu0 %v390_v7  ;;  %419 = vmatpush.bf16.msra.mxu1 %v390_v7 }
  0x1f   :  { %420 = vmatpush.bf16.msra.mxu2 %v390_v7  ;;  %421 = vmatpush.bf16.msra.mxu3 %v390_v7 }
  0x21   :  { %186 = vmatmul.bf16.vlgmr.msra.gmra.mxu0 %v382_v8  ;;  %196 = vmatmul.bf16.vlgmr.msra.gmra.mxu1 %v384_v9 }
  0x22   :  { %206 = vmatmul.bf16.vlgmr.msra.gmra.mxu2 %v386_v10  ;;  %216 = vmatmul.bf16.vlgmr.msra.gmra.mxu3 %v388_v11 }
  0x31   :  { %191 = vmatmul.bf16.gmra.mxu0 %v383_v12  ;;  %201 = vmatmul.bf16.gmra.mxu1 %v385_v13 }
  0x32   :  { %211 = vmatmul.bf16.gmra.mxu2 %v387_v14  ;;  %221 = vmatmul.bf16.gmra.mxu3 %v389_v15 }
  0x9e   :  { %v187_v17 = vpop.f32.mrf.mxu0  ;;  %v197_v18 = vpop.f32.mrf.mxu1 }
  0x9f   :  { %v282_v19 = vadd.f32 %v422_v16, %v187_v17  ;;  %v286_v20 = vadd.f32 %v422_v16, %v197_v18 }
  0xa1   :  { %298 = vst [vmem:[%s545_s3] sm:$0xff] %v282_v19 }
  0xa2   :  { %302 = vst [vmem:[%s545_s3 + $0x20] sm:$0xff] %v286_v20 }
  0xa5   :  { %v207_v21 = vpop.f32.mrf.mxu2  ;;  %v217_v22 = vpop.f32.mrf.mxu3 }
  0xa6   :  { %v290_v23 = vadd.f32 %v422_v16, %v207_v21  ;;  %v294_v24 = vadd.f32 %v422_v16, %v217_v22  ;;  %v189_v25 = vpop.f32.mrf.mxu0  ;;  %v199_v26 = vpop.f32.mrf.mxu1 }
  0xa7   :  { %v283_v27 = vadd.f32 %v422_v16, %v189_v25  ;;  %v287_v28 = vadd.f32 %v422_v16, %v199_v26 }
  0xa8   :  { %306 = vst [vmem:[%s545_s3 + $0x40] sm:$0xff] %v290_v23 }
  0xa9   :  { %310 = vst [vmem:[%s545_s3 + $0x60] sm:$0xff] %v294_v24 }
  0xaa   :  { %299 = vst [vmem:[%s545_s3 + $0x8] sm:$0xff] %v283_v27 }
  0xab   :  { %303 = vst [vmem:[%s545_s3 + $0x28] sm:$0xff] %v287_v28 }
  0xad   :  { %v209_v29 = vpop.f32.mrf.mxu2  ;;  %v219_v30 = vpop.f32.mrf.mxu3 }
  0xae   :  { %v291_v31 = vadd.f32 %v422_v16, %v209_v29  ;;  %v295_v32 = vadd.f32 %v422_v16, %v219_v30  ;;  %v192_v33 = vpop.f32.mrf.mxu0  ;;  %v202_v34 = vpop.f32.mrf.mxu1 }
  0xaf   :  { %v284_v35 = vadd.f32 %v422_v16, %v192_v33  ;;  %v288_v36 = vadd.f32 %v422_v16, %v202_v34 }
  0xb0   :  { %307 = vst [vmem:[%s545_s3 + $0x48] sm:$0xff] %v291_v31 }
  0xb1   :  { %311 = vst [vmem:[%s545_s3 + $0x68] sm:$0xff] %v295_v32 }
  0xb2   :  { %300 = vst [vmem:[%s545_s3 + $0x10] sm:$0xff] %v284_v35 }
  0xb3   :  { %304 = vst [vmem:[%s545_s3 + $0x30] sm:$0xff] %v288_v36 }
  0xb5   :  { %v212_v37 = vpop.f32.mrf.mxu2  ;;  %v222_v38 = vpop.f32.mrf.mxu3 }
  0xb6   :  { %v292_v39 = vadd.f32 %v422_v16, %v212_v37  ;;  %v296_v40 = vadd.f32 %v422_v16, %v222_v38  ;;  %v194_v41 = vpop.f32.mrf.mxu0  ;;  %v204_v42 = vpop.f32.mrf.mxu1 }
  0xb7   :  { %v285_v43 = vadd.f32 %v422_v16, %v194_v41  ;;  %v289_v44 = vadd.f32 %v422_v16, %v204_v42 }
  0xb8   :  { %308 = vst [vmem:[%s545_s3 + $0x50] sm:$0xff] %v292_v39 }
  0xb9   :  { %312 = vst [vmem:[%s545_s3 + $0x70] sm:$0xff] %v296_v40 }
  0xba   :  { %301 = vst [vmem:[%s545_s3 + $0x18] sm:$0xff] %v285_v43 }
  0xbb   :  { %305 = vst [vmem:[%s545_s3 + $0x38] sm:$0xff] %v289_v44 }
  0xbd   :  { %v214_v45 = vpop.f32.mrf.mxu2  ;;  %v224_v46 = vpop.f32.mrf.mxu3 }
  0xbe   :  { %v293_v47 = vadd.f32 %v422_v16, %v214_v45  ;;  %v297_v48 = vadd.f32 %v422_v16, %v224_v46 }
  0xc0   :  { %309 = vst [vmem:[%s545_s3 + $0x58] sm:$0xff] %v293_v47 }
  0xc1   :  { %313 = vst [vmem:[%s545_s3 + $0x78] sm:$0xff] %v297_v48 }

// kernel: resnet_forward.18
= control target key start
LH: loop header
LB: loop body
LE: loop exit
PB: predicated region body
PF: predicated region fallthrough
CT: control target
= control target key end

     0   :  { %s1685_s15 = smov 0   ;;  %s1687_s16 = smov 0   ;;  %s2041_s0 = inlined_call_operand.vmem [shape: bf16[128,1152], index: 0, kind: input, shape index: {}]   ;;  %s2042_s1 = inlined_call_operand.vmem [shape: bf16[1152,128], index: 1, kind: input, shape index: {}]   ;;  %s2043_s2 = inlined_call_operand.vmem [shape: f32[1,128], index: 2, kind: input, shape index: {}]   ;;  %s2044_s3 = inlined_call_operand.vmem [shape: bf16[128,128], index: 3, kind: input, shape index: {}]   ;;  %s2045_s4 = inlined_call_operand.vmem [shape: f32[128,128], index: 4, kind: output, shape index: {}]  }
   0x1   :  { %s1689_s17 = smov 0   ;;  %s1691_s18 = smov 0  }
   0x2   :  { %s1693_s19 = smov 0  }
   0x3 LB: > { %s26_s20 = sadd.s32 1, %s1653_s18  ;;  %p49_p1 = scmp.ne.s32.totalorder %s1645_s16, %s1641_s15  ;;  %s1657_s19 = sphi %s1693_s19, %s14_s19   ;;  %s1653_s18 = sphi %s1691_s18, %s2049_s18   ;;  %s1649_s17 = sphi %s1689_s17, %s2048_s17   ;;  %s1645_s16 = sphi %s1687_s16, %s2047_s16   ;;  %s1641_s15 = sphi %s1685_s15, %s2046_s15  }
   0x4   : > { %p27_p0 = scmp.ge.s32.totalorder %s26_s20, 3  ;;  %p50_p2 = scmp.eq.s32.totalorder %s1657_s19, 0 }
   0x5   : > { %s42_s22 = sadd.s32 1, %s1645_s16  ;;  %p1229_p5 = scmp.ge.s32.totalorder %s1657_s19, 3 }
   0x6   : > { %s2051_s20 = smov (%p27_p0, %s26_s20), 0  ;;  %p51_p3 = por %p50_p2, %p49_p1 }
   0x7   : > { %s38_s21 = ssub.s32 %s1653_s18, %s2051_s20  ;;  %203 = sbr.rel (%p1229_p5) target bundleno = 49 (0x31), region = 24 }
   0x8   : > { %p40_p4 = scmp.eq.s32.totalorder %s38_s21, 0 }
   0xa   : > { %s1720_s23 = scalar_select %p40_p4, %s1645_s16, %s42_s22  }
   0xc   : > { %206 = sbr.rel (!%p51_p3) target bundleno = 49 (0x31), region = 28  ;;  %s208_s24 = sand.u32 (%p51_p3), 1, %s1645_s16  }
   0xd   : > { %s1463_s25 = smul.u32 (%p51_p3), 12, %s1653_s18 }
   0xe   : > { %s1575_s26 = smul.u32 (%p51_p3), 192, %s208_s24 }
   0xf   : > { %s1728_s29 = scalar_lea.vmem (%p51_p3), %s2041_s0, %s1463_s25 }
  0x10   : > { %v231_v0 = vld [vmem:[%s1728_s29] sm:$0xff] (%p51_p3)  ;;  %v235_v2 = vld [vmem:[%s1728_s29 + $0x48] sm:$0xff] (%p51_p3)  ;;  %s1733_s30 = scalar_lea.vmem (%p51_p3), [#allocation3], %s1575_s26  ;;  %v239_v4 = vld [vmem:[%s1728_s29 + $0x90] sm:$0xff] (%p51_p3) }
  0x11   : > { %v233_v1 = vld [vmem:[%s1728_s29 + $0x24] sm:$0xff]  ;;  %232 = vst [vmem:[%s1733_s30] sm:$0xff] %v231_v0  ;;  %v237_v3 = vld [vmem:[%s1728_s29 + $0x6c] sm:$0xff]  ;;  %v241_v5 = vld [vmem:[%s1728_s29 + $0xb4] sm:$0xff] }
  0x12   : > { %234 = vst [vmem:[%s1733_s30 + $0xc] sm:$0xff] %v233_v1  ;;  %v243_v6 = vld [vmem:[%s1728_s29 + $0xd8] sm:$0xff]  ;;  %v247_v8 = vld [vmem:[%s1728_s29 + $0x120] sm:$0xff]  ;;  %v251_v10 = vld [vmem:[%s1728_s29 + $0x168] sm:$0xff] }
  0x13   : > { %236 = vst [vmem:[%s1733_s30 + $0x18] sm:$0xff] %v235_v2  ;;  %v245_v7 = vld [vmem:[%s1728_s29 + $0xfc] sm:$0xff]  ;;  %v249_v9 = vld [vmem:[%s1728_s29 + $0x144] sm:$0xff]  ;;  %v253_v11 = vld [vmem:[%s1728_s29 + $0x18c] sm:$0xff] }
  0x14   : > { %238 = vst [vmem:[%s1733_s30 + $0x24] sm:$0xff] %v237_v3  ;;  %v255_v12 = vld [vmem:[%s1728_s29 + $0x1b0] sm:$0xff]  ;;  %v259_v14 = vld [vmem:[%s1728_s29 + $0x1f8] sm:$0xff]  ;;  %v1231_v16 = vld [vmem:[%s1728_s29 + $0x8] sm:$0xf] }
  0x15   : > { %240 = vst [vmem:[%s1733_s30 + $0x30] sm:$0xff] %v239_v4  ;;  %v257_v13 = vld [vmem:[%s1728_s29 + $0x1d4] sm:$0xff]  ;;  %v261_v15 = vld [vmem:[%s1728_s29 + $0x21c] sm:$0xff]  ;;  %v1233_v17 = vld [vmem:[%s1728_s29 + $0x2c] sm:$0xf] }
  0x16   : > { %242 = vst [vmem:[%s1733_s30 + $0x3c] sm:$0xff] %v241_v5  ;;  %v1235_v18 = vld [vmem:[%s1728_s29 + $0x50] sm:$0xf]  ;;  %v1237_v19 = vld [vmem:[%s1728_s29 + $0x74] sm:$0xf] }
  0x17   : > { %244 = vst [vmem:[%s1733_s30 + $0x48] sm:$0xff] %v243_v6  ;;  %v1239_v20 = vld [vmem:[%s1728_s29 + $0x98] sm:$0xf]  ;;  %v1241_v21 = vld [vmem:[%s1728_s29 + $0xbc] sm:$0xf] }
  0x18   : > { %246 = vst [vmem:[%s1733_s30 + $0x54] sm:$0xff] %v245_v7  ;;  %v1243_v22 = vld [vmem:[%s1728_s29 + $0xe0] sm:$0xf]  ;;  %v1245_v23 = vld [vmem:[%s1728_s29 + $0x104] sm:$0xf] }
  0x19   : > { %248 = vst [vmem:[%s1733_s30 + $0x60] sm:$0xff] %v247_v8  ;;  %v1247_v24 = vld [vmem:[%s1728_s29 + $0x128] sm:$0xf]  ;;  %v1249_v25 = vld [vmem:[%s1728_s29 + $0x14c] sm:$0xf] }
  0x1a   : > { %250 = vst [vmem:[%s1733_s30 + $0x6c] sm:$0xff] %v249_v9  ;;  %v1251_v26 = vld [vmem:[%s1728_s29 + $0x170] sm:$0xf]  ;;  %v1253_v27 = vld [vmem:[%s1728_s29 + $0x194] sm:$0xf] }
  0x1b   : > { %252 = vst [vmem:[%s1733_s30 + $0x78] sm:$0xff] %v251_v10  ;;  %v1255_v28 = vld [vmem:[%s1728_s29 + $0x1b8] sm:$0xf]  ;;  %v1257_v29 = vld [vmem:[%s1728_s29 + $0x1dc] sm:$0xf] }
  0x1c   : > { %254 = vst [vmem:[%s1733_s30 + $0x84] sm:$0xff] %v253_v11  ;;  %v1259_v30 = vld [vmem:[%s1728_s29 + $0x200] sm:$0xf]  ;;  %v1261_v31 = vld [vmem:[%s1728_s29 + $0x224] sm:$0xf] }
  0x1d   : > { %256 = vst [vmem:[%s1733_s30 + $0x90] sm:$0xff] %v255_v12 }
  0x1e   : > { %258 = vst [vmem:[%s1733_s30 + $0x9c] sm:$0xff] %v257_v13 }
  0x1f   : > { %260 = vst [vmem:[%s1733_s30 + $0xa8] sm:$0xff] %v259_v14 }
  0x20   : > { %262 = vst [vmem:[%s1733_s30 + $0xb4] sm:$0xff] %v261_v15 }
  0x21   : > { %1232 = vst [vmem:[%s1733_s30 + $0x8] sm:$0xf] %v1231_v16 }
  0x22   : > { %1234 = vst [vmem:[%s1733_s30 + $0x14] sm:$0xf] %v1233_v17 }
  0x23   : > { %1236 = vst [vmem:[%s1733_s30 + $0x20] sm:$0xf] %v1235_v18 }
  0x24   : > { %1238 = vst [vmem:[%s1733_s30 + $0x2c] sm:$0xf] %v1237_v19 }
  0x25   : > { %1240 = vst [vmem:[%s1733_s30 + $0x38] sm:$0xf] %v1239_v20 }
  0x26   : > { %1242 = vst [vmem:[%s1733_s30 + $0x44] sm:$0xf] %v1241_v21 }
  0x27   : > { %1244 = vst [vmem:[%s1733_s30 + $0x50] sm:$0xf] %v1243_v22 }
  0x28   : > { %1246 = vst [vmem:[%s1733_s30 + $0x5c] sm:$0xf] %v1245_v23 }
  0x29   : > { %1248 = vst [vmem:[%s1733_s30 + $0x68] sm:$0xf] %v1247_v24 }
  0x2a   : > { %1250 = vst [vmem:[%s1733_s30 + $0x74] sm:$0xf] %v1249_v25 }
  0x2b   : > { %1252 = vst [vmem:[%s1733_s30 + $0x80] sm:$0xf] %v1251_v26 }
  0x2c   : > { %1254 = vst [vmem:[%s1733_s30 + $0x8c] sm:$0xf] %v1253_v27 }
  0x2d   : > { %1256 = vst [vmem:[%s1733_s30 + $0x98] sm:$0xf] %v1255_v28 }
  0x2e   : > { %1258 = vst [vmem:[%s1733_s30 + $0xa4] sm:$0xf] %v1257_v29 }
  0x2f   : > { %1260 = vst [vmem:[%s1733_s30 + $0xb0] sm:$0xf] %v1259_v30 }
  0x30   : > { %1262 = vst [vmem:[%s1733_s30 + $0xbc] sm:$0xf] %v1261_v31 }
  0x31 PF: > { %p1263_p6 = scmp.ge.s32.totalorder %s1657_s19, 1  ;;  %p319_p7 = scmp.lt.s32.totalorder %s1657_s19, 4 }
  0x33   : > { %p320_p8 = pnand %p1263_p6, %p319_p7 }
  0x34   : > { %s326_s5 = sand.u32 (!%p320_p8), 1, %s1641_s15   ;;  %s375_s6 = smul.u32 (!%p320_p8), 48, %s1649_s17 }
  0x35   : > { %323 = sbr.rel (%p320_p8) target bundleno = 363 (0x16b), region = 58  ;;  %p1265_p10 = scmp.ne.s32.totalorder (!%p320_p8), %s1649_s17, 0 }
  0x36   : > { %s1576_s7 = smul.u32 (!%p320_p8), 192, %s326_s5  ;;  %p376_p9 = scmp.lt.s32.totalorder (!%p320_p8), %s375_s6, 143 }
  0x38   : > { %s1805_s12 = scalar_lea.vmem (!%p320_p8), [#allocation3], %s1576_s7 }
  0x3a   : > { %s2053_s6 = smov (!%p376_p9, %s375_s6), 143  ;;  %408 = sbr.rel (%p1265_p10) target bundleno = 80 (0x50), region = 66 }
  0x3b   : > { %s1264_s8 = sshll.u32 %s2053_s6, 2 }
  0x3c   : > { %s1803_s11 = scalar_lea.vmem %s2042_s1, %s1264_s8 }
  0x3f   : > { %v1659_v32 = vmov 0.0  }
  0x40   : > { %409 = vst [vmem:[#allocation2 + $0x30] sm:$0xff] %v1659_v32 }
  0x41   : > { %410 = vst [vmem:[#allocation2] sm:$0xff] %v1659_v32 }
  0x42   : > { %411 = vst [vmem:[#allocation2 + $0x58] sm:$0xff] %v1659_v32 }
  0x43   : > { %412 = vst [vmem:[#allocation2 + $0x18] sm:$0xff] %v1659_v32 }
  0x44   : > { %413 = vst [vmem:[#allocation2 + $0x50] sm:$0xff] %v1659_v32 }
  0x45   : > { %414 = vst [vmem:[#allocation2 + $0x68] sm:$0xff] %v1659_v32 }
  0x46   : > { %415 = vst [vmem:[#allocation2 + $0x8] sm:$0xff] %v1659_v32 }
  0x47   : > { %416 = vst [vmem:[#allocation2 + $0x48] sm:$0xff] %v1659_v32 }
  0x48   : > { %417 = vst [vmem:[#allocation2 + $0x40] sm:$0xff] %v1659_v32 }
  0x49   : > { %418 = vst [vmem:[#allocation2 + $0x20] sm:$0xff] %v1659_v32 }
  0x4a   : > { %419 = vst [vmem:[#allocation2 + $0x10] sm:$0xff] %v1659_v32 }
  0x4b   : > { %420 = vst [vmem:[#allocation2 + $0x38] sm:$0xff] %v1659_v32 }
  0x4c   : > { %421 = vst [vmem:[#allocation2 + $0x60] sm:$0xff] %v1659_v32 }
  0x4d   : > { %422 = vst [vmem:[#allocation2 + $0x70] sm:$0xff] %v1659_v32 }
  0x4e   : > { %423 = vst [vmem:[#allocation2 + $0x78] sm:$0xff] %v1659_v32 }
  0x4f   : > { %424 = vst [vmem:[#allocation2 + $0x28] sm:$0xff] %v1659_v32 }
  0x50 PF: > { %v1495_v33 = vld [vmem:[%s1803_s11 + $0x38] sm:$0xff]  ;;  %v1494_v36 = vld [vmem:[%s1803_s11 + $0x30] sm:$0xff]  ;;  %v1493_v39 = vld [vmem:[%s1803_s11 + $0x28] sm:$0xff]  ;;  %p1458_p11 = scmp.ne.s32.totalorder %s1649_s17, 2 }
  0x51   : > { %v1810_v34 = vld [vmem:[%s1803_s11 + $0x78] sm:$0xff]  ;;  %793 = vmatpush.bf16.msra.mxu0 %v1495_v33  ;;  %1551 = vmatpush.bf16.msra.mxu3 %v1495_v33  ;;  %v1819_v37 = vld [vmem:[%s1803_s11 + $0x70] sm:$0xff]  ;;  %v1501_v40 = vld [vmem:[%s1803_s11 + $0x68] sm:$0xff] }
  0x52   : > { %v1813_v35 = vld [vmem:[%s1803_s11 + $0xb8] sm:$0xff]  ;;  %842 = vmatpush.bf16.msra.mxu1 %v1810_v34  ;;  %v1822_v38 = vld [vmem:[%s1803_s11 + $0xb0] sm:$0xff]  ;;  %v1829_v41 = vld [vmem:[%s1803_s11 + $0xa8] sm:$0xff] }
  0x53   : > { %891 = vmatpush.bf16.msra.mxu2 %v1813_v35  ;;  %v1492_v42 = vld [vmem:[%s1803_s11 + $0x20] sm:$0xff]  ;;  %v1491_v45 = vld [vmem:[%s1803_s11 + $0x18] sm:$0xff]  ;;  %v1490_v48 = vld [vmem:[%s1803_s11 + $0x10] sm:$0xff] }
  0x54   : > { %v1500_v43 = vld [vmem:[%s1803_s11 + $0x60] sm:$0xff]  ;;  %v1499_v46 = vld [vmem:[%s1803_s11 + $0x58] sm:$0xff]  ;;  %v1498_v49 = vld [vmem:[%s1803_s11 + $0x50] sm:$0xff] }
  0x55   : > { %794 = vmatpush.bf16.msra.mxu0 %v1494_v36  ;;  %1552 = vmatpush.bf16.msra.mxu3 %v1494_v36  ;;  %v1835_v44 = vld [vmem:[%s1803_s11 + $0xa0] sm:$0xff]  ;;  %v1841_v47 = vld [vmem:[%s1803_s11 + $0x98] sm:$0xff]  ;;  %v1847_v50 = vld [vmem:[%s1803_s11 + $0x90] sm:$0xff] }
  0x56   : > { %843 = vmatpush.bf16.msra.mxu1 %v1819_v37  ;;  %v1489_v51 = vld [vmem:[%s1803_s11 + $0x8] sm:$0xff]  ;;  %v1488_v54 = vld [vmem:[%s1803_s11] sm:$0xff]  ;;  %v1340_v59 = vld [vmem:[%s1805_s12 + $0x90] sm:$0xf] }
  0x57   : > { %892 = vmatpush.bf16.msra.mxu2 %v1822_v38  ;;  %v1497_v52 = vld [vmem:[%s1803_s11 + $0x48] sm:$0xff]  ;;  %v1496_v55 = vld [vmem:[%s1803_s11 + $0x40] sm:$0xff]  ;;  %v1483_v60 = vld [vmem:[%s1805_s12 + $0x98] sm:$0xf0] }
  0x58   : > { %v1853_v53 = vld [vmem:[%s1803_s11 + $0x88] sm:$0xff]  ;;  %v1858_v56 = vld [vmem:[%s1803_s11 + $0x80] sm:$0xff]  ;;  %v1270_v62 = vld [vmem:[%s1805_s12 + $0xc] sm:$0xf0]  ;;  %v1341_v2 = vor.u32 %v1483_v60, %v1340_v59 }
  0x59   : > { %795 = vmatpush.bf16.msra.mxu0 %v1493_v39  ;;  %1553 = vmatpush.bf16.msra.mxu3 %v1493_v39  ;;  %v1268_v57 = vld [vmem:[%s1805_s12] sm:$0xf]  ;;  %v1465_v58 = vld [vmem:[%s1805_s12 + $0x8] sm:$0xf0]  ;;  %v1464_v61 = vld [vmem:[%s1805_s12 + $0x4] sm:$0xf] }
  0x5a   : > { %844 = vmatpush.bf16.msra.mxu1 %v1501_v40  ;;  %v1276_v63 = vld [vmem:[%s1805_s12 + $0x8] sm:$0xf]  ;;  %v1466_v0 = vld [vmem:[%s1805_s12 + $0x10] sm:$0xf0]  ;;  %v1269_v1 = vor.u32 %v1465_v58, %v1268_v57  ;;  %v1273_v3 = vor.u32 %v1464_v61, %v1270_v62  ;;  %v1280_v5 = vld [vmem:[%s1805_s12 + $0x18] sm:$0xf] }
  0x5b   : > { %893 = vmatpush.bf16.msra.mxu2 %v1829_v41  ;;  %v1277_v4 = vor.u32 %v1466_v0, %v1276_v63  ;;  %v1468_v6 = vld [vmem:[%s1805_s12 + $0x20] sm:$0xf0]  ;;  %v1352_v7 = vld [vmem:[%s1805_s12 + $0xa8] sm:$0xf]  ;;  %v1486_v8 = vld [vmem:[%s1805_s12 + $0xb0] sm:$0xf0] }
  0x5c   : > { %v1467_v9 = vld [vmem:[%s1805_s12 + $0x1c] sm:$0xf]  ;;  %v1282_v10 = vld [vmem:[%s1805_s12 + $0x24] sm:$0xf0]  ;;  %v1288_v11 = vld [vmem:[%s1805_s12 + $0x20] sm:$0xf]  ;;  %v1281_v13 = vor.u32 %v1468_v6, %v1280_v5  ;;  %v1353_v14 = vor.u32 %v1486_v8, %v1352_v7 }
  0x5d   : > { %796 = vmatpush.bf16.msra.mxu0 %v1492_v42  ;;  %1554 = vmatpush.bf16.msra.mxu3 %v1492_v42  ;;  %v1469_v12 = vld [vmem:[%s1805_s12 + $0x28] sm:$0xf0]  ;;  %v1285_v15 = vor.u32 %v1467_v9, %v1282_v10  ;;  %v1292_v17 = vld [vmem:[%s1805_s12 + $0x30] sm:$0xf]  ;;  %v1471_v18 = vld [vmem:[%s1805_s12 + $0x38] sm:$0xf0] }
  0x5e   : > { %845 = vmatpush.bf16.msra.mxu1 %v1500_v43  ;;  %v1289_v16 = vor.u32 %v1469_v12, %v1288_v11  ;;  %v1470_v19 = vld [vmem:[%s1805_s12 + $0x34] sm:$0xf]  ;;  %v1342_v21 = vld [vmem:[%s1805_s12 + $0x9c] sm:$0xf0]  ;;  %v1300_v23 = vld [vmem:[%s1805_s12 + $0x38] sm:$0xf]  ;;  %v1293_v25 = vor.u32 %v1471_v18, %v1292_v17 }
  0x5f   : > { %894 = vmatpush.bf16.msra.mxu2 %v1835_v44  ;;  %v1482_v20 = vld [vmem:[%s1805_s12 + $0x94] sm:$0xf]  ;;  %v1294_v22 = vld [vmem:[%s1805_s12 + $0x3c] sm:$0xf0]  ;;  %v1472_v24 = vld [vmem:[%s1805_s12 + $0x40] sm:$0xf0] }
  0x60   : > { %v1345_v26 = vor.u32 %v1482_v20, %v1342_v21  ;;  %v1297_v27 = vor.u32 %v1470_v19, %v1294_v22  ;;  %v1301_v28 = vor.u32 %v1472_v24, %v1300_v23  ;;  %v1304_v29 = vld [vmem:[%s1805_s12 + $0x48] sm:$0xf]  ;;  %v1474_v30 = vld [vmem:[%s1805_s12 + $0x50] sm:$0xf0]  ;;  %v1473_v31 = vld [vmem:[%s1805_s12 + $0x4c] sm:$0xf] }
  0x61   : > { %797 = vmatpush.bf16.msra.mxu0 %v1491_v45  ;;  %1555 = vmatpush.bf16.msra.mxu3 %v1491_v45  ;;  %v1485_v32 = vld [vmem:[%s1805_s12 + $0xac] sm:$0xf]  ;;  %v1354_v33 = vld [vmem:[%s1805_s12 + $0xb4] sm:$0xf0]  ;;  %v1475_v36 = vld [vmem:[%s1805_s12 + $0x58] sm:$0xf0] }
  0x62   : > { %846 = vmatpush.bf16.msra.mxu1 %v1499_v46  ;;  %v1357_v39 = vor.u32 %v1485_v32, %v1354_v33  ;;  %v1477_v42 = vld [vmem:[%s1805_s12 + $0x68] sm:$0xf0]  ;;  %v1484_v45 = vld [vmem:[%s1805_s12 + $0xa0] sm:$0xf0]  ;;  %v1360_v57 = vld [vmem:[%s1805_s12 + $0xb0] sm:$0xf] }
  0x63   : > { %895 = vmatpush.bf16.msra.mxu2 %v1841_v47  ;;  %v1330_v58 = vld [vmem:[%s1805_s12 + $0x84] sm:$0xf0]  ;;  %v1336_v59 = vld [vmem:[%s1805_s12 + $0x80] sm:$0xf]  ;;  %v1481_v60 = vld [vmem:[%s1805_s12 + $0x88] sm:$0xf0] }
  0x64   : > { %v1337_v0 = vor.u32 %v1481_v60, %v1336_v59  ;;  %v425_v5 = vld [vmem:[#allocation2 + $0x30] sm:$0xff]  ;;  %v427_v21 = vld [vmem:[#allocation2 + $0x58] sm:$0xff] }
  0x65   : > { %798 = vmatpush.bf16.msra.mxu0 %v1490_v48  ;;  %1556 = vmatpush.bf16.msra.mxu3 %v1490_v48  ;;  %v1478_v48 = vld [vmem:[%s1805_s12 + $0x70] sm:$0xf0] }
  0x66   : > { %847 = vmatpush.bf16.msra.mxu1 %v1498_v49 }
  0x67   : > { %896 = vmatpush.bf16.msra.mxu2 %v1847_v50 }
  0x69   : > { %799 = vmatpush.bf16.msra.mxu0 %v1489_v51  ;;  %1557 = vmatpush.bf16.msra.mxu3 %v1489_v51 }
  0x6a   : > { %848 = vmatpush.bf16.msra.mxu1 %v1497_v52 }
  0x6b   : > { %897 = vmatpush.bf16.msra.mxu2 %v1853_v53 }
  0x6d   : > { %800 = vmatpush.bf16.msra.mxu0 %v1488_v54  ;;  %1558 = vmatpush.bf16.msra.mxu3 %v1488_v54  ;;  %v1480_v54 = vld [vmem:[%s1805_s12 + $0x80] sm:$0xf0] }
  0x6e   : > { %849 = vmatpush.bf16.msra.mxu1 %v1496_v55 }
  0x6f   : > { %898 = vmatpush.bf16.msra.mxu2 %v1858_v56 }
  0x70   : > { %801 = vmatmul.bf16.vlgmr.msra.gmra.mxu0 %v1269_v1  ;;  %831 = vmatmul.bf16.vlgmr.msra.gmra.mxu3 %v1341_v2 }
  0x71   : > { %1559 = vmatpush.bf16.msrb.mxu3 %v1810_v34  ;;  %850 = vmatmul.bf16.vlgmr.msra.gmra.mxu1 %v1273_v3  ;;  %v1306_v34 = vld [vmem:[%s1805_s12 + $0x54] sm:$0xf0] }
  0x72   : > { %899 = vmatmul.bf16.vlgmr.msra.gmra.mxu2 %v1277_v4 }
  0x75   : > { %1560 = vmatpush.bf16.msrb.mxu3 %v1819_v37  ;;  %v1305_v37 = vor.u32 %v1474_v30, %v1304_v29  ;;  %v428_v29 = vld [vmem:[#allocation2 + $0x18] sm:$0xff] }
  0x79   : > { %1561 = vmatpush.bf16.msrb.mxu3 %v1501_v40 }
  0x7d   : > { %1562 = vmatpush.bf16.msrb.mxu3 %v1500_v43  ;;  %v1476_v43 = vld [vmem:[%s1805_s12 + $0x64] sm:$0xf] }
  0x80   : > { %806 = vmatmul.bf16.gmra.mxu0 %v1281_v13  ;;  %836 = vmatmul.bf16.gmra.mxu3 %v1353_v14  ;;  %v426_v13 = vld [vmem:[#allocation2] sm:$0xff] }
  0x81   : > { %1563 = vmatpush.bf16.msrb.mxu3 %v1499_v46  ;;  %855 = vmatmul.bf16.gmra.mxu1 %v1285_v15  ;;  %v1318_v46 = vld [vmem:[%s1805_s12 + $0x6c] sm:$0xf0] }
  0x82   : > { %904 = vmatmul.bf16.gmra.mxu2 %v1289_v16  ;;  %v1321_v51 = vor.u32 %v1476_v43, %v1318_v46 }
  0x85   : > { %1564 = vmatpush.bf16.msrb.mxu3 %v1498_v49 }
  0x89   : > { %1565 = vmatpush.bf16.msrb.mxu3 %v1497_v52 }
  0x8d   : > { %1566 = vmatpush.bf16.msrb.mxu3 %v1496_v55  ;;  %v1479_v55 = vld [vmem:[%s1805_s12 + $0x7c] sm:$0xf] }
  0x8e   : > { %v1333_v63 = vor.u32 %v1479_v55, %v1330_v58 }
  0x90   : > { %811 = vmatmul.bf16.gmra.mxu0 %v1293_v25  ;;  %880 = vmatmul.bf16.vlgmr.msrb.gmra.mxu3 %v1345_v26 }
  0x91   : > { %1567 = vmatpush.bf16.msra.mxu3 %v1813_v35  ;;  %860 = vmatmul.bf16.gmra.mxu1 %v1297_v27  ;;  %v1312_v35 = vld [vmem:[%s1805_s12 + $0x50] sm:$0xf] }
  0x92   : > { %909 = vmatmul.bf16.gmra.mxu2 %v1301_v28  ;;  %v1313_v40 = vor.u32 %v1475_v36, %v1312_v35 }
  0x95   : > { %1568 = vmatpush.bf16.msra.mxu3 %v1822_v38  ;;  %v1309_v38 = vor.u32 %v1473_v31, %v1306_v34 }
  0x99   : > { %1569 = vmatpush.bf16.msra.mxu3 %v1829_v41  ;;  %v1316_v41 = vld [vmem:[%s1805_s12 + $0x60] sm:$0xf] }
  0x9a   : > { %v1317_v49 = vor.u32 %v1477_v42, %v1316_v41 }
  0x9d   : > { %1570 = vmatpush.bf16.msra.mxu3 %v1835_v44  ;;  %v1348_v44 = vld [vmem:[%s1805_s12 + $0x98] sm:$0xf] }
  0xa0   : > { %816 = vmatmul.bf16.gmra.mxu0 %v1305_v37  ;;  %885 = vmatmul.bf16.gmra.mxu3 %v1357_v39  ;;  %v429_v37 = vld [vmem:[#allocation2 + $0x50] sm:$0xff] }
  0xa1   : > { %1571 = vmatpush.bf16.msra.mxu3 %v1841_v47  ;;  %865 = vmatmul.bf16.gmra.mxu1 %v1309_v38  ;;  %v1324_v47 = vld [vmem:[%s1805_s12 + $0x68] sm:$0xf] }
  0xa2   : > { %914 = vmatmul.bf16.gmra.mxu2 %v1313_v40  ;;  %v1325_v52 = vor.u32 %v1478_v48, %v1324_v47 }
  0xa5   : > { %1572 = vmatpush.bf16.msra.mxu3 %v1847_v50  ;;  %v1349_v50 = vor.u32 %v1484_v45, %v1348_v44  ;;  %v430_v45 = vld [vmem:[#allocation2 + $0x68] sm:$0xff] }
  0xa9   : > { %1573 = vmatpush.bf16.msra.mxu3 %v1853_v53  ;;  %v1328_v53 = vld [vmem:[%s1805_s12 + $0x78] sm:$0xf] }
  0xaa   : > { %v1329_v61 = vor.u32 %v1480_v54, %v1328_v53  ;;  %v431_v53 = vld [vmem:[#allocation2 + $0x8] sm:$0xff] }
  0xad   : > { %1574 = vmatpush.bf16.msra.mxu3 %v1858_v56  ;;  %v1487_v56 = vld [vmem:[%s1805_s12 + $0xb8] sm:$0xf0] }
  0xae   : > { %v1361_v62 = vor.u32 %v1487_v56, %v1360_v57 }
  0xb0   : > { %821 = vmatmul.bf16.gmra.mxu0 %v1317_v49  ;;  %929 = vmatmul.bf16.vlgmr.msra.gmra.mxu3 %v1349_v50 }
  0xb1   : > { %870 = vmatmul.bf16.gmra.mxu1 %v1321_v51 }
  0xb2   : > { %919 = vmatmul.bf16.gmra.mxu2 %v1325_v52 }
  0xc0   : > { %826 = vmatmul.bf16.gmra.mxu0 %v1329_v61  ;;  %934 = vmatmul.bf16.gmra.mxu3 %v1361_v62  ;;  %v432_v61 = vld [vmem:[#allocation2 + $0x48] sm:$0xff] }
  0xc1   : > { %875 = vmatmul.bf16.gmra.mxu1 %v1333_v63 }
  0xc2   : > { %924 = vmatmul.bf16.gmra.mxu2 %v1337_v0 }
  0xed   : > { %v802_v1 = vpop.f32.mrf.mxu0 }
  0xee   : > { %v851_v2 = vpop.f32.mrf.mxu1 }
  0xef   : > { %v852_v3 = vadd.f32 %v851_v2, %v802_v1 }
  0xf3   : > { %v1920_v4 = vpop.f32.mrf.mxu3 }
  0xf5   : > { %v900_v6 = vpop.f32.mrf.mxu2  ;;  %v804_v8 = vpop.f32.mrf.mxu0 }
  0xf6   : > { %v901_v7 = vadd.f32 %v900_v6, %v852_v3  ;;  %v853_v9 = vpop.f32.mrf.mxu1  ;;  %v437_v6 = vld [vmem:[#allocation2 + $0x60] sm:$0xff] }
  0xf7   : > { %v854_v11 = vadd.f32 %v853_v9, %v804_v8  ;;  %v433_v8 = vld [vmem:[#allocation2 + $0x40] sm:$0xff] }
  0xf8   : > { %v940_v10 = vadd.f32 %v901_v7, %v425_v5 }
  0xfa   : > { %956 = vst [vmem:[#allocation2 + $0x30] sm:$0xff] %v940_v10 }
  0xfb   : > { %v1922_v12 = vpop.f32.mrf.mxu3 }
  0xfd   : > { %v902_v14 = vpop.f32.mrf.mxu2  ;;  %v807_v16 = vpop.f32.mrf.mxu0 }
  0xfe   : > { %v903_v15 = vadd.f32 %v902_v14, %v854_v11  ;;  %v856_v17 = vpop.f32.mrf.mxu1 }
  0xff   : > { %v857_v19 = vadd.f32 %v856_v17, %v807_v16 }
 0x100   : > { %v941_v18 = vadd.f32 %v903_v15, %v426_v13 }
 0x102   : > { %957 = vst [vmem:[#allocation2] sm:$0xff] %v941_v18 }
 0x103   : > { %v1924_v20 = vpop.f32.mrf.mxu3 }
 0x105   : > { %v905_v22 = vpop.f32.mrf.mxu2  ;;  %v809_v24 = vpop.f32.mrf.mxu0 }
 0x106   : > { %v906_v23 = vadd.f32 %v905_v22, %v857_v19  ;;  %v858_v25 = vpop.f32.mrf.mxu1  ;;  %v438_v19 = vld [vmem:[#allocation2 + $0x70] sm:$0xff]  ;;  %v434_v22 = vld [vmem:[#allocation2 + $0x20] sm:$0xff] }
 0x107   : > { %v859_v27 = vadd.f32 %v858_v25, %v809_v24 }
 0x108   : > { %v942_v26 = vadd.f32 %v906_v23, %v427_v21 }
 0x10a   : > { %958 = vst [vmem:[#allocation2 + $0x58] sm:$0xff] %v942_v26 }
 0x10b   : > { %v1926_v28 = vpop.f32.mrf.mxu3 }
 0x10d   : > { %v907_v30 = vpop.f32.mrf.mxu2  ;;  %v812_v32 = vpop.f32.mrf.mxu0 }
 0x10e   : > { %v908_v31 = vadd.f32 %v907_v30, %v859_v27  ;;  %v861_v33 = vpop.f32.mrf.mxu1 }
 0x10f   : > { %v862_v35 = vadd.f32 %v861_v33, %v812_v32  ;;  %v439_v32 = vld [vmem:[#allocation2 + $0x78] sm:$0xff] }
 0x110   : > { %v943_v34 = vadd.f32 %v908_v31, %v428_v29 }
 0x112   : > { %959 = vst [vmem:[#allocation2 + $0x18] sm:$0xff] %v943_v34  ;;  %v435_v34 = vld [vmem:[#allocation2 + $0x10] sm:$0xff] }
 0x113   : > { %v881_v36 = vpop.f32.mrf.mxu3 }
 0x114   : > { %v882_v5 = vadd.f32 %v881_v36, %v1920_v4 }
 0x115   : > { %v910_v39 = vpop.f32.mrf.mxu2  ;;  %v814_v40 = vpop.f32.mrf.mxu0 }
 0x116   : > { %v911_v38 = vadd.f32 %v910_v39, %v862_v35  ;;  %v863_v41 = vpop.f32.mrf.mxu1 }
 0x117   : > { %v864_v43 = vadd.f32 %v863_v41, %v814_v40 }
 0x118   : > { %v944_v42 = vadd.f32 %v911_v38, %v429_v37 }
 0x11a   : > { %960 = vst [vmem:[#allocation2 + $0x50] sm:$0xff] %v944_v42 }
 0x11b   : > { %v883_v44 = vpop.f32.mrf.mxu3 }
 0x11c   : > { %v884_v17 = vadd.f32 %v883_v44, %v1922_v12 }
 0x11d   : > { %v912_v46 = vpop.f32.mrf.mxu2  ;;  %v817_v48 = vpop.f32.mrf.mxu0 }
 0x11e   : > { %v913_v47 = vadd.f32 %v912_v46, %v864_v43  ;;  %v866_v49 = vpop.f32.mrf.mxu1  ;;  %v440_v43 = vld [vmem:[#allocation2 + $0x28] sm:$0xff] }
 0x11f   : > { %v867_v51 = vadd.f32 %v866_v49, %v817_v48 }
 0x120   : > { %v945_v50 = vadd.f32 %v913_v47, %v430_v45  ;;  %v436_v45 = vld [vmem:[#allocation2 + $0x38] sm:$0xff] }
 0x122   : > { %961 = vst [vmem:[#allocation2 + $0x68] sm:$0xff] %v945_v50 }
 0x123   : > { %v886_v52 = vpop.f32.mrf.mxu3 }
 0x124   : > { %v887_v31 = vadd.f32 %v886_v52, %v1924_v20 }
 0x125   : > { %v915_v54 = vpop.f32.mrf.mxu2  ;;  %v819_v57 = vpop.f32.mrf.mxu0 }
 0x126   : > { %v916_v55 = vadd.f32 %v915_v54, %v867_v51  ;;  %v868_v56 = vpop.f32.mrf.mxu1 }
 0x127   : > { %v869_v59 = vadd.f32 %v868_v56, %v819_v57 }
 0x128   : > { %v946_v58 = vadd.f32 %v916_v55, %v431_v53 }
 0x12a   : > { %962 = vst [vmem:[#allocation2 + $0x8] sm:$0xff] %v946_v58 }
 0x12b   : > { %v888_v60 = vpop.f32.mrf.mxu3 }
 0x12c   : > { %v889_v41 = vadd.f32 %v888_v60, %v1926_v28 }
 0x12d   : > { %v917_v62 = vpop.f32.mrf.mxu2  ;;  %v822_v0 = vpop.f32.mrf.mxu0 }
 0x12e   : > { %v918_v63 = vadd.f32 %v917_v62, %v869_v59  ;;  %v871_v1 = vpop.f32.mrf.mxu1 }
 0x12f   : > { %v872_v3 = vadd.f32 %v871_v1, %v822_v0 }
 0x130   : > { %v947_v2 = vadd.f32 %v918_v63, %v432_v61 }
 0x132   : > { %963 = vst [vmem:[#allocation2 + $0x48] sm:$0xff] %v947_v2 }
 0x133   : > { %v930_v7 = vpop.f32.mrf.mxu3 }
 0x134   : > { %v931_v10 = vadd.f32 %v930_v7, %v882_v5 }
 0x135   : > { %v920_v9 = vpop.f32.mrf.mxu2  ;;  %v824_v13 = vpop.f32.mrf.mxu0 }
 0x136   : > { %v921_v11 = vadd.f32 %v920_v9, %v872_v3  ;;  %v952_v14 = vadd.f32 %v931_v10, %v437_v6  ;;  %v873_v15 = vpop.f32.mrf.mxu1 }
 0x137   : > { %v874_v18 = vadd.f32 %v873_v15, %v824_v13 }
 0x138   : > { %v948_v16 = vadd.f32 %v921_v11, %v433_v8  ;;  %968 = vst [vmem:[#allocation2 + $0x60] sm:$0xff] %v952_v14 }
 0x13a   : > { %964 = vst [vmem:[#allocation2 + $0x40] sm:$0xff] %v948_v16 }
 0x13b   : > { %v932_v21 = vpop.f32.mrf.mxu3 }
 0x13c   : > { %v933_v4 = vadd.f32 %v932_v21, %v884_v17 }
 0x13d   : > { %v922_v23 = vpop.f32.mrf.mxu2  ;;  %v827_v26 = vpop.f32.mrf.mxu0 }
 0x13e   : > { %v923_v24 = vadd.f32 %v922_v23, %v874_v18  ;;  %v953_v25 = vadd.f32 %v933_v4, %v438_v19  ;;  %v876_v27 = vpop.f32.mrf.mxu1 }
 0x13f   : > { %v877_v30 = vadd.f32 %v876_v27, %v827_v26 }
 0x140   : > { %v949_v29 = vadd.f32 %v923_v24, %v434_v22  ;;  %969 = vst [vmem:[#allocation2 + $0x70] sm:$0xff] %v953_v25 }
 0x142   : > { %965 = vst [vmem:[#allocation2 + $0x20] sm:$0xff] %v949_v29 }
 0x143   : > { %v935_v33 = vpop.f32.mrf.mxu3 }
 0x144   : > { %v936_v35 = vadd.f32 %v935_v33, %v887_v31 }
 0x145   : > { %v925_v12 = vpop.f32.mrf.mxu2  ;;  %v829_v38 = vpop.f32.mrf.mxu0 }
 0x146   : > { %v926_v36 = vadd.f32 %v925_v12, %v877_v30  ;;  %v954_v37 = vadd.f32 %v936_v35, %v439_v32  ;;  %v878_v40 = vpop.f32.mrf.mxu1 }
 0x147   : > { %v879_v42 = vadd.f32 %v878_v40, %v829_v38 }
 0x148   : > { %v950_v39 = vadd.f32 %v926_v36, %v435_v34  ;;  %970 = vst [vmem:[#allocation2 + $0x78] sm:$0xff] %v954_v37 }
 0x14a   : > { %966 = vst [vmem:[#allocation2 + $0x10] sm:$0xff] %v950_v39 }
 0x14b   : > { %v937_v44 = vpop.f32.mrf.mxu3 }
 0x14c   : > { %v938_v20 = vadd.f32 %v937_v44, %v889_v41 }
 0x14d   : > { %v927_v46 = vpop.f32.mrf.mxu2 }
 0x14e   : > { %v928_v47 = vadd.f32 %v927_v46, %v879_v42  ;;  %v955_v48 = vadd.f32 %v938_v20, %v440_v43  ;;  %975 = sbr.rel (%p1458_p11) target bundleno = 363 (0x16b), region = 70 }
 0x150   : > { %v951_v49 = vadd.f32 %v928_v47, %v436_v45  ;;  %971 = vst [vmem:[#allocation2 + $0x28] sm:$0xff] %v955_v48 }
 0x152   : > { %967 = vst [vmem:[#allocation2 + $0x38] sm:$0xff] %v951_v49 }
 0x153   : > { %v976_v50 = vld [vmem:[#allocation2 + $0x30] sm:$0xff]  ;;  %v1936_v51 = vld [vmem:[%s2043_s2] ss:$0 sm:$0xff]  ;;  %v978_v53 = vld [vmem:[#allocation2 + $0x58] sm:$0xff] }
 0x154   : > { %v1513_v28 = vld [vmem:[%s2044_s3] sm:$0xff]   ;;  %v996_v54 = vadd.f32 %v1936_v51, %v976_v50  ;;  %v1544_v58 = vld [vmem:[%s2044_s3 + $0x8] sm:$0xff]   ;;  %v979_v59 = vld [vmem:[#allocation2 + $0x18] sm:$0xff]  ;;  %v998_v61 = vadd.f32 %v1936_v51, %v978_v53 }
 0x155   : > { %v977_v52 = vld [vmem:[#allocation2] sm:$0xff]  ;;  %v1514_v55 = vunpack.c.l.bf16 %v1513_v28  ;;  %v1515_v56 = vunpack.c.h.bf16 %v1513_v28  ;;  %v980_v60 = vld [vmem:[#allocation2 + $0x50] sm:$0xff]  ;;  %v1518_v62 = vunpack.c.l.bf16 %v1544_v58  ;;  %v999_v63 = vadd.f32 %v1936_v51, %v979_v59  ;;  %v981_v2 = vld [vmem:[#allocation2 + $0x68] sm:$0xff] }
 0x156   : > { %v997_v57 = vadd.f32 %v1936_v51, %v977_v52  ;;  %v1519_v0 = vunpack.c.h.bf16 %v1544_v58  ;;  %v1545_v1 = vld [vmem:[%s2044_s3 + $0x10] sm:$0xff]   ;;  %v982_v3 = vld [vmem:[#allocation2 + $0x8] sm:$0xff]  ;;  %v1000_v7 = vadd.f32 %v1936_v51, %v980_v60  ;;  %v1546_v9 = vld [vmem:[%s2044_s3 + $0x18] sm:$0xff]   ;;  %v1001_v13 = vadd.f32 %v1936_v51, %v981_v2 }
 0x157   : > { %v1044_v5 = vadd.f32 %v1514_v55, %v996_v54  ;;  %v1522_v8 = vunpack.c.l.bf16 %v1545_v1  ;;  %v1046_v10 = vadd.f32 %v1518_v62, %v998_v61  ;;  %v1523_v14 = vunpack.c.h.bf16 %v1545_v1  ;;  %v983_v15 = vld [vmem:[#allocation2 + $0x48] sm:$0xff]  ;;  %v984_v16 = vld [vmem:[#allocation2 + $0x40] sm:$0xff]  ;;  %v986_v27 = vld [vmem:[#allocation2 + $0x10] sm:$0xff] }
 0x158   : > { %v1045_v6 = vadd.f32 %v1515_v56, %v997_v57  ;;  %v1047_v11 = vadd.f32 %v1519_v0, %v999_v63  ;;  %v1002_v21 = vadd.f32 %v1936_v51, %v982_v3  ;;  %v1547_v22 = vld [vmem:[%s2044_s3 + $0x20] sm:$0xff]   ;;  %v1526_v26 = vunpack.c.l.bf16 %v1546_v9  ;;  %v1548_v29 = vld [vmem:[%s2044_s3 + $0x28] sm:$0xff]   ;;  %v1549_v43 = vld [vmem:[%s2044_s3 + $0x30] sm:$0xff]  }
 0x159   : > { %v1060_v17 = vmax.f32 %v1044_v5, 0.0  ;;  %v1048_v19 = vadd.f32 %v1522_v8, %v1000_v7  ;;  %v985_v23 = vld [vmem:[#allocation2 + $0x20] sm:$0xff]  ;;  %v1062_v4 = vmax.f32 %v1046_v10, 0.0  ;;  %v1049_v25 = vadd.f32 %v1523_v14, %v1001_v13  ;;  %v987_v34 = vld [vmem:[#allocation2 + $0x38] sm:$0xff]  ;;  %v989_v44 = vld [vmem:[#allocation2 + $0x70] sm:$0xff] }
 0x15a   : > { %v1061_v18 = vmax.f32 %v1045_v6, 0.0  ;;  %v1063_v24 = vmax.f32 %v1047_v11, 0.0  ;;  %v1003_v31 = vadd.f32 %v1936_v51, %v983_v15  ;;  %v1527_v32 = vunpack.c.h.bf16 %v1546_v9  ;;  %v988_v39 = vld [vmem:[#allocation2 + $0x60] sm:$0xff]  ;;  %v990_v48 = vld [vmem:[#allocation2 + $0x78] sm:$0xff]  ;;  %v991_v54 = vld [vmem:[#allocation2 + $0x28] sm:$0xff] }
 0x15b   : > { %1076 = vst [vmem:[%s2045_s4] sm:$0xff] %v1060_v17  ;;  %v1064_v30 = vmax.f32 %v1048_v19, 0.0  ;;  %v1004_v33 = vadd.f32 %v1936_v51, %v984_v16  ;;  %v1065_v12 = vmax.f32 %v1049_v25, 0.0  ;;  %v1050_v35 = vadd.f32 %v1526_v26, %v1002_v21  ;;  %v1550_v53 = vld [vmem:[%s2044_s3 + $0x38] sm:$0xff]  }
 0x15c   : > { %1077 = vst [vmem:[%s2045_s4 + $0x8] sm:$0xff] %v1061_v18  ;;  %v1530_v36 = vunpack.c.l.bf16 %v1547_v22  ;;  %v1005_v37 = vadd.f32 %v1936_v51, %v985_v23  ;;  %v1051_v38 = vadd.f32 %v1527_v32, %v1003_v31  ;;  %v1531_v40 = vunpack.c.h.bf16 %v1547_v22 }
 0x15d   : > { %1078 = vst [vmem:[%s2045_s4 + $0x10] sm:$0xff] %v1062_v4  ;;  %v1006_v41 = vadd.f32 %v1936_v51, %v986_v27  ;;  %v1534_v42 = vunpack.c.l.bf16 %v1548_v29  ;;  %v1066_v45 = vmax.f32 %v1050_v35, 0.0  ;;  %v1007_v20 = vadd.f32 %v1936_v51, %v987_v34 }
 0x15e   : > { %1079 = vst [vmem:[%s2045_s4 + $0x18] sm:$0xff] %v1063_v24  ;;  %v1052_v46 = vadd.f32 %v1530_v36, %v1004_v33  ;;  %v1535_v47 = vunpack.c.h.bf16 %v1548_v29  ;;  %v1067_v49 = vmax.f32 %v1051_v38, 0.0  ;;  %v1053_v50 = vadd.f32 %v1531_v40, %v1005_v37 }
 0x15f   : > { %1080 = vst [vmem:[%s2045_s4 + $0x20] sm:$0xff] %v1064_v30  ;;  %v1054_v28 = vadd.f32 %v1534_v42, %v1006_v41  ;;  %v1008_v52 = vadd.f32 %v1936_v51, %v988_v39  ;;  %v1538_v56 = vunpack.c.l.bf16 %v1549_v43  ;;  %v1009_v58 = vadd.f32 %v1936_v51, %v989_v44 }
 0x160   : > { %1081 = vst [vmem:[%s2045_s4 + $0x28] sm:$0xff] %v1065_v12  ;;  %v1068_v55 = vmax.f32 %v1052_v46, 0.0  ;;  %v1055_v57 = vadd.f32 %v1535_v47, %v1007_v20  ;;  %v1069_v59 = vmax.f32 %v1053_v50, 0.0  ;;  %v1539_v61 = vunpack.c.h.bf16 %v1549_v43 }
 0x161   : > { %1082 = vst [vmem:[%s2045_s4 + $0x30] sm:$0xff] %v1066_v45  ;;  %v1070_v60 = vmax.f32 %v1054_v28, 0.0  ;;  %v1010_v62 = vadd.f32 %v1936_v51, %v990_v48  ;;  %v1056_v0 = vadd.f32 %v1538_v56, %v1008_v52  ;;  %v1542_v1 = vunpack.c.l.bf16 %v1550_v53 }
 0x162   : > { %1083 = vst [vmem:[%s2045_s4 + $0x38] sm:$0xff] %v1067_v49  ;;  %v1071_v63 = vmax.f32 %v1055_v57, 0.0  ;;  %v1011_v2 = vadd.f32 %v1936_v51, %v991_v54  ;;  %v1057_v3 = vadd.f32 %v1539_v61, %v1009_v58  ;;  %v1543_v5 = vunpack.c.h.bf16 %v1550_v53 }
 0x163   : > { %1084 = vst [vmem:[%s2045_s4 + $0x40] sm:$0xff] %v1068_v55  ;;  %v1072_v6 = vmax.f32 %v1056_v0, 0.0  ;;  %v1058_v7 = vadd.f32 %v1542_v1, %v1010_v62 }
 0x164   : > { %1085 = vst [vmem:[%s2045_s4 + $0x48] sm:$0xff] %v1069_v59  ;;  %v1073_v8 = vmax.f32 %v1057_v3, 0.0  ;;  %v1059_v9 = vadd.f32 %v1543_v5, %v1011_v2 }
 0x165   : > { %1086 = vst [vmem:[%s2045_s4 + $0x50] sm:$0xff] %v1070_v60  ;;  %v1074_v51 = vmax.f32 %v1058_v7, 0.0 }
 0x166   : > { %1087 = vst [vmem:[%s2045_s4 + $0x58] sm:$0xff] %v1071_v63  ;;  %v1075_v10 = vmax.f32 %v1059_v9, 0.0 }
 0x167   : > { %1088 = vst [vmem:[%s2045_s4 + $0x60] sm:$0xff] %v1072_v6 }
 0x168   : > { %1089 = vst [vmem:[%s2045_s4 + $0x68] sm:$0xff] %v1073_v8 }
 0x169   : > { %1090 = vst [vmem:[%s2045_s4 + $0x70] sm:$0xff] %v1074_v51 }
 0x16a   : > { %1091 = vst [vmem:[%s2045_s4 + $0x78] sm:$0xff] %v1075_v10 }
 0x16b PF: > { %s14_s19 = sadd.s32 1, %s1657_s19   ;;  %s2046_s15 = smov %s1645_s16 }
 0x16c   : > { %p11_p12 = scmp.ge.s32.totalorder %s14_s19, 5   ;;  %s2047_s16 = smov %s1720_s23 }
 0x16d   : > { %s2048_s17 = smov %s1653_s18  ;;  %s2049_s18 = smov %s2051_s20 }
 0x16e   :  { %13 = sbr.rel (!%p11_p12) target bundleno = 3 (0x3), region = 120 }

// kernel: resnet_forward.19
= control target key start
LH: loop header
LB: loop body
LE: loop exit
PB: predicated region body
PF: predicated region fallthrough
CT: control target
= control target key end

     0   :  { %s1376_s12 = smov 0   ;;  %s1378_s13 = smov 0   ;;  %s1590_s0 = inlined_call_operand.vmem [shape: bf16[32,1152], index: 0, kind: input, shape index: {}]   ;;  %s1591_s1 = inlined_call_operand.vmem [shape: bf16[1152,256], index: 1, kind: input, shape index: {}]   ;;  %s1592_s2 = inlined_call_operand.vmem [shape: f32[1,256], index: 2, kind: input, shape index: {}]   ;;  %s1593_s3 = inlined_call_operand.vmem [shape: f32[32,256], index: 3, kind: output, shape index: {}]  }
   0x1   :  { %s1380_s14 = smov 0   ;;  %s1382_s15 = smov 0  }
   0x2   :  { %s1384_s16 = smov 0  }
   0x3 LB: > { %s25_s17 = sadd.s32 1, %s1349_s15  ;;  %p48_p1 = scmp.ne.s32.totalorder %s1341_s13, %s1337_s12  ;;  %s1353_s16 = sphi %s1384_s16, %s13_s16   ;;  %s1349_s15 = sphi %s1382_s15, %s1597_s15   ;;  %s1345_s14 = sphi %s1380_s14, %s1596_s14   ;;  %s1341_s13 = sphi %s1378_s13, %s1595_s13   ;;  %s1337_s12 = sphi %s1376_s12, %s1594_s12  }
   0x4   : > { %p26_p0 = scmp.ge.s32.totalorder %s25_s17, 3  ;;  %p49_p2 = scmp.eq.s32.totalorder %s1353_s16, 0 }
   0x5   : > { %s41_s19 = sadd.s32 1, %s1341_s13  ;;  %p965_p5 = scmp.ge.s32.totalorder %s1353_s16, 3 }
   0x6   : > { %s1599_s17 = smov (%p26_p0, %s25_s17), 0  ;;  %p50_p3 = por %p49_p2, %p48_p1 }
   0x7   : > { %s37_s18 = ssub.s32 %s1349_s15, %s1599_s17  ;;  %164 = sbr.rel (%p965_p5) target bundleno = 25 (0x19), region = 20 }
   0x8   : > { %p39_p4 = scmp.eq.s32.totalorder %s37_s18, 0 }
   0xa   : > { %s1411_s20 = scalar_select %p39_p4, %s1341_s13, %s41_s19  }
   0xc   : > { %167 = sbr.rel (!%p50_p3) target bundleno = 25 (0x19), region = 24  ;;  %s169_s21 = sand.u32 (%p50_p3), 1, %s1341_s13  }
   0xd   : > { %s1200_s22 = smul.u32 (%p50_p3), 12, %s1349_s15 }
   0xe   : > { %s1272_s23 = smul.u32 (%p50_p3), 48, %s169_s21 }
   0xf   : > { %s177_s26 = scalar_lea.vmem (%p50_p3), %s1590_s0, %s1200_s22 }
  0x10   : > { %v192_v0 = vld [vmem:[%s177_s26] sm:$0xff] (%p50_p3)  ;;  %v196_v2 = vld [vmem:[%s177_s26 + $0x48] sm:$0xff] (%p50_p3)  ;;  %s171_s27 = scalar_lea.vmem (%p50_p3), [#allocation3], %s1272_s23  ;;  %v971_v6 = vld [vmem:[%s177_s26 + $0x50] sm:$0xf] (%p50_p3) }
  0x11   : > { %v194_v1 = vld [vmem:[%s177_s26 + $0x24] sm:$0xff]  ;;  %193 = vst [vmem:[%s171_s27] sm:$0xff] %v192_v0  ;;  %v198_v3 = vld [vmem:[%s177_s26 + $0x6c] sm:$0xff]  ;;  %v973_v7 = vld [vmem:[%s177_s26 + $0x74] sm:$0xf] }
  0x12   : > { %195 = vst [vmem:[%s171_s27 + $0xc] sm:$0xff] %v194_v1  ;;  %v967_v4 = vld [vmem:[%s177_s26 + $0x8] sm:$0xf]  ;;  %v969_v5 = vld [vmem:[%s177_s26 + $0x2c] sm:$0xf] }
  0x13   : > { %197 = vst [vmem:[%s171_s27 + $0x18] sm:$0xff] %v196_v2 }
  0x14   : > { %199 = vst [vmem:[%s171_s27 + $0x24] sm:$0xff] %v198_v3 }
  0x15   : > { %968 = vst [vmem:[%s171_s27 + $0x8] sm:$0xf] %v967_v4 }
  0x16   : > { %970 = vst [vmem:[%s171_s27 + $0x14] sm:$0xf] %v969_v5 }
  0x17   : > { %972 = vst [vmem:[%s171_s27 + $0x20] sm:$0xf] %v971_v6 }
  0x18   : > { %974 = vst [vmem:[%s171_s27 + $0x2c] sm:$0xf] %v973_v7 }
  0x19 PF: > { %p975_p6 = scmp.ge.s32.totalorder %s1353_s16, 1  ;;  %p235_p7 = scmp.lt.s32.totalorder %s1353_s16, 4 }
  0x1b   : > { %p236_p8 = pnand %p975_p6, %p235_p7 }
  0x1c   : > { %s242_s28 = sand.u32 (!%p236_p8), 1, %s1337_s12   ;;  %s286_s29 = smul.u32 (!%p236_p8), 48, %s1345_s14 }
  0x1d   : > { %239 = sbr.rel (%p236_p8) target bundleno = 278 (0x116), region = 54  ;;  %p978_p10 = scmp.ne.s32.totalorder (!%p236_p8), %s1345_s14, 0 }
  0x1e   : > { %s1273_s30 = smul.u32 (!%p236_p8), 48, %s242_s28  ;;  %p288_p9 = scmp.lt.s32.totalorder (!%p236_p8), %s286_s29, 143 }
  0x20   : > { %s1428_s8 = scalar_lea.vmem (!%p236_p8), [#allocation3], %s1273_s30 }
  0x22   : > { %s1601_s29 = smov (!%p288_p9, %s286_s29), 143  ;;  %318 = sbr.rel (%p978_p10) target bundleno = 48 (0x30), region = 62 }
  0x23   : > { %s1201_s4 = sshll.u32 %s1601_s29, 3 }
  0x24   : > { %s1426_s7 = scalar_lea.vmem %s1591_s1, %s1201_s4 }
  0x27   : > { %v1355_v8 = vmov 0.0  }
  0x28   : > { %319 = vst [vmem:[#allocation2 + $0x30] sm:$0xff] %v1355_v8 }
  0x29   : > { %320 = vst [vmem:[#allocation2] sm:$0xff] %v1355_v8 }
  0x2a   : > { %321 = vst [vmem:[#allocation2 + $0x18] sm:$0xff] %v1355_v8 }
  0x2b   : > { %322 = vst [vmem:[#allocation2 + $0x10] sm:$0xff] %v1355_v8 }
  0x2c   : > { %323 = vst [vmem:[#allocation2 + $0x8] sm:$0xff] %v1355_v8 }
  0x2d   : > { %324 = vst [vmem:[#allocation2 + $0x20] sm:$0xff] %v1355_v8 }
  0x2e   : > { %325 = vst [vmem:[#allocation2 + $0x28] sm:$0xff] %v1355_v8 }
  0x2f   : > { %326 = vst [vmem:[#allocation2 + $0x38] sm:$0xff] %v1355_v8 }
  0x30 PF: > { %v1061_v9 = vld [vmem:[%s1426_s7 + $0x70] sm:$0xf]  ;;  %v1223_v10 = vld [vmem:[%s1426_s7 + $0x74] sm:$0xf0]  ;;  %v1222_v18 = vld [vmem:[%s1426_s7 + $0x74] sm:$0xf] }
  0x31   : > { %v1125_v11 = vld [vmem:[%s1426_s7 + $0xf0] sm:$0xf]  ;;  %v1062_v12 = vor.u32 %v1223_v10, %v1061_v9  ;;  %v1239_v13 = vld [vmem:[%s1426_s7 + $0xf4] sm:$0xf0]  ;;  %v1063_v19 = vld [vmem:[%s1426_s7 + $0x78] sm:$0xf0] }
  0x32   : > { %v1189_v14 = vld [vmem:[%s1426_s7 + $0x170] sm:$0xf]  ;;  %v1255_v15 = vld [vmem:[%s1426_s7 + $0x174] sm:$0xf0]  ;;  %v1126_v16 = vor.u32 %v1239_v13, %v1125_v11  ;;  %v1053_v20 = vld [vmem:[%s1426_s7 + $0x60] sm:$0xf]  ;;  %v1066_v21 = vor.u32 %v1222_v18, %v1063_v19 }
  0x33   : > { %v1190_v17 = vor.u32 %v1255_v15, %v1189_v14  ;;  %663 = vmatpush.bf16.msra.mxu0 %v1062_v12  ;;  %v1221_v22 = vld [vmem:[%s1426_s7 + $0x64] sm:$0xf0]  ;;  %v1117_v23 = vld [vmem:[%s1426_s7 + $0xe0] sm:$0xf]  ;;  %v1220_v29 = vld [vmem:[%s1426_s7 + $0x64] sm:$0xf] }
  0x34   : > { %v1237_v24 = vld [vmem:[%s1426_s7 + $0xe4] sm:$0xf0]  ;;  %682 = vmatpush.bf16.msra.mxu1 %v1126_v16  ;;  %v1054_v25 = vor.u32 %v1221_v22, %v1053_v20  ;;  %v1181_v27 = vld [vmem:[%s1426_s7 + $0x160] sm:$0xf]  ;;  %720 = vmatpush.bf16.msra.mxu3 %v1066_v21  ;;  %v1055_v31 = vld [vmem:[%s1426_s7 + $0x68] sm:$0xf0] }
  0x35   : > { %701 = vmatpush.bf16.msra.mxu2 %v1190_v17  ;;  %v1118_v26 = vor.u32 %v1237_v24, %v1117_v23  ;;  %v1253_v28 = vld [vmem:[%s1426_s7 + $0x164] sm:$0xf0]  ;;  %v1045_v32 = vld [vmem:[%s1426_s7 + $0x50] sm:$0xf]  ;;  %v1219_v33 = vld [vmem:[%s1426_s7 + $0x54] sm:$0xf0]  ;;  %v1058_v34 = vor.u32 %v1220_v29, %v1055_v31 }
  0x36   : > { %v1182_v30 = vor.u32 %v1253_v28, %v1181_v27  ;;  %v1109_v35 = vld [vmem:[%s1426_s7 + $0xd0] sm:$0xf]  ;;  %v1235_v36 = vld [vmem:[%s1426_s7 + $0xd4] sm:$0xf0]  ;;  %v1046_v38 = vor.u32 %v1219_v33, %v1045_v32  ;;  %v1218_v40 = vld [vmem:[%s1426_s7 + $0x54] sm:$0xf] }
  0x37   : > { %v1173_v37 = vld [vmem:[%s1426_s7 + $0x150] sm:$0xf]  ;;  %664 = vmatpush.bf16.msra.mxu0 %v1054_v25  ;;  %v1251_v39 = vld [vmem:[%s1426_s7 + $0x154] sm:$0xf0]  ;;  %v1047_v41 = vld [vmem:[%s1426_s7 + $0x58] sm:$0xf0]  ;;  %v1110_v42 = vor.u32 %v1235_v36, %v1109_v35 }
  0x38   : > { %683 = vmatpush.bf16.msra.mxu1 %v1118_v26  ;;  %v1174_v43 = vor.u32 %v1251_v39, %v1173_v37  ;;  %v1037_v44 = vld [vmem:[%s1426_s7 + $0x40] sm:$0xf]  ;;  %v1217_v45 = vld [vmem:[%s1426_s7 + $0x44] sm:$0xf0]  ;;  %721 = vmatpush.bf16.msra.mxu3 %v1058_v34  ;;  %v1050_v47 = vor.u32 %v1218_v40, %v1047_v41  ;;  %v1216_v51 = vld [vmem:[%s1426_s7 + $0x44] sm:$0xf] }
  0x39   : > { %702 = vmatpush.bf16.msra.mxu2 %v1182_v30  ;;  %v1101_v46 = vld [vmem:[%s1426_s7 + $0xc0] sm:$0xf]  ;;  %v1233_v48 = vld [vmem:[%s1426_s7 + $0xc4] sm:$0xf0]  ;;  %v1039_v52 = vld [vmem:[%s1426_s7 + $0x48] sm:$0xf0]  ;;  %v1038_v53 = vor.u32 %v1217_v45, %v1037_v44 }
  0x3a   : > { %v1165_v49 = vld [vmem:[%s1426_s7 + $0x140] sm:$0xf]  ;;  %v1249_v50 = vld [vmem:[%s1426_s7 + $0x144] sm:$0xf0]  ;;  %v1102_v54 = vor.u32 %v1233_v48, %v1101_v46  ;;  %v1029_v56 = vld [vmem:[%s1426_s7 + $0x30] sm:$0xf]  ;;  %v1042_v59 = vor.u32 %v1216_v51, %v1039_v52 }
  0x3b   : > { %665 = vmatpush.bf16.msra.mxu0 %v1046_v38  ;;  %v1166_v55 = vor.u32 %v1249_v50, %v1165_v49  ;;  %v1215_v57 = vld [vmem:[%s1426_s7 + $0x34] sm:$0xf0]  ;;  %v1093_v58 = vld [vmem:[%s1426_s7 + $0xb0] sm:$0xf]  ;;  %v1214_v63 = vld [vmem:[%s1426_s7 + $0x34] sm:$0xf] }
  0x3c   : > { %684 = vmatpush.bf16.msra.mxu1 %v1110_v42  ;;  %722 = vmatpush.bf16.msra.mxu3 %v1050_v47  ;;  %v1231_v60 = vld [vmem:[%s1426_s7 + $0xb4] sm:$0xf0]  ;;  %v1157_v61 = vld [vmem:[%s1426_s7 + $0x130] sm:$0xf]  ;;  %v1031_v0 = vld [vmem:[%s1426_s7 + $0x38] sm:$0xf0]  ;;  %v1030_v1 = vor.u32 %v1215_v57, %v1029_v56 }
  0x3d   : > { %703 = vmatpush.bf16.msra.mxu2 %v1174_v43  ;;  %v1247_v62 = vld [vmem:[%s1426_s7 + $0x134] sm:$0xf0]  ;;  %v1094_v2 = vor.u32 %v1231_v60, %v1093_v58  ;;  %v1021_v4 = vld [vmem:[%s1426_s7 + $0x20] sm:$0xf]  ;;  %v1213_v5 = vld [vmem:[%s1426_s7 + $0x24] sm:$0xf0]  ;;  %v1034_v7 = vor.u32 %v1214_v63, %v1031_v0 }
  0x3e   : > { %v1158_v3 = vor.u32 %v1247_v62, %v1157_v61  ;;  %v1085_v6 = vld [vmem:[%s1426_s7 + $0xa0] sm:$0xf]  ;;  %v1229_v8 = vld [vmem:[%s1426_s7 + $0xa4] sm:$0xf0]  ;;  %v1212_v11 = vld [vmem:[%s1426_s7 + $0x24] sm:$0xf]  ;;  %v1022_v13 = vor.u32 %v1213_v5, %v1021_v4 }
  0x3f   : > { %666 = vmatpush.bf16.msra.mxu0 %v1038_v53  ;;  %v1149_v9 = vld [vmem:[%s1426_s7 + $0x120] sm:$0xf]  ;;  %v1245_v10 = vld [vmem:[%s1426_s7 + $0x124] sm:$0xf0]  ;;  %v1023_v12 = vld [vmem:[%s1426_s7 + $0x28] sm:$0xf0]  ;;  %v1086_v14 = vor.u32 %v1229_v8, %v1085_v6 }
  0x40   : > { %685 = vmatpush.bf16.msra.mxu1 %v1102_v54  ;;  %723 = vmatpush.bf16.msra.mxu3 %v1042_v59  ;;  %v1150_v15 = vor.u32 %v1245_v10, %v1149_v9  ;;  %v1013_v16 = vld [vmem:[%s1426_s7 + $0x10] sm:$0xf]  ;;  %v1211_v17 = vld [vmem:[%s1426_s7 + $0x14] sm:$0xf0]  ;;  %v1026_v19 = vor.u32 %v1212_v11, %v1023_v12  ;;  %v1210_v23 = vld [vmem:[%s1426_s7 + $0x14] sm:$0xf] }
  0x41   : > { %704 = vmatpush.bf16.msra.mxu2 %v1166_v55  ;;  %v1077_v18 = vld [vmem:[%s1426_s7 + $0x90] sm:$0xf]  ;;  %v1227_v20 = vld [vmem:[%s1426_s7 + $0x94] sm:$0xf0]  ;;  %v1015_v24 = vld [vmem:[%s1426_s7 + $0x18] sm:$0xf0]  ;;  %v1014_v25 = vor.u32 %v1211_v17, %v1013_v16 }
  0x42   : > { %v1141_v21 = vld [vmem:[%s1426_s7 + $0x110] sm:$0xf]  ;;  %v1243_v22 = vld [vmem:[%s1426_s7 + $0x114] sm:$0xf0]  ;;  %v1005_v26 = vld [vmem:[%s1426_s7] sm:$0xf]  ;;  %v1078_v29 = vor.u32 %v1227_v20, %v1077_v18  ;;  %v1018_v34 = vor.u32 %v1210_v23, %v1015_v24 }
  0x43   : > { %667 = vmatpush.bf16.msra.mxu0 %v1030_v1  ;;  %v1209_v27 = vld [vmem:[%s1426_s7 + $0x4] sm:$0xf0]  ;;  %v1069_v28 = vld [vmem:[%s1426_s7 + $0x80] sm:$0xf]  ;;  %v1142_v30 = vor.u32 %v1243_v22, %v1141_v21  ;;  %v1208_v35 = vld [vmem:[%s1426_s7 + $0x4] sm:$0xf] }
  0x44   : > { %686 = vmatpush.bf16.msra.mxu1 %v1094_v2  ;;  %724 = vmatpush.bf16.msra.mxu3 %v1034_v7  ;;  %v1225_v31 = vld [vmem:[%s1426_s7 + $0x84] sm:$0xf0]  ;;  %v1133_v32 = vld [vmem:[%s1426_s7 + $0x100] sm:$0xf]  ;;  %v1007_v36 = vld [vmem:[%s1426_s7 + $0x8] sm:$0xf0]  ;;  %v1006_v41 = vor.u32 %v1209_v27, %v1005_v26 }
  0x45   : > { %705 = vmatpush.bf16.msra.mxu2 %v1158_v3  ;;  %v1241_v33 = vld [vmem:[%s1426_s7 + $0x104] sm:$0xf0]  ;;  %v981_v37 = vld [vmem:[%s1428_s8] sm:$0xf]  ;;  %v1203_v38 = vld [vmem:[%s1428_s8 + $0x8] sm:$0xf0]  ;;  %v1070_v45 = vor.u32 %v1225_v31, %v1069_v28  ;;  %v1010_v50 = vor.u32 %v1208_v35, %v1007_v36 }
  0x46   : > { %v1238_v39 = vld [vmem:[%s1426_s7 + $0xf4] sm:$0xf]  ;;  %v1127_v40 = vld [vmem:[%s1426_s7 + $0xf8] sm:$0xf0]  ;;  %v1134_v46 = vor.u32 %v1241_v33, %v1133_v32  ;;  %v983_v47 = vld [vmem:[%s1428_s8 + $0xc] sm:$0xf0]  ;;  %v982_v52 = vor.u32 %v1203_v38, %v981_v37 }
  0x47   : > { %668 = vmatpush.bf16.msra.mxu0 %v1022_v13  ;;  %v1202_v42 = vld [vmem:[%s1428_s8 + $0x4] sm:$0xf]  ;;  %v1191_v44 = vld [vmem:[%s1426_s7 + $0x178] sm:$0xf0]  ;;  %v989_v48 = vld [vmem:[%s1428_s8 + $0x8] sm:$0xf]  ;;  %v1130_v51 = vor.u32 %v1238_v39, %v1127_v40 }
  0x48   : > { %687 = vmatpush.bf16.msra.mxu1 %v1086_v14  ;;  %725 = vmatpush.bf16.msra.mxu3 %v1026_v19  ;;  %v1254_v43 = vld [vmem:[%s1426_s7 + $0x174] sm:$0xf]  ;;  %v1236_v54 = vld [vmem:[%s1426_s7 + $0xe4] sm:$0xf]  ;;  %v1119_v55 = vld [vmem:[%s1426_s7 + $0xe8] sm:$0xf0]  ;;  %v1507_v56 = vor.u32 %v1202_v42, %v983_v47 }
  0x49   : > { %706 = vmatpush.bf16.msra.mxu2 %v1150_v15  ;;  %v1204_v49 = vld [vmem:[%s1428_s8 + $0x10] sm:$0xf0]  ;;  %v1194_v53 = vor.u32 %v1254_v43, %v1191_v44  ;;  %v1183_v59 = vld [vmem:[%s1426_s7 + $0x168] sm:$0xf0]  ;;  %v1122_v60 = vor.u32 %v1236_v54, %v1119_v55  ;;  %v1111_v63 = vld [vmem:[%s1426_s7 + $0xd8] sm:$0xf0] }
  0x4a   : > { %v1509_v57 = vor.u32 %v1204_v49, %v989_v48  ;;  %v1252_v58 = vld [vmem:[%s1426_s7 + $0x164] sm:$0xf]  ;;  %v1234_v62 = vld [vmem:[%s1426_s7 + $0xd4] sm:$0xf]  ;;  %v1175_v1 = vld [vmem:[%s1426_s7 + $0x158] sm:$0xf0] }
  0x4b   : > { %669 = vmatpush.bf16.msra.mxu0 %v1014_v25  ;;  %v1186_v61 = vor.u32 %v1252_v58, %v1183_v59  ;;  %v1250_v0 = vld [vmem:[%s1426_s7 + $0x154] sm:$0xf]  ;;  %v1114_v2 = vor.u32 %v1234_v62, %v1111_v63  ;;  %v1232_v4 = vld [vmem:[%s1426_s7 + $0xc4] sm:$0xf]  ;;  %v1103_v5 = vld [vmem:[%s1426_s7 + $0xc8] sm:$0xf0] }
  0x4c   : > { %688 = vmatpush.bf16.msra.mxu1 %v1078_v29  ;;  %726 = vmatpush.bf16.msra.mxu3 %v1018_v34  ;;  %v1178_v3 = vor.u32 %v1250_v0, %v1175_v1  ;;  %v1248_v6 = vld [vmem:[%s1426_s7 + $0x144] sm:$0xf]  ;;  %v1167_v7 = vld [vmem:[%s1426_s7 + $0x148] sm:$0xf0]  ;;  %v1106_v8 = vor.u32 %v1232_v4, %v1103_v5  ;;  %v993_v9 = vld [vmem:[%s1428_s8 + $0x18] sm:$0xf] }
  0x4d   : > { %707 = vmatpush.bf16.msra.mxu2 %v1142_v30  ;;  %v1170_v10 = vor.u32 %v1248_v6, %v1167_v7  ;;  %v1206_v11 = vld [vmem:[%s1428_s8 + $0x20] sm:$0xf0]  ;;  %v1095_v13 = vld [vmem:[%s1426_s7 + $0xb8] sm:$0xf0]  ;;  %v995_v17 = vld [vmem:[%s1428_s8 + $0x24] sm:$0xf0] }
  0x4e   : > { %v1230_v12 = vld [vmem:[%s1426_s7 + $0xb4] sm:$0xf]  ;;  %v1205_v14 = vld [vmem:[%s1428_s8 + $0x1c] sm:$0xf]  ;;  %v1001_v18 = vld [vmem:[%s1428_s8 + $0x20] sm:$0xf]  ;;  %v994_v21 = vor.u32 %v1206_v11, %v993_v9 }
  0x4f   : > { %670 = vmatpush.bf16.msra.mxu0 %v1006_v41  ;;  %v1246_v15 = vld [vmem:[%s1426_s7 + $0x134] sm:$0xf]  ;;  %v1159_v16 = vld [vmem:[%s1426_s7 + $0x138] sm:$0xf0]  ;;  %v1098_v20 = vor.u32 %v1230_v12, %v1095_v13  ;;  %v1228_v23 = vld [vmem:[%s1426_s7 + $0xa4] sm:$0xf]  ;;  %v998_v25 = vor.u32 %v1205_v14, %v995_v17 }
  0x50   : > { %689 = vmatpush.bf16.msra.mxu1 %v1070_v45  ;;  %727 = vmatpush.bf16.msra.mxu3 %v1010_v50  ;;  %v1207_v19 = vld [vmem:[%s1428_s8 + $0x28] sm:$0xf0]  ;;  %v1162_v22 = vor.u32 %v1246_v15, %v1159_v16  ;;  %v1244_v27 = vld [vmem:[%s1426_s7 + $0x124] sm:$0xf]  ;;  %v1226_v31 = vld [vmem:[%s1426_s7 + $0x94] sm:$0xf] }
  0x51   : > { %708 = vmatpush.bf16.msra.mxu2 %v1134_v46  ;;  %v1087_v24 = vld [vmem:[%s1426_s7 + $0xa8] sm:$0xf0]  ;;  %v1002_v26 = vor.u32 %v1207_v19, %v1001_v18  ;;  %v1079_v32 = vld [vmem:[%s1426_s7 + $0x98] sm:$0xf0]  ;;  %v1242_v33 = vld [vmem:[%s1426_s7 + $0x114] sm:$0xf] }
  0x52   : > { %671 = vmatmul.bf16.vlgmr.msra.gmra.mxu0 %v982_v52  ;;  %v1151_v28 = vld [vmem:[%s1426_s7 + $0x128] sm:$0xf0]  ;;  %v1090_v29 = vor.u32 %v1228_v23, %v1087_v24  ;;  %v1143_v34 = vld [vmem:[%s1426_s7 + $0x118] sm:$0xf0]  ;;  %v1082_v35 = vor.u32 %v1226_v31, %v1079_v32  ;;  %v1224_v37 = vld [vmem:[%s1426_s7 + $0x84] sm:$0xf] }
  0x53   : > { %690 = vmatmul.bf16.vlgmr.msra.gmra.mxu1 %v1507_v56  ;;  %728 = vmatmul.bf16.vlgmr.msra.gmra.mxu3 %v982_v52  ;;  %v1154_v30 = vor.u32 %v1244_v27, %v1151_v28  ;;  %v1146_v36 = vor.u32 %v1242_v33, %v1143_v34  ;;  %v1071_v38 = vld [vmem:[%s1426_s7 + $0x88] sm:$0xf0]  ;;  %v1240_v39 = vld [vmem:[%s1426_s7 + $0x104] sm:$0xf]  ;;  %v327_v46 = vld [vmem:[#allocation2 + $0x30] sm:$0xff]  ;;  %p1195_p11 = scmp.ne.s32.totalorder %s1345_s14, 2 }
  0x54   : > { %758 = vmatpush.bf16.msrb.mxu1 %v1194_v53  ;;  %709 = vmatmul.bf16.vlgmr.msra.gmra.mxu2 %v1509_v57  ;;  %v1135_v40 = vld [vmem:[%s1426_s7 + $0x108] sm:$0xf0]  ;;  %v1074_v41 = vor.u32 %v1224_v37, %v1071_v38  ;;  %v329_v54 = vld [vmem:[#allocation2 + $0x18] sm:$0xff]  ;;  %v328_v14 = vld [vmem:[#allocation2] sm:$0xff] }
  0x55   : > { %1256 = vmatpush.bf16.msrb.mxu2 %v1130_v51  ;;  %739 = vmatpush.bf16.msrb.mxu0 %v1130_v51  ;;  %v1138_v42 = vor.u32 %v1240_v39, %v1135_v40  ;;  %v331_v62 = vld [vmem:[#allocation2 + $0x8] sm:$0xff]  ;;  %v330_v24 = vld [vmem:[#allocation2 + $0x10] sm:$0xff]  ;;  %v334_v31 = vld [vmem:[#allocation2 + $0x38] sm:$0xff] }
  0x56   : > { %1264 = vmatpush.bf16.msrb.mxu3 %v1194_v53  ;;  %v333_v6 = vld [vmem:[#allocation2 + $0x28] sm:$0xff] }
  0x58   : > { %759 = vmatpush.bf16.msrb.mxu1 %v1186_v61 }
  0x59   : > { %1257 = vmatpush.bf16.msrb.mxu2 %v1122_v60  ;;  %740 = vmatpush.bf16.msrb.mxu0 %v1122_v60 }
  0x5a   : > { %1265 = vmatpush.bf16.msrb.mxu3 %v1186_v61 }
  0x5c   : > { %760 = vmatpush.bf16.msrb.mxu1 %v1178_v3 }
  0x5d   : > { %1258 = vmatpush.bf16.msrb.mxu2 %v1114_v2  ;;  %741 = vmatpush.bf16.msrb.mxu0 %v1114_v2 }
  0x5e   : > { %1266 = vmatpush.bf16.msrb.mxu3 %v1178_v3 }
  0x60   : > { %761 = vmatpush.bf16.msrb.mxu1 %v1170_v10 }
  0x61   : > { %1259 = vmatpush.bf16.msrb.mxu2 %v1106_v8  ;;  %742 = vmatpush.bf16.msrb.mxu0 %v1106_v8 }
  0x62   : > { %1267 = vmatpush.bf16.msrb.mxu3 %v1170_v10  ;;  %676 = vmatmul.bf16.gmra.mxu0 %v994_v21 }
  0x63   : > { %695 = vmatmul.bf16.gmra.mxu1 %v998_v25  ;;  %733 = vmatmul.bf16.gmra.mxu3 %v994_v21 }
  0x64   : > { %762 = vmatpush.bf16.msrb.mxu1 %v1162_v22  ;;  %714 = vmatmul.bf16.gmra.mxu2 %v1002_v26 }
  0x65   : > { %1260 = vmatpush.bf16.msrb.mxu2 %v1098_v20  ;;  %743 = vmatpush.bf16.msrb.mxu0 %v1098_v20  ;;  %v332_v20 = vld [vmem:[#allocation2 + $0x20] sm:$0xff] }
  0x66   : > { %1268 = vmatpush.bf16.msrb.mxu3 %v1162_v22 }
  0x68   : > { %763 = vmatpush.bf16.msrb.mxu1 %v1154_v30 }
  0x69   : > { %1261 = vmatpush.bf16.msrb.mxu2 %v1090_v29  ;;  %744 = vmatpush.bf16.msrb.mxu0 %v1090_v29 }
  0x6a   : > { %1269 = vmatpush.bf16.msrb.mxu3 %v1154_v30 }
  0x6c   : > { %764 = vmatpush.bf16.msrb.mxu1 %v1146_v36 }
  0x6d   : > { %1262 = vmatpush.bf16.msrb.mxu2 %v1082_v35  ;;  %745 = vmatpush.bf16.msrb.mxu0 %v1082_v35 }
  0x6e   : > { %1270 = vmatpush.bf16.msrb.mxu3 %v1146_v36 }
  0x70   : > { %765 = vmatpush.bf16.msrb.mxu1 %v1138_v42 }
  0x71   : > { %1263 = vmatpush.bf16.msrb.mxu2 %v1074_v41  ;;  %746 = vmatpush.bf16.msrb.mxu0 %v1074_v41 }
  0x72   : > { %1271 = vmatpush.bf16.msrb.mxu3 %v1138_v42 }
  0x73   : > { %766 = vmatmul.bf16.vlgmr.msrb.gmra.mxu1 %v1509_v57 }
  0x74   : > { %747 = vmatmul.bf16.vlgmr.msrb.gmra.mxu0 %v1507_v56  ;;  %752 = vmatmul.bf16.vlgmr.msrb.gmra.mxu2 %v998_v25 }
  0x75   : > { %771 = vmatmul.bf16.vlgmr.msrb.gmra.mxu3 %v1002_v26 }
  0xcf   : > { %v672_v43 = vpop.f32.mrf.mxu0 }
  0xd0   : > { %v691_v44 = vpop.f32.mrf.mxu1 }
  0xd1   : > { %v692_v45 = vadd.f32 %v691_v44, %v672_v43 }
  0xd6   : > { %v729_v49 = vpop.f32.mrf.mxu3 }
  0xd7   : > { %v710_v47 = vpop.f32.mrf.mxu2  ;;  %v674_v50 = vpop.f32.mrf.mxu0 }
  0xd8   : > { %v711_v48 = vadd.f32 %v710_v47, %v692_v45  ;;  %v693_v51 = vpop.f32.mrf.mxu1 }
  0xd9   : > { %v694_v53 = vadd.f32 %v693_v51, %v674_v50 }
  0xda   : > { %v777_v52 = vadd.f32 %v711_v48, %v327_v46 }
  0xdc   : > { %785 = vst [vmem:[#allocation2 + $0x30] sm:$0xff] %v777_v52 }
  0xde   : > { %v731_v56 = vpop.f32.mrf.mxu3 }
  0xdf   : > { %v712_v55 = vpop.f32.mrf.mxu2  ;;  %v677_v59 = vpop.f32.mrf.mxu0 }
  0xe0   : > { %v713_v58 = vadd.f32 %v712_v55, %v694_v53  ;;  %v696_v60 = vpop.f32.mrf.mxu1 }
  0xe1   : > { %v697_v61 = vadd.f32 %v696_v60, %v677_v59 }
  0xe2   : > { %v779_v57 = vadd.f32 %v713_v58, %v329_v54 }
  0xe4   : > { %787 = vst [vmem:[#allocation2 + $0x18] sm:$0xff] %v779_v57 }
  0xe6   : > { %v734_v1 = vpop.f32.mrf.mxu3 }
  0xe7   : > { %v715_v63 = vpop.f32.mrf.mxu2  ;;  %v679_v2 = vpop.f32.mrf.mxu0 }
  0xe8   : > { %v716_v0 = vadd.f32 %v715_v63, %v697_v61  ;;  %v698_v3 = vpop.f32.mrf.mxu1 }
  0xe9   : > { %v699_v5 = vadd.f32 %v698_v3, %v679_v2 }
  0xea   : > { %v781_v4 = vadd.f32 %v716_v0, %v331_v62 }
  0xec   : > { %789 = vst [vmem:[#allocation2 + $0x8] sm:$0xff] %v781_v4 }
  0xee   : > { %v736_v9 = vpop.f32.mrf.mxu3 }
  0xef   : > { %v717_v7 = vpop.f32.mrf.mxu2 }
  0xf0   : > { %v718_v8 = vadd.f32 %v717_v7, %v699_v5  ;;  %v767_v13 = vpop.f32.mrf.mxu1 }
  0xf1   : > { %v748_v10 = vpop.f32.mrf.mxu0 }
  0xf2   : > { %v783_v11 = vadd.f32 %v718_v8, %v333_v6  ;;  %v749_v12 = vadd.f32 %v748_v10, %v729_v49 }
  0xf4   : > { %791 = vst [vmem:[#allocation2 + $0x28] sm:$0xff] %v783_v11  ;;  %v768_v15 = vadd.f32 %v767_v13, %v749_v12 }
  0xf6   : > { %v778_v16 = vadd.f32 %v768_v15, %v328_v14 }
  0xf7   : > { %v753_v17 = vpop.f32.mrf.mxu2 }
  0xf8   : > { %786 = vst [vmem:[#allocation2] sm:$0xff] %v778_v16  ;;  %v754_v18 = vadd.f32 %v753_v17, %v734_v1  ;;  %v772_v19 = vpop.f32.mrf.mxu3  ;;  %v769_v25 = vpop.f32.mrf.mxu1 }
  0xf9   : > { %v750_v21 = vpop.f32.mrf.mxu0 }
  0xfa   : > { %v773_v22 = vadd.f32 %v772_v19, %v754_v18  ;;  %v751_v23 = vadd.f32 %v750_v21, %v731_v56 }
  0xfc   : > { %v782_v26 = vadd.f32 %v773_v22, %v332_v20  ;;  %v770_v27 = vadd.f32 %v769_v25, %v751_v23 }
  0xfe   : > { %790 = vst [vmem:[#allocation2 + $0x20] sm:$0xff] %v782_v26  ;;  %v780_v28 = vadd.f32 %v770_v27, %v330_v24 }
  0xff   : > { %v755_v29 = vpop.f32.mrf.mxu2 }
 0x100   : > { %788 = vst [vmem:[#allocation2 + $0x10] sm:$0xff] %v780_v28  ;;  %v756_v30 = vadd.f32 %v755_v29, %v736_v9  ;;  %v774_v32 = vpop.f32.mrf.mxu3 }
 0x102   : > { %v775_v33 = vadd.f32 %v774_v32, %v756_v30  ;;  %796 = sbr.rel (%p1195_p11) target bundleno = 278 (0x116), region = 66 }
 0x104   : > { %v784_v34 = vadd.f32 %v775_v33, %v334_v31 }
 0x106   : > { %792 = vst [vmem:[#allocation2 + $0x38] sm:$0xff] %v784_v34 }
 0x107   : > { %v797_v35 = vld [vmem:[#allocation2 + $0x30] sm:$0xff]  ;;  %v805_v36 = vld [vmem:[%s1592_s2] sm:$0x3]  ;;  %v799_v40 = vld [vmem:[#allocation2 + $0x18] sm:$0xff] }
 0x108   : > { %v798_v37 = vld [vmem:[#allocation2] sm:$0xff]  ;;  %v807_v38 = vperm.slane %v805_v36, 0  ;;  %v808_v39 = vperm.slane %v805_v36, 1  ;;  %v800_v41 = vld [vmem:[#allocation2 + $0x10] sm:$0xff]  ;;  %v801_v42 = vld [vmem:[#allocation2 + $0x8] sm:$0xff] }
 0x109   : > { %v802_v43 = vld [vmem:[#allocation2 + $0x20] sm:$0xff]  ;;  %v803_v44 = vld [vmem:[#allocation2 + $0x28] sm:$0xff] }
 0x10a   : > { %v811_v45 = vadd.f32 %v807_v38, %v797_v35  ;;  %v812_v46 = vadd.f32 %v808_v39, %v798_v37  ;;  %v813_v47 = vadd.f32 %v807_v38, %v799_v40  ;;  %v814_v48 = vadd.f32 %v808_v39, %v800_v41 }
 0x10b   : > { %v815_v50 = vadd.f32 %v807_v38, %v801_v42  ;;  %v816_v51 = vadd.f32 %v808_v39, %v802_v43  ;;  %v817_v55 = vadd.f32 %v807_v38, %v803_v44 }
 0x10c   : > { %v819_v52 = vmax.f32 %v811_v45, 0.0  ;;  %v820_v53 = vmax.f32 %v812_v46, 0.0  ;;  %v821_v54 = vmax.f32 %v813_v47, 0.0  ;;  %v822_v58 = vmax.f32 %v814_v48, 0.0 }
 0x10d   : > { %v804_v49 = vld [vmem:[#allocation2 + $0x38] sm:$0xff]  ;;  %v823_v59 = vmax.f32 %v815_v50, 0.0  ;;  %v824_v60 = vmax.f32 %v816_v51, 0.0  ;;  %v825_v57 = vmax.f32 %v817_v55, 0.0 }
 0x10e   : > { %v818_v56 = vadd.f32 %v808_v39, %v804_v49  ;;  %827 = vst [vmem:[%s1593_s3] sm:$0xff] %v819_v52 }
 0x10f   : > { %828 = vst [vmem:[%s1593_s3 + $0x8] sm:$0xff] %v820_v53 }
 0x110   : > { %829 = vst [vmem:[%s1593_s3 + $0x10] sm:$0xff] %v821_v54  ;;  %v826_v61 = vmax.f32 %v818_v56, 0.0 }
 0x111   : > { %830 = vst [vmem:[%s1593_s3 + $0x18] sm:$0xff] %v822_v58 }
 0x112   : > { %831 = vst [vmem:[%s1593_s3 + $0x20] sm:$0xff] %v823_v59 }
 0x113   : > { %832 = vst [vmem:[%s1593_s3 + $0x28] sm:$0xff] %v824_v60 }
 0x114   : > { %833 = vst [vmem:[%s1593_s3 + $0x30] sm:$0xff] %v825_v57 }
 0x115   : > { %834 = vst [vmem:[%s1593_s3 + $0x38] sm:$0xff] %v826_v61 }
 0x116 PF: > { %s13_s16 = sadd.s32 1, %s1353_s16   ;;  %s1594_s12 = smov %s1341_s13 }
 0x117   : > { %p10_p12 = scmp.ge.s32.totalorder %s13_s16, 5   ;;  %s1595_s13 = smov %s1411_s20 }
 0x118   : > { %s1596_s14 = smov %s1349_s15  ;;  %s1597_s15 = smov %s1599_s17 }
 0x119   :  { %12 = sbr.rel (!%p10_p12) target bundleno = 3 (0x3), region = 113 }

// kernel: resnet_forward.20
= control target key start
LH: loop header
LB: loop body
LE: loop exit
PB: predicated region body
PF: predicated region fallthrough
CT: control target
= control target key end

     0   :  { %s492_s1 = inlined_call_operand.vmem [shape: bf16[128,256], index: 1, kind: input, shape index: {}]   ;;  %s493_s0 = inlined_call_operand.vmem [shape: bf16[32,128], index: 0, kind: input, shape index: {}]   ;;  %s494_s2 = inlined_call_operand.vmem [shape: f32[1,256], index: 2, kind: input, shape index: {}]   ;;  %s495_s3 = inlined_call_operand.vmem [shape: f32[32,256], index: 3, kind: output, shape index: {}]  }
   0x1   :  { %v303_v0 = vld [vmem:[%s492_s1 + $0x70] sm:$0xf]  ;;  %v326_v1 = vld [vmem:[%s492_s1 + $0x74] sm:$0xf0]  ;;  %v325_v2 = vld [vmem:[%s492_s1 + $0x74] sm:$0xf] }
   0x2   :  { %v304_v3 = vor.u32 %v326_v1, %v303_v0  ;;  %v305_v4 = vld [vmem:[%s492_s1 + $0x78] sm:$0xf0]  ;;  %v295_v5 = vld [vmem:[%s492_s1 + $0x60] sm:$0xf]  ;;  %v324_v6 = vld [vmem:[%s492_s1 + $0x64] sm:$0xf0] }
   0x3   :  { %v308_v7 = vor.u32 %v325_v2, %v305_v4  ;;  %v323_v8 = vld [vmem:[%s492_s1 + $0x64] sm:$0xf]  ;;  %v297_v9 = vld [vmem:[%s492_s1 + $0x68] sm:$0xf0]  ;;  %v296_v10 = vor.u32 %v324_v6, %v295_v5  ;;  %v287_v12 = vld [vmem:[%s492_s1 + $0x50] sm:$0xf] }
   0x4   :  { %146 = vmatpush.bf16.msra.mxu0 %v304_v3  ;;  %327 = vmatpush.bf16.msra.mxu2 %v304_v3  ;;  %v300_v11 = vor.u32 %v323_v8, %v297_v9  ;;  %v322_v13 = vld [vmem:[%s492_s1 + $0x54] sm:$0xf0]  ;;  %v321_v14 = vld [vmem:[%s492_s1 + $0x54] sm:$0xf]  ;;  %v289_v15 = vld [vmem:[%s492_s1 + $0x58] sm:$0xf0] }
   0x5   :  { %165 = vmatpush.bf16.msra.mxu1 %v308_v7  ;;  %335 = vmatpush.bf16.msra.mxu3 %v308_v7  ;;  %v288_v16 = vor.u32 %v322_v13, %v287_v12  ;;  %v292_v17 = vor.u32 %v321_v14, %v289_v15  ;;  %v279_v18 = vld [vmem:[%s492_s1 + $0x40] sm:$0xf]  ;;  %v320_v19 = vld [vmem:[%s492_s1 + $0x44] sm:$0xf0]  ;;  %v319_v20 = vld [vmem:[%s492_s1 + $0x44] sm:$0xf] }
   0x6   :  { %v281_v21 = vld [vmem:[%s492_s1 + $0x48] sm:$0xf0]  ;;  %v280_v22 = vor.u32 %v320_v19, %v279_v18  ;;  %v271_v24 = vld [vmem:[%s492_s1 + $0x30] sm:$0xf]  ;;  %v318_v25 = vld [vmem:[%s492_s1 + $0x34] sm:$0xf0] }
   0x7   :  { %v284_v23 = vor.u32 %v319_v20, %v281_v21  ;;  %v317_v26 = vld [vmem:[%s492_s1 + $0x34] sm:$0xf]  ;;  %v273_v27 = vld [vmem:[%s492_s1 + $0x38] sm:$0xf0]  ;;  %v272_v28 = vor.u32 %v318_v25, %v271_v24  ;;  %v263_v30 = vld [vmem:[%s492_s1 + $0x20] sm:$0xf] }
   0x8   :  { %147 = vmatpush.bf16.msra.mxu0 %v296_v10  ;;  %328 = vmatpush.bf16.msra.mxu2 %v296_v10  ;;  %v276_v29 = vor.u32 %v317_v26, %v273_v27  ;;  %v316_v31 = vld [vmem:[%s492_s1 + $0x24] sm:$0xf0]  ;;  %v315_v32 = vld [vmem:[%s492_s1 + $0x24] sm:$0xf]  ;;  %v265_v33 = vld [vmem:[%s492_s1 + $0x28] sm:$0xf0] }
   0x9   :  { %166 = vmatpush.bf16.msra.mxu1 %v300_v11  ;;  %336 = vmatpush.bf16.msra.mxu3 %v300_v11  ;;  %v264_v34 = vor.u32 %v316_v31, %v263_v30  ;;  %v268_v35 = vor.u32 %v315_v32, %v265_v33  ;;  %v255_v36 = vld [vmem:[%s492_s1 + $0x10] sm:$0xf]  ;;  %v314_v37 = vld [vmem:[%s492_s1 + $0x14] sm:$0xf0]  ;;  %v313_v38 = vld [vmem:[%s492_s1 + $0x14] sm:$0xf] }
   0xa   :  { %v257_v39 = vld [vmem:[%s492_s1 + $0x18] sm:$0xf0]  ;;  %v256_v40 = vor.u32 %v314_v37, %v255_v36  ;;  %v247_v42 = vld [vmem:[%s492_s1] sm:$0xf]  ;;  %v312_v43 = vld [vmem:[%s492_s1 + $0x4] sm:$0xf0] }
   0xb   :  { %v260_v41 = vor.u32 %v313_v38, %v257_v39  ;;  %v311_v44 = vld [vmem:[%s492_s1 + $0x4] sm:$0xf]  ;;  %v249_v45 = vld [vmem:[%s492_s1 + $0x8] sm:$0xf0]  ;;  %v248_v46 = vor.u32 %v312_v43, %v247_v42  ;;  %v211_v50 = vld [vmem:[%s494_s2] sm:$0x3] }
   0xc   :  { %148 = vmatpush.bf16.msra.mxu0 %v288_v16  ;;  %329 = vmatpush.bf16.msra.mxu2 %v288_v16  ;;  %v252_v47 = vor.u32 %v311_v44, %v249_v45  ;;  %v309_v48 = vld [vmem:[%s493_s0] sm:$0xff]  ;;  %v310_v49 = vld [vmem:[%s493_s0 + $0x8] sm:$0xff]  ;;  %v213_v51 = vperm.slane %v211_v50, 0  ;;  %v214_v52 = vperm.slane %v211_v50, 1 }
   0xd   :  { %167 = vmatpush.bf16.msra.mxu1 %v292_v17  ;;  %337 = vmatpush.bf16.msra.mxu3 %v292_v17 }
  0x10   :  { %149 = vmatpush.bf16.msra.mxu0 %v280_v22  ;;  %330 = vmatpush.bf16.msra.mxu2 %v280_v22 }
  0x11   :  { %168 = vmatpush.bf16.msra.mxu1 %v284_v23  ;;  %338 = vmatpush.bf16.msra.mxu3 %v284_v23 }
  0x14   :  { %150 = vmatpush.bf16.msra.mxu0 %v272_v28  ;;  %331 = vmatpush.bf16.msra.mxu2 %v272_v28 }
  0x15   :  { %169 = vmatpush.bf16.msra.mxu1 %v276_v29  ;;  %339 = vmatpush.bf16.msra.mxu3 %v276_v29 }
  0x18   :  { %151 = vmatpush.bf16.msra.mxu0 %v264_v34  ;;  %332 = vmatpush.bf16.msra.mxu2 %v264_v34 }
  0x19   :  { %170 = vmatpush.bf16.msra.mxu1 %v268_v35  ;;  %340 = vmatpush.bf16.msra.mxu3 %v268_v35 }
  0x1c   :  { %152 = vmatpush.bf16.msra.mxu0 %v256_v40  ;;  %333 = vmatpush.bf16.msra.mxu2 %v256_v40 }
  0x1d   :  { %171 = vmatpush.bf16.msra.mxu1 %v260_v41  ;;  %341 = vmatpush.bf16.msra.mxu3 %v260_v41 }
  0x20   :  { %153 = vmatpush.bf16.msra.mxu0 %v248_v46  ;;  %334 = vmatpush.bf16.msra.mxu2 %v248_v46 }
  0x21   :  { %172 = vmatpush.bf16.msra.mxu1 %v252_v47  ;;  %342 = vmatpush.bf16.msra.mxu3 %v252_v47 }
  0x23   :  { %154 = vmatmul.bf16.vlgmr.msra.gmra.mxu0 %v309_v48  ;;  %159 = vmatmul.bf16.vlgmr.msra.gmra.mxu2 %v310_v49 }
  0x24   :  { %173 = vmatmul.bf16.vlgmr.msra.gmra.mxu1 %v309_v48  ;;  %178 = vmatmul.bf16.vlgmr.msra.gmra.mxu3 %v310_v49 }
  0xa0   :  { %v155_v53 = vpop.f32.mrf.mxu0 }
  0xa1   :  { %v217_v54 = vadd.f32 %v213_v51, %v155_v53  ;;  %v174_v55 = vpop.f32.mrf.mxu1 }
  0xa2   :  { %v218_v56 = vadd.f32 %v214_v52, %v174_v55 }
  0xa3   :  { %225 = vst [vmem:[%s495_s3] sm:$0xff] %v217_v54 }
  0xa4   :  { %226 = vst [vmem:[%s495_s3 + $0x8] sm:$0xff] %v218_v56 }
  0xa6   :  { %v160_v57 = vpop.f32.mrf.mxu2 }
  0xa7   :  { %v221_v58 = vadd.f32 %v213_v51, %v160_v57  ;;  %v179_v59 = vpop.f32.mrf.mxu3 }
  0xa8   :  { %v222_v60 = vadd.f32 %v214_v52, %v179_v59  ;;  %v157_v61 = vpop.f32.mrf.mxu0 }
  0xa9   :  { %229 = vst [vmem:[%s495_s3 + $0x20] sm:$0xff] %v221_v58  ;;  %v219_v62 = vadd.f32 %v213_v51, %v157_v61  ;;  %v176_v63 = vpop.f32.mrf.mxu1 }
  0xaa   :  { %230 = vst [vmem:[%s495_s3 + $0x28] sm:$0xff] %v222_v60  ;;  %v220_v0 = vadd.f32 %v214_v52, %v176_v63 }
  0xab   :  { %227 = vst [vmem:[%s495_s3 + $0x10] sm:$0xff] %v219_v62 }
  0xac   :  { %228 = vst [vmem:[%s495_s3 + $0x18] sm:$0xff] %v220_v0 }
  0xae   :  { %v162_v1 = vpop.f32.mrf.mxu2 }
  0xaf   :  { %v223_v2 = vadd.f32 %v213_v51, %v162_v1  ;;  %v181_v3 = vpop.f32.mrf.mxu3 }
  0xb0   :  { %v224_v4 = vadd.f32 %v214_v52, %v181_v3 }
  0xb1   :  { %231 = vst [vmem:[%s495_s3 + $0x30] sm:$0xff] %v223_v2 }
  0xb2   :  { %232 = vst [vmem:[%s495_s3 + $0x38] sm:$0xff] %v224_v4 }

// kernel: resnet_forward.21
= control target key start
LH: loop header
LB: loop body
LE: loop exit
PB: predicated region body
PF: predicated region fallthrough
CT: control target
= control target key end

     0   :  { %s1491_s15 = smov 0   ;;  %s1493_s16 = smov 0   ;;  %s1717_s0 = inlined_call_operand.vmem [shape: bf16[32,2304], index: 0, kind: input, shape index: {}]   ;;  %s1718_s1 = inlined_call_operand.vmem [shape: bf16[2304,256], index: 1, kind: input, shape index: {}]   ;;  %s1719_s2 = inlined_call_operand.vmem [shape: f32[1,256], index: 2, kind: input, shape index: {}]   ;;  %s1720_s3 = inlined_call_operand.vmem [shape: bf16[32,256], index: 3, kind: input, shape index: {}]   ;;  %s1721_s4 = inlined_call_operand.vmem [shape: f32[32,256], index: 4, kind: output, shape index: {}]  }
   0x1   :  { %s1495_s17 = smov 0   ;;  %s1497_s18 = smov 0  }
   0x2   :  { %s1499_s19 = smov 0  }
   0x3 LB: > { %s26_s20 = sadd.s32 1, %s1459_s18  ;;  %p49_p1 = scmp.ne.s32.totalorder %s1451_s16, %s1447_s15  ;;  %s1463_s19 = sphi %s1499_s19, %s14_s19   ;;  %s1459_s18 = sphi %s1497_s18, %s1725_s18   ;;  %s1455_s17 = sphi %s1495_s17, %s1724_s17   ;;  %s1451_s16 = sphi %s1493_s16, %s1723_s16   ;;  %s1447_s15 = sphi %s1491_s15, %s1722_s15  }
   0x4   : > { %p27_p0 = scmp.ge.s32.totalorder %s26_s20, 6  ;;  %p50_p2 = scmp.eq.s32.totalorder %s1463_s19, 0 }
   0x5   : > { %s42_s22 = sadd.s32 1, %s1451_s16  ;;  %p1075_p5 = scmp.ge.s32.totalorder %s1463_s19, 6 }
   0x6   : > { %s1727_s20 = smov (%p27_p0, %s26_s20), 0  ;;  %p51_p3 = por %p50_p2, %p49_p1 }
   0x7   : > { %s38_s21 = ssub.s32 %s1459_s18, %s1727_s20  ;;  %208 = sbr.rel (%p1075_p5) target bundleno = 25 (0x19), region = 24 }
   0x8   : > { %p40_p4 = scmp.eq.s32.totalorder %s38_s21, 0 }
   0xa   : > { %s1526_s23 = scalar_select %p40_p4, %s1451_s16, %s42_s22  }
   0xc   : > { %211 = sbr.rel (!%p51_p3) target bundleno = 25 (0x19), region = 28  ;;  %s213_s24 = sand.u32 (%p51_p3), 1, %s1451_s16  }
   0xd   : > { %s1310_s25 = smul.u32 (%p51_p3), 12, %s1459_s18 }
   0xe   : > { %s1382_s26 = smul.u32 (%p51_p3), 48, %s213_s24 }
   0xf   : > { %s221_s29 = scalar_lea.vmem (%p51_p3), %s1717_s0, %s1310_s25 }
  0x10   : > { %v236_v0 = vld [vmem:[%s221_s29] sm:$0xff] (%p51_p3)  ;;  %v238_v1 = vld [vmem:[%s221_s29 + $0x48] sm:$0xff] (%p51_p3)  ;;  %v240_v2 = vld [vmem:[%s221_s29 + $0x90] sm:$0xff] (%p51_p3)  ;;  %s215_s30 = scalar_lea.vmem (%p51_p3), [#allocation3], %s1382_s26 }
  0x11   : > { %237 = vst [vmem:[%s215_s30] sm:$0xff] %v236_v0  ;;  %v242_v3 = vld [vmem:[%s221_s29 + $0xd8] sm:$0xff]  ;;  %v1077_v4 = vld [vmem:[%s221_s29 + $0x8] sm:$0xf]  ;;  %v1079_v5 = vld [vmem:[%s221_s29 + $0x50] sm:$0xf] }
  0x12   : > { %239 = vst [vmem:[%s215_s30 + $0xc] sm:$0xff] %v238_v1  ;;  %v1081_v6 = vld [vmem:[%s221_s29 + $0x98] sm:$0xf]  ;;  %v1083_v7 = vld [vmem:[%s221_s29 + $0xe0] sm:$0xf] }
  0x13   : > { %241 = vst [vmem:[%s215_s30 + $0x18] sm:$0xff] %v240_v2 }
  0x14   : > { %243 = vst [vmem:[%s215_s30 + $0x24] sm:$0xff] %v242_v3 }
  0x15   : > { %1078 = vst [vmem:[%s215_s30 + $0x8] sm:$0xf] %v1077_v4 }
  0x16   : > { %1080 = vst [vmem:[%s215_s30 + $0x14] sm:$0xf] %v1079_v5 }
  0x17   : > { %1082 = vst [vmem:[%s215_s30 + $0x20] sm:$0xf] %v1081_v6 }
  0x18   : > { %1084 = vst [vmem:[%s215_s30 + $0x2c] sm:$0xf] %v1083_v7 }
  0x19 PF: > { %p1085_p6 = scmp.ge.s32.totalorder %s1463_s19, 1  ;;  %p279_p7 = scmp.lt.s32.totalorder %s1463_s19, 7 }
  0x1b   : > { %p280_p8 = pnand %p1085_p6, %p279_p7 }
  0x1c   : > { %s286_s5 = sand.u32 (!%p280_p8), 1, %s1447_s15   ;;  %s342_s6 = smul.u32 (!%p280_p8), 48, %s1455_s17 }
  0x1d   : > { %283 = sbr.rel (%p280_p8) target bundleno = 280 (0x118), region = 58  ;;  %p1088_p10 = scmp.ne.s32.totalorder (!%p280_p8), %s1455_s17, 0 }
  0x1e   : > { %s1383_s7 = smul.u32 (!%p280_p8), 48, %s286_s5  ;;  %p344_p9 = scmp.lt.s32.totalorder (!%p280_p8), %s342_s6, 287 }
  0x20   : > { %s1543_s12 = scalar_lea.vmem (!%p280_p8), [#allocation3], %s1383_s7 }
  0x22   : > { %s1729_s6 = smov (!%p344_p9, %s342_s6), 287  ;;  %386 = sbr.rel (%p1088_p10) target bundleno = 48 (0x30), region = 66 }
  0x23   : > { %s1311_s8 = sshll.u32 %s1729_s6, 3 }
  0x24   : > { %s1541_s11 = scalar_lea.vmem %s1718_s1, %s1311_s8 }
  0x27   : > { %v1465_v8 = vmov 0.0  }
  0x28   : > { %387 = vst [vmem:[#allocation2 + $0x30] sm:$0xff] %v1465_v8 }
  0x29   : > { %388 = vst [vmem:[#allocation2] sm:$0xff] %v1465_v8 }
  0x2a   : > { %389 = vst [vmem:[#allocation2 + $0x18] sm:$0xff] %v1465_v8 }
  0x2b   : > { %390 = vst [vmem:[#allocation2 + $0x10] sm:$0xff] %v1465_v8 }
  0x2c   : > { %391 = vst [vmem:[#allocation2 + $0x8] sm:$0xff] %v1465_v8 }
  0x2d   : > { %392 = vst [vmem:[#allocation2 + $0x20] sm:$0xff] %v1465_v8 }
  0x2e   : > { %393 = vst [vmem:[#allocation2 + $0x28] sm:$0xff] %v1465_v8 }
  0x2f   : > { %394 = vst [vmem:[#allocation2 + $0x38] sm:$0xff] %v1465_v8 }
  0x30 PF: > { %v1171_v9 = vld [vmem:[%s1541_s11 + $0x70] sm:$0xf]  ;;  %v1333_v10 = vld [vmem:[%s1541_s11 + $0x74] sm:$0xf0]  ;;  %v1332_v18 = vld [vmem:[%s1541_s11 + $0x74] sm:$0xf] }
  0x31   : > { %v1235_v11 = vld [vmem:[%s1541_s11 + $0xf0] sm:$0xf]  ;;  %v1172_v12 = vor.u32 %v1333_v10, %v1171_v9  ;;  %v1349_v13 = vld [vmem:[%s1541_s11 + $0xf4] sm:$0xf0]  ;;  %v1173_v19 = vld [vmem:[%s1541_s11 + $0x78] sm:$0xf0] }
  0x32   : > { %v1299_v14 = vld [vmem:[%s1541_s11 + $0x170] sm:$0xf]  ;;  %v1365_v15 = vld [vmem:[%s1541_s11 + $0x174] sm:$0xf0]  ;;  %v1236_v16 = vor.u32 %v1349_v13, %v1235_v11  ;;  %v1163_v20 = vld [vmem:[%s1541_s11 + $0x60] sm:$0xf]  ;;  %v1176_v21 = vor.u32 %v1332_v18, %v1173_v19 }
  0x33   : > { %v1300_v17 = vor.u32 %v1365_v15, %v1299_v14  ;;  %731 = vmatpush.bf16.msra.mxu0 %v1172_v12  ;;  %v1331_v22 = vld [vmem:[%s1541_s11 + $0x64] sm:$0xf0]  ;;  %v1227_v23 = vld [vmem:[%s1541_s11 + $0xe0] sm:$0xf]  ;;  %v1330_v29 = vld [vmem:[%s1541_s11 + $0x64] sm:$0xf] }
  0x34   : > { %v1347_v24 = vld [vmem:[%s1541_s11 + $0xe4] sm:$0xf0]  ;;  %750 = vmatpush.bf16.msra.mxu1 %v1236_v16  ;;  %v1164_v25 = vor.u32 %v1331_v22, %v1163_v20  ;;  %v1291_v27 = vld [vmem:[%s1541_s11 + $0x160] sm:$0xf]  ;;  %788 = vmatpush.bf16.msra.mxu3 %v1176_v21  ;;  %v1165_v31 = vld [vmem:[%s1541_s11 + $0x68] sm:$0xf0] }
  0x35   : > { %769 = vmatpush.bf16.msra.mxu2 %v1300_v17  ;;  %v1228_v26 = vor.u32 %v1347_v24, %v1227_v23  ;;  %v1363_v28 = vld [vmem:[%s1541_s11 + $0x164] sm:$0xf0]  ;;  %v1155_v32 = vld [vmem:[%s1541_s11 + $0x50] sm:$0xf]  ;;  %v1329_v33 = vld [vmem:[%s1541_s11 + $0x54] sm:$0xf0]  ;;  %v1168_v34 = vor.u32 %v1330_v29, %v1165_v31 }
  0x36   : > { %v1292_v30 = vor.u32 %v1363_v28, %v1291_v27  ;;  %v1219_v35 = vld [vmem:[%s1541_s11 + $0xd0] sm:$0xf]  ;;  %v1345_v36 = vld [vmem:[%s1541_s11 + $0xd4] sm:$0xf0]  ;;  %v1156_v38 = vor.u32 %v1329_v33, %v1155_v32  ;;  %v1328_v40 = vld [vmem:[%s1541_s11 + $0x54] sm:$0xf] }
  0x37   : > { %v1283_v37 = vld [vmem:[%s1541_s11 + $0x150] sm:$0xf]  ;;  %732 = vmatpush.bf16.msra.mxu0 %v1164_v25  ;;  %v1361_v39 = vld [vmem:[%s1541_s11 + $0x154] sm:$0xf0]  ;;  %v1157_v41 = vld [vmem:[%s1541_s11 + $0x58] sm:$0xf0]  ;;  %v1220_v42 = vor.u32 %v1345_v36, %v1219_v35 }
  0x38   : > { %751 = vmatpush.bf16.msra.mxu1 %v1228_v26  ;;  %v1284_v43 = vor.u32 %v1361_v39, %v1283_v37  ;;  %v1147_v44 = vld [vmem:[%s1541_s11 + $0x40] sm:$0xf]  ;;  %v1327_v45 = vld [vmem:[%s1541_s11 + $0x44] sm:$0xf0]  ;;  %789 = vmatpush.bf16.msra.mxu3 %v1168_v34  ;;  %v1160_v47 = vor.u32 %v1328_v40, %v1157_v41  ;;  %v1326_v51 = vld [vmem:[%s1541_s11 + $0x44] sm:$0xf] }
  0x39   : > { %770 = vmatpush.bf16.msra.mxu2 %v1292_v30  ;;  %v1211_v46 = vld [vmem:[%s1541_s11 + $0xc0] sm:$0xf]  ;;  %v1343_v48 = vld [vmem:[%s1541_s11 + $0xc4] sm:$0xf0]  ;;  %v1149_v52 = vld [vmem:[%s1541_s11 + $0x48] sm:$0xf0]  ;;  %v1148_v53 = vor.u32 %v1327_v45, %v1147_v44 }
  0x3a   : > { %v1275_v49 = vld [vmem:[%s1541_s11 + $0x140] sm:$0xf]  ;;  %v1359_v50 = vld [vmem:[%s1541_s11 + $0x144] sm:$0xf0]  ;;  %v1212_v54 = vor.u32 %v1343_v48, %v1211_v46  ;;  %v1139_v56 = vld [vmem:[%s1541_s11 + $0x30] sm:$0xf]  ;;  %v1152_v59 = vor.u32 %v1326_v51, %v1149_v52 }
  0x3b   : > { %733 = vmatpush.bf16.msra.mxu0 %v1156_v38  ;;  %v1276_v55 = vor.u32 %v1359_v50, %v1275_v49  ;;  %v1325_v57 = vld [vmem:[%s1541_s11 + $0x34] sm:$0xf0]  ;;  %v1203_v58 = vld [vmem:[%s1541_s11 + $0xb0] sm:$0xf]  ;;  %v1324_v63 = vld [vmem:[%s1541_s11 + $0x34] sm:$0xf] }
  0x3c   : > { %752 = vmatpush.bf16.msra.mxu1 %v1220_v42  ;;  %790 = vmatpush.bf16.msra.mxu3 %v1160_v47  ;;  %v1341_v60 = vld [vmem:[%s1541_s11 + $0xb4] sm:$0xf0]  ;;  %v1267_v61 = vld [vmem:[%s1541_s11 + $0x130] sm:$0xf]  ;;  %v1141_v0 = vld [vmem:[%s1541_s11 + $0x38] sm:$0xf0]  ;;  %v1140_v1 = vor.u32 %v1325_v57, %v1139_v56 }
  0x3d   : > { %771 = vmatpush.bf16.msra.mxu2 %v1284_v43  ;;  %v1357_v62 = vld [vmem:[%s1541_s11 + $0x134] sm:$0xf0]  ;;  %v1204_v2 = vor.u32 %v1341_v60, %v1203_v58  ;;  %v1131_v4 = vld [vmem:[%s1541_s11 + $0x20] sm:$0xf]  ;;  %v1323_v5 = vld [vmem:[%s1541_s11 + $0x24] sm:$0xf0]  ;;  %v1144_v7 = vor.u32 %v1324_v63, %v1141_v0 }
  0x3e   : > { %v1268_v3 = vor.u32 %v1357_v62, %v1267_v61  ;;  %v1195_v6 = vld [vmem:[%s1541_s11 + $0xa0] sm:$0xf]  ;;  %v1339_v8 = vld [vmem:[%s1541_s11 + $0xa4] sm:$0xf0]  ;;  %v1322_v11 = vld [vmem:[%s1541_s11 + $0x24] sm:$0xf]  ;;  %v1132_v13 = vor.u32 %v1323_v5, %v1131_v4 }
  0x3f   : > { %734 = vmatpush.bf16.msra.mxu0 %v1148_v53  ;;  %v1259_v9 = vld [vmem:[%s1541_s11 + $0x120] sm:$0xf]  ;;  %v1355_v10 = vld [vmem:[%s1541_s11 + $0x124] sm:$0xf0]  ;;  %v1133_v12 = vld [vmem:[%s1541_s11 + $0x28] sm:$0xf0]  ;;  %v1196_v14 = vor.u32 %v1339_v8, %v1195_v6 }
  0x40   : > { %753 = vmatpush.bf16.msra.mxu1 %v1212_v54  ;;  %791 = vmatpush.bf16.msra.mxu3 %v1152_v59  ;;  %v1260_v15 = vor.u32 %v1355_v10, %v1259_v9  ;;  %v1123_v16 = vld [vmem:[%s1541_s11 + $0x10] sm:$0xf]  ;;  %v1321_v17 = vld [vmem:[%s1541_s11 + $0x14] sm:$0xf0]  ;;  %v1136_v19 = vor.u32 %v1322_v11, %v1133_v12  ;;  %v1320_v23 = vld [vmem:[%s1541_s11 + $0x14] sm:$0xf] }
  0x41   : > { %772 = vmatpush.bf16.msra.mxu2 %v1276_v55  ;;  %v1187_v18 = vld [vmem:[%s1541_s11 + $0x90] sm:$0xf]  ;;  %v1337_v20 = vld [vmem:[%s1541_s11 + $0x94] sm:$0xf0]  ;;  %v1125_v24 = vld [vmem:[%s1541_s11 + $0x18] sm:$0xf0]  ;;  %v1124_v25 = vor.u32 %v1321_v17, %v1123_v16 }
  0x42   : > { %v1251_v21 = vld [vmem:[%s1541_s11 + $0x110] sm:$0xf]  ;;  %v1353_v22 = vld [vmem:[%s1541_s11 + $0x114] sm:$0xf0]  ;;  %v1115_v26 = vld [vmem:[%s1541_s11] sm:$0xf]  ;;  %v1188_v29 = vor.u32 %v1337_v20, %v1187_v18  ;;  %v1128_v34 = vor.u32 %v1320_v23, %v1125_v24 }
  0x43   : > { %735 = vmatpush.bf16.msra.mxu0 %v1140_v1  ;;  %v1319_v27 = vld [vmem:[%s1541_s11 + $0x4] sm:$0xf0]  ;;  %v1179_v28 = vld [vmem:[%s1541_s11 + $0x80] sm:$0xf]  ;;  %v1252_v30 = vor.u32 %v1353_v22, %v1251_v21  ;;  %v1318_v35 = vld [vmem:[%s1541_s11 + $0x4] sm:$0xf] }
  0x44   : > { %754 = vmatpush.bf16.msra.mxu1 %v1204_v2  ;;  %792 = vmatpush.bf16.msra.mxu3 %v1144_v7  ;;  %v1335_v31 = vld [vmem:[%s1541_s11 + $0x84] sm:$0xf0]  ;;  %v1243_v32 = vld [vmem:[%s1541_s11 + $0x100] sm:$0xf]  ;;  %v1117_v36 = vld [vmem:[%s1541_s11 + $0x8] sm:$0xf0]  ;;  %v1116_v41 = vor.u32 %v1319_v27, %v1115_v26 }
  0x45   : > { %773 = vmatpush.bf16.msra.mxu2 %v1268_v3  ;;  %v1351_v33 = vld [vmem:[%s1541_s11 + $0x104] sm:$0xf0]  ;;  %v1091_v37 = vld [vmem:[%s1543_s12] sm:$0xf]  ;;  %v1313_v38 = vld [vmem:[%s1543_s12 + $0x8] sm:$0xf0]  ;;  %v1180_v45 = vor.u32 %v1335_v31, %v1179_v28  ;;  %v1120_v50 = vor.u32 %v1318_v35, %v1117_v36 }
  0x46   : > { %v1348_v39 = vld [vmem:[%s1541_s11 + $0xf4] sm:$0xf]  ;;  %v1237_v40 = vld [vmem:[%s1541_s11 + $0xf8] sm:$0xf0]  ;;  %v1244_v46 = vor.u32 %v1351_v33, %v1243_v32  ;;  %v1093_v47 = vld [vmem:[%s1543_s12 + $0xc] sm:$0xf0]  ;;  %v1092_v52 = vor.u32 %v1313_v38, %v1091_v37 }
  0x47   : > { %736 = vmatpush.bf16.msra.mxu0 %v1132_v13  ;;  %v1312_v42 = vld [vmem:[%s1543_s12 + $0x4] sm:$0xf]  ;;  %v1301_v44 = vld [vmem:[%s1541_s11 + $0x178] sm:$0xf0]  ;;  %v1099_v48 = vld [vmem:[%s1543_s12 + $0x8] sm:$0xf]  ;;  %v1240_v51 = vor.u32 %v1348_v39, %v1237_v40 }
  0x48   : > { %755 = vmatpush.bf16.msra.mxu1 %v1196_v14  ;;  %793 = vmatpush.bf16.msra.mxu3 %v1136_v19  ;;  %v1364_v43 = vld [vmem:[%s1541_s11 + $0x174] sm:$0xf]  ;;  %v1346_v54 = vld [vmem:[%s1541_s11 + $0xe4] sm:$0xf]  ;;  %v1229_v55 = vld [vmem:[%s1541_s11 + $0xe8] sm:$0xf0]  ;;  %v1622_v56 = vor.u32 %v1312_v42, %v1093_v47 }
  0x49   : > { %774 = vmatpush.bf16.msra.mxu2 %v1260_v15  ;;  %v1314_v49 = vld [vmem:[%s1543_s12 + $0x10] sm:$0xf0]  ;;  %v1304_v53 = vor.u32 %v1364_v43, %v1301_v44  ;;  %v1293_v59 = vld [vmem:[%s1541_s11 + $0x168] sm:$0xf0]  ;;  %v1232_v60 = vor.u32 %v1346_v54, %v1229_v55  ;;  %v1221_v63 = vld [vmem:[%s1541_s11 + $0xd8] sm:$0xf0] }
  0x4a   : > { %v1624_v57 = vor.u32 %v1314_v49, %v1099_v48  ;;  %v1362_v58 = vld [vmem:[%s1541_s11 + $0x164] sm:$0xf]  ;;  %v1344_v62 = vld [vmem:[%s1541_s11 + $0xd4] sm:$0xf]  ;;  %v1285_v1 = vld [vmem:[%s1541_s11 + $0x158] sm:$0xf0] }
  0x4b   : > { %737 = vmatpush.bf16.msra.mxu0 %v1124_v25  ;;  %v1296_v61 = vor.u32 %v1362_v58, %v1293_v59  ;;  %v1360_v0 = vld [vmem:[%s1541_s11 + $0x154] sm:$0xf]  ;;  %v1224_v2 = vor.u32 %v1344_v62, %v1221_v63  ;;  %v1342_v4 = vld [vmem:[%s1541_s11 + $0xc4] sm:$0xf]  ;;  %v1213_v5 = vld [vmem:[%s1541_s11 + $0xc8] sm:$0xf0] }
  0x4c   : > { %756 = vmatpush.bf16.msra.mxu1 %v1188_v29  ;;  %794 = vmatpush.bf16.msra.mxu3 %v1128_v34  ;;  %v1288_v3 = vor.u32 %v1360_v0, %v1285_v1  ;;  %v1358_v6 = vld [vmem:[%s1541_s11 + $0x144] sm:$0xf]  ;;  %v1277_v7 = vld [vmem:[%s1541_s11 + $0x148] sm:$0xf0]  ;;  %v1216_v8 = vor.u32 %v1342_v4, %v1213_v5  ;;  %v1103_v9 = vld [vmem:[%s1543_s12 + $0x18] sm:$0xf] }
  0x4d   : > { %775 = vmatpush.bf16.msra.mxu2 %v1252_v30  ;;  %v1280_v10 = vor.u32 %v1358_v6, %v1277_v7  ;;  %v1316_v11 = vld [vmem:[%s1543_s12 + $0x20] sm:$0xf0]  ;;  %v1205_v13 = vld [vmem:[%s1541_s11 + $0xb8] sm:$0xf0]  ;;  %v1105_v17 = vld [vmem:[%s1543_s12 + $0x24] sm:$0xf0] }
  0x4e   : > { %v1340_v12 = vld [vmem:[%s1541_s11 + $0xb4] sm:$0xf]  ;;  %v1315_v14 = vld [vmem:[%s1543_s12 + $0x1c] sm:$0xf]  ;;  %v1111_v18 = vld [vmem:[%s1543_s12 + $0x20] sm:$0xf]  ;;  %v1104_v21 = vor.u32 %v1316_v11, %v1103_v9 }
  0x4f   : > { %738 = vmatpush.bf16.msra.mxu0 %v1116_v41  ;;  %v1356_v15 = vld [vmem:[%s1541_s11 + $0x134] sm:$0xf]  ;;  %v1269_v16 = vld [vmem:[%s1541_s11 + $0x138] sm:$0xf0]  ;;  %v1208_v20 = vor.u32 %v1340_v12, %v1205_v13  ;;  %v1338_v23 = vld [vmem:[%s1541_s11 + $0xa4] sm:$0xf]  ;;  %v1108_v25 = vor.u32 %v1315_v14, %v1105_v17 }
  0x50   : > { %757 = vmatpush.bf16.msra.mxu1 %v1180_v45  ;;  %795 = vmatpush.bf16.msra.mxu3 %v1120_v50  ;;  %v1317_v19 = vld [vmem:[%s1543_s12 + $0x28] sm:$0xf0]  ;;  %v1272_v22 = vor.u32 %v1356_v15, %v1269_v16  ;;  %v1354_v27 = vld [vmem:[%s1541_s11 + $0x124] sm:$0xf]  ;;  %v1336_v31 = vld [vmem:[%s1541_s11 + $0x94] sm:$0xf] }
  0x51   : > { %776 = vmatpush.bf16.msra.mxu2 %v1244_v46  ;;  %v1197_v24 = vld [vmem:[%s1541_s11 + $0xa8] sm:$0xf0]  ;;  %v1112_v26 = vor.u32 %v1317_v19, %v1111_v18  ;;  %v1189_v32 = vld [vmem:[%s1541_s11 + $0x98] sm:$0xf0]  ;;  %v1352_v33 = vld [vmem:[%s1541_s11 + $0x114] sm:$0xf] }
  0x52   : > { %739 = vmatmul.bf16.vlgmr.msra.gmra.mxu0 %v1092_v52  ;;  %v1261_v28 = vld [vmem:[%s1541_s11 + $0x128] sm:$0xf0]  ;;  %v1200_v29 = vor.u32 %v1338_v23, %v1197_v24  ;;  %v1253_v34 = vld [vmem:[%s1541_s11 + $0x118] sm:$0xf0]  ;;  %v1192_v35 = vor.u32 %v1336_v31, %v1189_v32  ;;  %v1334_v37 = vld [vmem:[%s1541_s11 + $0x84] sm:$0xf] }
  0x53   : > { %758 = vmatmul.bf16.vlgmr.msra.gmra.mxu1 %v1622_v56  ;;  %796 = vmatmul.bf16.vlgmr.msra.gmra.mxu3 %v1092_v52  ;;  %v1264_v30 = vor.u32 %v1354_v27, %v1261_v28  ;;  %v1256_v36 = vor.u32 %v1352_v33, %v1253_v34  ;;  %v1181_v38 = vld [vmem:[%s1541_s11 + $0x88] sm:$0xf0]  ;;  %v1350_v39 = vld [vmem:[%s1541_s11 + $0x104] sm:$0xf]  ;;  %v395_v46 = vld [vmem:[#allocation2 + $0x30] sm:$0xff]  ;;  %p1305_p11 = scmp.ne.s32.totalorder %s1455_s17, 5 }
  0x54   : > { %826 = vmatpush.bf16.msrb.mxu1 %v1304_v53  ;;  %777 = vmatmul.bf16.vlgmr.msra.gmra.mxu2 %v1624_v57  ;;  %v1245_v40 = vld [vmem:[%s1541_s11 + $0x108] sm:$0xf0]  ;;  %v1184_v41 = vor.u32 %v1334_v37, %v1181_v38  ;;  %v397_v54 = vld [vmem:[#allocation2 + $0x18] sm:$0xff]  ;;  %v396_v14 = vld [vmem:[#allocation2] sm:$0xff] }
  0x55   : > { %1366 = vmatpush.bf16.msrb.mxu2 %v1240_v51  ;;  %807 = vmatpush.bf16.msrb.mxu0 %v1240_v51  ;;  %v1248_v42 = vor.u32 %v1350_v39, %v1245_v40  ;;  %v399_v62 = vld [vmem:[#allocation2 + $0x8] sm:$0xff]  ;;  %v398_v24 = vld [vmem:[#allocation2 + $0x10] sm:$0xff]  ;;  %v402_v31 = vld [vmem:[#allocation2 + $0x38] sm:$0xff] }
  0x56   : > { %1374 = vmatpush.bf16.msrb.mxu3 %v1304_v53  ;;  %v401_v6 = vld [vmem:[#allocation2 + $0x28] sm:$0xff] }
  0x58   : > { %827 = vmatpush.bf16.msrb.mxu1 %v1296_v61 }
  0x59   : > { %1367 = vmatpush.bf16.msrb.mxu2 %v1232_v60  ;;  %808 = vmatpush.bf16.msrb.mxu0 %v1232_v60 }
  0x5a   : > { %1375 = vmatpush.bf16.msrb.mxu3 %v1296_v61 }
  0x5c   : > { %828 = vmatpush.bf16.msrb.mxu1 %v1288_v3 }
  0x5d   : > { %1368 = vmatpush.bf16.msrb.mxu2 %v1224_v2  ;;  %809 = vmatpush.bf16.msrb.mxu0 %v1224_v2 }
  0x5e   : > { %1376 = vmatpush.bf16.msrb.mxu3 %v1288_v3 }
  0x60   : > { %829 = vmatpush.bf16.msrb.mxu1 %v1280_v10 }
  0x61   : > { %1369 = vmatpush.bf16.msrb.mxu2 %v1216_v8  ;;  %810 = vmatpush.bf16.msrb.mxu0 %v1216_v8 }
  0x62   : > { %1377 = vmatpush.bf16.msrb.mxu3 %v1280_v10  ;;  %744 = vmatmul.bf16.gmra.mxu0 %v1104_v21 }
  0x63   : > { %763 = vmatmul.bf16.gmra.mxu1 %v1108_v25  ;;  %801 = vmatmul.bf16.gmra.mxu3 %v1104_v21 }
  0x64   : > { %830 = vmatpush.bf16.msrb.mxu1 %v1272_v22  ;;  %782 = vmatmul.bf16.gmra.mxu2 %v1112_v26 }
  0x65   : > { %1370 = vmatpush.bf16.msrb.mxu2 %v1208_v20  ;;  %811 = vmatpush.bf16.msrb.mxu0 %v1208_v20  ;;  %v400_v20 = vld [vmem:[#allocation2 + $0x20] sm:$0xff] }
  0x66   : > { %1378 = vmatpush.bf16.msrb.mxu3 %v1272_v22 }
  0x68   : > { %831 = vmatpush.bf16.msrb.mxu1 %v1264_v30 }
  0x69   : > { %1371 = vmatpush.bf16.msrb.mxu2 %v1200_v29  ;;  %812 = vmatpush.bf16.msrb.mxu0 %v1200_v29 }
  0x6a   : > { %1379 = vmatpush.bf16.msrb.mxu3 %v1264_v30 }
  0x6c   : > { %832 = vmatpush.bf16.msrb.mxu1 %v1256_v36 }
  0x6d   : > { %1372 = vmatpush.bf16.msrb.mxu2 %v1192_v35  ;;  %813 = vmatpush.bf16.msrb.mxu0 %v1192_v35 }
  0x6e   : > { %1380 = vmatpush.bf16.msrb.mxu3 %v1256_v36 }
  0x70   : > { %833 = vmatpush.bf16.msrb.mxu1 %v1248_v42 }
  0x71   : > { %1373 = vmatpush.bf16.msrb.mxu2 %v1184_v41  ;;  %814 = vmatpush.bf16.msrb.mxu0 %v1184_v41 }
  0x72   : > { %1381 = vmatpush.bf16.msrb.mxu3 %v1248_v42 }
  0x73   : > { %834 = vmatmul.bf16.vlgmr.msrb.gmra.mxu1 %v1624_v57 }
  0x74   : > { %815 = vmatmul.bf16.vlgmr.msrb.gmra.mxu0 %v1622_v56  ;;  %820 = vmatmul.bf16.vlgmr.msrb.gmra.mxu2 %v1108_v25 }
  0x75   : > { %839 = vmatmul.bf16.vlgmr.msrb.gmra.mxu3 %v1112_v26 }
  0xcf   : > { %v740_v43 = vpop.f32.mrf.mxu0 }
  0xd0   : > { %v759_v44 = vpop.f32.mrf.mxu1 }
  0xd1   : > { %v760_v45 = vadd.f32 %v759_v44, %v740_v43 }
  0xd6   : > { %v797_v49 = vpop.f32.mrf.mxu3 }
  0xd7   : > { %v778_v47 = vpop.f32.mrf.mxu2  ;;  %v742_v50 = vpop.f32.mrf.mxu0 }
  0xd8   : > { %v779_v48 = vadd.f32 %v778_v47, %v760_v45  ;;  %v761_v51 = vpop.f32.mrf.mxu1 }
  0xd9   : > { %v762_v53 = vadd.f32 %v761_v51, %v742_v50 }
  0xda   : > { %v845_v52 = vadd.f32 %v779_v48, %v395_v46 }
  0xdc   : > { %853 = vst [vmem:[#allocation2 + $0x30] sm:$0xff] %v845_v52 }
  0xde   : > { %v799_v56 = vpop.f32.mrf.mxu3 }
  0xdf   : > { %v780_v55 = vpop.f32.mrf.mxu2  ;;  %v745_v59 = vpop.f32.mrf.mxu0 }
  0xe0   : > { %v781_v58 = vadd.f32 %v780_v55, %v762_v53  ;;  %v764_v60 = vpop.f32.mrf.mxu1 }
  0xe1   : > { %v765_v61 = vadd.f32 %v764_v60, %v745_v59 }
  0xe2   : > { %v847_v57 = vadd.f32 %v781_v58, %v397_v54 }
  0xe4   : > { %855 = vst [vmem:[#allocation2 + $0x18] sm:$0xff] %v847_v57 }
  0xe6   : > { %v802_v1 = vpop.f32.mrf.mxu3 }
  0xe7   : > { %v783_v63 = vpop.f32.mrf.mxu2  ;;  %v747_v2 = vpop.f32.mrf.mxu0 }
  0xe8   : > { %v784_v0 = vadd.f32 %v783_v63, %v765_v61  ;;  %v766_v3 = vpop.f32.mrf.mxu1 }
  0xe9   : > { %v767_v5 = vadd.f32 %v766_v3, %v747_v2 }
  0xea   : > { %v849_v4 = vadd.f32 %v784_v0, %v399_v62 }
  0xec   : > { %857 = vst [vmem:[#allocation2 + $0x8] sm:$0xff] %v849_v4 }
  0xee   : > { %v804_v9 = vpop.f32.mrf.mxu3 }
  0xef   : > { %v785_v7 = vpop.f32.mrf.mxu2 }
  0xf0   : > { %v786_v8 = vadd.f32 %v785_v7, %v767_v5  ;;  %v835_v13 = vpop.f32.mrf.mxu1 }
  0xf1   : > { %v816_v10 = vpop.f32.mrf.mxu0 }
  0xf2   : > { %v851_v11 = vadd.f32 %v786_v8, %v401_v6  ;;  %v817_v12 = vadd.f32 %v816_v10, %v797_v49 }
  0xf4   : > { %859 = vst [vmem:[#allocation2 + $0x28] sm:$0xff] %v851_v11  ;;  %v836_v15 = vadd.f32 %v835_v13, %v817_v12 }
  0xf6   : > { %v846_v16 = vadd.f32 %v836_v15, %v396_v14 }
  0xf7   : > { %v821_v17 = vpop.f32.mrf.mxu2 }
  0xf8   : > { %854 = vst [vmem:[#allocation2] sm:$0xff] %v846_v16  ;;  %v822_v18 = vadd.f32 %v821_v17, %v802_v1  ;;  %v840_v19 = vpop.f32.mrf.mxu3  ;;  %v837_v25 = vpop.f32.mrf.mxu1 }
  0xf9   : > { %v818_v21 = vpop.f32.mrf.mxu0 }
  0xfa   : > { %v841_v22 = vadd.f32 %v840_v19, %v822_v18  ;;  %v819_v23 = vadd.f32 %v818_v21, %v799_v56 }
  0xfc   : > { %v850_v26 = vadd.f32 %v841_v22, %v400_v20  ;;  %v838_v27 = vadd.f32 %v837_v25, %v819_v23 }
  0xfe   : > { %858 = vst [vmem:[#allocation2 + $0x20] sm:$0xff] %v850_v26  ;;  %v848_v28 = vadd.f32 %v838_v27, %v398_v24 }
  0xff   : > { %v823_v29 = vpop.f32.mrf.mxu2 }
 0x100   : > { %856 = vst [vmem:[#allocation2 + $0x10] sm:$0xff] %v848_v28  ;;  %v824_v30 = vadd.f32 %v823_v29, %v804_v9  ;;  %v842_v32 = vpop.f32.mrf.mxu3 }
 0x102   : > { %v843_v33 = vadd.f32 %v842_v32, %v824_v30  ;;  %864 = sbr.rel (%p1305_p11) target bundleno = 280 (0x118), region = 70 }
 0x104   : > { %v852_v34 = vadd.f32 %v843_v33, %v402_v31 }
 0x106   : > { %860 = vst [vmem:[#allocation2 + $0x38] sm:$0xff] %v852_v34 }
 0x107   : > { %v865_v35 = vld [vmem:[#allocation2 + $0x30] sm:$0xff]  ;;  %v873_v36 = vld [vmem:[%s1719_s2] sm:$0x3]  ;;  %v867_v43 = vld [vmem:[#allocation2 + $0x18] sm:$0xff] }
 0x108   : > { %v887_v37 = vld [vmem:[%s1720_s3] sm:$0xff]  ;;  %v875_v38 = vperm.slane %v873_v36, 0  ;;  %v876_v41 = vperm.slane %v873_v36, 1  ;;  %v888_v44 = vld [vmem:[%s1720_s3 + $0x8] sm:$0xff]  ;;  %v868_v46 = vld [vmem:[#allocation2 + $0x10] sm:$0xff] }
 0x109   : > { %v891_v39 = vunpack.c.l.bf16 %v887_v37  ;;  %v866_v40 = vld [vmem:[#allocation2] sm:$0xff]  ;;  %v892_v42 = vunpack.c.h.bf16 %v887_v37  ;;  %v893_v45 = vunpack.c.l.bf16 %v888_v44  ;;  %v894_v47 = vunpack.c.h.bf16 %v888_v44  ;;  %v869_v48 = vld [vmem:[#allocation2 + $0x8] sm:$0xff]  ;;  %v889_v49 = vld [vmem:[%s1720_s3 + $0x10] sm:$0xff] }
 0x10a   : > { %v879_v50 = vadd.f32 %v875_v38, %v865_v35  ;;  %v880_v51 = vadd.f32 %v876_v41, %v866_v40  ;;  %v881_v52 = vadd.f32 %v875_v38, %v867_v43  ;;  %v882_v53 = vadd.f32 %v876_v41, %v868_v46  ;;  %v870_v54 = vld [vmem:[#allocation2 + $0x20] sm:$0xff]  ;;  %v871_v55 = vld [vmem:[#allocation2 + $0x28] sm:$0xff]  ;;  %v890_v58 = vld [vmem:[%s1720_s3 + $0x18] sm:$0xff] }
 0x10b   : > { %v883_v56 = vadd.f32 %v875_v38, %v869_v48  ;;  %v895_v59 = vunpack.c.l.bf16 %v889_v49  ;;  %v884_v60 = vadd.f32 %v876_v41, %v870_v54  ;;  %v896_v57 = vunpack.c.h.bf16 %v889_v49 }
 0x10c   : > { %v899_v61 = vadd.f32 %v891_v39, %v879_v50  ;;  %v900_v62 = vadd.f32 %v892_v42, %v880_v51  ;;  %v901_v63 = vadd.f32 %v893_v45, %v881_v52  ;;  %v902_v0 = vadd.f32 %v894_v47, %v882_v53 }
 0x10d   : > { %v872_v1 = vld [vmem:[#allocation2 + $0x38] sm:$0xff]  ;;  %v903_v2 = vadd.f32 %v895_v59, %v883_v56  ;;  %v904_v3 = vadd.f32 %v896_v57, %v884_v60  ;;  %v885_v4 = vadd.f32 %v875_v38, %v871_v55  ;;  %v897_v5 = vunpack.c.l.bf16 %v890_v58 }
 0x10e   : > { %v907_v6 = vmax.f32 %v899_v61, 0.0  ;;  %v908_v7 = vmax.f32 %v900_v62, 0.0  ;;  %v909_v8 = vmax.f32 %v901_v63, 0.0  ;;  %v910_v9 = vmax.f32 %v902_v0, 0.0 }
 0x10f   : > { %v905_v10 = vadd.f32 %v897_v5, %v885_v4  ;;  %v886_v11 = vadd.f32 %v876_v41, %v872_v1  ;;  %v911_v12 = vmax.f32 %v903_v2, 0.0  ;;  %v898_v13 = vunpack.c.h.bf16 %v890_v58 }
 0x110   : > { %915 = vst [vmem:[%s1721_s4] sm:$0xff] %v907_v6  ;;  %v912_v14 = vmax.f32 %v904_v3, 0.0 }
 0x111   : > { %916 = vst [vmem:[%s1721_s4 + $0x8] sm:$0xff] %v908_v7  ;;  %v913_v15 = vmax.f32 %v905_v10, 0.0  ;;  %v906_v16 = vadd.f32 %v898_v13, %v886_v11 }
 0x112   : > { %917 = vst [vmem:[%s1721_s4 + $0x10] sm:$0xff] %v909_v8 }
 0x113   : > { %918 = vst [vmem:[%s1721_s4 + $0x18] sm:$0xff] %v910_v9  ;;  %v914_v17 = vmax.f32 %v906_v16, 0.0 }
 0x114   : > { %919 = vst [vmem:[%s1721_s4 + $0x20] sm:$0xff] %v911_v12 }
 0x115   : > { %920 = vst [vmem:[%s1721_s4 + $0x28] sm:$0xff] %v912_v14 }
 0x116   : > { %921 = vst [vmem:[%s1721_s4 + $0x30] sm:$0xff] %v913_v15 }
 0x117   : > { %922 = vst [vmem:[%s1721_s4 + $0x38] sm:$0xff] %v914_v17 }
 0x118 PF: > { %s14_s19 = sadd.s32 1, %s1463_s19   ;;  %s1722_s15 = smov %s1451_s16 }
 0x119   : > { %p11_p12 = scmp.ge.s32.totalorder %s14_s19, 8   ;;  %s1723_s16 = smov %s1526_s23 }
 0x11a   : > { %s1724_s17 = smov %s1459_s18  ;;  %s1725_s18 = smov %s1727_s20 }
 0x11b   :  { %13 = sbr.rel (!%p11_p12) target bundleno = 3 (0x3), region = 120 }

// kernel: resnet_forward.22
= control target key start
LH: loop header
LB: loop body
LE: loop exit
PB: predicated region body
PF: predicated region fallthrough
CT: control target
= control target key end

     0   :  { %s1964_s0 = inlined_call_operand.vmem [shape: bf16[16,2304], index: 0, kind: input, shape index: {}]   ;;  %s1965_s1 = inlined_call_operand.vmem [shape: bf16[2304,512], index: 1, kind: input, shape index: {}]   ;;  %s1966_s2 = inlined_call_operand.vmem [shape: f32[1,512], index: 2, kind: input, shape index: {}]   ;;  %s1967_s3 = inlined_call_operand.vmem [shape: f32[16,512], index: 3, kind: output, shape index: {}]  }
   0x1   :  { %1969 = sst [smem:[#allocation7_spill]] %s1964_s0 }
   0x2   :  { %1970 = sst [smem:[#allocation8_spill]] %s1965_s1 }
   0x3   :  { %s1568_s12 = smov 0   ;;  %s1570_s13 = smov 0  }
   0x4   :  { %s1572_s14 = smov 0   ;;  %s1574_s15 = smov 0  }
   0x5   :  { %s1576_s16 = smov 0   ;;  %s1578_s17 = smov 0  }
   0x6   :  { %s1580_s18 = smov 0   ;;  %s1582_s19 = smov 0  }
   0x7   :  { %s1584_s20 = smov 0   ;;  %s1586_s21 = smov 0  }
   0x8   :  { %s1588_s22 = smov 0  }
   0x9 LB: > { %s1086_s23 = sadd.s32 4294967295, %s1545_s22   ;;  %s25_s24 = sadd.s32 1, %s1537_s20  ;;  %s1545_s22 = sphi %s1588_s22, %s13_s22   ;;  %s1541_s21 = sphi %s1586_s21, %s1987_s21   ;;  %s1537_s20 = sphi %s1584_s20, %s1986_s20   ;;  %s1533_s19 = sphi %s1582_s19, %s1985_s19   ;;  %s1529_s18 = sphi %s1580_s18, %s1984_s18   ;;  %s1525_s17 = sphi %s1578_s17, %s1983_s17   ;;  %s1521_s16 = sphi %s1576_s16, %s1982_s16   ;;  %s1517_s15 = sphi %s1574_s15, %s1981_s15   ;;  %s1513_s14 = sphi %s1572_s14, %s1980_s14   ;;  %s1509_s13 = sphi %s1570_s13, %s1979_s13   ;;  %s1505_s12 = sphi %s1568_s12, %s1978_s12  }
   0xa   : > { %p26_p0 = scmp.ge.s32.totalorder %s25_s24, 6  ;;  %s28_s25 = sadd.s32 1, %s1541_s21 }
   0xb   : > { %s41_s26 = sadd.s32 1, %s1525_s17  ;;  %p48_p1 = scmp.ne.s32.totalorder %s1525_s17, %s1521_s16 }
   0xc   : > { %s1989_s24 = smov (%p26_p0, %s25_s24), 0  ;;  %s1991_s25 = smov (!%p26_p0, %s28_s25), %s1541_s21 }
   0xd   : > { %s37_s27 = ssub.s32 %s1537_s20, %s1989_s24  ;;  %p49_p2 = scmp.eq.s32.totalorder %s1545_s22, 0 }
   0xe   : > { %p30_p3 = scmp.ge.s32.totalorder %s1991_s25, 2  ;;  %p39_p4 = scmp.eq.s32.totalorder %s37_s27, 0 }
   0xf   : > { %p1635_p5 = por %p49_p2, %p48_p1  ;;  %s69_s29 = sadd.s32 1, %s1517_s15 }
  0x10   : > { %s1993_s25 = smov (%p30_p3, %s1991_s25), 0  ;;  %p76_p6 = scmp.ne.s32.totalorder %s1517_s15, %s1513_s14 }
  0x11   : > { %1972 = sst [smem:[#allocation6_spill]] %s1993_s25  ;;  %s65_s4 = ssub.s32 %s1541_s21, %s1993_s25 }
  0x12   : > { %s1643_s30 = scalar_select %p39_p4, %s1525_s17, %s41_s26  }
  0x13   : > { %s66_s5 = sor.u32 %s65_s4, %s37_s27  ;;  %p121_p7 = scmp.eq.s32.totalorder %s65_s4, 0 }
  0x14   : > { %p67_p8 = scmp.eq.s32.totalorder %s66_s5, 0  ;;  %p1649_p9 = por %p76_p6, %p49_p2 }
  0x15   : > { %s123_s7 = sadd.s32 1, %s1509_s13  ;;  %p133_p10 = scmp.ne.s32.totalorder %s1509_s13, %s1505_s12 }
  0x16   : > { %s1657_s8 = scalar_select %p67_p8, %s1517_s15, %s69_s29  }
  0x17   : > { %s1660_s9 = scalar_select %p121_p7, %s1509_s13, %s123_s7  }
  0x18   : > { %p134_p11 = scmp.eq.s32.totalorder %s1086_s23, 11  ;;  %p1089_p13 = scmp.ge.s32.totalorder %s1545_s22, 12 }
  0x1a   : > { %p1662_p12 = por %p134_p11, %p133_p10  ;;  %156 = sbr.rel (%p1089_p13) target bundleno = 102 (0x66), region = 16 }
  0x1f   : > { %159 = sbr.rel (!%p1635_p5) target bundleno = 44 (0x2c), region = 20  ;;  %s161_s11 = sand.u32 (%p1635_p5), 1, %s1525_s17  }
  0x20   : > { %s1312_s26 = smul.u32 (%p1635_p5), 12, %s1537_s20  ;;  %s1975_s0 = sld [smem:[#allocation7_spill]] (%p1635_p5) }
  0x21   : > { %s1366_s27 = smul.u32 (%p1635_p5), 24, %s161_s11 }
  0x23   : > { %s163_s23 = scalar_lea.vmem (%p1635_p5), [#allocation3], %s1366_s27 }
  0x26   : > { %s169_s5 = scalar_lea.vmem %s1975_s0, %s1312_s26 }
  0x27   : > { %v184_v0 = vld [vmem:[%s169_s5] sm:$0xff]  ;;  %v186_v1 = vld [vmem:[%s169_s5 + $0x48] sm:$0xff]  ;;  %v1093_v3 = vld [vmem:[%s169_s5 + $0x50] sm:$0xf] }
  0x28   : > { %v1091_v2 = vld [vmem:[%s169_s5 + $0x8] sm:$0xf]  ;;  %185 = vst [vmem:[%s163_s23] sm:$0xff] %v184_v0 }
  0x29   : > { %187 = vst [vmem:[%s163_s23 + $0xc] sm:$0xff] %v186_v1 }
  0x2a   : > { %1092 = vst [vmem:[%s163_s23 + $0x8] sm:$0xf] %v1091_v2 }
  0x2b   : > { %1094 = vst [vmem:[%s163_s23 + $0x14] sm:$0xf] %v1093_v3 }
  0x2c PF: > { %205 = sbr.rel (!%p1649_p9) target bundleno = 102 (0x66), region = 46  ;;  %s207_s28 = sand.u32 (%p1649_p9), 1, %s1517_s15  }
  0x2d   : > { %s1367_s7 = smul.u32 (%p1649_p9), 384, %s207_s28  ;;  %s1095_s11 = sshll.u32 (%p1649_p9), %s1541_s21, 1 }
  0x2e   : > { %s1313_s26 = smul.u32 (%p1649_p9), 192, %s1537_s20  ;;  %s1976_s1 = sld [smem:[#allocation8_spill]] (%p1649_p9) }
  0x2f   : > { %s1687_s6 = scalar_lea.vmem (%p1649_p9), [#allocation4], %s1367_s7 }
  0x30   : > { %s213_s29 = sadd.s32 (%p1649_p9), %s1313_s26, %s1095_s11 }
  0x31   : > { %s1097_s4 = sshll.u32 %s213_s29, 2 }
  0x34   : > { %s1682_s5 = scalar_lea.vmem %s1976_s1, %s1097_s4 }
  0x35   : > { %v338_v4 = vld [vmem:[%s1682_s5] sm:$0xff]  ;;  %v340_v5 = vld [vmem:[%s1682_s5 + $0x10] sm:$0xff] }
  0x36   : > { %v342_v6 = vld [vmem:[%s1682_s5 + $0x20] sm:$0xff]  ;;  %339 = vst [vmem:[%s1687_s6] sm:$0xff] %v338_v4  ;;  %v344_v7 = vld [vmem:[%s1682_s5 + $0x30] sm:$0xff] }
  0x37   : > { %341 = vst [vmem:[%s1687_s6 + $0x8] sm:$0xff] %v340_v5  ;;  %v346_v8 = vld [vmem:[%s1682_s5 + $0x40] sm:$0xff]  ;;  %v348_v9 = vld [vmem:[%s1682_s5 + $0x50] sm:$0xff] }
  0x38   : > { %343 = vst [vmem:[%s1687_s6 + $0x10] sm:$0xff] %v342_v6  ;;  %v350_v10 = vld [vmem:[%s1682_s5 + $0x60] sm:$0xff]  ;;  %v352_v11 = vld [vmem:[%s1682_s5 + $0x70] sm:$0xff] }
  0x39   : > { %345 = vst [vmem:[%s1687_s6 + $0x18] sm:$0xff] %v344_v7  ;;  %v354_v12 = vld [vmem:[%s1682_s5 + $0x80] sm:$0xff]  ;;  %v356_v13 = vld [vmem:[%s1682_s5 + $0x90] sm:$0xff] }
  0x3a   : > { %347 = vst [vmem:[%s1687_s6 + $0x20] sm:$0xff] %v346_v8  ;;  %v358_v14 = vld [vmem:[%s1682_s5 + $0xa0] sm:$0xff]  ;;  %v360_v15 = vld [vmem:[%s1682_s5 + $0xb0] sm:$0xff] }
  0x3b   : > { %349 = vst [vmem:[%s1687_s6 + $0x28] sm:$0xff] %v348_v9  ;;  %v362_v16 = vld [vmem:[%s1682_s5 + $0xc0] sm:$0xff]  ;;  %v364_v17 = vld [vmem:[%s1682_s5 + $0xd0] sm:$0xff] }
  0x3c   : > { %351 = vst [vmem:[%s1687_s6 + $0x30] sm:$0xff] %v350_v10  ;;  %v366_v18 = vld [vmem:[%s1682_s5 + $0xe0] sm:$0xff]  ;;  %v368_v19 = vld [vmem:[%s1682_s5 + $0xf0] sm:$0xff] }
  0x3d   : > { %353 = vst [vmem:[%s1687_s6 + $0x38] sm:$0xff] %v352_v11  ;;  %v370_v20 = vld [vmem:[%s1682_s5 + $0x100] sm:$0xff]  ;;  %v372_v21 = vld [vmem:[%s1682_s5 + $0x110] sm:$0xff] }
  0x3e   : > { %355 = vst [vmem:[%s1687_s6 + $0x40] sm:$0xff] %v354_v12  ;;  %v374_v22 = vld [vmem:[%s1682_s5 + $0x120] sm:$0xff]  ;;  %v376_v23 = vld [vmem:[%s1682_s5 + $0x130] sm:$0xff] }
  0x3f   : > { %357 = vst [vmem:[%s1687_s6 + $0x48] sm:$0xff] %v356_v13  ;;  %v378_v24 = vld [vmem:[%s1682_s5 + $0x140] sm:$0xff]  ;;  %v380_v25 = vld [vmem:[%s1682_s5 + $0x150] sm:$0xff] }
  0x40   : > { %359 = vst [vmem:[%s1687_s6 + $0x50] sm:$0xff] %v358_v14  ;;  %v382_v26 = vld [vmem:[%s1682_s5 + $0x160] sm:$0xff]  ;;  %v384_v27 = vld [vmem:[%s1682_s5 + $0x170] sm:$0xff] }
  0x41   : > { %361 = vst [vmem:[%s1687_s6 + $0x58] sm:$0xff] %v360_v15  ;;  %v386_v28 = vld [vmem:[%s1682_s5 + $0x180] sm:$0xff]  ;;  %v388_v29 = vld [vmem:[%s1682_s5 + $0x190] sm:$0xff] }
  0x42   : > { %363 = vst [vmem:[%s1687_s6 + $0x60] sm:$0xff] %v362_v16  ;;  %v390_v30 = vld [vmem:[%s1682_s5 + $0x1a0] sm:$0xff]  ;;  %v392_v31 = vld [vmem:[%s1682_s5 + $0x1b0] sm:$0xff] }
  0x43   : > { %365 = vst [vmem:[%s1687_s6 + $0x68] sm:$0xff] %v364_v17  ;;  %v394_v32 = vld [vmem:[%s1682_s5 + $0x1c0] sm:$0xff]  ;;  %v396_v33 = vld [vmem:[%s1682_s5 + $0x1d0] sm:$0xff] }
  0x44   : > { %367 = vst [vmem:[%s1687_s6 + $0x70] sm:$0xff] %v366_v18  ;;  %v398_v34 = vld [vmem:[%s1682_s5 + $0x1e0] sm:$0xff]  ;;  %v400_v35 = vld [vmem:[%s1682_s5 + $0x1f0] sm:$0xff] }
  0x45   : > { %369 = vst [vmem:[%s1687_s6 + $0x78] sm:$0xff] %v368_v19  ;;  %v402_v36 = vld [vmem:[%s1682_s5 + $0x200] sm:$0xff]  ;;  %v404_v37 = vld [vmem:[%s1682_s5 + $0x210] sm:$0xff] }
  0x46   : > { %371 = vst [vmem:[%s1687_s6 + $0x80] sm:$0xff] %v370_v20  ;;  %v406_v38 = vld [vmem:[%s1682_s5 + $0x220] sm:$0xff]  ;;  %v408_v39 = vld [vmem:[%s1682_s5 + $0x230] sm:$0xff] }
  0x47   : > { %373 = vst [vmem:[%s1687_s6 + $0x88] sm:$0xff] %v372_v21  ;;  %v410_v40 = vld [vmem:[%s1682_s5 + $0x240] sm:$0xff]  ;;  %v412_v41 = vld [vmem:[%s1682_s5 + $0x250] sm:$0xff] }
  0x48   : > { %375 = vst [vmem:[%s1687_s6 + $0x90] sm:$0xff] %v374_v22  ;;  %v414_v42 = vld [vmem:[%s1682_s5 + $0x260] sm:$0xff]  ;;  %v416_v43 = vld [vmem:[%s1682_s5 + $0x270] sm:$0xff] }
  0x49   : > { %377 = vst [vmem:[%s1687_s6 + $0x98] sm:$0xff] %v376_v23  ;;  %v418_v44 = vld [vmem:[%s1682_s5 + $0x280] sm:$0xff]  ;;  %v420_v45 = vld [vmem:[%s1682_s5 + $0x290] sm:$0xff] }
  0x4a   : > { %379 = vst [vmem:[%s1687_s6 + $0xa0] sm:$0xff] %v378_v24  ;;  %v422_v46 = vld [vmem:[%s1682_s5 + $0x2a0] sm:$0xff]  ;;  %v424_v47 = vld [vmem:[%s1682_s5 + $0x2b0] sm:$0xff] }
  0x4b   : > { %381 = vst [vmem:[%s1687_s6 + $0xa8] sm:$0xff] %v380_v25  ;;  %v426_v48 = vld [vmem:[%s1682_s5 + $0x2c0] sm:$0xff]  ;;  %v428_v49 = vld [vmem:[%s1682_s5 + $0x2d0] sm:$0xff] }
  0x4c   : > { %383 = vst [vmem:[%s1687_s6 + $0xb0] sm:$0xff] %v382_v26  ;;  %v430_v50 = vld [vmem:[%s1682_s5 + $0x2e0] sm:$0xff]  ;;  %v432_v51 = vld [vmem:[%s1682_s5 + $0x2f0] sm:$0xff] }
  0x4d   : > { %385 = vst [vmem:[%s1687_s6 + $0xb8] sm:$0xff] %v384_v27 }
  0x4e   : > { %387 = vst [vmem:[%s1687_s6 + $0xc0] sm:$0xff] %v386_v28 }
  0x4f   : > { %389 = vst [vmem:[%s1687_s6 + $0xc8] sm:$0xff] %v388_v29 }
  0x50   : > { %391 = vst [vmem:[%s1687_s6 + $0xd0] sm:$0xff] %v390_v30 }
  0x51   : > { %393 = vst [vmem:[%s1687_s6 + $0xd8] sm:$0xff] %v392_v31 }
  0x52   : > { %395 = vst [vmem:[%s1687_s6 + $0xe0] sm:$0xff] %v394_v32 }
  0x53   : > { %397 = vst [vmem:[%s1687_s6 + $0xe8] sm:$0xff] %v396_v33 }
  0x54   : > { %399 = vst [vmem:[%s1687_s6 + $0xf0] sm:$0xff] %v398_v34 }
  0x55   : > { %401 = vst [vmem:[%s1687_s6 + $0xf8] sm:$0xff] %v400_v35 }
  0x56   : > { %403 = vst [vmem:[%s1687_s6 + $0x100] sm:$0xff] %v402_v36 }
  0x57   : > { %405 = vst [vmem:[%s1687_s6 + $0x108] sm:$0xff] %v404_v37 }
  0x58   : > { %407 = vst [vmem:[%s1687_s6 + $0x110] sm:$0xff] %v406_v38 }
  0x59   : > { %409 = vst [vmem:[%s1687_s6 + $0x118] sm:$0xff] %v408_v39 }
  0x5a   : > { %411 = vst [vmem:[%s1687_s6 + $0x120] sm:$0xff] %v410_v40 }
  0x5b   : > { %413 = vst [vmem:[%s1687_s6 + $0x128] sm:$0xff] %v412_v41 }
  0x5c   : > { %415 = vst [vmem:[%s1687_s6 + $0x130] sm:$0xff] %v414_v42 }
  0x5d   : > { %417 = vst [vmem:[%s1687_s6 + $0x138] sm:$0xff] %v416_v43 }
  0x5e   : > { %419 = vst [vmem:[%s1687_s6 + $0x140] sm:$0xff] %v418_v44 }
  0x5f   : > { %421 = vst [vmem:[%s1687_s6 + $0x148] sm:$0xff] %v420_v45 }
  0x60   : > { %423 = vst [vmem:[%s1687_s6 + $0x150] sm:$0xff] %v422_v46 }
  0x61   : > { %425 = vst [vmem:[%s1687_s6 + $0x158] sm:$0xff] %v424_v47 }
  0x62   : > { %427 = vst [vmem:[%s1687_s6 + $0x160] sm:$0xff] %v426_v48 }
  0x63   : > { %429 = vst [vmem:[%s1687_s6 + $0x168] sm:$0xff] %v428_v49 }
  0x64   : > { %431 = vst [vmem:[%s1687_s6 + $0x170] sm:$0xff] %v430_v50 }
  0x65   : > { %433 = vst [vmem:[%s1687_s6 + $0x178] sm:$0xff] %v432_v51 }
  0x66 PF: > { %p1098_p0 = scmp.ge.s32.totalorder %s1545_s22, 1  ;;  %p446_p1 = scmp.lt.s32.totalorder %s1545_s22, 13 }
  0x68   : > { %p447_p2 = pnand %p1098_p0, %p446_p1 }
  0x69   : > { %s453_s0 = sand.u32 (!%p447_p2), 1, %s1521_s16   ;;  %s460_s23 = sand.u32 (!%p447_p2), 1, %s1513_s14  }
  0x6a   : > { %450 = sbr.rel (%p447_p2) target bundleno = 350 (0x15e), region = 88  ;;  %s487_s7 = sand.u32 (!%p447_p2), 1, %s1505_s12  }
  0x6b   : > { %s1368_s28 = smul.u32 (!%p447_p2), 24, %s453_s0  ;;  %s1099_s26 = sshll.u32 (!%p447_p2), %s487_s7, 5 }
  0x6c   : > { %s1369_s11 = smul.u32 (!%p447_p2), 384, %s460_s23  ;;  %s1100_s29 = sshll.u32 (!%p447_p2), %s1533_s19, 1 }
  0x6d   : > { %p495_p3 = scmp.lt.s32.totalorder (!%p447_p2), %s1100_s29, 3  ;;  %s1794_s6 = scalar_lea.vmem (!%p447_p2), [#allocation3], %s1368_s28 }
  0x6e   : > { %s1796_s1 = scalar_lea.vmem (!%p447_p2), [#allocation4], %s1369_s11  ;;  %s1798_s25 = scalar_lea.vmem (!%p447_p2), [#allocation5], %s1099_s26 }
  0x6f   : > { %s1995_s29 = smov (!%p495_p3, %s1100_s29), 3  ;;  %p1101_p4 = scmp.ne.s32.totalorder %s1529_s18, 0 }
  0x70   : > { %s497_s5 = scalar_lea.vmem %s1966_s2, %s1995_s29 }
  0x71   : > { %504 = sbr.rel (%p1101_p4) target bundleno = 123 (0x7b), region = 100 }
  0x76   : > { %v1547_v52 = vmov 0.0  }
  0x77   : > { %505 = vst [vmem:[#allocation2 + $0x10] sm:$0xff] %v1547_v52 }
  0x78   : > { %506 = vst [vmem:[#allocation2] sm:$0xff] %v1547_v52 }
  0x79   : > { %507 = vst [vmem:[#allocation2 + $0x18] sm:$0xff] %v1547_v52 }
  0x7a   : > { %508 = vst [vmem:[#allocation2 + $0x8] sm:$0xff] %v1547_v52 }
  0x7b PF: > { %v1172_v53 = vld [vmem:[%s1796_s1 + $0x70] sm:$0xf]  ;;  %v1332_v54 = vld [vmem:[%s1796_s1 + $0x74] sm:$0xf0]  ;;  %v1164_v62 = vld [vmem:[%s1796_s1 + $0x60] sm:$0xf] }
  0x7c   : > { %v1236_v55 = vld [vmem:[%s1796_s1 + $0xf0] sm:$0xf]  ;;  %v1173_v56 = vor.u32 %v1332_v54, %v1172_v53  ;;  %v1348_v57 = vld [vmem:[%s1796_s1 + $0xf4] sm:$0xf0]  ;;  %v1330_v63 = vld [vmem:[%s1796_s1 + $0x64] sm:$0xf0] }
  0x7d   : > { %v1300_v58 = vld [vmem:[%s1796_s1 + $0x170] sm:$0xf]  ;;  %v1364_v59 = vld [vmem:[%s1796_s1 + $0x174] sm:$0xf0]  ;;  %v1237_v60 = vor.u32 %v1348_v57, %v1236_v55  ;;  %v1228_v0 = vld [vmem:[%s1796_s1 + $0xe0] sm:$0xf]  ;;  %v1165_v1 = vor.u32 %v1330_v63, %v1164_v62 }
  0x7e   : > { %v1301_v61 = vor.u32 %v1364_v59, %v1300_v58  ;;  %821 = vmatpush.bf16.msra.mxu0 %v1173_v56  ;;  %v1346_v2 = vld [vmem:[%s1796_s1 + $0xe4] sm:$0xf0]  ;;  %v1292_v3 = vld [vmem:[%s1796_s1 + $0x160] sm:$0xf]  ;;  %v1156_v7 = vld [vmem:[%s1796_s1 + $0x50] sm:$0xf] }
  0x7f   : > { %v1362_v4 = vld [vmem:[%s1796_s1 + $0x164] sm:$0xf0]  ;;  %835 = vmatpush.bf16.msra.mxu1 %v1237_v60  ;;  %v1229_v5 = vor.u32 %v1346_v2, %v1228_v0  ;;  %v1328_v8 = vld [vmem:[%s1796_s1 + $0x54] sm:$0xf0]  ;;  %v1220_v9 = vld [vmem:[%s1796_s1 + $0xd0] sm:$0xf] }
  0x80   : > { %849 = vmatpush.bf16.msra.mxu2 %v1301_v61  ;;  %v1293_v6 = vor.u32 %v1362_v4, %v1292_v3  ;;  %v1344_v10 = vld [vmem:[%s1796_s1 + $0xd4] sm:$0xf0]  ;;  %v1284_v11 = vld [vmem:[%s1796_s1 + $0x150] sm:$0xf]  ;;  %v1157_v13 = vor.u32 %v1328_v8, %v1156_v7  ;;  %v1148_v14 = vld [vmem:[%s1796_s1 + $0x40] sm:$0xf] }
  0x81   : > { %v1360_v12 = vld [vmem:[%s1796_s1 + $0x154] sm:$0xf0]  ;;  %v1326_v15 = vld [vmem:[%s1796_s1 + $0x44] sm:$0xf0]  ;;  %v1221_v16 = vor.u32 %v1344_v10, %v1220_v9  ;;  %v1212_v18 = vld [vmem:[%s1796_s1 + $0xc0] sm:$0xf] }
  0x82   : > { %822 = vmatpush.bf16.msra.mxu0 %v1165_v1  ;;  %v1285_v17 = vor.u32 %v1360_v12, %v1284_v11  ;;  %v1331_v19 = vld [vmem:[%s1796_s1 + $0x74] sm:$0xf]  ;;  %v1174_v20 = vld [vmem:[%s1796_s1 + $0x78] sm:$0xf0]  ;;  %v1342_v21 = vld [vmem:[%s1796_s1 + $0xc4] sm:$0xf0]  ;;  %v1149_v26 = vor.u32 %v1326_v15, %v1148_v14 }
  0x83   : > { %836 = vmatpush.bf16.msra.mxu1 %v1229_v5  ;;  %v1276_v22 = vld [vmem:[%s1796_s1 + $0x140] sm:$0xf]  ;;  %v1358_v23 = vld [vmem:[%s1796_s1 + $0x144] sm:$0xf0]  ;;  %v1177_v24 = vor.u32 %v1331_v19, %v1174_v20  ;;  %v1329_v25 = vld [vmem:[%s1796_s1 + $0x64] sm:$0xf]  ;;  %v1213_v30 = vor.u32 %v1342_v21, %v1212_v18 }
  0x84   : > { %850 = vmatpush.bf16.msra.mxu2 %v1293_v6  ;;  %v1140_v27 = vld [vmem:[%s1796_s1 + $0x30] sm:$0xf]  ;;  %v1324_v28 = vld [vmem:[%s1796_s1 + $0x34] sm:$0xf0]  ;;  %v1166_v29 = vld [vmem:[%s1796_s1 + $0x68] sm:$0xf0]  ;;  %v1277_v31 = vor.u32 %v1358_v23, %v1276_v22 }
  0x85   : > { %863 = vmatpush.bf16.msra.mxu3 %v1177_v24  ;;  %v1204_v32 = vld [vmem:[%s1796_s1 + $0xb0] sm:$0xf]  ;;  %v1340_v33 = vld [vmem:[%s1796_s1 + $0xb4] sm:$0xf0]  ;;  %v1169_v35 = vor.u32 %v1329_v25, %v1166_v29  ;;  %v1327_v37 = vld [vmem:[%s1796_s1 + $0x54] sm:$0xf]  ;;  %v1141_v39 = vor.u32 %v1324_v28, %v1140_v27 }
  0x86   : > { %823 = vmatpush.bf16.msra.mxu0 %v1157_v13  ;;  %v1268_v34 = vld [vmem:[%s1796_s1 + $0x130] sm:$0xf]  ;;  %v1356_v36 = vld [vmem:[%s1796_s1 + $0x134] sm:$0xf0]  ;;  %v1158_v38 = vld [vmem:[%s1796_s1 + $0x58] sm:$0xf0]  ;;  %v1205_v43 = vor.u32 %v1340_v33, %v1204_v32 }
  0x87   : > { %837 = vmatpush.bf16.msra.mxu1 %v1221_v16  ;;  %v1132_v40 = vld [vmem:[%s1796_s1 + $0x20] sm:$0xf]  ;;  %v1322_v41 = vld [vmem:[%s1796_s1 + $0x24] sm:$0xf0]  ;;  %v1161_v42 = vor.u32 %v1327_v37, %v1158_v38  ;;  %v1269_v44 = vor.u32 %v1356_v36, %v1268_v34  ;;  %v1325_v46 = vld [vmem:[%s1796_s1 + $0x44] sm:$0xf] }
  0x88   : > { %851 = vmatpush.bf16.msra.mxu2 %v1285_v17  ;;  %v1196_v45 = vld [vmem:[%s1796_s1 + $0xa0] sm:$0xf]  ;;  %v1150_v47 = vld [vmem:[%s1796_s1 + $0x48] sm:$0xf0]  ;;  %v1338_v48 = vld [vmem:[%s1796_s1 + $0xa4] sm:$0xf0]  ;;  %v1133_v51 = vor.u32 %v1322_v41, %v1132_v40 }
  0x89   : > { %864 = vmatpush.bf16.msra.mxu3 %v1169_v35  ;;  %v1260_v49 = vld [vmem:[%s1796_s1 + $0x120] sm:$0xf]  ;;  %v1354_v50 = vld [vmem:[%s1796_s1 + $0x124] sm:$0xf0]  ;;  %v1124_v52 = vld [vmem:[%s1796_s1 + $0x10] sm:$0xf]  ;;  %v1153_v54 = vor.u32 %v1325_v46, %v1150_v47  ;;  %v1197_v55 = vor.u32 %v1338_v48, %v1196_v45 }
  0x8a   : > { %824 = vmatpush.bf16.msra.mxu0 %v1149_v26  ;;  %v1320_v53 = vld [vmem:[%s1796_s1 + $0x14] sm:$0xf0]  ;;  %v1261_v56 = vor.u32 %v1354_v50, %v1260_v49  ;;  %v1188_v57 = vld [vmem:[%s1796_s1 + $0x90] sm:$0xf]  ;;  %v1323_v58 = vld [vmem:[%s1796_s1 + $0x34] sm:$0xf] }
  0x8b   : > { %838 = vmatpush.bf16.msra.mxu1 %v1213_v30  ;;  %v1142_v59 = vld [vmem:[%s1796_s1 + $0x38] sm:$0xf0]  ;;  %v1336_v60 = vld [vmem:[%s1796_s1 + $0x94] sm:$0xf0]  ;;  %v1252_v61 = vld [vmem:[%s1796_s1 + $0x110] sm:$0xf]  ;;  %v1125_v63 = vor.u32 %v1320_v53, %v1124_v52 }
  0x8c   : > { %852 = vmatpush.bf16.msra.mxu2 %v1277_v31  ;;  %v1352_v62 = vld [vmem:[%s1796_s1 + $0x114] sm:$0xf0]  ;;  %v1116_v0 = vld [vmem:[%s1796_s1] sm:$0xf]  ;;  %v1318_v1 = vld [vmem:[%s1796_s1 + $0x4] sm:$0xf0]  ;;  %v1145_v3 = vor.u32 %v1323_v58, %v1142_v59  ;;  %v1189_v4 = vor.u32 %v1336_v60, %v1188_v57 }
  0x8d   : > { %865 = vmatpush.bf16.msra.mxu3 %v1161_v42  ;;  %v1180_v2 = vld [vmem:[%s1796_s1 + $0x80] sm:$0xf]  ;;  %v1253_v5 = vor.u32 %v1352_v62, %v1252_v61  ;;  %v1334_v6 = vld [vmem:[%s1796_s1 + $0x84] sm:$0xf0]  ;;  %v1321_v7 = vld [vmem:[%s1796_s1 + $0x24] sm:$0xf]  ;;  %v1117_v15 = vor.u32 %v1318_v1, %v1116_v0 }
  0x8e   : > { %825 = vmatpush.bf16.msra.mxu0 %v1141_v39  ;;  %v1134_v8 = vld [vmem:[%s1796_s1 + $0x28] sm:$0xf0]  ;;  %v1244_v9 = vld [vmem:[%s1796_s1 + $0x100] sm:$0xf]  ;;  %v1350_v10 = vld [vmem:[%s1796_s1 + $0x104] sm:$0xf0]  ;;  %v1181_v20 = vor.u32 %v1334_v6, %v1180_v2 }
  0x8f   : > { %839 = vmatpush.bf16.msra.mxu1 %v1205_v43  ;;  %v1347_v11 = vld [vmem:[%s1796_s1 + $0xf4] sm:$0xf]  ;;  %v1238_v12 = vld [vmem:[%s1796_s1 + $0xf8] sm:$0xf0]  ;;  %v1112_v16 = vld [vmem:[%s1794_s6 + $0x8] sm:$0xf]  ;;  %v1137_v17 = vor.u32 %v1321_v7, %v1134_v8  ;;  %v1245_v21 = vor.u32 %v1350_v10, %v1244_v9 }
  0x90   : > { %853 = vmatpush.bf16.msra.mxu2 %v1269_v44  ;;  %v1363_v13 = vld [vmem:[%s1796_s1 + $0x174] sm:$0xf]  ;;  %v1302_v14 = vld [vmem:[%s1796_s1 + $0x178] sm:$0xf0]  ;;  %v1104_v18 = vld [vmem:[%s1794_s6] sm:$0xf]  ;;  %v1241_v25 = vor.u32 %v1347_v11, %v1238_v12 }
  0x91   : > { %866 = vmatpush.bf16.msra.mxu3 %v1153_v54  ;;  %v1315_v19 = vld [vmem:[%s1794_s6 + $0x8] sm:$0xf0]  ;;  %v1316_v22 = vld [vmem:[%s1794_s6 + $0x10] sm:$0xf0]  ;;  %v1314_v23 = vld [vmem:[%s1794_s6 + $0x4] sm:$0xf]  ;;  %v1305_v26 = vor.u32 %v1363_v13, %v1302_v14 }
  0x92   : > { %826 = vmatpush.bf16.msra.mxu0 %v1133_v51  ;;  %v1106_v24 = vld [vmem:[%s1794_s6 + $0xc] sm:$0xf0]  ;;  %v1345_v27 = vld [vmem:[%s1796_s1 + $0xe4] sm:$0xf]  ;;  %v1319_v28 = vld [vmem:[%s1796_s1 + $0x14] sm:$0xf]  ;;  %v1105_v33 = vor.u32 %v1315_v19, %v1104_v18  ;;  %v1877_v34 = vor.u32 %v1316_v22, %v1112_v16 }
  0x93   : > { %840 = vmatpush.bf16.msra.mxu1 %v1197_v55  ;;  %v1126_v29 = vld [vmem:[%s1796_s1 + $0x18] sm:$0xf0]  ;;  %v1230_v30 = vld [vmem:[%s1796_s1 + $0xe8] sm:$0xf0]  ;;  %v1361_v31 = vld [vmem:[%s1796_s1 + $0x164] sm:$0xf]  ;;  %v1879_v35 = vor.u32 %v1314_v23, %v1106_v24 }
  0x94   : > { %854 = vmatpush.bf16.msra.mxu2 %v1261_v56  ;;  %v1294_v32 = vld [vmem:[%s1796_s1 + $0x168] sm:$0xf0]  ;;  %v1129_v36 = vor.u32 %v1319_v28, %v1126_v29  ;;  %v1233_v37 = vor.u32 %v1345_v27, %v1230_v30  ;;  %v1343_v39 = vld [vmem:[%s1796_s1 + $0xd4] sm:$0xf]  ;;  %v1317_v40 = vld [vmem:[%s1796_s1 + $0x4] sm:$0xf] }
  0x95   : > { %867 = vmatpush.bf16.msra.mxu3 %v1145_v3  ;;  %v1297_v38 = vor.u32 %v1361_v31, %v1294_v32  ;;  %v1118_v41 = vld [vmem:[%s1796_s1 + $0x8] sm:$0xf0]  ;;  %v1222_v42 = vld [vmem:[%s1796_s1 + $0xd8] sm:$0xf0]  ;;  %v1359_v43 = vld [vmem:[%s1796_s1 + $0x154] sm:$0xf] }
  0x96   : > { %827 = vmatpush.bf16.msra.mxu0 %v1125_v63  ;;  %v1286_v44 = vld [vmem:[%s1796_s1 + $0x158] sm:$0xf0]  ;;  %v1121_v45 = vor.u32 %v1317_v40, %v1118_v41  ;;  %v1225_v46 = vor.u32 %v1343_v39, %v1222_v42  ;;  %v1341_v48 = vld [vmem:[%s1796_s1 + $0xc4] sm:$0xf]  ;;  %v1214_v49 = vld [vmem:[%s1796_s1 + $0xc8] sm:$0xf0] }
  0x97   : > { %841 = vmatpush.bf16.msra.mxu1 %v1189_v4  ;;  %v1289_v47 = vor.u32 %v1359_v43, %v1286_v44  ;;  %v1357_v50 = vld [vmem:[%s1796_s1 + $0x144] sm:$0xf]  ;;  %v1278_v51 = vld [vmem:[%s1796_s1 + $0x148] sm:$0xf0]  ;;  %v1217_v52 = vor.u32 %v1341_v48, %v1214_v49  ;;  %v1339_v54 = vld [vmem:[%s1796_s1 + $0xb4] sm:$0xf] }
  0x98   : > { %855 = vmatpush.bf16.msra.mxu2 %v1253_v5  ;;  %v1281_v53 = vor.u32 %v1357_v50, %v1278_v51  ;;  %v1206_v55 = vld [vmem:[%s1796_s1 + $0xb8] sm:$0xf0]  ;;  %v1355_v56 = vld [vmem:[%s1796_s1 + $0x134] sm:$0xf]  ;;  %v1337_v60 = vld [vmem:[%s1796_s1 + $0xa4] sm:$0xf] }
  0x99   : > { %868 = vmatpush.bf16.msra.mxu3 %v1137_v17  ;;  %v1270_v57 = vld [vmem:[%s1796_s1 + $0x138] sm:$0xf0]  ;;  %v1209_v58 = vor.u32 %v1339_v54, %v1206_v55  ;;  %v1198_v61 = vld [vmem:[%s1796_s1 + $0xa8] sm:$0xf0]  ;;  %v1353_v62 = vld [vmem:[%s1796_s1 + $0x124] sm:$0xf] }
  0x9a   : > { %828 = vmatpush.bf16.msra.mxu0 %v1117_v15  ;;  %v1273_v59 = vor.u32 %v1355_v56, %v1270_v57  ;;  %v1262_v63 = vld [vmem:[%s1796_s1 + $0x128] sm:$0xf0]  ;;  %v1201_v0 = vor.u32 %v1337_v60, %v1198_v61  ;;  %v1335_v2 = vld [vmem:[%s1796_s1 + $0x94] sm:$0xf]  ;;  %v1190_v3 = vld [vmem:[%s1796_s1 + $0x98] sm:$0xf0] }
  0x9b   : > { %842 = vmatpush.bf16.msra.mxu1 %v1181_v20  ;;  %v1265_v1 = vor.u32 %v1353_v62, %v1262_v63  ;;  %v1351_v4 = vld [vmem:[%s1796_s1 + $0x114] sm:$0xf]  ;;  %v1254_v5 = vld [vmem:[%s1796_s1 + $0x118] sm:$0xf0]  ;;  %v1193_v6 = vor.u32 %v1335_v2, %v1190_v3  ;;  %v1333_v8 = vld [vmem:[%s1796_s1 + $0x84] sm:$0xf] }
  0x9c   : > { %856 = vmatpush.bf16.msra.mxu2 %v1245_v21  ;;  %v1257_v7 = vor.u32 %v1351_v4, %v1254_v5  ;;  %v1182_v9 = vld [vmem:[%s1796_s1 + $0x88] sm:$0xf0]  ;;  %v1349_v10 = vld [vmem:[%s1796_s1 + $0x104] sm:$0xf]  ;;  %v510_v32 = vld [vmem:[#allocation2] sm:$0xff]  ;;  %p1306_p5 = scmp.ne.s32.totalorder %s1529_s18, 5 }
  0x9d   : > { %829 = vmatmul.bf16.vlgmr.msra.gmra.mxu0 %v1105_v33  ;;  %869 = vmatpush.bf16.msra.mxu3 %v1129_v36  ;;  %v1246_v11 = vld [vmem:[%s1796_s1 + $0x108] sm:$0xf0]  ;;  %v1185_v12 = vor.u32 %v1333_v8, %v1182_v9  ;;  %v509_v17 = vld [vmem:[#allocation2 + $0x10] sm:$0xff] }
  0x9e   : > { %877 = vmatpush.bf16.msrb.mxu0 %v1241_v25  ;;  %843 = vmatmul.bf16.vlgmr.msra.gmra.mxu1 %v1879_v35  ;;  %v1249_v13 = vor.u32 %v1349_v10, %v1246_v11  ;;  %v511_v24 = vld [vmem:[#allocation2 + $0x18] sm:$0xff] }
  0x9f   : > { %891 = vmatpush.bf16.msrb.mxu1 %v1305_v26  ;;  %857 = vmatmul.bf16.vlgmr.msra.gmra.mxu2 %v1877_v34 }
  0xa1   : > { %870 = vmatpush.bf16.msra.mxu3 %v1121_v45 }
  0xa2   : > { %878 = vmatpush.bf16.msrb.mxu0 %v1233_v37 }
  0xa3   : > { %892 = vmatpush.bf16.msrb.mxu1 %v1297_v38  ;;  %v512_v38 = vld [vmem:[#allocation2 + $0x8] sm:$0xff] }
  0xa4   : > { %871 = vmatmul.bf16.vlgmr.msra.gmra.mxu3 %v1105_v33 }
  0xa6   : > { %879 = vmatpush.bf16.msrb.mxu0 %v1225_v46 }
  0xa7   : > { %893 = vmatpush.bf16.msrb.mxu1 %v1289_v47 }
  0xaa   : > { %880 = vmatpush.bf16.msrb.mxu0 %v1217_v52 }
  0xab   : > { %894 = vmatpush.bf16.msrb.mxu1 %v1281_v53 }
  0xae   : > { %881 = vmatpush.bf16.msrb.mxu0 %v1209_v58 }
  0xaf   : > { %895 = vmatpush.bf16.msrb.mxu1 %v1273_v59 }
  0xb2   : > { %882 = vmatpush.bf16.msrb.mxu0 %v1201_v0 }
  0xb3   : > { %896 = vmatpush.bf16.msrb.mxu1 %v1265_v1 }
  0xb6   : > { %883 = vmatpush.bf16.msrb.mxu0 %v1193_v6 }
  0xb7   : > { %897 = vmatpush.bf16.msrb.mxu1 %v1257_v7 }
  0xba   : > { %884 = vmatpush.bf16.msrb.mxu0 %v1185_v12 }
  0xbb   : > { %898 = vmatpush.bf16.msrb.mxu1 %v1249_v13 }
  0xbd   : > { %885 = vmatmul.bf16.vlgmr.msrb.gmra.mxu0 %v1879_v35 }
  0xbe   : > { %899 = vmatmul.bf16.vlgmr.msrb.gmra.mxu1 %v1877_v34 }
 0x11a   : > { %v830_v14 = vpop.f32.mrf.mxu0 }
 0x11b   : > { %v844_v15 = vpop.f32.mrf.mxu1 }
 0x11c   : > { %v845_v16 = vadd.f32 %v844_v15, %v830_v14 }
 0x122   : > { %v858_v18 = vpop.f32.mrf.mxu2  ;;  %v832_v20 = vpop.f32.mrf.mxu0 }
 0x123   : > { %v859_v19 = vadd.f32 %v858_v18, %v845_v16  ;;  %v846_v21 = vpop.f32.mrf.mxu1 }
 0x124   : > { %v847_v23 = vadd.f32 %v846_v21, %v832_v20 }
 0x125   : > { %v905_v22 = vadd.f32 %v859_v19, %v509_v17 }
 0x127   : > { %909 = vst [vmem:[#allocation2 + $0x10] sm:$0xff] %v905_v22  ;;  %v872_v28 = vpop.f32.mrf.mxu3 }
 0x12a   : > { %v860_v25 = vpop.f32.mrf.mxu2 }
 0x12b   : > { %v861_v26 = vadd.f32 %v860_v25, %v847_v23 }
 0x12d   : > { %v907_v27 = vadd.f32 %v861_v26, %v511_v24 }
 0x12f   : > { %911 = vst [vmem:[#allocation2 + $0x18] sm:$0xff] %v907_v27  ;;  %v874_v35 = vpop.f32.mrf.mxu3 }
 0x13a   : > { %v886_v29 = vpop.f32.mrf.mxu0 }
 0x13b   : > { %v900_v30 = vpop.f32.mrf.mxu1  ;;  %v887_v31 = vadd.f32 %v886_v29, %v872_v28 }
 0x13d   : > { %v901_v33 = vadd.f32 %v900_v30, %v887_v31 }
 0x13f   : > { %v906_v34 = vadd.f32 %v901_v33, %v510_v32 }
 0x141   : > { %910 = vst [vmem:[#allocation2] sm:$0xff] %v906_v34 }
 0x142   : > { %v888_v36 = vpop.f32.mrf.mxu0 }
 0x143   : > { %v889_v37 = vadd.f32 %v888_v36, %v874_v35  ;;  %v902_v39 = vpop.f32.mrf.mxu1 }
 0x145   : > { %v903_v40 = vadd.f32 %v902_v39, %v889_v37  ;;  %916 = sbr.rel (%p1306_p5) target bundleno = 342 (0x156), region = 104 }
 0x147   : > { %v908_v41 = vadd.f32 %v903_v40, %v512_v38 }
 0x149   : > { %912 = vst [vmem:[#allocation2 + $0x8] sm:$0xff] %v908_v41 }
 0x14a   : > { %v917_v42 = vld [vmem:[#allocation2 + $0x10] sm:$0xff]  ;;  %v921_v43 = vld [vmem:[%s497_s5] sm:$0x3]  ;;  %v919_v47 = vld [vmem:[#allocation2 + $0x18] sm:$0xff] }
 0x14b   : > { %v918_v44 = vld [vmem:[#allocation2] sm:$0xff]  ;;  %v923_v45 = vperm.slane %v921_v43, 0  ;;  %v924_v46 = vperm.slane %v921_v43, 1 }
 0x14d   : > { %v927_v49 = vadd.f32 %v923_v45, %v917_v42  ;;  %v928_v50 = vadd.f32 %v924_v46, %v918_v44  ;;  %v929_v51 = vadd.f32 %v923_v45, %v919_v47 }
 0x14f   : > { %v931_v53 = vmax.f32 %v927_v49, 0.0  ;;  %v932_v54 = vmax.f32 %v928_v50, 0.0  ;;  %v933_v55 = vmax.f32 %v929_v51, 0.0 }
 0x150   : > { %v920_v48 = vld [vmem:[#allocation2 + $0x8] sm:$0xff] }
 0x151   : > { %v930_v52 = vadd.f32 %v924_v46, %v920_v48  ;;  %935 = vst [vmem:[%s1798_s25] sm:$0xff] %v931_v53 }
 0x152   : > { %936 = vst [vmem:[%s1798_s25 + $0x8] sm:$0xff] %v932_v54 }
 0x153   : > { %v934_v56 = vmax.f32 %v930_v52, 0.0  ;;  %937 = vst [vmem:[%s1798_s25 + $0x10] sm:$0xff] %v933_v55 }
 0x155   : > { %938 = vst [vmem:[%s1798_s25 + $0x18] sm:$0xff] %v934_v56 }
 0x156 PF: > { %945 = sbr.rel (!%p1662_p12) target bundleno = 350 (0x15e), region = 108  ;;  %s1365_s14 = sshll.u32 (%p1662_p12), %s1533_s19, 4 }
 0x157   : > { %s951_s0 = scalar_lea.vmem (%p1662_p12), %s1967_s3, %s1365_s14 }
 0x158   : > { %v964_v57 = vld [vmem:[%s1798_s25] sm:$0xff] (%p1662_p12) }
 0x159   : > { %v966_v58 = vld [vmem:[%s1798_s25 + $0x8] sm:$0xff] (%p1662_p12)  ;;  %965 = vst [vmem:[%s951_s0] sm:$0xff] (%p1662_p12), %v964_v57 }
 0x15a   : > { %v968_v59 = vld [vmem:[%s1798_s25 + $0x10] sm:$0xff] (%p1662_p12)  ;;  %967 = vst [vmem:[%s951_s0 + $0x8] sm:$0xff] (%p1662_p12), %v966_v58 }
 0x15b   : > { %969 = vst [vmem:[%s951_s0 + $0x20] sm:$0xff] %v968_v59 }
 0x15c   : > { %v970_v60 = vld [vmem:[%s1798_s25 + $0x18] sm:$0xff] }
 0x15d   : > { %971 = vst [vmem:[%s951_s0 + $0x28] sm:$0xff] %v970_v60 }
 0x15e PF: > { %s13_s22 = sadd.s32 1, %s1545_s22   ;;  %s1977_s10 = sld [smem:[#allocation6_spill]] }
 0x15f   : > { %p10_p6 = scmp.ge.s32.totalorder %s13_s22, 14   ;;  %s1978_s12 = smov %s1509_s13 }
 0x160   : > { %s1979_s13 = smov %s1660_s9  ;;  %s1980_s14 = smov %s1517_s15 }
 0x161   : > { %s1981_s15 = smov %s1657_s8  ;;  %s1982_s16 = smov %s1525_s17 }
 0x162   : > { %s1983_s17 = smov %s1643_s30  ;;  %s1984_s18 = smov %s1537_s20 }
 0x163   : > { %s1985_s19 = smov %s1541_s21  ;;  %s1986_s20 = smov %s1989_s24 }
 0x164   : > { %s1987_s21 = smov %s1977_s10  ;;  %12 = sbr.rel (!%p10_p6) target bundleno = 9 (0x9), region = 179 }

// kernel: resnet_forward.23
= control target key start
LH: loop header
LB: loop body
LE: loop exit
PB: predicated region body
PF: predicated region fallthrough
CT: control target
= control target key end

     0   :  { %s1145_s12 = smov 0   ;;  %s1147_s13 = smov 0   ;;  %s1371_s0 = inlined_call_operand.vmem [shape: bf16[16,256], index: 0, kind: input, shape index: {}]   ;;  %s1372_s1 = inlined_call_operand.vmem [shape: bf16[256,512], index: 1, kind: input, shape index: {}]   ;;  %s1373_s2 = inlined_call_operand.vmem [shape: f32[1,512], index: 2, kind: input, shape index: {}]   ;;  %s1374_s3 = inlined_call_operand.vmem [shape: f32[16,512], index: 3, kind: output, shape index: {}]  }
   0x1   :  { %s1149_s14 = smov 0   ;;  %s1151_s15 = smov 0  }
   0x2   :  { %s1153_s16 = smov 0  }
   0x3 LB: > { %s28_s17 = sadd.s32 1, %s1119_s15  ;;  %s856_s18 = sadd.s32 4294967295, %s1123_s16   ;;  %s1123_s16 = sphi %s1153_s16, %s13_s16   ;;  %s1119_s15 = sphi %s1151_s15, %s1379_s15   ;;  %s1115_s14 = sphi %s1149_s14, %s1378_s14   ;;  %s1111_s13 = sphi %s1147_s13, %s1377_s13   ;;  %s1107_s12 = sphi %s1145_s12, %s1376_s12  }
   0x4   : > { %p30_p0 = scmp.ge.s32.totalorder %s28_s17, 2  ;;  %p76_p1 = scmp.ne.s32.totalorder %s1111_s13, %s1107_s12 }
   0x5   : > { %p77_p2 = scmp.eq.s32.totalorder %s1123_s16, 0  ;;  %p134_p4 = scmp.eq.s32.totalorder %s856_s18, 1 }
   0x6   : > { %s1381_s17 = smov (%p30_p0, %s28_s17), 0  ;;  %s69_s20 = sadd.s32 1, %s1111_s13 }
   0x7   : > { %p78_p3 = por %p77_p2, %p76_p1  ;;  %s65_s19 = ssub.s32 %s1119_s15, %s1381_s17 }
   0x8   : > { %p67_p5 = scmp.eq.s32.totalorder %s65_s19, 0  ;;  %p1180_p6 = por %p134_p4, %p76_p1 }
   0x9   : > { %p860_p7 = scmp.ge.s32.totalorder %s1123_s16, 2 }
   0xa   : > { %s1185_s22 = scalar_select %p67_p5, %s1111_s13, %s69_s20  }
   0xb   : > { %171 = sbr.rel (%p860_p7) target bundleno = 52 (0x34), region = 20 }
  0x10   : > { %174 = sbr.rel (!%p78_p3) target bundleno = 52 (0x34), region = 24  ;;  %s176_s23 = sand.u32 (%p78_p3), 1, %s1111_s13  }
  0x11   : > { %s1009_s24 = sshll.u32 (%p78_p3), %s1119_s15, 3  ;;  %s861_s25 = sshll.u32 (%p78_p3), %s176_s23, 8 }
  0x12   : > { %s1193_s28 = scalar_lea.vmem (%p78_p3), %s1372_s1, %s1009_s24  ;;  %s1198_s29 = scalar_lea.vmem (%p78_p3), [#allocation3], %s861_s25 }
  0x13   : > { %v275_v0 = vld [vmem:[%s1193_s28] sm:$0xff] (%p78_p3)  ;;  %v277_v1 = vld [vmem:[%s1193_s28 + $0x10] sm:$0xff] (%p78_p3) }
  0x14   : > { %v279_v2 = vld [vmem:[%s1193_s28 + $0x20] sm:$0xff] (%p78_p3)  ;;  %276 = vst [vmem:[%s1198_s29] sm:$0xff] (%p78_p3), %v275_v0  ;;  %v281_v3 = vld [vmem:[%s1193_s28 + $0x30] sm:$0xff] (%p78_p3) }
  0x15   : > { %278 = vst [vmem:[%s1198_s29 + $0x8] sm:$0xff] %v277_v1  ;;  %v283_v4 = vld [vmem:[%s1193_s28 + $0x40] sm:$0xff]  ;;  %v285_v5 = vld [vmem:[%s1193_s28 + $0x50] sm:$0xff] }
  0x16   : > { %280 = vst [vmem:[%s1198_s29 + $0x10] sm:$0xff] %v279_v2  ;;  %v287_v6 = vld [vmem:[%s1193_s28 + $0x60] sm:$0xff]  ;;  %v289_v7 = vld [vmem:[%s1193_s28 + $0x70] sm:$0xff] }
  0x17   : > { %282 = vst [vmem:[%s1198_s29 + $0x18] sm:$0xff] %v281_v3  ;;  %v291_v8 = vld [vmem:[%s1193_s28 + $0x80] sm:$0xff]  ;;  %v293_v9 = vld [vmem:[%s1193_s28 + $0x90] sm:$0xff] }
  0x18   : > { %284 = vst [vmem:[%s1198_s29 + $0x20] sm:$0xff] %v283_v4  ;;  %v295_v10 = vld [vmem:[%s1193_s28 + $0xa0] sm:$0xff]  ;;  %v297_v11 = vld [vmem:[%s1193_s28 + $0xb0] sm:$0xff] }
  0x19   : > { %286 = vst [vmem:[%s1198_s29 + $0x28] sm:$0xff] %v285_v5  ;;  %v299_v12 = vld [vmem:[%s1193_s28 + $0xc0] sm:$0xff]  ;;  %v301_v13 = vld [vmem:[%s1193_s28 + $0xd0] sm:$0xff] }
  0x1a   : > { %288 = vst [vmem:[%s1198_s29 + $0x30] sm:$0xff] %v287_v6  ;;  %v303_v14 = vld [vmem:[%s1193_s28 + $0xe0] sm:$0xff]  ;;  %v305_v15 = vld [vmem:[%s1193_s28 + $0xf0] sm:$0xff] }
  0x1b   : > { %290 = vst [vmem:[%s1198_s29 + $0x38] sm:$0xff] %v289_v7  ;;  %v307_v16 = vld [vmem:[%s1193_s28 + $0x100] sm:$0xff]  ;;  %v309_v17 = vld [vmem:[%s1193_s28 + $0x110] sm:$0xff] }
  0x1c   : > { %292 = vst [vmem:[%s1198_s29 + $0x40] sm:$0xff] %v291_v8  ;;  %v311_v18 = vld [vmem:[%s1193_s28 + $0x120] sm:$0xff]  ;;  %v313_v19 = vld [vmem:[%s1193_s28 + $0x130] sm:$0xff] }
  0x1d   : > { %294 = vst [vmem:[%s1198_s29 + $0x48] sm:$0xff] %v293_v9  ;;  %v315_v20 = vld [vmem:[%s1193_s28 + $0x140] sm:$0xff]  ;;  %v317_v21 = vld [vmem:[%s1193_s28 + $0x150] sm:$0xff] }
  0x1e   : > { %296 = vst [vmem:[%s1198_s29 + $0x50] sm:$0xff] %v295_v10  ;;  %v319_v22 = vld [vmem:[%s1193_s28 + $0x160] sm:$0xff]  ;;  %v321_v23 = vld [vmem:[%s1193_s28 + $0x170] sm:$0xff] }
  0x1f   : > { %298 = vst [vmem:[%s1198_s29 + $0x58] sm:$0xff] %v297_v11  ;;  %v323_v24 = vld [vmem:[%s1193_s28 + $0x180] sm:$0xff]  ;;  %v325_v25 = vld [vmem:[%s1193_s28 + $0x190] sm:$0xff] }
  0x20   : > { %300 = vst [vmem:[%s1198_s29 + $0x60] sm:$0xff] %v299_v12  ;;  %v327_v26 = vld [vmem:[%s1193_s28 + $0x1a0] sm:$0xff]  ;;  %v329_v27 = vld [vmem:[%s1193_s28 + $0x1b0] sm:$0xff] }
  0x21   : > { %302 = vst [vmem:[%s1198_s29 + $0x68] sm:$0xff] %v301_v13  ;;  %v331_v28 = vld [vmem:[%s1193_s28 + $0x1c0] sm:$0xff]  ;;  %v333_v29 = vld [vmem:[%s1193_s28 + $0x1d0] sm:$0xff] }
  0x22   : > { %304 = vst [vmem:[%s1198_s29 + $0x70] sm:$0xff] %v303_v14  ;;  %v335_v30 = vld [vmem:[%s1193_s28 + $0x1e0] sm:$0xff]  ;;  %v337_v31 = vld [vmem:[%s1193_s28 + $0x1f0] sm:$0xff] }
  0x23   : > { %306 = vst [vmem:[%s1198_s29 + $0x78] sm:$0xff] %v305_v15 }
  0x24   : > { %308 = vst [vmem:[%s1198_s29 + $0x80] sm:$0xff] %v307_v16 }
  0x25   : > { %310 = vst [vmem:[%s1198_s29 + $0x88] sm:$0xff] %v309_v17 }
  0x26   : > { %312 = vst [vmem:[%s1198_s29 + $0x90] sm:$0xff] %v311_v18 }
  0x27   : > { %314 = vst [vmem:[%s1198_s29 + $0x98] sm:$0xff] %v313_v19 }
  0x28   : > { %316 = vst [vmem:[%s1198_s29 + $0xa0] sm:$0xff] %v315_v20 }
  0x29   : > { %318 = vst [vmem:[%s1198_s29 + $0xa8] sm:$0xff] %v317_v21 }
  0x2a   : > { %320 = vst [vmem:[%s1198_s29 + $0xb0] sm:$0xff] %v319_v22 }
  0x2b   : > { %322 = vst [vmem:[%s1198_s29 + $0xb8] sm:$0xff] %v321_v23 }
  0x2c   : > { %324 = vst [vmem:[%s1198_s29 + $0xc0] sm:$0xff] %v323_v24 }
  0x2d   : > { %326 = vst [vmem:[%s1198_s29 + $0xc8] sm:$0xff] %v325_v25 }
  0x2e   : > { %328 = vst [vmem:[%s1198_s29 + $0xd0] sm:$0xff] %v327_v26 }
  0x2f   : > { %330 = vst [vmem:[%s1198_s29 + $0xd8] sm:$0xff] %v329_v27 }
  0x30   : > { %332 = vst [vmem:[%s1198_s29 + $0xe0] sm:$0xff] %v331_v28 }
  0x31   : > { %334 = vst [vmem:[%s1198_s29 + $0xe8] sm:$0xff] %v333_v29 }
  0x32   : > { %336 = vst [vmem:[%s1198_s29 + $0xf0] sm:$0xff] %v335_v30 }
  0x33   : > { %338 = vst [vmem:[%s1198_s29 + $0xf8] sm:$0xff] %v337_v31 }
  0x34 PF: > { %p864_p8 = scmp.ge.s32.totalorder %s1123_s16, 1  ;;  %p351_p9 = scmp.lt.s32.totalorder %s1123_s16, 3 }
  0x36   : > { %p352_p10 = pnand %p864_p8, %p351_p9 }
  0x37   : > { %s358_s30 = sand.u32 (!%p352_p10), 1, %s1107_s12   ;;  %s867_s20 = sshll.u32 (!%p352_p10), %s1115_s14, 1 }
  0x38   : > { %355 = sbr.rel (%p352_p10) target bundleno = 250 (0xfa), region = 66  ;;  %s865_s4 = sshll.u32 (!%p352_p10), %s358_s30, 8 }
  0x39   : > { %s1266_s5 = scalar_lea.vmem (!%p352_p10), [#allocation3], %s865_s4  ;;  %p409_p11 = scmp.lt.s32.totalorder (!%p352_p10), %s867_s20, 3 }
  0x3a   : > { %s866_s26 = sshll.u32 (!%p352_p10), %s358_s30, 5 }
  0x3b   : > { %s393_s27 = scalar_lea.vmem (!%p352_p10), [#allocation4], %s866_s26 }
  0x3d   : > { %v934_v32 = vld [vmem:[%s1266_s5 + $0x70] sm:$0xf]  ;;  %v1027_v33 = vld [vmem:[%s1266_s5 + $0x74] sm:$0xf0]  ;;  %v1026_v37 = vld [vmem:[%s1266_s5 + $0x74] sm:$0xf] }
  0x3e   : > { %v998_v34 = vld [vmem:[%s1266_s5 + $0xf0] sm:$0xf]  ;;  %v935_v35 = vor.u32 %v1027_v33, %v934_v32  ;;  %v1043_v36 = vld [vmem:[%s1266_s5 + $0xf4] sm:$0xf0]  ;;  %v936_v38 = vld [vmem:[%s1266_s5 + $0x78] sm:$0xf0] }
  0x3f   : > { %v999_v39 = vor.u32 %v1043_v36, %v998_v34  ;;  %v939_v40 = vor.u32 %v1026_v37, %v936_v38  ;;  %v1042_v41 = vld [vmem:[%s1266_s5 + $0xf4] sm:$0xf]  ;;  %v1000_v42 = vld [vmem:[%s1266_s5 + $0xf8] sm:$0xf0]  ;;  %v926_v43 = vld [vmem:[%s1266_s5 + $0x60] sm:$0xf] }
  0x40   : > { %631 = vmatpush.bf16.msra.mxu0 %v935_v35  ;;  %v1003_v44 = vor.u32 %v1042_v41, %v1000_v42  ;;  %v1025_v45 = vld [vmem:[%s1266_s5 + $0x64] sm:$0xf0]  ;;  %v990_v46 = vld [vmem:[%s1266_s5 + $0xe0] sm:$0xf]  ;;  %v1024_v50 = vld [vmem:[%s1266_s5 + $0x64] sm:$0xf] }
  0x41   : > { %v1041_v47 = vld [vmem:[%s1266_s5 + $0xe4] sm:$0xf0]  ;;  %645 = vmatpush.bf16.msra.mxu1 %v999_v39  ;;  %659 = vmatpush.bf16.msra.mxu2 %v939_v40  ;;  %v927_v48 = vor.u32 %v1025_v45, %v926_v43  ;;  %v928_v51 = vld [vmem:[%s1266_s5 + $0x68] sm:$0xf0]  ;;  %v1040_v52 = vld [vmem:[%s1266_s5 + $0xe4] sm:$0xf] }
  0x42   : > { %v991_v49 = vor.u32 %v1041_v47, %v990_v46  ;;  %673 = vmatpush.bf16.msra.mxu3 %v1003_v44  ;;  %v931_v53 = vor.u32 %v1024_v50, %v928_v51  ;;  %v992_v54 = vld [vmem:[%s1266_s5 + $0xe8] sm:$0xf0]  ;;  %v918_v55 = vld [vmem:[%s1266_s5 + $0x50] sm:$0xf]  ;;  %v1023_v56 = vld [vmem:[%s1266_s5 + $0x54] sm:$0xf0] }
  0x43   : > { %v995_v57 = vor.u32 %v1040_v52, %v992_v54  ;;  %v982_v58 = vld [vmem:[%s1266_s5 + $0xd0] sm:$0xf]  ;;  %v1039_v59 = vld [vmem:[%s1266_s5 + $0xd4] sm:$0xf0]  ;;  %v1022_v60 = vld [vmem:[%s1266_s5 + $0x54] sm:$0xf]  ;;  %v919_v61 = vor.u32 %v1023_v56, %v918_v55 }
  0x44   : > { %632 = vmatpush.bf16.msra.mxu0 %v927_v48  ;;  %v920_v62 = vld [vmem:[%s1266_s5 + $0x58] sm:$0xf0]  ;;  %v1038_v63 = vld [vmem:[%s1266_s5 + $0xd4] sm:$0xf]  ;;  %v983_v1 = vor.u32 %v1039_v59, %v982_v58  ;;  %v910_v3 = vld [vmem:[%s1266_s5 + $0x40] sm:$0xf] }
  0x45   : > { %v984_v0 = vld [vmem:[%s1266_s5 + $0xd8] sm:$0xf0]  ;;  %646 = vmatpush.bf16.msra.mxu1 %v991_v49  ;;  %660 = vmatpush.bf16.msra.mxu2 %v931_v53  ;;  %v923_v2 = vor.u32 %v1022_v60, %v920_v62  ;;  %v1021_v4 = vld [vmem:[%s1266_s5 + $0x44] sm:$0xf0]  ;;  %v974_v5 = vld [vmem:[%s1266_s5 + $0xc0] sm:$0xf] }
  0x46   : > { %674 = vmatpush.bf16.msra.mxu3 %v995_v57  ;;  %v987_v6 = vor.u32 %v1038_v63, %v984_v0  ;;  %v1037_v7 = vld [vmem:[%s1266_s5 + $0xc4] sm:$0xf0]  ;;  %v1020_v8 = vld [vmem:[%s1266_s5 + $0x44] sm:$0xf]  ;;  %v912_v9 = vld [vmem:[%s1266_s5 + $0x48] sm:$0xf0]  ;;  %v911_v12 = vor.u32 %v1021_v4, %v910_v3 }
  0x47   : > { %v1036_v10 = vld [vmem:[%s1266_s5 + $0xc4] sm:$0xf]  ;;  %v976_v11 = vld [vmem:[%s1266_s5 + $0xc8] sm:$0xf0]  ;;  %v975_v13 = vor.u32 %v1037_v7, %v974_v5  ;;  %v915_v14 = vor.u32 %v1020_v8, %v912_v9  ;;  %v902_v15 = vld [vmem:[%s1266_s5 + $0x30] sm:$0xf] }
  0x48   : > { %633 = vmatpush.bf16.msra.mxu0 %v919_v61  ;;  %v1019_v16 = vld [vmem:[%s1266_s5 + $0x34] sm:$0xf0]  ;;  %v966_v17 = vld [vmem:[%s1266_s5 + $0xb0] sm:$0xf]  ;;  %v979_v18 = vor.u32 %v1036_v10, %v976_v11  ;;  %v1018_v20 = vld [vmem:[%s1266_s5 + $0x34] sm:$0xf] }
  0x49   : > { %647 = vmatpush.bf16.msra.mxu1 %v983_v1  ;;  %661 = vmatpush.bf16.msra.mxu2 %v923_v2  ;;  %v1035_v19 = vld [vmem:[%s1266_s5 + $0xb4] sm:$0xf0]  ;;  %v904_v21 = vld [vmem:[%s1266_s5 + $0x38] sm:$0xf0]  ;;  %v1034_v22 = vld [vmem:[%s1266_s5 + $0xb4] sm:$0xf]  ;;  %v903_v24 = vor.u32 %v1019_v16, %v902_v15 }
  0x4a   : > { %675 = vmatpush.bf16.msra.mxu3 %v987_v6  ;;  %v968_v23 = vld [vmem:[%s1266_s5 + $0xb8] sm:$0xf0]  ;;  %v967_v25 = vor.u32 %v1035_v19, %v966_v17  ;;  %v907_v26 = vor.u32 %v1018_v20, %v904_v21  ;;  %v894_v27 = vld [vmem:[%s1266_s5 + $0x20] sm:$0xf]  ;;  %v1017_v28 = vld [vmem:[%s1266_s5 + $0x24] sm:$0xf0] }
  0x4b   : > { %v958_v29 = vld [vmem:[%s1266_s5 + $0xa0] sm:$0xf]  ;;  %v971_v30 = vor.u32 %v1034_v22, %v968_v23  ;;  %v1033_v31 = vld [vmem:[%s1266_s5 + $0xa4] sm:$0xf0]  ;;  %v1016_v32 = vld [vmem:[%s1266_s5 + $0x24] sm:$0xf]  ;;  %v895_v36 = vor.u32 %v1017_v28, %v894_v27 }
  0x4c   : > { %634 = vmatpush.bf16.msra.mxu0 %v911_v12  ;;  %v896_v33 = vld [vmem:[%s1266_s5 + $0x28] sm:$0xf0]  ;;  %v1032_v34 = vld [vmem:[%s1266_s5 + $0xa4] sm:$0xf]  ;;  %v959_v37 = vor.u32 %v1033_v31, %v958_v29  ;;  %v886_v39 = vld [vmem:[%s1266_s5 + $0x10] sm:$0xf] }
  0x4d   : > { %648 = vmatpush.bf16.msra.mxu1 %v975_v13  ;;  %662 = vmatpush.bf16.msra.mxu2 %v915_v14  ;;  %v960_v35 = vld [vmem:[%s1266_s5 + $0xa8] sm:$0xf0]  ;;  %v899_v38 = vor.u32 %v1016_v32, %v896_v33  ;;  %v1015_v40 = vld [vmem:[%s1266_s5 + $0x14] sm:$0xf0]  ;;  %v950_v41 = vld [vmem:[%s1266_s5 + $0x90] sm:$0xf] }
  0x4e   : > { %676 = vmatpush.bf16.msra.mxu3 %v979_v18  ;;  %v963_v42 = vor.u32 %v1032_v34, %v960_v35  ;;  %v1031_v43 = vld [vmem:[%s1266_s5 + $0x94] sm:$0xf0]  ;;  %v1014_v44 = vld [vmem:[%s1266_s5 + $0x14] sm:$0xf]  ;;  %v888_v45 = vld [vmem:[%s1266_s5 + $0x18] sm:$0xf0]  ;;  %v887_v48 = vor.u32 %v1015_v40, %v886_v39 }
  0x4f   : > { %v1030_v46 = vld [vmem:[%s1266_s5 + $0x94] sm:$0xf]  ;;  %v952_v47 = vld [vmem:[%s1266_s5 + $0x98] sm:$0xf0]  ;;  %v951_v49 = vor.u32 %v1031_v43, %v950_v41  ;;  %v891_v50 = vor.u32 %v1014_v44, %v888_v45  ;;  %v878_v51 = vld [vmem:[%s1266_s5] sm:$0xf] }
  0x50   : > { %635 = vmatpush.bf16.msra.mxu0 %v903_v24  ;;  %v1013_v52 = vld [vmem:[%s1266_s5 + $0x4] sm:$0xf0]  ;;  %v942_v53 = vld [vmem:[%s1266_s5 + $0x80] sm:$0xf]  ;;  %v955_v54 = vor.u32 %v1030_v46, %v952_v47  ;;  %v1012_v56 = vld [vmem:[%s1266_s5 + $0x4] sm:$0xf] }
  0x51   : > { %649 = vmatpush.bf16.msra.mxu1 %v967_v25  ;;  %663 = vmatpush.bf16.msra.mxu2 %v907_v26  ;;  %v1029_v55 = vld [vmem:[%s1266_s5 + $0x84] sm:$0xf0]  ;;  %v880_v57 = vld [vmem:[%s1266_s5 + $0x8] sm:$0xf0]  ;;  %v1028_v58 = vld [vmem:[%s1266_s5 + $0x84] sm:$0xf]  ;;  %v879_v60 = vor.u32 %v1013_v52, %v878_v51 }
  0x52   : > { %677 = vmatpush.bf16.msra.mxu3 %v971_v30  ;;  %v944_v59 = vld [vmem:[%s1266_s5 + $0x88] sm:$0xf0]  ;;  %v870_v61 = vld [vmem:[%s1371_s0] sm:$0xf]  ;;  %v1011_v62 = vld [vmem:[%s1371_s0 + $0x4] sm:$0xf0]  ;;  %v943_v63 = vor.u32 %v1029_v55, %v942_v53  ;;  %v883_v0 = vor.u32 %v1012_v56, %v880_v57 }
  0x53   : > { %v1010_v1 = vld [vmem:[%s1371_s0 + $0x4] sm:$0xf]  ;;  %v872_v2 = vld [vmem:[%s1371_s0 + $0x8] sm:$0xf0]  ;;  %v947_v3 = vor.u32 %v1028_v58, %v944_v59  ;;  %v871_v4 = vor.u32 %v1011_v62, %v870_v61  ;;  %s1383_s20 = smov (!%p409_p11, %s867_s20), 3  ;;  %s1044_s12 = sshll.u32 (%p1180_p6), %s1115_s14, 4 }
  0x54   : > { %636 = vmatpush.bf16.msra.mxu0 %v895_v36  ;;  %v875_v5 = vor.u32 %v1010_v1, %v872_v2  ;;  %s411_s25 = scalar_lea.vmem %s1373_s2, %s1383_s20  ;;  %s728_s30 = scalar_lea.vmem (%p1180_p6), %s1374_s3, %s1044_s12 }
  0x55   : > { %650 = vmatpush.bf16.msra.mxu1 %v959_v37  ;;  %664 = vmatpush.bf16.msra.mxu2 %v899_v38  ;;  %v702_v6 = vld [vmem:[%s411_s25] sm:$0x3] }
  0x56   : > { %678 = vmatpush.bf16.msra.mxu3 %v963_v42  ;;  %v704_v8 = vperm.slane %v702_v6, 0  ;;  %v705_v13 = vperm.slane %v702_v6, 1 }
  0x58   : > { %637 = vmatpush.bf16.msra.mxu0 %v887_v48 }
  0x59   : > { %651 = vmatpush.bf16.msra.mxu1 %v951_v49  ;;  %665 = vmatpush.bf16.msra.mxu2 %v891_v50 }
  0x5a   : > { %679 = vmatpush.bf16.msra.mxu3 %v955_v54 }
  0x5c   : > { %638 = vmatpush.bf16.msra.mxu0 %v879_v60 }
  0x5d   : > { %652 = vmatpush.bf16.msra.mxu1 %v943_v63  ;;  %666 = vmatpush.bf16.msra.mxu2 %v883_v0 }
  0x5e   : > { %680 = vmatpush.bf16.msra.mxu3 %v947_v3 }
  0x5f   : > { %639 = vmatmul.bf16.vlgmr.msra.gmra.mxu0 %v871_v4 }
  0x60   : > { %653 = vmatmul.bf16.vlgmr.msra.gmra.mxu1 %v875_v5  ;;  %667 = vmatmul.bf16.vlgmr.msra.gmra.mxu2 %v871_v4 }
  0x61   : > { %681 = vmatmul.bf16.vlgmr.msra.gmra.mxu3 %v875_v5 }
  0xdc   : > { %v640_v7 = vpop.f32.mrf.mxu0 }
  0xdd   : > { %v654_v9 = vpop.f32.mrf.mxu1 }
  0xde   : > { %v655_v10 = vadd.f32 %v654_v9, %v640_v7 }
  0xe0   : > { %v708_v11 = vadd.f32 %v704_v8, %v655_v10 }
  0xe2   : > { %712 = vst [vmem:[%s393_s27] sm:$0xff] %v708_v11 }
  0xe3   : > { %v668_v12 = vpop.f32.mrf.mxu2 }
  0xe4   : > { %v682_v14 = vpop.f32.mrf.mxu3  ;;  %v642_v15 = vpop.f32.mrf.mxu0 }
  0xe5   : > { %v683_v16 = vadd.f32 %v682_v14, %v668_v12  ;;  %v656_v17 = vpop.f32.mrf.mxu1 }
  0xe6   : > { %v657_v18 = vadd.f32 %v656_v17, %v642_v15 }
  0xe7   : > { %v709_v19 = vadd.f32 %v705_v13, %v683_v16 }
  0xe8   : > { %v710_v20 = vadd.f32 %v704_v8, %v657_v18 }
  0xe9   : > { %713 = vst [vmem:[%s393_s27 + $0x8] sm:$0xff] %v709_v19  ;;  %v741_v25 = vld [vmem:[%s393_s27] sm:$0xff] (%p1180_p6) }
  0xea   : > { %714 = vst [vmem:[%s393_s27 + $0x10] sm:$0xff] %v710_v20 }
  0xeb   : > { %v670_v21 = vpop.f32.mrf.mxu2  ;;  %742 = vst [vmem:[%s728_s30] sm:$0xff] (%p1180_p6), %v741_v25 }
  0xec   : > { %v684_v22 = vpop.f32.mrf.mxu3 }
  0xed   : > { %v685_v23 = vadd.f32 %v684_v22, %v670_v21  ;;  %722 = sbr.rel (!%p1180_p6) target bundleno = 250 (0xfa), region = 82 }
  0xef   : > { %v711_v24 = vadd.f32 %v705_v13, %v685_v23 }
  0xf0   : > { %v743_v26 = vld [vmem:[%s393_s27 + $0x8] sm:$0xff] (%p1180_p6) }
  0xf1   : > { %715 = vst [vmem:[%s393_s27 + $0x18] sm:$0xff] %v711_v24  ;;  %v745_v27 = vld [vmem:[%s393_s27 + $0x10] sm:$0xff] (%p1180_p6) }
  0xf2   : > { %744 = vst [vmem:[%s728_s30 + $0x8] sm:$0xff] %v743_v26 }
  0xf3   : > { %746 = vst [vmem:[%s728_s30 + $0x20] sm:$0xff] %v745_v27 }
  0xf8   : > { %v747_v28 = vld [vmem:[%s393_s27 + $0x18] sm:$0xff] }
  0xf9   : > { %748 = vst [vmem:[%s728_s30 + $0x28] sm:$0xff] %v747_v28 }
  0xfa PF: > { %s13_s16 = sadd.s32 1, %s1123_s16   ;;  %s1376_s12 = smov %s1111_s13 }
  0xfb   : > { %p10_p12 = scmp.ge.s32.totalorder %s13_s16, 4   ;;  %s1377_s13 = smov %s1185_s22 }
  0xfc   : > { %s1378_s14 = smov %s1119_s15  ;;  %s1379_s15 = smov %s1381_s17 }
  0xfd   :  { %12 = sbr.rel (!%p10_p12) target bundleno = 3 (0x3), region = 142 }

// kernel: resnet_forward.24
= control target key start
LH: loop header
LB: loop body
LE: loop exit
PB: predicated region body
PF: predicated region fallthrough
CT: control target
= control target key end

     0   :  { %s2458_s0 = inlined_call_operand.vmem [shape: bf16[16,4608], index: 0, kind: input, shape index: {}]   ;;  %s2459_s1 = inlined_call_operand.vmem [shape: bf16[4608,512], index: 1, kind: input, shape index: {}]   ;;  %s2460_s2 = inlined_call_operand.vmem [shape: f32[1,512], index: 2, kind: input, shape index: {}]   ;;  %s2461_s3 = inlined_call_operand.vmem [shape: bf16[16,512], index: 3, kind: input, shape index: {}]   ;;  %s2462_s4 = inlined_call_operand.vmem [shape: f32[16,512], index: 4, kind: output, shape index: {}]  }
   0x1   :  { %2465 = sst [smem:[#allocation9_spill]] %s2458_s0 }
   0x2   :  { %s1964_s15 = smov 0   ;;  %s1966_s16 = smov 0  }
   0x3   :  { %s1968_s17 = smov 0   ;;  %s1970_s18 = smov 0  }
   0x4   :  { %s1972_s19 = smov 0   ;;  %s1974_s20 = smov 0  }
   0x5   :  { %s1976_s21 = smov 0   ;;  %s1978_s22 = smov 0  }
   0x6   :  { %s1980_s23 = smov 0   ;;  %s1982_s24 = smov 0  }
   0x7   :  { %s1984_s25 = smov 0  }
   0x8 LB: > { %s1389_s26 = sadd.s32 4294967295, %s1936_s25   ;;  %s26_s27 = sadd.s32 1, %s1928_s23  ;;  %s1936_s25 = sphi %s1984_s25, %s14_s25   ;;  %s1932_s24 = sphi %s1982_s24, %s2484_s24   ;;  %s1928_s23 = sphi %s1980_s23, %s2483_s23   ;;  %s1924_s22 = sphi %s1978_s22, %s2482_s22   ;;  %s1920_s21 = sphi %s1976_s21, %s2481_s21   ;;  %s1916_s20 = sphi %s1974_s20, %s2480_s20   ;;  %s1912_s19 = sphi %s1972_s19, %s2479_s19   ;;  %s1908_s18 = sphi %s1970_s18, %s2478_s18   ;;  %s1904_s17 = sphi %s1968_s17, %s2477_s17   ;;  %s1900_s16 = sphi %s1966_s16, %s2476_s16   ;;  %s1896_s15 = sphi %s1964_s15, %s2475_s15  }
   0x9   : > { %p27_p0 = scmp.ge.s32.totalorder %s26_s27, 9  ;;  %s29_s28 = sadd.s32 1, %s1932_s24 }
   0xa   : > { %s42_s29 = sadd.s32 1, %s1916_s20  ;;  %p49_p1 = scmp.ne.s32.totalorder %s1916_s20, %s1912_s19 }
   0xb   : > { %s2486_s27 = smov (%p27_p0, %s26_s27), 0  ;;  %s2488_s28 = smov (!%p27_p0, %s29_s28), %s1932_s24 }
   0xc   : > { %2466 = sst [smem:[#allocation7_spill]] %s2486_s27  ;;  %s38_s30 = ssub.s32 %s1928_s23, %s2486_s27 }
   0xd   : > { %p50_p2 = scmp.eq.s32.totalorder %s1936_s25, 0  ;;  %p31_p3 = scmp.ge.s32.totalorder %s2488_s28, 2 }
   0xe   : > { %p40_p4 = scmp.eq.s32.totalorder %s38_s30, 0  ;;  %s70_s6 = sadd.s32 1, %s1908_s18 }
   0xf   : > { %p2033_p5 = por %p50_p2, %p49_p1  ;;  %s2490_s28 = smov (%p31_p3, %s2488_s28), 0 }
  0x10   : > { %2468 = sst [smem:[#allocation8_spill]] %s2490_s28  ;;  %s66_s8 = ssub.s32 %s1932_s24, %s2490_s28 }
  0x11   : > { %s2041_s7 = scalar_select %p40_p4, %s1916_s20, %s42_s29  }
  0x12   : > { %p77_p6 = scmp.ne.s32.totalorder %s1908_s18, %s1904_s17  ;;  %s67_s9 = sor.u32 %s66_s8, %s38_s30 }
  0x13   : > { %p122_p7 = scmp.eq.s32.totalorder %s66_s8, 0  ;;  %p68_p8 = scmp.eq.s32.totalorder %s67_s9, 0 }
  0x14   : > { %p2049_p9 = por %p77_p6, %p50_p2  ;;  %s124_s11 = sadd.s32 1, %s1900_s16 }
  0x15   : > { %p131_p10 = scmp.ne.s32.totalorder %s1900_s16, %s1896_s15  ;;  %p163_p12 = scmp.eq.s32.totalorder %s1389_s26, 17 }
  0x16   : > { %s2057_s12 = scalar_select %p68_p8, %s1908_s18, %s70_s6  }
  0x17   : > { %s2060_s13 = scalar_select %p122_p7, %s1900_s16, %s124_s11  }
  0x18   : > { %p2064_p11 = por %p131_p10, %p50_p2  ;;  %p2068_p13 = por %p163_p12, %p131_p10 }
  0x19   : > { %p1392_p0 = scmp.ge.s32.totalorder %s1936_s25, 18 }
  0x1b   : > { %185 = sbr.rel (%p1392_p0) target bundleno = 123 (0x7b), region = 16 }
  0x20   : > { %188 = sbr.rel (!%p2033_p5) target bundleno = 46 (0x2e), region = 20  ;;  %s190_s30 = sand.u32 (%p2033_p5), 1, %s1916_s20  }
  0x21   : > { %s1689_s6 = sshll.u32 (%p2033_p5), %s1928_s23, 4  ;;  %s1393_s8 = sshll.u32 (%p2033_p5), %s190_s30, 5 }
  0x22   : > { %s2472_s0 = sld [smem:[#allocation9_spill]] (%p2033_p5)  ;;  %s192_s26 = scalar_lea.vmem (%p2033_p5), [#allocation3], %s1393_s8 }
  0x28   : > { %s198_s28 = scalar_lea.vmem %s2472_s0, %s1689_s6 }
  0x29   : > { %v211_v0 = vld [vmem:[%s198_s28] sm:$0xff]  ;;  %v213_v1 = vld [vmem:[%s198_s28 + $0x8] sm:$0xff]  ;;  %v215_v2 = vld [vmem:[%s198_s28 + $0x90] sm:$0xff] }
  0x2a   : > { %212 = vst [vmem:[%s192_s26] sm:$0xff] %v211_v0  ;;  %v217_v3 = vld [vmem:[%s198_s28 + $0x98] sm:$0xff] }
  0x2b   : > { %214 = vst [vmem:[%s192_s26 + $0x8] sm:$0xff] %v213_v1 }
  0x2c   : > { %216 = vst [vmem:[%s192_s26 + $0x10] sm:$0xff] %v215_v2 }
  0x2d   : > { %218 = vst [vmem:[%s192_s26 + $0x18] sm:$0xff] %v217_v3 }
  0x2e PF: > { %224 = sbr.rel (!%p2049_p9) target bundleno = 117 (0x75), region = 43  ;;  %s226_s5 = sand.u32 (%p2049_p9), 1, %s1908_s18  }
  0x2f   : > { %s1398_s30 = sshll.u32 (%p2049_p9), %s1932_s24, 1  ;;  %s1396_s9 = sshll.u32 (%p2049_p9), %s226_s5, 9 }
  0x30   : > { %s1690_s6 = sshll.u32 (%p2049_p9), %s1928_s23, 8  ;;  %s2093_s10 = scalar_lea.vmem (%p2049_p9), [#allocation4], %s1396_s9 }
  0x31   : > { %s232_s11 = sadd.s32 (%p2049_p9), %s1690_s6, %s1398_s30 }
  0x32   : > { %s1400_s0 = sshll.u32 (%p2049_p9), %s232_s11, 2 }
  0x33   : > { %s2088_s28 = scalar_lea.vmem %s2459_s1, %s1400_s0 }
  0x34   : > { %v389_v4 = vld [vmem:[%s2088_s28] sm:$0xff]  ;;  %v391_v5 = vld [vmem:[%s2088_s28 + $0x10] sm:$0xff] }
  0x35   : > { %v393_v6 = vld [vmem:[%s2088_s28 + $0x20] sm:$0xff]  ;;  %390 = vst [vmem:[%s2093_s10] sm:$0xff] %v389_v4  ;;  %v395_v7 = vld [vmem:[%s2088_s28 + $0x30] sm:$0xff] }
  0x36   : > { %392 = vst [vmem:[%s2093_s10 + $0x8] sm:$0xff] %v391_v5  ;;  %v397_v8 = vld [vmem:[%s2088_s28 + $0x40] sm:$0xff]  ;;  %v399_v9 = vld [vmem:[%s2088_s28 + $0x50] sm:$0xff] }
  0x37   : > { %394 = vst [vmem:[%s2093_s10 + $0x10] sm:$0xff] %v393_v6  ;;  %v401_v10 = vld [vmem:[%s2088_s28 + $0x60] sm:$0xff]  ;;  %v403_v11 = vld [vmem:[%s2088_s28 + $0x70] sm:$0xff] }
  0x38   : > { %396 = vst [vmem:[%s2093_s10 + $0x18] sm:$0xff] %v395_v7  ;;  %v405_v12 = vld [vmem:[%s2088_s28 + $0x80] sm:$0xff]  ;;  %v407_v13 = vld [vmem:[%s2088_s28 + $0x90] sm:$0xff] }
  0x39   : > { %398 = vst [vmem:[%s2093_s10 + $0x20] sm:$0xff] %v397_v8  ;;  %v409_v14 = vld [vmem:[%s2088_s28 + $0xa0] sm:$0xff]  ;;  %v411_v15 = vld [vmem:[%s2088_s28 + $0xb0] sm:$0xff] }
  0x3a   : > { %400 = vst [vmem:[%s2093_s10 + $0x28] sm:$0xff] %v399_v9  ;;  %v413_v16 = vld [vmem:[%s2088_s28 + $0xc0] sm:$0xff]  ;;  %v415_v17 = vld [vmem:[%s2088_s28 + $0xd0] sm:$0xff] }
  0x3b   : > { %402 = vst [vmem:[%s2093_s10 + $0x30] sm:$0xff] %v401_v10  ;;  %v417_v18 = vld [vmem:[%s2088_s28 + $0xe0] sm:$0xff]  ;;  %v419_v19 = vld [vmem:[%s2088_s28 + $0xf0] sm:$0xff] }
  0x3c   : > { %404 = vst [vmem:[%s2093_s10 + $0x38] sm:$0xff] %v403_v11  ;;  %v421_v20 = vld [vmem:[%s2088_s28 + $0x100] sm:$0xff]  ;;  %v423_v21 = vld [vmem:[%s2088_s28 + $0x110] sm:$0xff] }
  0x3d   : > { %406 = vst [vmem:[%s2093_s10 + $0x40] sm:$0xff] %v405_v12  ;;  %v425_v22 = vld [vmem:[%s2088_s28 + $0x120] sm:$0xff]  ;;  %v427_v23 = vld [vmem:[%s2088_s28 + $0x130] sm:$0xff] }
  0x3e   : > { %408 = vst [vmem:[%s2093_s10 + $0x48] sm:$0xff] %v407_v13  ;;  %v429_v24 = vld [vmem:[%s2088_s28 + $0x140] sm:$0xff]  ;;  %v431_v25 = vld [vmem:[%s2088_s28 + $0x150] sm:$0xff] }
  0x3f   : > { %410 = vst [vmem:[%s2093_s10 + $0x50] sm:$0xff] %v409_v14  ;;  %v433_v26 = vld [vmem:[%s2088_s28 + $0x160] sm:$0xff]  ;;  %v435_v27 = vld [vmem:[%s2088_s28 + $0x170] sm:$0xff] }
  0x40   : > { %412 = vst [vmem:[%s2093_s10 + $0x58] sm:$0xff] %v411_v15  ;;  %v437_v28 = vld [vmem:[%s2088_s28 + $0x180] sm:$0xff]  ;;  %v439_v29 = vld [vmem:[%s2088_s28 + $0x190] sm:$0xff] }
  0x41   : > { %414 = vst [vmem:[%s2093_s10 + $0x60] sm:$0xff] %v413_v16  ;;  %v441_v30 = vld [vmem:[%s2088_s28 + $0x1a0] sm:$0xff]  ;;  %v443_v31 = vld [vmem:[%s2088_s28 + $0x1b0] sm:$0xff] }
  0x42   : > { %416 = vst [vmem:[%s2093_s10 + $0x68] sm:$0xff] %v415_v17  ;;  %v445_v32 = vld [vmem:[%s2088_s28 + $0x1c0] sm:$0xff]  ;;  %v447_v33 = vld [vmem:[%s2088_s28 + $0x1d0] sm:$0xff] }
  0x43   : > { %418 = vst [vmem:[%s2093_s10 + $0x70] sm:$0xff] %v417_v18  ;;  %v449_v34 = vld [vmem:[%s2088_s28 + $0x1e0] sm:$0xff]  ;;  %v451_v35 = vld [vmem:[%s2088_s28 + $0x1f0] sm:$0xff] }
  0x44   : > { %420 = vst [vmem:[%s2093_s10 + $0x78] sm:$0xff] %v419_v19  ;;  %v453_v36 = vld [vmem:[%s2088_s28 + $0x200] sm:$0xff]  ;;  %v455_v37 = vld [vmem:[%s2088_s28 + $0x210] sm:$0xff] }
  0x45   : > { %422 = vst [vmem:[%s2093_s10 + $0x80] sm:$0xff] %v421_v20  ;;  %v457_v38 = vld [vmem:[%s2088_s28 + $0x220] sm:$0xff]  ;;  %v459_v39 = vld [vmem:[%s2088_s28 + $0x230] sm:$0xff] }
  0x46   : > { %424 = vst [vmem:[%s2093_s10 + $0x88] sm:$0xff] %v423_v21  ;;  %v461_v40 = vld [vmem:[%s2088_s28 + $0x240] sm:$0xff]  ;;  %v463_v41 = vld [vmem:[%s2088_s28 + $0x250] sm:$0xff] }
  0x47   : > { %426 = vst [vmem:[%s2093_s10 + $0x90] sm:$0xff] %v425_v22  ;;  %v465_v42 = vld [vmem:[%s2088_s28 + $0x260] sm:$0xff]  ;;  %v467_v43 = vld [vmem:[%s2088_s28 + $0x270] sm:$0xff] }
  0x48   : > { %428 = vst [vmem:[%s2093_s10 + $0x98] sm:$0xff] %v427_v23  ;;  %v469_v44 = vld [vmem:[%s2088_s28 + $0x280] sm:$0xff]  ;;  %v471_v45 = vld [vmem:[%s2088_s28 + $0x290] sm:$0xff] }
  0x49   : > { %430 = vst [vmem:[%s2093_s10 + $0xa0] sm:$0xff] %v429_v24  ;;  %v473_v46 = vld [vmem:[%s2088_s28 + $0x2a0] sm:$0xff]  ;;  %v475_v47 = vld [vmem:[%s2088_s28 + $0x2b0] sm:$0xff] }
  0x4a   : > { %432 = vst [vmem:[%s2093_s10 + $0xa8] sm:$0xff] %v431_v25  ;;  %v477_v48 = vld [vmem:[%s2088_s28 + $0x2c0] sm:$0xff]  ;;  %v479_v49 = vld [vmem:[%s2088_s28 + $0x2d0] sm:$0xff] }
  0x4b   : > { %434 = vst [vmem:[%s2093_s10 + $0xb0] sm:$0xff] %v433_v26  ;;  %v481_v50 = vld [vmem:[%s2088_s28 + $0x2e0] sm:$0xff]  ;;  %v483_v51 = vld [vmem:[%s2088_s28 + $0x2f0] sm:$0xff] }
  0x4c   : > { %436 = vst [vmem:[%s2093_s10 + $0xb8] sm:$0xff] %v435_v27  ;;  %v485_v52 = vld [vmem:[%s2088_s28 + $0x300] sm:$0xff]  ;;  %v487_v53 = vld [vmem:[%s2088_s28 + $0x310] sm:$0xff] }
  0x4d   : > { %438 = vst [vmem:[%s2093_s10 + $0xc0] sm:$0xff] %v437_v28  ;;  %v489_v54 = vld [vmem:[%s2088_s28 + $0x320] sm:$0xff]  ;;  %v491_v55 = vld [vmem:[%s2088_s28 + $0x330] sm:$0xff] }
  0x4e   : > { %440 = vst [vmem:[%s2093_s10 + $0xc8] sm:$0xff] %v439_v29  ;;  %v493_v56 = vld [vmem:[%s2088_s28 + $0x340] sm:$0xff]  ;;  %v495_v57 = vld [vmem:[%s2088_s28 + $0x350] sm:$0xff] }
  0x4f   : > { %442 = vst [vmem:[%s2093_s10 + $0xd0] sm:$0xff] %v441_v30  ;;  %v497_v58 = vld [vmem:[%s2088_s28 + $0x360] sm:$0xff]  ;;  %v499_v59 = vld [vmem:[%s2088_s28 + $0x370] sm:$0xff] }
  0x50   : > { %444 = vst [vmem:[%s2093_s10 + $0xd8] sm:$0xff] %v443_v31  ;;  %v501_v60 = vld [vmem:[%s2088_s28 + $0x380] sm:$0xff]  ;;  %v503_v61 = vld [vmem:[%s2088_s28 + $0x390] sm:$0xff] }
  0x51   : > { %446 = vst [vmem:[%s2093_s10 + $0xe0] sm:$0xff] %v445_v32  ;;  %v505_v62 = vld [vmem:[%s2088_s28 + $0x3a0] sm:$0xff]  ;;  %v507_v63 = vld [vmem:[%s2088_s28 + $0x3b0] sm:$0xff] }
  0x52   : > { %448 = vst [vmem:[%s2093_s10 + $0xe8] sm:$0xff] %v447_v33  ;;  %v509_v0 = vld [vmem:[%s2088_s28 + $0x3c0] sm:$0xff]  ;;  %v511_v1 = vld [vmem:[%s2088_s28 + $0x3d0] sm:$0xff] }
  0x53   : > { %450 = vst [vmem:[%s2093_s10 + $0xf0] sm:$0xff] %v449_v34  ;;  %v513_v2 = vld [vmem:[%s2088_s28 + $0x3e0] sm:$0xff]  ;;  %v515_v3 = vld [vmem:[%s2088_s28 + $0x3f0] sm:$0xff] }
  0x54   : > { %452 = vst [vmem:[%s2093_s10 + $0xf8] sm:$0xff] %v451_v35 }
  0x55   : > { %454 = vst [vmem:[%s2093_s10 + $0x100] sm:$0xff] %v453_v36 }
  0x56   : > { %456 = vst [vmem:[%s2093_s10 + $0x108] sm:$0xff] %v455_v37 }
  0x57   : > { %458 = vst [vmem:[%s2093_s10 + $0x110] sm:$0xff] %v457_v38 }
  0x58   : > { %460 = vst [vmem:[%s2093_s10 + $0x118] sm:$0xff] %v459_v39 }
  0x59   : > { %462 = vst [vmem:[%s2093_s10 + $0x120] sm:$0xff] %v461_v40 }
  0x5a   : > { %464 = vst [vmem:[%s2093_s10 + $0x128] sm:$0xff] %v463_v41 }
  0x5b   : > { %466 = vst [vmem:[%s2093_s10 + $0x130] sm:$0xff] %v465_v42 }
  0x5c   : > { %468 = vst [vmem:[%s2093_s10 + $0x138] sm:$0xff] %v467_v43 }
  0x5d   : > { %470 = vst [vmem:[%s2093_s10 + $0x140] sm:$0xff] %v469_v44 }
  0x5e   : > { %472 = vst [vmem:[%s2093_s10 + $0x148] sm:$0xff] %v471_v45 }
  0x5f   : > { %474 = vst [vmem:[%s2093_s10 + $0x150] sm:$0xff] %v473_v46 }
  0x60   : > { %476 = vst [vmem:[%s2093_s10 + $0x158] sm:$0xff] %v475_v47 }
  0x61   : > { %478 = vst [vmem:[%s2093_s10 + $0x160] sm:$0xff] %v477_v48 }
  0x62   : > { %480 = vst [vmem:[%s2093_s10 + $0x168] sm:$0xff] %v479_v49 }
  0x63   : > { %482 = vst [vmem:[%s2093_s10 + $0x170] sm:$0xff] %v481_v50 }
  0x64   : > { %484 = vst [vmem:[%s2093_s10 + $0x178] sm:$0xff] %v483_v51 }
  0x65   : > { %486 = vst [vmem:[%s2093_s10 + $0x180] sm:$0xff] %v485_v52 }
  0x66   : > { %488 = vst [vmem:[%s2093_s10 + $0x188] sm:$0xff] %v487_v53 }
  0x67   : > { %490 = vst [vmem:[%s2093_s10 + $0x190] sm:$0xff] %v489_v54 }
  0x68   : > { %492 = vst [vmem:[%s2093_s10 + $0x198] sm:$0xff] %v491_v55 }
  0x69   : > { %494 = vst [vmem:[%s2093_s10 + $0x1a0] sm:$0xff] %v493_v56 }
  0x6a   : > { %496 = vst [vmem:[%s2093_s10 + $0x1a8] sm:$0xff] %v495_v57 }
  0x6b   : > { %498 = vst [vmem:[%s2093_s10 + $0x1b0] sm:$0xff] %v497_v58 }
  0x6c   : > { %500 = vst [vmem:[%s2093_s10 + $0x1b8] sm:$0xff] %v499_v59 }
  0x6d   : > { %502 = vst [vmem:[%s2093_s10 + $0x1c0] sm:$0xff] %v501_v60 }
  0x6e   : > { %504 = vst [vmem:[%s2093_s10 + $0x1c8] sm:$0xff] %v503_v61 }
  0x6f   : > { %506 = vst [vmem:[%s2093_s10 + $0x1d0] sm:$0xff] %v505_v62 }
  0x70   : > { %508 = vst [vmem:[%s2093_s10 + $0x1d8] sm:$0xff] %v507_v63 }
  0x71   : > { %510 = vst [vmem:[%s2093_s10 + $0x1e0] sm:$0xff] %v509_v0 }
  0x72   : > { %512 = vst [vmem:[%s2093_s10 + $0x1e8] sm:$0xff] %v511_v1 }
  0x73   : > { %514 = vst [vmem:[%s2093_s10 + $0x1f0] sm:$0xff] %v513_v2 }
  0x74   : > { %516 = vst [vmem:[%s2093_s10 + $0x1f8] sm:$0xff] %v515_v3 }
  0x75 PF: > { %530 = sbr.rel (!%p2064_p11) target bundleno = 123 (0x7b), region = 85  ;;  %s532_s0 = sand.u32 (%p2064_p11), 1, %s1900_s16  }
  0x76   : > { %s1691_s27 = sshll.u32 (%p2064_p11), %s1932_s24, 3  ;;  %s1401_s26 = sshll.u32 (%p2064_p11), %s532_s0, 4 }
  0x77   : > { %s540_s9 = scalar_lea.vmem (%p2064_p11), %s2461_s3, %s1691_s27  ;;  %s534_s6 = scalar_lea.vmem (%p2064_p11), [#allocation5], %s1401_s26 }
  0x78   : > { %v571_v4 = vld [vmem:[%s540_s9] sm:$0xff] (%p2064_p11)  ;;  %v573_v5 = vld [vmem:[%s540_s9 + $0x10] sm:$0xff] (%p2064_p11) }
  0x79   : > { %572 = vst [vmem:[%s534_s6] sm:$0xff] (%p2064_p11), %v571_v4 }
  0x7a   : > { %574 = vst [vmem:[%s534_s6 + $0x8] sm:$0xff] %v573_v5 }
  0x7b PF: > { %p1404_p1 = scmp.ge.s32.totalorder %s1936_s25, 1  ;;  %p579_p2 = scmp.lt.s32.totalorder %s1936_s25, 19 }
  0x7d   : > { %p580_p3 = pnand %p1404_p1, %p579_p2 }
  0x7e   : > { %s586_s14 = sand.u32 (!%p580_p3), 1, %s1912_s19   ;;  %s593_s11 = sand.u32 (!%p580_p3), 1, %s1904_s17  }
  0x7f   : > { %583 = sbr.rel (%p580_p3) target bundleno = 383 (0x17f), region = 123  ;;  %s1405_s8 = sshll.u32 (!%p580_p3), %s586_s14, 5 }
  0x80   : > { %s1406_s28 = sshll.u32 (!%p580_p3), %s593_s11, 9  ;;  %s600_s10 = sand.u32 (!%p580_p3), 1, %s1896_s15  }
  0x81   : > { %s1409_s0 = sshll.u32 (!%p580_p3), %s1924_s22, 1  ;;  %s2233_s27 = sshll.u32 (!%p580_p3), %s600_s10, 4 }
  0x82   : > { %s1408_s26 = sshll.u32 (!%p580_p3), %s600_s10, 5  ;;  %p641_p4 = scmp.lt.s32.totalorder (!%p580_p3), %s1409_s0, 3 }
  0x83   : > { %s2241_s6 = scalar_lea.vmem (!%p580_p3), [#allocation3], %s1405_s8  ;;  %s2243_s19 = scalar_lea.vmem (!%p580_p3), [#allocation4], %s1406_s28 }
  0x84   : > { %s2492_s0 = smov (!%p641_p4, %s1409_s0), 3  ;;  %s602_s17 = scalar_lea.vmem [#allocation5], %s2233_s27 }
  0x85   : > { %s643_s9 = scalar_lea.vmem %s2460_s2, %s2492_s0  ;;  %s2246_s14 = scalar_lea.vmem [#allocation6], %s1408_s26 }
  0x86   : > { %p1410_p5 = scmp.ne.s32.totalorder %s1920_s21, 0 }
  0x88   : > { %652 = sbr.rel (%p1410_p5) target bundleno = 146 (0x92), region = 139 }
  0x8d   : > { %v1938_v6 = vmov 0.0  }
  0x8e   : > { %653 = vst [vmem:[#allocation2 + $0x10] sm:$0xff] %v1938_v6 }
  0x8f   : > { %654 = vst [vmem:[#allocation2] sm:$0xff] %v1938_v6 }
  0x90   : > { %655 = vst [vmem:[#allocation2 + $0x18] sm:$0xff] %v1938_v6 }
  0x91   : > { %656 = vst [vmem:[#allocation2 + $0x8] sm:$0xff] %v1938_v6 }
  0x92 PF: > { %v1485_v7 = vld [vmem:[%s2243_s19 + $0x70] sm:$0xf]  ;;  %v1711_v8 = vld [vmem:[%s2243_s19 + $0x74] sm:$0xf0]  ;;  %v1477_v18 = vld [vmem:[%s2243_s19 + $0x60] sm:$0xf] }
  0x93   : > { %v1549_v9 = vld [vmem:[%s2243_s19 + $0xf0] sm:$0xf]  ;;  %v1486_v10 = vor.u32 %v1711_v8, %v1485_v7  ;;  %v1727_v11 = vld [vmem:[%s2243_s19 + $0xf4] sm:$0xf0]  ;;  %v1709_v20 = vld [vmem:[%s2243_s19 + $0x64] sm:$0xf0] }
  0x94   : > { %v1613_v12 = vld [vmem:[%s2243_s19 + $0x170] sm:$0xf]  ;;  %v1743_v13 = vld [vmem:[%s2243_s19 + $0x174] sm:$0xf0]  ;;  %v1550_v14 = vor.u32 %v1727_v11, %v1549_v9  ;;  %v1541_v21 = vld [vmem:[%s2243_s19 + $0xe0] sm:$0xf]  ;;  %v1478_v23 = vor.u32 %v1709_v20, %v1477_v18 }
  0x95   : > { %v1614_v15 = vor.u32 %v1743_v13, %v1613_v12  ;;  %v1677_v16 = vld [vmem:[%s2243_s19 + $0x1f0] sm:$0xf]  ;;  %v1759_v17 = vld [vmem:[%s2243_s19 + $0x1f4] sm:$0xf0]  ;;  %1069 = vmatpush.bf16.msra.mxu0 %v1486_v10  ;;  %v1725_v22 = vld [vmem:[%s2243_s19 + $0xe4] sm:$0xf0] }
  0x96   : > { %v1678_v19 = vor.u32 %v1759_v17, %v1677_v16  ;;  %1083 = vmatpush.bf16.msra.mxu1 %v1550_v14  ;;  %v1542_v24 = vor.u32 %v1725_v22, %v1541_v21  ;;  %v1605_v25 = vld [vmem:[%s2243_s19 + $0x160] sm:$0xf]  ;;  %v1741_v26 = vld [vmem:[%s2243_s19 + $0x164] sm:$0xf0]  ;;  %v1469_v30 = vld [vmem:[%s2243_s19 + $0x50] sm:$0xf] }
  0x97   : > { %1097 = vmatpush.bf16.msra.mxu2 %v1614_v15  ;;  %v1669_v27 = vld [vmem:[%s2243_s19 + $0x1e0] sm:$0xf]  ;;  %v1606_v28 = vor.u32 %v1741_v26, %v1605_v25  ;;  %v1757_v29 = vld [vmem:[%s2243_s19 + $0x1e4] sm:$0xf0]  ;;  %v1707_v31 = vld [vmem:[%s2243_s19 + $0x54] sm:$0xf0] }
  0x98   : > { %1111 = vmatpush.bf16.msra.mxu3 %v1678_v19  ;;  %v1670_v32 = vor.u32 %v1757_v29, %v1669_v27  ;;  %v1533_v33 = vld [vmem:[%s2243_s19 + $0xd0] sm:$0xf]  ;;  %v1723_v34 = vld [vmem:[%s2243_s19 + $0xd4] sm:$0xf0]  ;;  %v1470_v36 = vor.u32 %v1707_v31, %v1469_v30  ;;  %v1461_v42 = vld [vmem:[%s2243_s19 + $0x40] sm:$0xf] }
  0x99   : > { %v1597_v35 = vld [vmem:[%s2243_s19 + $0x150] sm:$0xf]  ;;  %1070 = vmatpush.bf16.msra.mxu0 %v1478_v23  ;;  %v1739_v37 = vld [vmem:[%s2243_s19 + $0x154] sm:$0xf0]  ;;  %v1534_v40 = vor.u32 %v1723_v34, %v1533_v33  ;;  %v1705_v43 = vld [vmem:[%s2243_s19 + $0x44] sm:$0xf0] }
  0x9a   : > { %v1661_v38 = vld [vmem:[%s2243_s19 + $0x1d0] sm:$0xf]  ;;  %v1755_v39 = vld [vmem:[%s2243_s19 + $0x1d4] sm:$0xf0]  ;;  %1084 = vmatpush.bf16.msra.mxu1 %v1542_v24  ;;  %v1598_v41 = vor.u32 %v1739_v37, %v1597_v35  ;;  %v1525_v44 = vld [vmem:[%s2243_s19 + $0xc0] sm:$0xf]  ;;  %v1462_v51 = vor.u32 %v1705_v43, %v1461_v42 }
  0x9b   : > { %1098 = vmatpush.bf16.msra.mxu2 %v1606_v28  ;;  %v1662_v45 = vor.u32 %v1755_v39, %v1661_v38  ;;  %v1721_v46 = vld [vmem:[%s2243_s19 + $0xc4] sm:$0xf0]  ;;  %v1589_v47 = vld [vmem:[%s2243_s19 + $0x140] sm:$0xf]  ;;  %v1453_v54 = vld [vmem:[%s2243_s19 + $0x30] sm:$0xf] }
  0x9c   : > { %1112 = vmatpush.bf16.msra.mxu3 %v1670_v32  ;;  %v1737_v48 = vld [vmem:[%s2243_s19 + $0x144] sm:$0xf0]  ;;  %v1653_v49 = vld [vmem:[%s2243_s19 + $0x1c0] sm:$0xf]  ;;  %v1526_v52 = vor.u32 %v1721_v46, %v1525_v44  ;;  %v1703_v55 = vld [vmem:[%s2243_s19 + $0x34] sm:$0xf0] }
  0x9d   : > { %v1753_v50 = vld [vmem:[%s2243_s19 + $0x1c4] sm:$0xf0]  ;;  %1071 = vmatpush.bf16.msra.mxu0 %v1470_v36  ;;  %v1590_v53 = vor.u32 %v1737_v48, %v1589_v47  ;;  %v1517_v56 = vld [vmem:[%s2243_s19 + $0xb0] sm:$0xf]  ;;  %v1719_v58 = vld [vmem:[%s2243_s19 + $0xb4] sm:$0xf0]  ;;  %v1454_v63 = vor.u32 %v1703_v55, %v1453_v54 }
  0x9e   : > { %1085 = vmatpush.bf16.msra.mxu1 %v1534_v40  ;;  %v1654_v57 = vor.u32 %v1753_v50, %v1653_v49  ;;  %v1581_v59 = vld [vmem:[%s2243_s19 + $0x130] sm:$0xf]  ;;  %v1735_v60 = vld [vmem:[%s2243_s19 + $0x134] sm:$0xf0]  ;;  %v1518_v0 = vor.u32 %v1719_v58, %v1517_v56  ;;  %v1445_v2 = vld [vmem:[%s2243_s19 + $0x20] sm:$0xf] }
  0x9f   : > { %1099 = vmatpush.bf16.msra.mxu2 %v1598_v41  ;;  %v1645_v61 = vld [vmem:[%s2243_s19 + $0x1b0] sm:$0xf]  ;;  %v1751_v62 = vld [vmem:[%s2243_s19 + $0x1b4] sm:$0xf0]  ;;  %v1582_v1 = vor.u32 %v1735_v60, %v1581_v59  ;;  %v1701_v3 = vld [vmem:[%s2243_s19 + $0x24] sm:$0xf0] }
  0xa0   : > { %1113 = vmatpush.bf16.msra.mxu3 %v1662_v45  ;;  %v1509_v4 = vld [vmem:[%s2243_s19 + $0xa0] sm:$0xf]  ;;  %v1646_v5 = vor.u32 %v1751_v62, %v1645_v61  ;;  %v1717_v6 = vld [vmem:[%s2243_s19 + $0xa4] sm:$0xf0]  ;;  %v1446_v11 = vor.u32 %v1701_v3, %v1445_v2  ;;  %v1437_v14 = vld [vmem:[%s2243_s19 + $0x10] sm:$0xf] }
  0xa1   : > { %1072 = vmatpush.bf16.msra.mxu0 %v1462_v51  ;;  %v1573_v7 = vld [vmem:[%s2243_s19 + $0x120] sm:$0xf]  ;;  %v1733_v8 = vld [vmem:[%s2243_s19 + $0x124] sm:$0xf0]  ;;  %v1510_v12 = vor.u32 %v1717_v6, %v1509_v4  ;;  %v1699_v15 = vld [vmem:[%s2243_s19 + $0x14] sm:$0xf0] }
  0xa2   : > { %1086 = vmatpush.bf16.msra.mxu1 %v1526_v52  ;;  %v1637_v9 = vld [vmem:[%s2243_s19 + $0x1a0] sm:$0xf]  ;;  %v1749_v10 = vld [vmem:[%s2243_s19 + $0x1a4] sm:$0xf0]  ;;  %v1574_v13 = vor.u32 %v1733_v8, %v1573_v7  ;;  %v1501_v16 = vld [vmem:[%s2243_s19 + $0x90] sm:$0xf]  ;;  %v1438_v24 = vor.u32 %v1699_v15, %v1437_v14 }
  0xa3   : > { %1100 = vmatpush.bf16.msra.mxu2 %v1590_v53  ;;  %v1638_v17 = vor.u32 %v1749_v10, %v1637_v9  ;;  %v1715_v18 = vld [vmem:[%s2243_s19 + $0x94] sm:$0xf0]  ;;  %v1565_v19 = vld [vmem:[%s2243_s19 + $0x110] sm:$0xf]  ;;  %v1429_v23 = vld [vmem:[%s2243_s19] sm:$0xf] }
  0xa4   : > { %1114 = vmatpush.bf16.msra.mxu3 %v1654_v57  ;;  %v1731_v20 = vld [vmem:[%s2243_s19 + $0x114] sm:$0xf0]  ;;  %v1629_v21 = vld [vmem:[%s2243_s19 + $0x190] sm:$0xf]  ;;  %v1697_v25 = vld [vmem:[%s2243_s19 + $0x4] sm:$0xf0]  ;;  %v1502_v28 = vor.u32 %v1715_v18, %v1501_v16 }
  0xa5   : > { %1073 = vmatpush.bf16.msra.mxu0 %v1454_v63  ;;  %v1747_v22 = vld [vmem:[%s2243_s19 + $0x194] sm:$0xf0]  ;;  %v1493_v26 = vld [vmem:[%s2243_s19 + $0x80] sm:$0xf]  ;;  %v1713_v27 = vld [vmem:[%s2243_s19 + $0x84] sm:$0xf0]  ;;  %v1566_v29 = vor.u32 %v1731_v20, %v1565_v19  ;;  %v1430_v40 = vor.u32 %v1697_v25, %v1429_v23 }
  0xa6   : > { %1087 = vmatpush.bf16.msra.mxu1 %v1518_v0  ;;  %v1557_v30 = vld [vmem:[%s2243_s19 + $0x100] sm:$0xf]  ;;  %v1729_v31 = vld [vmem:[%s2243_s19 + $0x104] sm:$0xf0]  ;;  %v1630_v33 = vor.u32 %v1747_v22, %v1629_v21  ;;  %v1710_v35 = vld [vmem:[%s2243_s19 + $0x74] sm:$0xf]  ;;  %v1494_v44 = vor.u32 %v1713_v27, %v1493_v26 }
  0xa7   : > { %1101 = vmatpush.bf16.msra.mxu2 %v1582_v1  ;;  %v1621_v32 = vld [vmem:[%s2243_s19 + $0x180] sm:$0xf]  ;;  %v1745_v34 = vld [vmem:[%s2243_s19 + $0x184] sm:$0xf0]  ;;  %v1487_v36 = vld [vmem:[%s2243_s19 + $0x78] sm:$0xf0]  ;;  %v1558_v45 = vor.u32 %v1729_v31, %v1557_v30 }
  0xa8   : > { %1115 = vmatpush.bf16.msra.mxu3 %v1646_v5  ;;  %v1726_v37 = vld [vmem:[%s2243_s19 + $0xf4] sm:$0xf]  ;;  %v1551_v38 = vld [vmem:[%s2243_s19 + $0xf8] sm:$0xf0]  ;;  %v1708_v46 = vld [vmem:[%s2243_s19 + $0x64] sm:$0xf]  ;;  %v1622_v50 = vor.u32 %v1745_v34, %v1621_v32  ;;  %v1490_v51 = vor.u32 %v1710_v35, %v1487_v36 }
  0xa9   : > { %1074 = vmatpush.bf16.msra.mxu0 %v1446_v11  ;;  %v1742_v39 = vld [vmem:[%s2243_s19 + $0x174] sm:$0xf]  ;;  %v1615_v41 = vld [vmem:[%s2243_s19 + $0x178] sm:$0xf0]  ;;  %v1479_v47 = vld [vmem:[%s2243_s19 + $0x68] sm:$0xf0]  ;;  %v1554_v56 = vor.u32 %v1726_v37, %v1551_v38 }
  0xaa   : > { %1088 = vmatpush.bf16.msra.mxu1 %v1510_v12  ;;  %v1758_v42 = vld [vmem:[%s2243_s19 + $0x1f4] sm:$0xf]  ;;  %v1679_v43 = vld [vmem:[%s2243_s19 + $0x1f8] sm:$0xf0]  ;;  %v1421_v48 = vld [vmem:[%s2241_s6 + $0x8] sm:$0xf]  ;;  %v1618_v57 = vor.u32 %v1742_v39, %v1615_v41  ;;  %v1482_v6 = vor.u32 %v1708_v46, %v1479_v47 }
  0xab   : > { %1102 = vmatpush.bf16.msra.mxu2 %v1574_v13  ;;  %v1695_v49 = vld [vmem:[%s2241_s6 + $0x14] sm:$0xf0]  ;;  %v1724_v52 = vld [vmem:[%s2243_s19 + $0xe4] sm:$0xf]  ;;  %v1543_v53 = vld [vmem:[%s2243_s19 + $0xe8] sm:$0xf0]  ;;  %v1682_v61 = vor.u32 %v1758_v42, %v1679_v43 }
  0xac   : > { %1116 = vmatpush.bf16.msra.mxu3 %v1638_v17  ;;  %v1740_v54 = vld [vmem:[%s2243_s19 + $0x164] sm:$0xf]  ;;  %v1607_v55 = vld [vmem:[%s2243_s19 + $0x168] sm:$0xf0]  ;;  %v1423_v59 = vld [vmem:[%s2241_s6 + $0x18] sm:$0xf0]  ;;  %v2332_v62 = vor.u32 %v1695_v49, %v1421_v48  ;;  %v1546_v8 = vor.u32 %v1724_v52, %v1543_v53 }
  0xad   : > { %1075 = vmatpush.bf16.msra.mxu0 %v1438_v24  ;;  %v1693_v58 = vld [vmem:[%s2241_s6 + $0xc] sm:$0xf]  ;;  %v1413_v60 = vld [vmem:[%s2241_s6] sm:$0xf]  ;;  %v1694_v63 = vld [vmem:[%s2241_s6 + $0xc] sm:$0xf0]  ;;  %v1610_v9 = vor.u32 %v1740_v54, %v1607_v55 }
  0xae   : > { %1089 = vmatpush.bf16.msra.mxu1 %v1502_v28  ;;  %v1692_v0 = vld [vmem:[%s2241_s6 + $0x4] sm:$0xf]  ;;  %v1415_v1 = vld [vmem:[%s2241_s6 + $0x10] sm:$0xf0]  ;;  %v1671_v3 = vld [vmem:[%s2243_s19 + $0x1e8] sm:$0xf0]  ;;  %v2339_v4 = vor.u32 %v1693_v58, %v1423_v59  ;;  %v2341_v5 = vor.u32 %v1694_v63, %v1413_v60 }
  0xaf   : > { %1103 = vmatpush.bf16.msra.mxu2 %v1566_v29  ;;  %v1756_v2 = vld [vmem:[%s2243_s19 + $0x1e4] sm:$0xf]  ;;  %v2343_v7 = vor.u32 %v1692_v0, %v1415_v1  ;;  %v1706_v10 = vld [vmem:[%s2243_s19 + $0x54] sm:$0xf]  ;;  %v1471_v11 = vld [vmem:[%s2243_s19 + $0x58] sm:$0xf0] }
  0xb0   : > { %1117 = vmatpush.bf16.msra.mxu3 %v1630_v33  ;;  %v1722_v12 = vld [vmem:[%s2243_s19 + $0xd4] sm:$0xf]  ;;  %v1674_v13 = vor.u32 %v1756_v2, %v1671_v3  ;;  %v1535_v14 = vld [vmem:[%s2243_s19 + $0xd8] sm:$0xf0]  ;;  %v1474_v19 = vor.u32 %v1706_v10, %v1471_v11  ;;  %v1704_v22 = vld [vmem:[%s2243_s19 + $0x44] sm:$0xf] }
  0xb1   : > { %1076 = vmatpush.bf16.msra.mxu0 %v1430_v40  ;;  %v1738_v15 = vld [vmem:[%s2243_s19 + $0x154] sm:$0xf]  ;;  %v1599_v16 = vld [vmem:[%s2243_s19 + $0x158] sm:$0xf0]  ;;  %v1538_v20 = vor.u32 %v1722_v12, %v1535_v14  ;;  %v1463_v23 = vld [vmem:[%s2243_s19 + $0x48] sm:$0xf0] }
  0xb2   : > { %1090 = vmatpush.bf16.msra.mxu1 %v1494_v44  ;;  %v1754_v17 = vld [vmem:[%s2243_s19 + $0x1d4] sm:$0xf]  ;;  %v1663_v18 = vld [vmem:[%s2243_s19 + $0x1d8] sm:$0xf0]  ;;  %v1602_v21 = vor.u32 %v1738_v15, %v1599_v16  ;;  %v1720_v24 = vld [vmem:[%s2243_s19 + $0xc4] sm:$0xf]  ;;  %v1466_v31 = vor.u32 %v1704_v22, %v1463_v23 }
  0xb3   : > { %1104 = vmatpush.bf16.msra.mxu2 %v1558_v45  ;;  %v1666_v25 = vor.u32 %v1754_v17, %v1663_v18  ;;  %v1527_v26 = vld [vmem:[%s2243_s19 + $0xc8] sm:$0xf0]  ;;  %v1736_v27 = vld [vmem:[%s2243_s19 + $0x144] sm:$0xf]  ;;  %v1702_v34 = vld [vmem:[%s2243_s19 + $0x34] sm:$0xf] }
  0xb4   : > { %1118 = vmatpush.bf16.msra.mxu3 %v1622_v50  ;;  %1077 = vmatmul.bf16.vlgmr.msra.gmra.mxu0 %v2341_v5  ;;  %v1591_v28 = vld [vmem:[%s2243_s19 + $0x148] sm:$0xf0]  ;;  %v1752_v29 = vld [vmem:[%s2243_s19 + $0x1c4] sm:$0xf]  ;;  %v1530_v32 = vor.u32 %v1720_v24, %v1527_v26  ;;  %v1455_v35 = vld [vmem:[%s2243_s19 + $0x38] sm:$0xf0] }
  0xb5   : > { %1125 = vmatpush.bf16.msrb.mxu0 %v1490_v51  ;;  %1091 = vmatmul.bf16.vlgmr.msra.gmra.mxu1 %v2343_v7  ;;  %v1655_v30 = vld [vmem:[%s2243_s19 + $0x1c8] sm:$0xf0]  ;;  %v1594_v33 = vor.u32 %v1736_v27, %v1591_v28  ;;  %v1718_v36 = vld [vmem:[%s2243_s19 + $0xb4] sm:$0xf]  ;;  %v1519_v38 = vld [vmem:[%s2243_s19 + $0xb8] sm:$0xf0]  ;;  %v1458_v43 = vor.u32 %v1702_v34, %v1455_v35 }
  0xb6   : > { %1139 = vmatpush.bf16.msrb.mxu1 %v1554_v56  ;;  %1105 = vmatmul.bf16.vlgmr.msra.gmra.mxu2 %v2332_v62  ;;  %v1658_v37 = vor.u32 %v1752_v29, %v1655_v30  ;;  %v1734_v39 = vld [vmem:[%s2243_s19 + $0x134] sm:$0xf]  ;;  %v1583_v40 = vld [vmem:[%s2243_s19 + $0x138] sm:$0xf0]  ;;  %v1522_v44 = vor.u32 %v1718_v36, %v1519_v38  ;;  %v1700_v46 = vld [vmem:[%s2243_s19 + $0x24] sm:$0xf] }
  0xb7   : > { %1153 = vmatpush.bf16.msrb.mxu2 %v1618_v57  ;;  %1119 = vmatmul.bf16.vlgmr.msra.gmra.mxu3 %v2339_v4  ;;  %v1750_v41 = vld [vmem:[%s2243_s19 + $0x1b4] sm:$0xf]  ;;  %v1647_v42 = vld [vmem:[%s2243_s19 + $0x1b8] sm:$0xf0]  ;;  %v1586_v45 = vor.u32 %v1734_v39, %v1583_v40  ;;  %v1447_v47 = vld [vmem:[%s2243_s19 + $0x28] sm:$0xf0] }
  0xb8   : > { %1167 = vmatpush.bf16.msrb.mxu3 %v1682_v61  ;;  %v1716_v48 = vld [vmem:[%s2243_s19 + $0xa4] sm:$0xf]  ;;  %v1650_v49 = vor.u32 %v1750_v41, %v1647_v42  ;;  %v1511_v50 = vld [vmem:[%s2243_s19 + $0xa8] sm:$0xf0]  ;;  %v1450_v55 = vor.u32 %v1700_v46, %v1447_v47  ;;  %v1698_v58 = vld [vmem:[%s2243_s19 + $0x14] sm:$0xf] }
  0xb9   : > { %1126 = vmatpush.bf16.msrb.mxu0 %v1482_v6  ;;  %v1732_v51 = vld [vmem:[%s2243_s19 + $0x124] sm:$0xf]  ;;  %v1575_v52 = vld [vmem:[%s2243_s19 + $0x128] sm:$0xf0]  ;;  %v1514_v56 = vor.u32 %v1716_v48, %v1511_v50  ;;  %v1439_v59 = vld [vmem:[%s2243_s19 + $0x18] sm:$0xf0] }
  0xba   : > { %1140 = vmatpush.bf16.msrb.mxu1 %v1546_v8  ;;  %v1748_v53 = vld [vmem:[%s2243_s19 + $0x1a4] sm:$0xf]  ;;  %v1639_v54 = vld [vmem:[%s2243_s19 + $0x1a8] sm:$0xf0]  ;;  %v1578_v57 = vor.u32 %v1732_v51, %v1575_v52  ;;  %v1714_v60 = vld [vmem:[%s2243_s19 + $0x94] sm:$0xf]  ;;  %v1442_v6 = vor.u32 %v1698_v58, %v1439_v59 }
  0xbb   : > { %1154 = vmatpush.bf16.msrb.mxu2 %v1610_v9  ;;  %v1642_v61 = vor.u32 %v1748_v53, %v1639_v54  ;;  %v1503_v63 = vld [vmem:[%s2243_s19 + $0x98] sm:$0xf0]  ;;  %v1730_v0 = vld [vmem:[%s2243_s19 + $0x114] sm:$0xf]  ;;  %v1696_v10 = vld [vmem:[%s2243_s19 + $0x4] sm:$0xf] }
  0xbc   : > { %1168 = vmatpush.bf16.msrb.mxu3 %v1674_v13  ;;  %v1567_v1 = vld [vmem:[%s2243_s19 + $0x118] sm:$0xf0]  ;;  %v1746_v2 = vld [vmem:[%s2243_s19 + $0x194] sm:$0xf]  ;;  %v1506_v8 = vor.u32 %v1714_v60, %v1503_v63  ;;  %v1431_v11 = vld [vmem:[%s2243_s19 + $0x8] sm:$0xf0] }
  0xbd   : > { %1127 = vmatpush.bf16.msrb.mxu0 %v1474_v19  ;;  %v1631_v3 = vld [vmem:[%s2243_s19 + $0x198] sm:$0xf0]  ;;  %v1570_v9 = vor.u32 %v1730_v0, %v1567_v1  ;;  %v1712_v12 = vld [vmem:[%s2243_s19 + $0x84] sm:$0xf]  ;;  %v1495_v14 = vld [vmem:[%s2243_s19 + $0x88] sm:$0xf0]  ;;  %v1434_v19 = vor.u32 %v1696_v10, %v1431_v11 }
  0xbe   : > { %1141 = vmatpush.bf16.msrb.mxu1 %v1538_v20  ;;  %v1634_v13 = vor.u32 %v1746_v2, %v1631_v3  ;;  %v1728_v15 = vld [vmem:[%s2243_s19 + $0x104] sm:$0xf]  ;;  %v1559_v16 = vld [vmem:[%s2243_s19 + $0x108] sm:$0xf0]  ;;  %v1498_v20 = vor.u32 %v1712_v12, %v1495_v14  ;;  %v657_v29 = vld [vmem:[#allocation2 + $0x10] sm:$0xff]  ;;  %p1683_p6 = scmp.ne.s32.totalorder %s1920_s21, 8 }
  0xbf   : > { %1155 = vmatpush.bf16.msrb.mxu2 %v1602_v21  ;;  %v1744_v17 = vld [vmem:[%s2243_s19 + $0x184] sm:$0xf]  ;;  %v1623_v18 = vld [vmem:[%s2243_s19 + $0x188] sm:$0xf0]  ;;  %v1562_v21 = vor.u32 %v1728_v15, %v1559_v16  ;;  %v659_v36 = vld [vmem:[#allocation2 + $0x18] sm:$0xff] }
  0xc0   : > { %1169 = vmatpush.bf16.msrb.mxu3 %v1666_v25  ;;  %v1626_v22 = vor.u32 %v1744_v17, %v1623_v18  ;;  %v660_v51 = vld [vmem:[#allocation2 + $0x8] sm:$0xff] }
  0xc1   : > { %1128 = vmatpush.bf16.msrb.mxu0 %v1466_v31 }
  0xc2   : > { %1142 = vmatpush.bf16.msrb.mxu1 %v1530_v32 }
  0xc3   : > { %1156 = vmatpush.bf16.msrb.mxu2 %v1594_v33 }
  0xc4   : > { %1170 = vmatpush.bf16.msrb.mxu3 %v1658_v37 }
  0xc5   : > { %1129 = vmatpush.bf16.msrb.mxu0 %v1458_v43  ;;  %v658_v43 = vld [vmem:[#allocation2] sm:$0xff] }
  0xc6   : > { %1143 = vmatpush.bf16.msrb.mxu1 %v1522_v44 }
  0xc7   : > { %1157 = vmatpush.bf16.msrb.mxu2 %v1586_v45 }
  0xc8   : > { %1171 = vmatpush.bf16.msrb.mxu3 %v1650_v49 }
  0xc9   : > { %1130 = vmatpush.bf16.msrb.mxu0 %v1450_v55 }
  0xca   : > { %1144 = vmatpush.bf16.msrb.mxu1 %v1514_v56 }
  0xcb   : > { %1158 = vmatpush.bf16.msrb.mxu2 %v1578_v57 }
  0xcc   : > { %1172 = vmatpush.bf16.msrb.mxu3 %v1642_v61 }
  0xcd   : > { %1131 = vmatpush.bf16.msrb.mxu0 %v1442_v6 }
  0xce   : > { %1145 = vmatpush.bf16.msrb.mxu1 %v1506_v8 }
  0xcf   : > { %1159 = vmatpush.bf16.msrb.mxu2 %v1570_v9 }
  0xd0   : > { %1173 = vmatpush.bf16.msrb.mxu3 %v1634_v13 }
  0xd1   : > { %1132 = vmatpush.bf16.msrb.mxu0 %v1434_v19 }
  0xd2   : > { %1146 = vmatpush.bf16.msrb.mxu1 %v1498_v20 }
  0xd3   : > { %1160 = vmatpush.bf16.msrb.mxu2 %v1562_v21 }
  0xd4   : > { %1174 = vmatpush.bf16.msrb.mxu3 %v1626_v22  ;;  %1133 = vmatmul.bf16.vlgmr.msrb.gmra.mxu0 %v2341_v5 }
  0xd5   : > { %1147 = vmatmul.bf16.vlgmr.msrb.gmra.mxu1 %v2343_v7 }
  0xd6   : > { %1161 = vmatmul.bf16.vlgmr.msrb.gmra.mxu2 %v2332_v62 }
  0xd7   : > { %1175 = vmatmul.bf16.vlgmr.msrb.gmra.mxu3 %v2339_v4 }
 0x131   : > { %v1078_v23 = vpop.f32.mrf.mxu0 }
 0x132   : > { %v1092_v24 = vpop.f32.mrf.mxu1 }
 0x133   : > { %v1093_v25 = vadd.f32 %v1092_v24, %v1078_v23 }
 0x139   : > { %v1106_v26 = vpop.f32.mrf.mxu2  ;;  %v1080_v31 = vpop.f32.mrf.mxu0 }
 0x13a   : > { %v1107_v27 = vadd.f32 %v1106_v26, %v1093_v25  ;;  %v1120_v28 = vpop.f32.mrf.mxu3  ;;  %v1094_v32 = vpop.f32.mrf.mxu1 }
 0x13b   : > { %v1095_v34 = vadd.f32 %v1094_v32, %v1080_v31 }
 0x13c   : > { %v1121_v30 = vadd.f32 %v1120_v28, %v1107_v27 }
 0x13e   : > { %v1181_v33 = vadd.f32 %v1121_v30, %v657_v29 }
 0x140   : > { %1185 = vst [vmem:[#allocation2 + $0x10] sm:$0xff] %v1181_v33 }
 0x141   : > { %v1108_v5 = vpop.f32.mrf.mxu2 }
 0x142   : > { %v1109_v35 = vadd.f32 %v1108_v5, %v1095_v34  ;;  %v1122_v7 = vpop.f32.mrf.mxu3 }
 0x144   : > { %v1123_v62 = vadd.f32 %v1122_v7, %v1109_v35 }
 0x146   : > { %v1183_v37 = vadd.f32 %v1123_v62, %v659_v36 }
 0x148   : > { %1187 = vst [vmem:[#allocation2 + $0x18] sm:$0xff] %v1183_v37 }
 0x151   : > { %v1134_v4 = vpop.f32.mrf.mxu0 }
 0x152   : > { %v1148_v38 = vpop.f32.mrf.mxu1 }
 0x153   : > { %v1149_v39 = vadd.f32 %v1148_v38, %v1134_v4 }
 0x159   : > { %v1162_v40 = vpop.f32.mrf.mxu2  ;;  %v1136_v45 = vpop.f32.mrf.mxu0 }
 0x15a   : > { %v1163_v41 = vadd.f32 %v1162_v40, %v1149_v39  ;;  %v1176_v42 = vpop.f32.mrf.mxu3  ;;  %v1150_v46 = vpop.f32.mrf.mxu1 }
 0x15b   : > { %v1151_v48 = vadd.f32 %v1150_v46, %v1136_v45 }
 0x15c   : > { %v1177_v44 = vadd.f32 %v1176_v42, %v1163_v41 }
 0x15e   : > { %v1182_v47 = vadd.f32 %v1177_v44, %v658_v43 }
 0x160   : > { %1186 = vst [vmem:[#allocation2] sm:$0xff] %v1182_v47 }
 0x161   : > { %v1164_v49 = vpop.f32.mrf.mxu2 }
 0x162   : > { %v1165_v50 = vadd.f32 %v1164_v49, %v1151_v48  ;;  %v1178_v52 = vpop.f32.mrf.mxu3 }
 0x164   : > { %v1179_v53 = vadd.f32 %v1178_v52, %v1165_v50  ;;  %1192 = sbr.rel (%p1683_p6) target bundleno = 375 (0x177), region = 143 }
 0x166   : > { %v1184_v54 = vadd.f32 %v1179_v53, %v660_v51 }
 0x168   : > { %1188 = vst [vmem:[#allocation2 + $0x8] sm:$0xff] %v1184_v54 }
 0x169   : > { %v1193_v55 = vld [vmem:[#allocation2 + $0x10] sm:$0xff]  ;;  %v1197_v56 = vld [vmem:[%s643_s9] sm:$0x3]  ;;  %v1195_v0 = vld [vmem:[#allocation2 + $0x18] sm:$0xff] }
 0x16a   : > { %v1207_v57 = vld [vmem:[%s602_s17] sm:$0xff]  ;;  %v1199_v58 = vperm.slane %v1197_v56, 0  ;;  %v1200_v61 = vperm.slane %v1197_v56, 1  ;;  %v1208_v1 = vld [vmem:[%s602_s17 + $0x8] sm:$0xff] }
 0x16b   : > { %v1209_v59 = vunpack.c.l.bf16 %v1207_v57  ;;  %v1194_v60 = vld [vmem:[#allocation2] sm:$0xff]  ;;  %v1210_v63 = vunpack.c.h.bf16 %v1207_v57  ;;  %v1211_v2 = vunpack.c.l.bf16 %v1208_v1  ;;  %v1212_v6 = vunpack.c.h.bf16 %v1208_v1 }
 0x16c   : > { %v1203_v8 = vadd.f32 %v1199_v58, %v1193_v55  ;;  %v1204_v9 = vadd.f32 %v1200_v61, %v1194_v60  ;;  %v1205_v10 = vadd.f32 %v1199_v58, %v1195_v0 }
 0x16e   : > { %v1213_v12 = vadd.f32 %v1209_v59, %v1203_v8  ;;  %v1214_v13 = vadd.f32 %v1210_v63, %v1204_v9  ;;  %v1215_v14 = vadd.f32 %v1211_v2, %v1205_v10 }
 0x16f   : > { %v1196_v3 = vld [vmem:[#allocation2 + $0x8] sm:$0xff] }
 0x170   : > { %v1206_v11 = vadd.f32 %v1200_v61, %v1196_v3  ;;  %v1217_v16 = vmax.f32 %v1213_v12, 0.0  ;;  %v1218_v17 = vmax.f32 %v1214_v13, 0.0  ;;  %v1219_v18 = vmax.f32 %v1215_v14, 0.0 }
 0x172   : > { %v1216_v15 = vadd.f32 %v1212_v6, %v1206_v11  ;;  %1221 = vst [vmem:[%s2246_s14] sm:$0xff] %v1217_v16 }
 0x173   : > { %1222 = vst [vmem:[%s2246_s14 + $0x8] sm:$0xff] %v1218_v17 }
 0x174   : > { %v1220_v19 = vmax.f32 %v1216_v15, 0.0  ;;  %1223 = vst [vmem:[%s2246_s14 + $0x10] sm:$0xff] %v1219_v18 }
 0x176   : > { %1224 = vst [vmem:[%s2246_s14 + $0x18] sm:$0xff] %v1220_v19 }
 0x177 PF: > { %1231 = sbr.rel (!%p2068_p13) target bundleno = 383 (0x17f), region = 147  ;;  %s1760_s21 = sshll.u32 (%p2068_p13), %s1924_s22, 4 }
 0x178   : > { %s1237_s10 = scalar_lea.vmem (%p2068_p13), %s2462_s4, %s1760_s21 }
 0x179   : > { %v1250_v20 = vld [vmem:[%s2246_s14] sm:$0xff] (%p2068_p13) }
 0x17a   : > { %v1252_v21 = vld [vmem:[%s2246_s14 + $0x8] sm:$0xff] (%p2068_p13)  ;;  %1251 = vst [vmem:[%s1237_s10] sm:$0xff] (%p2068_p13), %v1250_v20 }
 0x17b   : > { %v1254_v22 = vld [vmem:[%s2246_s14 + $0x10] sm:$0xff] (%p2068_p13)  ;;  %1253 = vst [vmem:[%s1237_s10 + $0x8] sm:$0xff] (%p2068_p13), %v1252_v21 }
 0x17c   : > { %1255 = vst [vmem:[%s1237_s10 + $0x20] sm:$0xff] %v1254_v22 }
 0x17d   : > { %v1256_v23 = vld [vmem:[%s2246_s14 + $0x18] sm:$0xff] }
 0x17e   : > { %1257 = vst [vmem:[%s1237_s10 + $0x28] sm:$0xff] %v1256_v23 }
 0x17f PF: > { %s14_s25 = sadd.s32 1, %s1936_s25   ;;  %s2473_s29 = sld [smem:[#allocation7_spill]] }
 0x180   : > { %p11_p7 = scmp.ge.s32.totalorder %s14_s25, 20   ;;  %s2474_s0 = sld [smem:[#allocation8_spill]] }
 0x181   : > { %s2475_s15 = smov %s1900_s16  ;;  %s2476_s16 = smov %s2060_s13 }
 0x182   : > { %s2477_s17 = smov %s1908_s18  ;;  %s2478_s18 = smov %s2057_s12 }
 0x183   : > { %s2479_s19 = smov %s1916_s20  ;;  %s2480_s20 = smov %s2041_s7 }
 0x184   : > { %s2481_s21 = smov %s1928_s23  ;;  %s2482_s22 = smov %s1932_s24 }
 0x185   : > { %s2483_s23 = smov %s2473_s29  ;;  %13 = sbr.rel (!%p11_p7) target bundleno = 8 (0x8), region = 220 }
 0x186   : > { %s2484_s24 = smov %s2474_s0 }

// kernel: resnet_forward.25
= control target key start
LH: loop header
LB: loop body
LE: loop exit
PB: predicated region body
PF: predicated region fallthrough
CT: control target
= control target key end

     0   :  { %s709_s1 = inlined_call_operand.vmem [shape: bf16[512,128], index: 1, kind: input, shape index: {}]   ;;  %s710_s0 = inlined_call_operand.vmem [shape: bf16[16,512], index: 0, kind: input, shape index: {}]   ;;  %s711_s2 = inlined_call_operand.vmem [shape: f32[1,128], index: 2, kind: input, shape index: {}]   ;;  %s712_s3 = inlined_call_operand.vmem [shape: f32[16,128], index: 3, kind: output, shape index: {}]  }
   0x1   :  { %v534_v0 = vld [vmem:[%s709_s1 + $0x38] sm:$0xff]  ;;  %v533_v4 = vld [vmem:[%s709_s1 + $0x30] sm:$0xff]  ;;  %v532_v8 = vld [vmem:[%s709_s1 + $0x28] sm:$0xff] }
   0x2   :  { %v542_v1 = vld [vmem:[%s709_s1 + $0x78] sm:$0xff]  ;;  %302 = vmatpush.bf16.msra.mxu0 %v534_v0  ;;  %v541_v5 = vld [vmem:[%s709_s1 + $0x70] sm:$0xff]  ;;  %v540_v9 = vld [vmem:[%s709_s1 + $0x68] sm:$0xff] }
   0x3   :  { %v550_v2 = vld [vmem:[%s709_s1 + $0xb8] sm:$0xff]  ;;  %316 = vmatpush.bf16.msra.mxu1 %v542_v1  ;;  %v549_v6 = vld [vmem:[%s709_s1 + $0xb0] sm:$0xff]  ;;  %v548_v10 = vld [vmem:[%s709_s1 + $0xa8] sm:$0xff] }
   0x4   :  { %v558_v3 = vld [vmem:[%s709_s1 + $0xf8] sm:$0xff]  ;;  %330 = vmatpush.bf16.msra.mxu2 %v550_v2  ;;  %v557_v7 = vld [vmem:[%s709_s1 + $0xf0] sm:$0xff]  ;;  %v556_v11 = vld [vmem:[%s709_s1 + $0xe8] sm:$0xff] }
   0x5   :  { %344 = vmatpush.bf16.msra.mxu3 %v558_v3  ;;  %v531_v12 = vld [vmem:[%s709_s1 + $0x20] sm:$0xff]  ;;  %v530_v16 = vld [vmem:[%s709_s1 + $0x18] sm:$0xff]  ;;  %v529_v20 = vld [vmem:[%s709_s1 + $0x10] sm:$0xff] }
   0x6   :  { %303 = vmatpush.bf16.msra.mxu0 %v533_v4  ;;  %v539_v13 = vld [vmem:[%s709_s1 + $0x60] sm:$0xff]  ;;  %v538_v17 = vld [vmem:[%s709_s1 + $0x58] sm:$0xff]  ;;  %v537_v21 = vld [vmem:[%s709_s1 + $0x50] sm:$0xff] }
   0x7   :  { %317 = vmatpush.bf16.msra.mxu1 %v541_v5  ;;  %v547_v14 = vld [vmem:[%s709_s1 + $0xa0] sm:$0xff]  ;;  %v546_v18 = vld [vmem:[%s709_s1 + $0x98] sm:$0xff]  ;;  %v545_v22 = vld [vmem:[%s709_s1 + $0x90] sm:$0xff] }
   0x8   :  { %331 = vmatpush.bf16.msra.mxu2 %v549_v6  ;;  %v555_v15 = vld [vmem:[%s709_s1 + $0xe0] sm:$0xff]  ;;  %v554_v19 = vld [vmem:[%s709_s1 + $0xd8] sm:$0xff]  ;;  %v553_v23 = vld [vmem:[%s709_s1 + $0xd0] sm:$0xff] }
   0x9   :  { %345 = vmatpush.bf16.msra.mxu3 %v557_v7  ;;  %v528_v24 = vld [vmem:[%s709_s1 + $0x8] sm:$0xff]  ;;  %v527_v28 = vld [vmem:[%s709_s1] sm:$0xff]  ;;  %v525_v33 = vld [vmem:[%s710_s0 + $0xc] sm:$0xf0] }
   0xa   :  { %304 = vmatpush.bf16.msra.mxu0 %v532_v8  ;;  %v536_v25 = vld [vmem:[%s709_s1 + $0x48] sm:$0xff]  ;;  %v535_v29 = vld [vmem:[%s709_s1 + $0x40] sm:$0xff]  ;;  %v383_v35 = vld [vmem:[%s710_s0 + $0x10] sm:$0xf0] }
   0xb   :  { %318 = vmatpush.bf16.msra.mxu1 %v540_v9  ;;  %v544_v26 = vld [vmem:[%s709_s1 + $0x88] sm:$0xff]  ;;  %v543_v30 = vld [vmem:[%s709_s1 + $0x80] sm:$0xff]  ;;  %v526_v37 = vld [vmem:[%s710_s0 + $0x14] sm:$0xf0] }
   0xc   :  { %332 = vmatpush.bf16.msra.mxu2 %v548_v10  ;;  %v552_v27 = vld [vmem:[%s709_s1 + $0xc8] sm:$0xff]  ;;  %v551_v31 = vld [vmem:[%s709_s1 + $0xc0] sm:$0xff]  ;;  %v391_v39 = vld [vmem:[%s710_s0 + $0x18] sm:$0xf0] }
   0xd   :  { %346 = vmatpush.bf16.msra.mxu3 %v556_v11  ;;  %v381_v32 = vld [vmem:[%s710_s0] sm:$0xf]  ;;  %v523_v34 = vld [vmem:[%s710_s0 + $0x4] sm:$0xf]  ;;  %v389_v36 = vld [vmem:[%s710_s0 + $0x8] sm:$0xf] }
   0xe   :  { %305 = vmatpush.bf16.msra.mxu0 %v531_v12  ;;  %v524_v38 = vld [vmem:[%s710_s0 + $0xc] sm:$0xf]  ;;  %v382_v40 = vor.u32 %v525_v33, %v381_v32  ;;  %v386_v41 = vor.u32 %v523_v34, %v383_v35  ;;  %v390_v42 = vor.u32 %v526_v37, %v389_v36  ;;  %v559_v50 = vld [vmem:[%s711_s2] ss:$0 sm:$0xff] }
   0xf   :  { %319 = vmatpush.bf16.msra.mxu1 %v539_v13  ;;  %v394_v43 = vor.u32 %v524_v38, %v391_v39 }
  0x10   :  { %333 = vmatpush.bf16.msra.mxu2 %v547_v14 }
  0x11   :  { %347 = vmatpush.bf16.msra.mxu3 %v555_v15 }
  0x12   :  { %306 = vmatpush.bf16.msra.mxu0 %v530_v16 }
  0x13   :  { %320 = vmatpush.bf16.msra.mxu1 %v538_v17 }
  0x14   :  { %334 = vmatpush.bf16.msra.mxu2 %v546_v18 }
  0x15   :  { %348 = vmatpush.bf16.msra.mxu3 %v554_v19 }
  0x16   :  { %307 = vmatpush.bf16.msra.mxu0 %v529_v20 }
  0x17   :  { %321 = vmatpush.bf16.msra.mxu1 %v537_v21 }
  0x18   :  { %335 = vmatpush.bf16.msra.mxu2 %v545_v22 }
  0x19   :  { %349 = vmatpush.bf16.msra.mxu3 %v553_v23 }
  0x1a   :  { %308 = vmatpush.bf16.msra.mxu0 %v528_v24 }
  0x1b   :  { %322 = vmatpush.bf16.msra.mxu1 %v536_v25 }
  0x1c   :  { %336 = vmatpush.bf16.msra.mxu2 %v544_v26 }
  0x1d   :  { %350 = vmatpush.bf16.msra.mxu3 %v552_v27 }
  0x1e   :  { %309 = vmatpush.bf16.msra.mxu0 %v527_v28 }
  0x1f   :  { %323 = vmatpush.bf16.msra.mxu1 %v535_v29 }
  0x20   :  { %337 = vmatpush.bf16.msra.mxu2 %v543_v30 }
  0x21   :  { %351 = vmatpush.bf16.msra.mxu3 %v551_v31  ;;  %310 = vmatmul.bf16.vlgmr.msra.gmra.mxu0 %v382_v40 }
  0x22   :  { %324 = vmatmul.bf16.vlgmr.msra.gmra.mxu1 %v386_v41 }
  0x23   :  { %338 = vmatmul.bf16.vlgmr.msra.gmra.mxu2 %v390_v42 }
  0x24   :  { %352 = vmatmul.bf16.vlgmr.msra.gmra.mxu3 %v394_v43 }
  0x9e   :  { %v311_v44 = vpop.f32.mrf.mxu0 }
  0x9f   :  { %v325_v45 = vpop.f32.mrf.mxu1 }
  0xa0   :  { %v326_v46 = vadd.f32 %v325_v45, %v311_v44 }
  0xa6   :  { %v339_v47 = vpop.f32.mrf.mxu2  ;;  %v313_v52 = vpop.f32.mrf.mxu0 }
  0xa7   :  { %v353_v48 = vpop.f32.mrf.mxu3  ;;  %v340_v49 = vadd.f32 %v339_v47, %v326_v46  ;;  %v327_v53 = vpop.f32.mrf.mxu1 }
  0xa8   :  { %v328_v55 = vadd.f32 %v327_v53, %v313_v52 }
  0xa9   :  { %v354_v51 = vadd.f32 %v353_v48, %v340_v49 }
  0xab   :  { %v371_v54 = vadd.f32 %v559_v50, %v354_v51 }
  0xad   :  { %373 = vst [vmem:[%s712_s3] sm:$0xff] %v371_v54 }
  0xae   :  { %v341_v56 = vpop.f32.mrf.mxu2 }
  0xaf   :  { %v342_v57 = vadd.f32 %v341_v56, %v328_v55  ;;  %v355_v58 = vpop.f32.mrf.mxu3 }
  0xb1   :  { %v356_v59 = vadd.f32 %v355_v58, %v342_v57 }
  0xb3   :  { %v372_v60 = vadd.f32 %v559_v50, %v356_v59 }
  0xb5   :  { %374 = vst [vmem:[%s712_s3 + $0x8] sm:$0xff] %v372_v60 }

</bundles_post_ra>
